<compile_context>
chip_gen: v5e
topology: v5e:2x2
jax: 0.10.0
libtpu: 0.0.40
codegen_flags: <defaults>
</compile_context>

<pallas_src>
import numpy as np
import jax
import jax.numpy as jnp
from jax.experimental import pallas as pl
from jax.experimental.pallas import tpu as pltpu

# ---- Module hyper-parameters (the torch module hard-codes 128 frames / 128*16) ----
FRAME_NUM = 128
BLOCK_SIZE = 8                      # non-dense_freq path: repeat([1,1,8]) -> 128
JOINT_NUM = 17
IN_CH = 57                          # trans(3) + velocity(3) + p3ds(51)
LATENT_D = 32
LATENT_D_T = 16                     # declared but unused by encode()/forward stats
FREQ_NUM = 10                       # frequency_num
FREQ_DIM = FREQ_NUM * JOINT_NUM * 3          # 510
FB_DIM = FRAME_NUM * JOINT_NUM * 3           # 6528  (dense_freq=False)
CONV_FEAT = 128 * 16 * 4                     # 8192 = last_layer_dim * 4

_CONV_DEFS = {
    'fc0_1': (64, IN_CH, 2), 'fc0_2': (64, 64, 1), 'fc0_3': (64, 64, 1),
    'pool1_1': (64, 64, 2), 'fc1_1': (64, 64, 1), 'fc1_2': (64, 64, 1),
    'pool2_1': (128, 64, 2), 'fc2_1': (128, 128, 1), 'fc2_2': (128, 128, 1),
}
_CONV_ORDER = ('fc0_1', 'fc0_2', 'fc0_3', 'pool1_1', 'fc1_1', 'fc1_2',
               'pool2_1', 'fc2_1', 'fc2_2')


# ----------------------------- in-kernel helpers -----------------------------------
def _swish(v):
    # x * sigmoid(x); approx reciprocal goes to the EUP slot (free next to MXU work).
    return v * pl.reciprocal(1.0 + jnp.exp(-v), approx=True)


def _edge_masks(n_rows, seq_len):
    # NOTE: rows must be batch-major (row = sample*seq_len + frame) and seq_len a power
    # of two — the pltpu.roll neighbour taps rely on these masks to kill the rows that
    # leak across sample boundaries.
    pos = jax.lax.broadcasted_iota(jnp.int32, (n_rows, 1), 0) & (seq_len - 1)
    return pos == 0, pos == (seq_len - 1)


def _conv_same(x, w_ref, b_ref, cout, first, last):
    """Conv1d k=3, stride=1, pad=1; the 3 taps are fused along the weight N axis.

    x:     (n, Cin) f32, rows ordered batch-major then frame.
    w_ref: (Cin, 3*Cout) bf16; column block k multiplies frame l+k-1.
    b_ref: (1, Cout) f32.
    """
    y = jnp.dot(x.astype(jnp.bfloat16), w_ref[...],
                preferred_element_type=jnp.float32)               # (n, 3*Cout)
    y0, y1, y2 = y[:, :cout], y[:, cout:2 * cout], y[:, 2 * cout:]
    n = y.shape[0]
    prev = jnp.where(first, 0.0, pltpu.roll(y0, 1, axis=0))       # y0 at frame l-1
    nxt = jnp.where(last, 0.0, pltpu.roll(y2, n - 1, axis=0))     # y2 at frame l+1
    return prev + y1 + nxt + b_ref[...]


def _conv_stride2(x_even, x_odd, we_ref, wo_ref, b_ref, cout, first):
    """Conv1d k=3, stride=2, pad=1 computed only on the kept output rows.

    out[m] = x[2m-1]@W0 + x[2m]@W1 + x[2m+1]@W2
           = roll(x_odd@W0, +1)[m] + (x_even@W1)[m] + (x_odd@W2)[m]
    we_ref: (Cin, Cout)   bf16 (tap 1);  wo_ref: (Cin, 2*Cout) bf16 (taps 0 | 2).
    """
    ye = jnp.dot(x_even.astype(jnp.bfloat16), we_ref[...],
                 preferred_element_type=jnp.float32)              # (n, Cout)
    yo = jnp.dot(x_odd.astype(jnp.bfloat16), wo_ref[...],
                 preferred_element_type=jnp.float32)              # (n, 2*Cout)
    y0, y2 = yo[:, :cout], yo[:, cout:]
    prev = jnp.where(first, 0.0, pltpu.roll(y0, 1, axis=0))
    return prev + ye + y2 + b_ref[...]


# ------------------------------- kernel A: conv stack -------------------------------
def _encoder_conv_kernel(xe_ref, xo_ref, ae_ref, ao_ref,
                         w01e, w01o, b01, w02, b02, w03, b03,
                         wp1e, wp1o, bp1, w11, b11, w12, b12,
                         wp2e, wp2o, bp2, w21, b21, w22, b22,
                         out1_ref, out2_ref, out3_ref,
                         v1_scr, v2_scr):
    n0 = xe_ref.shape[0]            # bt*64
    n1 = n0 // 2                    # bt*32
    n2 = n0 // 4                    # bt*16
    # boundary masks, hoisted: one iota per sequence length.
    f0, l0 = _edge_masks(n0, 64)
    f1, l1 = _edge_masks(n1, 32)
    f2, l2 = _edge_masks(n2, 16)

    # attention-scaled even / odd input frames, flattened (bt*64, 57)
    x_e = xe_ref[...] * ae_ref[...]
    x_o = xo_ref[...] * ao_ref[...]

    # ---- block 0 (frames 128 -> 64) ----
    h = _swish(_conv_stride2(x_e, x_o, w01e, w01o, b01, 64, f0))  # (bt*64, 64)
    r = _swish(_conv_same(h, w02, b02, 64, f0, l0))
    r = _swish(_conv_same(r, w03, b03, 64, f0, l0))
    v1_scr[...] = h + r

    # even/odd frame streams re-read from VMEM scratch (no HBM writeback hazard);
    # pack them lane-dense [frame 2p | frame 2p+1] for the bf16 activation output.
    v1e = v1_scr[pl.ds(0, n1, stride=2), :]
    v1o = v1_scr[pl.ds(1, n1, stride=2), :]
    out1_ref[...] = jnp.concatenate([v1e, v1o], axis=-1).astype(out1_ref.dtype)

    # ---- block 1 (64 -> 32) ----
    h = _swish(_conv_stride2(v1e, v1o, wp1e, wp1o, bp1, 64, f1))  # (bt*32, 64)
    r = _swish(_conv_same(h, w11, b11, 64, f1, l1))
    r = _swish(_conv_same(r, w12, b12, 64, f1, l1))
    v2_scr[...] = h + r

    v2e = v2_scr[pl.ds(0, n2, stride=2), :]
    v2o = v2_scr[pl.ds(1, n2, stride=2), :]
    out2_ref[...] = jnp.concatenate([v2e, v2o], axis=-1).astype(out2_ref.dtype)

    # ---- block 2 (32 -> 16) ----
    h = _swish(_conv_stride2(v2e, v2o, wp2e, wp2o, bp2, 128, f2))  # (bt*16, 128)
    r = _swish(_conv_same(h, w21, b21, 128, f2, l2))
    r = _swish(_conv_same(r, w22, b22, 128, f2, l2))
    out3_ref[...] = (h + r).astype(out3_ref.dtype)


def _pick_tile(batch, cap, multiple=1):
    """Largest divisor of `batch` (<= cap, multiple of `multiple`) keeping >=2 grid
    steps when possible (2-TC sharding on v7x)."""
    cands = [t for t in range(1, min(batch, cap) + 1)
             if batch % t == 0 and t % multiple == 0]
    if not cands:
        return batch
    multi = [t for t in cands if batch // t >= 2]
    return max(multi) if multi else max(cands)


def _conv_weight_list(kp):
    ws = []
    for name in _CONV_ORDER:
        if _CONV_DEFS[name][2] == 2:
            ws += [kp[name + '_we'], kp[name + '_wo'], kp[name + '_b']]
        else:
            ws += [kp[name + '_w'], kp[name + '_b']]
    return ws


def _conv_encoder(xe, xo, ae, ao, kp, batch):
    bt = _pick_tile(batch, 32)                                   # batch tile / grid step
    grid = (batch // bt,)
    weights = _conv_weight_list(kp)

    in_specs = ([pl.BlockSpec((bt * 64, IN_CH), lambda b: (b, 0)),
                 pl.BlockSpec((bt * 64, IN_CH), lambda b: (b, 0)),
                 pl.BlockSpec((bt * 64, 1), lambda b: (b, 0)),
                 pl.BlockSpec((bt * 64, 1), lambda b: (b, 0))]
                + [pl.BlockSpec(w.shape, lambda b: (0, 0)) for w in weights])

    out_shape = (
        jax.ShapeDtypeStruct((batch * 32, 128), jnp.bfloat16),   # block-0 act, pair-packed
        jax.ShapeDtypeStruct((batch * 16, 128), jnp.bfloat16),   # block-1 act, pair-packed
        jax.ShapeDtypeStruct((batch * 16, 128), jnp.bfloat16),   # block-2 act
    )
    out_specs = (
        pl.BlockSpec((bt * 32, 128), lambda b: (b, 0)),
        pl.BlockSpec((bt * 16, 128), lambda b: (b, 0)),
        pl.BlockSpec((bt * 16, 128), lambda b: (b, 0)),
    )
    return pl.pallas_call(
        _encoder_conv_kernel,
        out_shape=out_shape,
        grid_spec=pltpu.PrefetchScalarGridSpec(
            num_scalar_prefetch=0,
            grid=grid,
            in_specs=in_specs,
            out_specs=out_specs,
            scratch_shapes=[pltpu.VMEM((bt * 64, 64), jnp.float32),
                            pltpu.VMEM((bt * 32, 64), jnp.float32)]),
        compiler_params=pltpu.CompilerParams(
            dimension_semantics=("parallel",),                   # independent batch tiles
            vmem_limit_bytes=32 * 1024 * 1024,
        ),
    )(xe, xo, ae, ao, *weights)


# ------------------------------- kernel B: fused head -------------------------------
def _head_kernel(xl_ref, xm_ref, xf_ref, fr_ref,
                 wdct_ref, bdct_ref, wl_ref, wm_ref, wf_ref, wq_ref, bml_ref,
                 out_ref):
    ff = _swish(jnp.dot(fr_ref[...].astype(jnp.bfloat16), wdct_ref[...],
                        preferred_element_type=jnp.float32) + bdct_ref[...])   # (bh, 512)
    y = (jnp.dot(xf_ref[...], wf_ref[...], preferred_element_type=jnp.float32)
         + jnp.dot(xl_ref[...], wl_ref[...], preferred_element_type=jnp.float32)
         + jnp.dot(xm_ref[...], wm_ref[...], preferred_element_type=jnp.float32)
         + jnp.dot(ff.astype(jnp.bfloat16), wq_ref[...],
                   preferred_element_type=jnp.float32)
         + bml_ref[...])                                         # (bh, 64) = [mu | logvar]
    # numerically-stable softplus (matches F.softplus(beta=1, threshold=20) within f32)
    sp = jnp.maximum(y, 0.0) + jnp.log(1.0 + jnp.exp(-jnp.abs(y)))
    lane = jax.lax.broadcasted_iota(jnp.int32, y.shape, 1)
    out_ref[...] = jnp.where(lane < LATENT_D, y, sp)


def _head(x_loc, x_mid, x_fin, frequency, kp, batch):
    bh = _pick_tile(batch, 128, multiple=8)                      # 8-row aligned batch tile
    grid = (batch // bh,)
    consts = [kp['wdct'], kp['bdct'], kp['w_loc'], kp['w_mid'], kp['w_fin'],
              kp['w_frq'], kp['b_ml']]
    in_specs = ([pl.BlockSpec((bh, 64 * 64), lambda i: (i, 0)),
                 pl.BlockSpec((bh, 32 * 64), lambda i: (i, 0)),
                 pl.BlockSpec((bh, 16 * 128), lambda i: (i, 0)),
                 pl.BlockSpec((bh, FREQ_DIM), lambda i: (i, 0))]
                + [pl.BlockSpec(w.shape, lambda i: (0, 0)) for w in consts])
    return pl.pallas_call(
        _head_kernel,
        out_shape=jax.ShapeDtypeStruct((batch, 2 * LATENT_D), jnp.float32),
        grid_spec=pltpu.PrefetchScalarGridSpec(
            num_scalar_prefetch=0,
            grid=grid,
            in_specs=in_specs,
            out_specs=pl.BlockSpec((bh, 2 * LATENT_D), lambda i: (i, 0))),
        compiler_params=pltpu.CompilerParams(
            dimension_semantics=("parallel",),
            vmem_limit_bytes=32 * 1024 * 1024,
        ),
    )(x_loc, x_mid, x_fin, frequency, *consts)


# --------------------------------- forward (wrapper) --------------------------------
@jax.jit
def motion_prior_ik_forward(kp, trans, velocity, p3ds, frequency, frequency_block):
    Pin = jnp.concatenate([trans, velocity, p3ds], axis=-1)      # (B, 128, 57)  (N, L, C)
    B = Pin.shape[0]
    # dct_att linear stays hoisted (M=1 matmul with a 3.3 MB weight has no business in
    # the conv grid); the non-dense_freq repeat-x8 is applied here.
    att = jnp.dot(frequency_block, kp['att_w'].T,
                  precision=jax.lax.Precision.HIGHEST) + kp['att_b']     # (B, 16)
    att = jnp.repeat(att[:, :, None], BLOCK_SIZE, axis=2).reshape(B, FRAME_NUM)
    # even/odd frame split (free strided slices in XLA) so the first stride-2 conv only
    # computes the rows it keeps.
    xe = Pin[:, 0::2, :].reshape(B * 64, IN_CH)
    xo = Pin[:, 1::2, :].reshape(B * 64, IN_CH)
    ae = att[:, 0::2].reshape(B * 64, 1)
    ao = att[:, 1::2].reshape(B * 64, 1)

    out1, out2, out3 = _conv_encoder(xe, xo, ae, ao, kp, B)
    # The pair-packed (frame 2p | frame 2p+1) lane layout flattens to row-major (l, c);
    # the torch channel-major .view(B,-1) order is absorbed into the head-weight row
    # permutation (to_kernel_params).  HBM reshapes here are metadata-only.
    x_loc = out1.reshape(B, 64 * 64)                             # (B, 4096) bf16
    x_mid = out2.reshape(B, 32 * 64)                             # (B, 2048) bf16
    x_fin = out3.reshape(B, 16 * 128)                            # (B, 2048) bf16

    # nn.Dropout(p=0.1) is identity at inference time.
    y = _head(x_loc, x_mid, x_fin, frequency, kp, B)             # (B, 64) = [mu | std]
    # TODO(synk): q_z.rsample() and the external `motion_decoder` module are outside this
    # module's parameters; we return the Normal's mean/scale (results['mean'|'std']).
    return y[:, :LATENT_D], y[:, LATENT_D:]


# ------------------------------- deterministic params -------------------------------
def init_torch_params(key):
    keys = iter(jax.random.split(key, 32))

    def w(shape):
        fan_in = int(np.prod(shape[1:]))
        return jax.random.normal(next(keys), shape, jnp.float32) / np.sqrt(fan_in)

    def b(n):
        return 0.01 * jax.random.normal(next(keys), (n,), jnp.float32)

    p = {}
    p['dct_att_w'] = w((FRAME_NUM // BLOCK_SIZE, FB_DIM))        # Linear(6528 -> 16)
    p['dct_att_b'] = b(FRAME_NUM // BLOCK_SIZE)
    for name in _CONV_ORDER:
        co, ci, _ = _CONV_DEFS[name]
        p[name + '_w'] = w((co, ci, 3))                          # torch Conv1d (Cout, Cin, K)
        p[name + '_b'] = b(co)
    p['dct_w'] = w((512, FREQ_DIM))
    p['dct_b'] = b(512)
    p['mu_w'] = w((LATENT_D, CONV_FEAT + 512))
    p['mu_b'] = b(LATENT_D)
    p['lv_w'] = w((LATENT_D, CONV_FEAT + 512))
    p['lv_b'] = b(LATENT_D)
    return p


def to_kernel_params(p):
    kp = {}
    # dct_att stays in XLA (hoisted); keep its torch weights unchanged.
    kp['att_w'] = p['dct_att_w']                                 # (16, 6528) f32
    kp['att_b'] = p['dct_att_b']                                 # (16,)
    # Conv taps (torch (Cout,Cin,K) -> per-tap (Cin,Cout)), tap-fused along N, bf16.
    for name in _CONV_ORDER:
        co, ci, stride = _CONV_DEFS[name]
        w = jnp.transpose(p[name + '_w'], (2, 1, 0))             # (3, Cin, Cout)
        if stride == 2:
            kp[name + '_we'] = w[1].astype(jnp.bfloat16)                         # (Cin, Cout)
            kp[name + '_wo'] = jnp.concatenate([w[0], w[2]], axis=1).astype(jnp.bfloat16)
        else:
            kp[name + '_w'] = jnp.concatenate([w[0], w[1], w[2]], axis=1).astype(jnp.bfloat16)
        kp[name + '_b'] = p[name + '_b'][None, :].astype(jnp.float32)
    kp['wdct'] = p['dct_w'].T.astype(jnp.bfloat16)               # (510, 512)
    kp['bdct'] = p['dct_b'][None, :]

    # Fused mu||logvar head weights, row-permuted from torch channel-major (c, l) flatten
    # order to the kernel's row-major (l, c) flatten order (which the pair-packed lane
    # layout reproduces exactly).
    wml = jnp.concatenate([p['mu_w'], p['lv_w']], axis=0)        # (64, 8704)

    def seg(w2d, C, L):
        # columns indexed c*L + l  ->  rows indexed l*C + c
        return jnp.transpose(w2d.reshape(2 * LATENT_D, C, L), (2, 1, 0)).reshape(
            L * C, 2 * LATENT_D)

    kp['w_fin'] = seg(wml[:, :2048], 128, 16).astype(jnp.bfloat16)        # (2048, 64)
    kp['w_loc'] = seg(wml[:, 2048:6144], 64, 64).astype(jnp.bfloat16)     # (4096, 64)
    kp['w_mid'] = seg(wml[:, 6144:8192], 64, 32).astype(jnp.bfloat16)     # (2048, 64)
    kp['w_frq'] = wml[:, 8192:].T.astype(jnp.bfloat16)                    # (512, 64)
    kp['b_ml'] = jnp.concatenate([p['mu_b'], p['lv_b']])[None, :]         # (1, 64)
    return kp


# ------------------------------- pure-JAX reference ---------------------------------
def reference_forward(p, trans, velocity, p3ds, frequency, frequency_block):
    B = trans.shape[0]
    Pin = jnp.concatenate([trans, velocity, p3ds], axis=-1).reshape(B, FRAME_NUM, -1)
    P = jnp.transpose(Pin, (0, 2, 1))                            # NCL
    att = frequency_block @ p['dct_att_w'].T + p['dct_att_b']    # (B, 16)
    att = jnp.repeat(att[:, :, None], BLOCK_SIZE, axis=2).reshape(B, FRAME_NUM)
    P = P * att[:, None, :]

    def conv(x, name, s):
        y = jax.lax.conv_general_dilated(
            x, p[name + '_w'], (s,), [(1, 1)],
            dimension_numbers=('NCH', 'OIH', 'NCH'),
            precision=jax.lax.Precision.HIGHEST)
        return y + p[name + '_b'][None, :, None]

    sw = lambda v: v / (1.0 + jnp.exp(-v))
    h = sw(conv(P, 'fc0_1', 2))
    r = sw(conv(h, 'fc0_2', 1)); r = sw(conv(r, 'fc0_3', 1)); h = h + r
    x_local = h.reshape(B, -1)
    h = sw(conv(h, 'pool1_1', 2))
    r = sw(conv(h, 'fc1_1', 1)); r = sw(conv(r, 'fc1_2', 1)); h = h + r
    x_mid = h.reshape(B, -1)
    h = sw(conv(h, 'pool2_1', 2))
    r = sw(conv(h, 'fc2_1', 1)); r = sw(conv(r, 'fc2_2', 1)); h = h + r
    x_fin = h.reshape(B, -1)
    X = jnp.concatenate([x_fin, x_local, x_mid], axis=-1)
    ff = sw(jnp.dot(frequency, p['dct_w'].T,
                    precision=jax.lax.Precision.HIGHEST) + p['dct_b'])
    X = jnp.concatenate([X, ff], axis=-1)
    mu = jnp.dot(X, p['mu_w'].T, precision=jax.lax.Precision.HIGHEST) + p['mu_b']
    lv = jnp.dot(X, p['lv_w'].T, precision=jax.lax.Precision.HIGHEST) + p['lv_b']
    std = jnp.where(lv > 20.0, lv, jnp.log1p(jnp.exp(jnp.minimum(lv, 20.0))))
    return mu, std


# --------------------------------------- main ----------------------------------------
if __name__ == "__main__":
    root = jax.random.PRNGKey(0)
    k_param, k_data = jax.random.split(root)
    p = init_torch_params(k_param)
    kp = to_kernel_params(p)

    B = 2
    dk = jax.random.split(k_data, 5)
    trans = jax.random.normal(dk[0], (B, FRAME_NUM, 3), jnp.float32)
    velocity = jax.random.normal(dk[1], (B, FRAME_NUM, 3), jnp.float32)
    p3ds = jax.random.normal(dk[2], (B, FRAME_NUM, JOINT_NUM * 3), jnp.float32)
    frequency = jax.random.normal(dk[3], (B, FREQ_DIM), jnp.float32)
    frequency_block = jax.random.normal(dk[4], (B, FB_DIM), jnp.float32)

    mu, std = motion_prior_ik_forward(kp, trans, velocity, p3ds,
                                      frequency, frequency_block)
    mu, std = jax.block_until_ready((mu, std))

    mu_ref, std_ref = jax.block_until_ready(
        reference_forward(p, trans, velocity, p3ds, frequency, frequency_block))

    # tolerance sized for bf16 MXU inputs (f32 accumulation) through the 10-layer stack
    np.testing.assert_allclose(np.asarray(mu), np.asarray(mu_ref), rtol=5e-2, atol=5e-2)
    np.testing.assert_allclose(np.asarray(std), np.asarray(std_ref), rtol=5e-2, atol=5e-2)
    print("KERNEL_OK")
</pallas_src>

<mosaic_0001>
module attributes {stable_mosaic.version = 11 : i64} {
  func.func @_encoder_conv_kernel(%arg0: i32, %arg1: memref<64x57xf32, #tpu.memory_space<vmem>>, %arg2: memref<64x57xf32, #tpu.memory_space<vmem>>, %arg3: memref<64x1xf32, #tpu.memory_space<vmem>>, %arg4: memref<64x1xf32, #tpu.memory_space<vmem>>, %arg5: memref<57x64xbf16, #tpu.memory_space<vmem>>, %arg6: memref<57x128xbf16, #tpu.memory_space<vmem>>, %arg7: memref<1x64xf32, #tpu.memory_space<vmem>>, %arg8: memref<64x192xbf16, #tpu.memory_space<vmem>>, %arg9: memref<1x64xf32, #tpu.memory_space<vmem>>, %arg10: memref<64x192xbf16, #tpu.memory_space<vmem>>, %arg11: memref<1x64xf32, #tpu.memory_space<vmem>>, %arg12: memref<64x64xbf16, #tpu.memory_space<vmem>>, %arg13: memref<64x128xbf16, #tpu.memory_space<vmem>>, %arg14: memref<1x64xf32, #tpu.memory_space<vmem>>, %arg15: memref<64x192xbf16, #tpu.memory_space<vmem>>, %arg16: memref<1x64xf32, #tpu.memory_space<vmem>>, %arg17: memref<64x192xbf16, #tpu.memory_space<vmem>>, %arg18: memref<1x64xf32, #tpu.memory_space<vmem>>, %arg19: memref<64x128xbf16, #tpu.memory_space<vmem>>, %arg20: memref<64x256xbf16, #tpu.memory_space<vmem>>, %arg21: memref<1x128xf32, #tpu.memory_space<vmem>>, %arg22: memref<128x384xbf16, #tpu.memory_space<vmem>>, %arg23: memref<1x128xf32, #tpu.memory_space<vmem>>, %arg24: memref<128x384xbf16, #tpu.memory_space<vmem>>, %arg25: memref<1x128xf32, #tpu.memory_space<vmem>>, %arg26: memref<32x128xbf16, #tpu.memory_space<vmem>>, %arg27: memref<16x128xbf16, #tpu.memory_space<vmem>>, %arg28: memref<16x128xbf16, #tpu.memory_space<vmem>>, %arg29: memref<64x64xf32, #tpu.memory_space<vmem>>, %arg30: memref<32x64xf32, #tpu.memory_space<vmem>>) attributes {dimension_semantics = [#tpu.dimension_semantics<parallel>], iteration_bounds = array<i64: 2>, scalar_prefetch = 0 : i64, scratch_operands = 2 : i64, tpu.core_type = #tpu.core_type<tc>, window_params = [{transform_indices = @transform_0, window_bounds = array<i64: 64, 57>}, {transform_indices = @transform_1, window_bounds = array<i64: 64, 57>}, {transform_indices = @transform_2, window_bounds = array<i64: 64, 1>}, {transform_indices = @transform_3, window_bounds = array<i64: 64, 1>}, {pipeline_mode = #tpu.pipeline_mode<synchronous>, transform_indices = @transform_4, window_bounds = array<i64: 57, 64>}, {pipeline_mode = #tpu.pipeline_mode<synchronous>, transform_indices = @transform_5, window_bounds = array<i64: 57, 128>}, {pipeline_mode = #tpu.pipeline_mode<synchronous>, transform_indices = @transform_6, window_bounds = array<i64: 1, 64>}, {pipeline_mode = #tpu.pipeline_mode<synchronous>, transform_indices = @transform_7, window_bounds = array<i64: 64, 192>}, {pipeline_mode = #tpu.pipeline_mode<synchronous>, transform_indices = @transform_8, window_bounds = array<i64: 1, 64>}, {pipeline_mode = #tpu.pipeline_mode<synchronous>, transform_indices = @transform_9, window_bounds = array<i64: 64, 192>}, {pipeline_mode = #tpu.pipeline_mode<synchronous>, transform_indices = @transform_10, window_bounds = array<i64: 1, 64>}, {pipeline_mode = #tpu.pipeline_mode<synchronous>, transform_indices = @transform_11, window_bounds = array<i64: 64, 64>}, {pipeline_mode = #tpu.pipeline_mode<synchronous>, transform_indices = @transform_12, window_bounds = array<i64: 64, 128>}, {pipeline_mode = #tpu.pipeline_mode<synchronous>, transform_indices = @transform_13, window_bounds = array<i64: 1, 64>}, {pipeline_mode = #tpu.pipeline_mode<synchronous>, transform_indices = @transform_14, window_bounds = array<i64: 64, 192>}, {pipeline_mode = #tpu.pipeline_mode<synchronous>, transform_indices = @transform_15, window_bounds = array<i64: 1, 64>}, {pipeline_mode = #tpu.pipeline_mode<synchronous>, transform_indices = @transform_16, window_bounds = array<i64: 64, 192>}, {pipeline_mode = #tpu.pipeline_mode<synchronous>, transform_indices = @transform_17, window_bounds = array<i64: 1, 64>}, {pipeline_mode = #tpu.pipeline_mode<synchronous>, transform_indices = @transform_18, window_bounds = array<i64: 64, 128>}, {pipeline_mode = #tpu.pipeline_mode<synchronous>, transform_indices = @transform_19, window_bounds = array<i64: 64, 256>}, {pipeline_mode = #tpu.pipeline_mode<synchronous>, transform_indices = @transform_20, window_bounds = array<i64: 1, 128>}, {pipeline_mode = #tpu.pipeline_mode<synchronous>, transform_indices = @transform_21, window_bounds = array<i64: 128, 384>}, {pipeline_mode = #tpu.pipeline_mode<synchronous>, transform_indices = @transform_22, window_bounds = array<i64: 1, 128>}, {pipeline_mode = #tpu.pipeline_mode<synchronous>, transform_indices = @transform_23, window_bounds = array<i64: 128, 384>}, {pipeline_mode = #tpu.pipeline_mode<synchronous>, transform_indices = @transform_24, window_bounds = array<i64: 1, 128>}, {transform_indices = @transform_25, window_bounds = array<i64: 32, 128>}, {transform_indices = @transform_26, window_bounds = array<i64: 16, 128>}, {transform_indices = @transform_27, window_bounds = array<i64: 16, 128>}]} {
    %0 = tpu.iota {dimensions = array<i32: 0>} : vector<64x1xi32>
    %c63_i32 = arith.constant 63 : i32
    %1 = vector.broadcast %c63_i32 : i32 to vector<64x1xi32>
    %2 = arith.andi %0, %1 : vector<64x1xi32>
    %c0_i32 = arith.constant 0 : i32
    %3 = vector.broadcast %c0_i32 : i32 to vector<64x1xi32>
    %4 = arith.cmpi eq, %2, %3 : vector<64x1xi32>
    %c63_i32_0 = arith.constant 63 : i32
    %5 = vector.broadcast %c63_i32_0 : i32 to vector<64x1xi32>
    %6 = arith.cmpi eq, %2, %5 : vector<64x1xi32>
    %7 = tpu.iota {dimensions = array<i32: 0>} : vector<32x1xi32>
    %c31_i32 = arith.constant 31 : i32
    %8 = vector.broadcast %c31_i32 : i32 to vector<32x1xi32>
    %9 = arith.andi %7, %8 : vector<32x1xi32>
    %c0_i32_1 = arith.constant 0 : i32
    %10 = vector.broadcast %c0_i32_1 : i32 to vector<32x1xi32>
    %11 = arith.cmpi eq, %9, %10 : vector<32x1xi32>
    %c31_i32_2 = arith.constant 31 : i32
    %12 = vector.broadcast %c31_i32_2 : i32 to vector<32x1xi32>
    %13 = arith.cmpi eq, %9, %12 : vector<32x1xi32>
    %14 = tpu.iota {dimensions = array<i32: 0>} : vector<16x1xi32>
    %c15_i32 = arith.constant 15 : i32
    %15 = vector.broadcast %c15_i32 : i32 to vector<16x1xi32>
    %16 = arith.andi %14, %15 : vector<16x1xi32>
    %c0_i32_3 = arith.constant 0 : i32
    %17 = vector.broadcast %c0_i32_3 : i32 to vector<16x1xi32>
    %18 = arith.cmpi eq, %16, %17 : vector<16x1xi32>
    %c15_i32_4 = arith.constant 15 : i32
    %19 = vector.broadcast %c15_i32_4 : i32 to vector<16x1xi32>
    %20 = arith.cmpi eq, %16, %19 : vector<16x1xi32>
    %c0 = arith.constant 0 : index
    %c0_5 = arith.constant 0 : index
    %21 = vector.load %arg1[%c0, %c0_5] : memref<64x57xf32, #tpu.memory_space<vmem>>, vector<64x57xf32>
    %c0_6 = arith.constant 0 : index
    %c0_7 = arith.constant 0 : index
    %22 = vector.load %arg3[%c0_6, %c0_7] : memref<64x1xf32, #tpu.memory_space<vmem>>, vector<64x1xf32>
    %23 = vector.broadcast %22 : vector<64x1xf32> to vector<64x57xf32>
    %24 = arith.mulf %21, %23 : vector<64x57xf32>
    %c0_8 = arith.constant 0 : index
    %c0_9 = arith.constant 0 : index
    %25 = vector.load %arg2[%c0_8, %c0_9] : memref<64x57xf32, #tpu.memory_space<vmem>>, vector<64x57xf32>
    %c0_10 = arith.constant 0 : index
    %c0_11 = arith.constant 0 : index
    %26 = vector.load %arg4[%c0_10, %c0_11] : memref<64x1xf32, #tpu.memory_space<vmem>>, vector<64x1xf32>
    %27 = vector.broadcast %26 : vector<64x1xf32> to vector<64x57xf32>
    %28 = arith.mulf %25, %27 : vector<64x57xf32>
    %29 = arith.truncf %24 : vector<64x57xf32> to vector<64x57xbf16>
    %c0_12 = arith.constant 0 : index
    %c0_13 = arith.constant 0 : index
    %30 = vector.load %arg5[%c0_12, %c0_13] : memref<57x64xbf16, #tpu.memory_space<vmem>>, vector<57x64xbf16>
    %cst = arith.constant dense<0.000000e+00> : vector<64x64xf32>
    %31 = tpu.matmul %29, %30, %cst {dimension_numbers = #tpu.dot_dimension_numbers<[1], [0], [0], [1], [0, 0, 1, 1], [], []>} : vector<64x57xbf16>, vector<57x64xbf16>, vector<64x64xf32> -> vector<64x64xf32>
    %32 = arith.truncf %28 : vector<64x57xf32> to vector<64x57xbf16>
    %c0_14 = arith.constant 0 : index
    %c0_15 = arith.constant 0 : index
    %33 = vector.load %arg6[%c0_14, %c0_15] : memref<57x128xbf16, #tpu.memory_space<vmem>>, vector<57x128xbf16>
    %cst_16 = arith.constant dense<0.000000e+00> : vector<64x128xf32>
    %34 = tpu.matmul %32, %33, %cst_16 {dimension_numbers = #tpu.dot_dimension_numbers<[1], [0], [0], [1], [0, 0, 1, 1], [], []>} : vector<64x57xbf16>, vector<57x128xbf16>, vector<64x128xf32> -> vector<64x128xf32>
    %35 = vector.extract_strided_slice %34 {offsets = [0, 0], sizes = [64, 64], strides = [1, 1]} : vector<64x128xf32> to vector<64x64xf32>
    %36 = vector.extract_strided_slice %34 {offsets = [0, 64], sizes = [64, 64], strides = [1, 1]} : vector<64x128xf32> to vector<64x64xf32>
    %c1_i32 = arith.constant 1 : i32
    %37 = tpu.dynamic_rotate %35 by %c1_i32 dim 0 : vector<64x64xf32>, i32 -> vector<64x64xf32>
    %cst_17 = arith.constant 0.000000e+00 : f32
    %38 = vector.shape_cast %4 : vector<64x1xi1> to vector<64x1xi1>
    %39 = vector.broadcast %38 : vector<64x1xi1> to vector<64x64xi1>
    %40 = vector.broadcast %cst_17 : f32 to vector<64x64xf32>
    %41 = arith.select %39, %40, %37 : vector<64x64xi1>, vector<64x64xf32>
    %42 = arith.addf %41, %31 : vector<64x64xf32>
    %43 = arith.addf %42, %36 : vector<64x64xf32>
    %c0_18 = arith.constant 0 : index
    %c0_19 = arith.constant 0 : index
    %44 = vector.load %arg7[%c0_18, %c0_19] : memref<1x64xf32, #tpu.memory_space<vmem>>, vector<1x64xf32>
    %45 = vector.broadcast %44 : vector<1x64xf32> to vector<64x64xf32>
    %46 = arith.addf %43, %45 : vector<64x64xf32>
    %cst_20 = arith.constant 0.000000e+00 : f32
    %47 = vector.broadcast %cst_20 : f32 to vector<64x64xf32>
    %48 = arith.subf %47, %46 : vector<64x64xf32>
    %49 = math.exp %48 : vector<64x64xf32>
    %cst_21 = arith.constant 1.000000e+00 : f32
    %50 = vector.broadcast %cst_21 : f32 to vector<64x64xf32>
    %51 = arith.addf %50, %49 : vector<64x64xf32>
    %52 = tpu.reciprocal %51 {approx = true} : vector<64x64xf32> -> vector<64x64xf32>
    %53 = arith.mulf %46, %52 : vector<64x64xf32>
    %54 = arith.truncf %53 : vector<64x64xf32> to vector<64x64xbf16>
    %c0_22 = arith.constant 0 : index
    %c0_23 = arith.constant 0 : index
    %55 = vector.load %arg8[%c0_22, %c0_23] : memref<64x192xbf16, #tpu.memory_space<vmem>>, vector<64x192xbf16>
    %cst_24 = arith.constant dense<0.000000e+00> : vector<64x192xf32>
    %56 = tpu.matmul %54, %55, %cst_24 {dimension_numbers = #tpu.dot_dimension_numbers<[1], [0], [0], [1], [0, 0, 1, 1], [], []>} : vector<64x64xbf16>, vector<64x192xbf16>, vector<64x192xf32> -> vector<64x192xf32>
    %57 = vector.extract_strided_slice %56 {offsets = [0, 0], sizes = [64, 64], strides = [1, 1]} : vector<64x192xf32> to vector<64x64xf32>
    %58 = vector.extract_strided_slice %56 {offsets = [0, 64], sizes = [64, 64], strides = [1, 1]} : vector<64x192xf32> to vector<64x64xf32>
    %59 = vector.extract_strided_slice %56 {offsets = [0, 128], sizes = [64, 64], strides = [1, 1]} : vector<64x192xf32> to vector<64x64xf32>
    %c1_i32_25 = arith.constant 1 : i32
    %60 = tpu.dynamic_rotate %57 by %c1_i32_25 dim 0 : vector<64x64xf32>, i32 -> vector<64x64xf32>
    %cst_26 = arith.constant 0.000000e+00 : f32
    %61 = vector.shape_cast %4 : vector<64x1xi1> to vector<64x1xi1>
    %62 = vector.broadcast %61 : vector<64x1xi1> to vector<64x64xi1>
    %63 = vector.broadcast %cst_26 : f32 to vector<64x64xf32>
    %64 = arith.select %62, %63, %60 : vector<64x64xi1>, vector<64x64xf32>
    %c63_i32_27 = arith.constant 63 : i32
    %65 = tpu.dynamic_rotate %59 by %c63_i32_27 dim 0 : vector<64x64xf32>, i32 -> vector<64x64xf32>
    %cst_28 = arith.constant 0.000000e+00 : f32
    %66 = vector.shape_cast %6 : vector<64x1xi1> to vector<64x1xi1>
    %67 = vector.broadcast %66 : vector<64x1xi1> to vector<64x64xi1>
    %68 = vector.broadcast %cst_28 : f32 to vector<64x64xf32>
    %69 = arith.select %67, %68, %65 : vector<64x64xi1>, vector<64x64xf32>
    %70 = arith.addf %64, %58 : vector<64x64xf32>
    %71 = arith.addf %70, %69 : vector<64x64xf32>
    %c0_29 = arith.constant 0 : index
    %c0_30 = arith.constant 0 : index
    %72 = vector.load %arg9[%c0_29, %c0_30] : memref<1x64xf32, #tpu.memory_space<vmem>>, vector<1x64xf32>
    %73 = vector.broadcast %72 : vector<1x64xf32> to vector<64x64xf32>
    %74 = arith.addf %71, %73 : vector<64x64xf32>
    %cst_31 = arith.constant 0.000000e+00 : f32
    %75 = vector.broadcast %cst_31 : f32 to vector<64x64xf32>
    %76 = arith.subf %75, %74 : vector<64x64xf32>
    %77 = math.exp %76 : vector<64x64xf32>
    %cst_32 = arith.constant 1.000000e+00 : f32
    %78 = vector.broadcast %cst_32 : f32 to vector<64x64xf32>
    %79 = arith.addf %78, %77 : vector<64x64xf32>
    %80 = tpu.reciprocal %79 {approx = true} : vector<64x64xf32> -> vector<64x64xf32>
    %81 = arith.mulf %74, %80 : vector<64x64xf32>
    %82 = arith.truncf %81 : vector<64x64xf32> to vector<64x64xbf16>
    %c0_33 = arith.constant 0 : index
    %c0_34 = arith.constant 0 : index
    %83 = vector.load %arg10[%c0_33, %c0_34] : memref<64x192xbf16, #tpu.memory_space<vmem>>, vector<64x192xbf16>
    %cst_35 = arith.constant dense<0.000000e+00> : vector<64x192xf32>
    %84 = tpu.matmul %82, %83, %cst_35 {dimension_numbers = #tpu.dot_dimension_numbers<[1], [0], [0], [1], [0, 0, 1, 1], [], []>} : vector<64x64xbf16>, vector<64x192xbf16>, vector<64x192xf32> -> vector<64x192xf32>
    %85 = vector.extract_strided_slice %84 {offsets = [0, 0], sizes = [64, 64], strides = [1, 1]} : vector<64x192xf32> to vector<64x64xf32>
    %86 = vector.extract_strided_slice %84 {offsets = [0, 64], sizes = [64, 64], strides = [1, 1]} : vector<64x192xf32> to vector<64x64xf32>
    %87 = vector.extract_strided_slice %84 {offsets = [0, 128], sizes = [64, 64], strides = [1, 1]} : vector<64x192xf32> to vector<64x64xf32>
    %c1_i32_36 = arith.constant 1 : i32
    %88 = tpu.dynamic_rotate %85 by %c1_i32_36 dim 0 : vector<64x64xf32>, i32 -> vector<64x64xf32>
    %cst_37 = arith.constant 0.000000e+00 : f32
    %89 = vector.shape_cast %4 : vector<64x1xi1> to vector<64x1xi1>
    %90 = vector.broadcast %89 : vector<64x1xi1> to vector<64x64xi1>
    %91 = vector.broadcast %cst_37 : f32 to vector<64x64xf32>
    %92 = arith.select %90, %91, %88 : vector<64x64xi1>, vector<64x64xf32>
    %c63_i32_38 = arith.constant 63 : i32
    %93 = tpu.dynamic_rotate %87 by %c63_i32_38 dim 0 : vector<64x64xf32>, i32 -> vector<64x64xf32>
    %cst_39 = arith.constant 0.000000e+00 : f32
    %94 = vector.shape_cast %6 : vector<64x1xi1> to vector<64x1xi1>
    %95 = vector.broadcast %94 : vector<64x1xi1> to vector<64x64xi1>
    %96 = vector.broadcast %cst_39 : f32 to vector<64x64xf32>
    %97 = arith.select %95, %96, %93 : vector<64x64xi1>, vector<64x64xf32>
    %98 = arith.addf %92, %86 : vector<64x64xf32>
    %99 = arith.addf %98, %97 : vector<64x64xf32>
    %c0_40 = arith.constant 0 : index
    %c0_41 = arith.constant 0 : index
    %100 = vector.load %arg11[%c0_40, %c0_41] : memref<1x64xf32, #tpu.memory_space<vmem>>, vector<1x64xf32>
    %101 = vector.broadcast %100 : vector<1x64xf32> to vector<64x64xf32>
    %102 = arith.addf %99, %101 : vector<64x64xf32>
    %cst_42 = arith.constant 0.000000e+00 : f32
    %103 = vector.broadcast %cst_42 : f32 to vector<64x64xf32>
    %104 = arith.subf %103, %102 : vector<64x64xf32>
    %105 = math.exp %104 : vector<64x64xf32>
    %cst_43 = arith.constant 1.000000e+00 : f32
    %106 = vector.broadcast %cst_43 : f32 to vector<64x64xf32>
    %107 = arith.addf %106, %105 : vector<64x64xf32>
    %108 = tpu.reciprocal %107 {approx = true} : vector<64x64xf32> -> vector<64x64xf32>
    %109 = arith.mulf %102, %108 : vector<64x64xf32>
    %110 = arith.addf %53, %109 : vector<64x64xf32>
    %c0_44 = arith.constant 0 : index
    %c0_45 = arith.constant 0 : index
    %111 = vector.load %arg29[%c0_44, %c0_45] : memref<64x64xf32, #tpu.memory_space<vmem>>, vector<64x64xf32>
    tpu.vector_store %arg29[%c0_44, %c0_45], %110 {strides = array<i32>} : memref<64x64xf32, #tpu.memory_space<vmem>>, vector<64x64xf32>,
    %c0_46 = arith.constant 0 : index
    %c0_47 = arith.constant 0 : index
    %112 = tpu.strided_load %arg29[%c0_46, %c0_47] {strides = array<i32: 2, 1>} : memref<64x64xf32, #tpu.memory_space<vmem>>, vector<32x64xf32>
    %c1 = arith.constant 1 : index
    %c0_48 = arith.constant 0 : index
    %113 = tpu.strided_load %arg29[%c1, %c0_48] {strides = array<i32: 2, 1>} : memref<64x64xf32, #tpu.memory_space<vmem>>, vector<32x64xf32>
    %114 = tpu.concatenate %112, %113 in 1 : vector<32x64xf32>, vector<32x64xf32> -> vector<32x128xf32>
    %115 = arith.truncf %114 : vector<32x128xf32> to vector<32x128xbf16>
    %c0_49 = arith.constant 0 : index
    %c0_50 = arith.constant 0 : index
    %116 = vector.load %arg26[%c0_49, %c0_50] : memref<32x128xbf16, #tpu.memory_space<vmem>>, vector<32x128xbf16>
    tpu.vector_store %arg26[%c0_49, %c0_50], %115 {strides = array<i32>} : memref<32x128xbf16, #tpu.memory_space<vmem>>, vector<32x128xbf16>,
    %117 = arith.truncf %112 : vector<32x64xf32> to vector<32x64xbf16>
    %c0_51 = arith.constant 0 : index
    %c0_52 = arith.constant 0 : index
    %118 = vector.load %arg12[%c0_51, %c0_52] : memref<64x64xbf16, #tpu.memory_space<vmem>>, vector<64x64xbf16>
    %cst_53 = arith.constant dense<0.000000e+00> : vector<32x64xf32>
    %119 = tpu.matmul %117, %118, %cst_53 {dimension_numbers = #tpu.dot_dimension_numbers<[1], [0], [0], [1], [0, 0, 1, 1], [], []>} : vector<32x64xbf16>, vector<64x64xbf16>, vector<32x64xf32> -> vector<32x64xf32>
    %120 = arith.truncf %113 : vector<32x64xf32> to vector<32x64xbf16>
    %c0_54 = arith.constant 0 : index
    %c0_55 = arith.constant 0 : index
    %121 = vector.load %arg13[%c0_54, %c0_55] : memref<64x128xbf16, #tpu.memory_space<vmem>>, vector<64x128xbf16>
    %cst_56 = arith.constant dense<0.000000e+00> : vector<32x128xf32>
    %122 = tpu.matmul %120, %121, %cst_56 {dimension_numbers = #tpu.dot_dimension_numbers<[1], [0], [0], [1], [0, 0, 1, 1], [], []>} : vector<32x64xbf16>, vector<64x128xbf16>, vector<32x128xf32> -> vector<32x128xf32>
    %123 = vector.extract_strided_slice %122 {offsets = [0, 0], sizes = [32, 64], strides = [1, 1]} : vector<32x128xf32> to vector<32x64xf32>
    %124 = vector.extract_strided_slice %122 {offsets = [0, 64], sizes = [32, 64], strides = [1, 1]} : vector<32x128xf32> to vector<32x64xf32>
    %c1_i32_57 = arith.constant 1 : i32
    %125 = tpu.dynamic_rotate %123 by %c1_i32_57 dim 0 : vector<32x64xf32>, i32 -> vector<32x64xf32>
    %cst_58 = arith.constant 0.000000e+00 : f32
    %126 = vector.shape_cast %11 : vector<32x1xi1> to vector<32x1xi1>
    %127 = vector.broadcast %126 : vector<32x1xi1> to vector<32x64xi1>
    %128 = vector.broadcast %cst_58 : f32 to vector<32x64xf32>
    %129 = arith.select %127, %128, %125 : vector<32x64xi1>, vector<32x64xf32>
    %130 = arith.addf %129, %119 : vector<32x64xf32>
    %131 = arith.addf %130, %124 : vector<32x64xf32>
    %c0_59 = arith.constant 0 : index
    %c0_60 = arith.constant 0 : index
    %132 = vector.load %arg14[%c0_59, %c0_60] : memref<1x64xf32, #tpu.memory_space<vmem>>, vector<1x64xf32>
    %133 = vector.broadcast %132 : vector<1x64xf32> to vector<32x64xf32>
    %134 = arith.addf %131, %133 : vector<32x64xf32>
    %cst_61 = arith.constant 0.000000e+00 : f32
    %135 = vector.broadcast %cst_61 : f32 to vector<32x64xf32>
    %136 = arith.subf %135, %134 : vector<32x64xf32>
    %137 = math.exp %136 : vector<32x64xf32>
    %cst_62 = arith.constant 1.000000e+00 : f32
    %138 = vector.broadcast %cst_62 : f32 to vector<32x64xf32>
    %139 = arith.addf %138, %137 : vector<32x64xf32>
    %140 = tpu.reciprocal %139 {approx = true} : vector<32x64xf32> -> vector<32x64xf32>
    %141 = arith.mulf %134, %140 : vector<32x64xf32>
    %142 = arith.truncf %141 : vector<32x64xf32> to vector<32x64xbf16>
    %c0_63 = arith.constant 0 : index
    %c0_64 = arith.constant 0 : index
    %143 = vector.load %arg15[%c0_63, %c0_64] : memref<64x192xbf16, #tpu.memory_space<vmem>>, vector<64x192xbf16>
    %cst_65 = arith.constant dense<0.000000e+00> : vector<32x192xf32>
    %144 = tpu.matmul %142, %143, %cst_65 {dimension_numbers = #tpu.dot_dimension_numbers<[1], [0], [0], [1], [0, 0, 1, 1], [], []>} : vector<32x64xbf16>, vector<64x192xbf16>, vector<32x192xf32> -> vector<32x192xf32>
    %145 = vector.extract_strided_slice %144 {offsets = [0, 0], sizes = [32, 64], strides = [1, 1]} : vector<32x192xf32> to vector<32x64xf32>
    %146 = vector.extract_strided_slice %144 {offsets = [0, 64], sizes = [32, 64], strides = [1, 1]} : vector<32x192xf32> to vector<32x64xf32>
    %147 = vector.extract_strided_slice %144 {offsets = [0, 128], sizes = [32, 64], strides = [1, 1]} : vector<32x192xf32> to vector<32x64xf32>
    %c1_i32_66 = arith.constant 1 : i32
    %148 = tpu.dynamic_rotate %145 by %c1_i32_66 dim 0 : vector<32x64xf32>, i32 -> vector<32x64xf32>
    %cst_67 = arith.constant 0.000000e+00 : f32
    %149 = vector.shape_cast %11 : vector<32x1xi1> to vector<32x1xi1>
    %150 = vector.broadcast %149 : vector<32x1xi1> to vector<32x64xi1>
    %151 = vector.broadcast %cst_67 : f32 to vector<32x64xf32>
    %152 = arith.select %150, %151, %148 : vector<32x64xi1>, vector<32x64xf32>
    %c31_i32_68 = arith.constant 31 : i32
    %153 = tpu.dynamic_rotate %147 by %c31_i32_68 dim 0 : vector<32x64xf32>, i32 -> vector<32x64xf32>
    %cst_69 = arith.constant 0.000000e+00 : f32
    %154 = vector.shape_cast %13 : vector<32x1xi1> to vector<32x1xi1>
    %155 = vector.broadcast %154 : vector<32x1xi1> to vector<32x64xi1>
    %156 = vector.broadcast %cst_69 : f32 to vector<32x64xf32>
    %157 = arith.select %155, %156, %153 : vector<32x64xi1>, vector<32x64xf32>
    %158 = arith.addf %152, %146 : vector<32x64xf32>
    %159 = arith.addf %158, %157 : vector<32x64xf32>
    %c0_70 = arith.constant 0 : index
    %c0_71 = arith.constant 0 : index
    %160 = vector.load %arg16[%c0_70, %c0_71] : memref<1x64xf32, #tpu.memory_space<vmem>>, vector<1x64xf32>
    %161 = vector.broadcast %160 : vector<1x64xf32> to vector<32x64xf32>
    %162 = arith.addf %159, %161 : vector<32x64xf32>
    %cst_72 = arith.constant 0.000000e+00 : f32
    %163 = vector.broadcast %cst_72 : f32 to vector<32x64xf32>
    %164 = arith.subf %163, %162 : vector<32x64xf32>
    %165 = math.exp %164 : vector<32x64xf32>
    %cst_73 = arith.constant 1.000000e+00 : f32
    %166 = vector.broadcast %cst_73 : f32 to vector<32x64xf32>
    %167 = arith.addf %166, %165 : vector<32x64xf32>
    %168 = tpu.reciprocal %167 {approx = true} : vector<32x64xf32> -> vector<32x64xf32>
    %169 = arith.mulf %162, %168 : vector<32x64xf32>
    %170 = arith.truncf %169 : vector<32x64xf32> to vector<32x64xbf16>
    %c0_74 = arith.constant 0 : index
    %c0_75 = arith.constant 0 : index
    %171 = vector.load %arg17[%c0_74, %c0_75] : memref<64x192xbf16, #tpu.memory_space<vmem>>, vector<64x192xbf16>
    %cst_76 = arith.constant dense<0.000000e+00> : vector<32x192xf32>
    %172 = tpu.matmul %170, %171, %cst_76 {dimension_numbers = #tpu.dot_dimension_numbers<[1], [0], [0], [1], [0, 0, 1, 1], [], []>} : vector<32x64xbf16>, vector<64x192xbf16>, vector<32x192xf32> -> vector<32x192xf32>
    %173 = vector.extract_strided_slice %172 {offsets = [0, 0], sizes = [32, 64], strides = [1, 1]} : vector<32x192xf32> to vector<32x64xf32>
    %174 = vector.extract_strided_slice %172 {offsets = [0, 64], sizes = [32, 64], strides = [1, 1]} : vector<32x192xf32> to vector<32x64xf32>
    %175 = vector.extract_strided_slice %172 {offsets = [0, 128], sizes = [32, 64], strides = [1, 1]} : vector<32x192xf32> to vector<32x64xf32>
    %c1_i32_77 = arith.constant 1 : i32
    %176 = tpu.dynamic_rotate %173 by %c1_i32_77 dim 0 : vector<32x64xf32>, i32 -> vector<32x64xf32>
    %cst_78 = arith.constant 0.000000e+00 : f32
    %177 = vector.shape_cast %11 : vector<32x1xi1> to vector<32x1xi1>
    %178 = vector.broadcast %177 : vector<32x1xi1> to vector<32x64xi1>
    %179 = vector.broadcast %cst_78 : f32 to vector<32x64xf32>
    %180 = arith.select %178, %179, %176 : vector<32x64xi1>, vector<32x64xf32>
    %c31_i32_79 = arith.constant 31 : i32
    %181 = tpu.dynamic_rotate %175 by %c31_i32_79 dim 0 : vector<32x64xf32>, i32 -> vector<32x64xf32>
    %cst_80 = arith.constant 0.000000e+00 : f32
    %182 = vector.shape_cast %13 : vector<32x1xi1> to vector<32x1xi1>
    %183 = vector.broadcast %182 : vector<32x1xi1> to vector<32x64xi1>
    %184 = vector.broadcast %cst_80 : f32 to vector<32x64xf32>
    %185 = arith.select %183, %184, %181 : vector<32x64xi1>, vector<32x64xf32>
    %186 = arith.addf %180, %174 : vector<32x64xf32>
    %187 = arith.addf %186, %185 : vector<32x64xf32>
    %c0_81 = arith.constant 0 : index
    %c0_82 = arith.constant 0 : index
    %188 = vector.load %arg18[%c0_81, %c0_82] : memref<1x64xf32, #tpu.memory_space<vmem>>, vector<1x64xf32>
    %189 = vector.broadcast %188 : vector<1x64xf32> to vector<32x64xf32>
    %190 = arith.addf %187, %189 : vector<32x64xf32>
    %cst_83 = arith.constant 0.000000e+00 : f32
    %191 = vector.broadcast %cst_83 : f32 to vector<32x64xf32>
    %192 = arith.subf %191, %190 : vector<32x64xf32>
    %193 = math.exp %192 : vector<32x64xf32>
    %cst_84 = arith.constant 1.000000e+00 : f32
    %194 = vector.broadcast %cst_84 : f32 to vector<32x64xf32>
    %195 = arith.addf %194, %193 : vector<32x64xf32>
    %196 = tpu.reciprocal %195 {approx = true} : vector<32x64xf32> -> vector<32x64xf32>
    %197 = arith.mulf %190, %196 : vector<32x64xf32>
    %198 = arith.addf %141, %197 : vector<32x64xf32>
    %c0_85 = arith.constant 0 : index
    %c0_86 = arith.constant 0 : index
    %199 = vector.load %arg30[%c0_85, %c0_86] : memref<32x64xf32, #tpu.memory_space<vmem>>, vector<32x64xf32>
    tpu.vector_store %arg30[%c0_85, %c0_86], %198 {strides = array<i32>} : memref<32x64xf32, #tpu.memory_space<vmem>>, vector<32x64xf32>,
    %c0_87 = arith.constant 0 : index
    %c0_88 = arith.constant 0 : index
    %200 = tpu.strided_load %arg30[%c0_87, %c0_88] {strides = array<i32: 2, 1>} : memref<32x64xf32, #tpu.memory_space<vmem>>, vector<16x64xf32>
    %c1_89 = arith.constant 1 : index
    %c0_90 = arith.constant 0 : index
    %201 = tpu.strided_load %arg30[%c1_89, %c0_90] {strides = array<i32: 2, 1>} : memref<32x64xf32, #tpu.memory_space<vmem>>, vector<16x64xf32>
    %202 = tpu.concatenate %200, %201 in 1 : vector<16x64xf32>, vector<16x64xf32> -> vector<16x128xf32>
    %203 = arith.truncf %202 : vector<16x128xf32> to vector<16x128xbf16>
    %c0_91 = arith.constant 0 : index
    %c0_92 = arith.constant 0 : index
    %204 = vector.load %arg27[%c0_91, %c0_92] : memref<16x128xbf16, #tpu.memory_space<vmem>>, vector<16x128xbf16>
    tpu.vector_store %arg27[%c0_91, %c0_92], %203 {strides = array<i32>} : memref<16x128xbf16, #tpu.memory_space<vmem>>, vector<16x128xbf16>,
    %205 = arith.truncf %200 : vector<16x64xf32> to vector<16x64xbf16>
    %c0_93 = arith.constant 0 : index
    %c0_94 = arith.constant 0 : index
    %206 = vector.load %arg19[%c0_93, %c0_94] : memref<64x128xbf16, #tpu.memory_space<vmem>>, vector<64x128xbf16>
    %cst_95 = arith.constant dense<0.000000e+00> : vector<16x128xf32>
    %207 = tpu.matmul %205, %206, %cst_95 {dimension_numbers = #tpu.dot_dimension_numbers<[1], [0], [0], [1], [0, 0, 1, 1], [], []>} : vector<16x64xbf16>, vector<64x128xbf16>, vector<16x128xf32> -> vector<16x128xf32>
    %208 = arith.truncf %201 : vector<16x64xf32> to vector<16x64xbf16>
    %c0_96 = arith.constant 0 : index
    %c0_97 = arith.constant 0 : index
    %209 = vector.load %arg20[%c0_96, %c0_97] : memref<64x256xbf16, #tpu.memory_space<vmem>>, vector<64x256xbf16>
    %cst_98 = arith.constant dense<0.000000e+00> : vector<16x256xf32>
    %210 = tpu.matmul %208, %209, %cst_98 {dimension_numbers = #tpu.dot_dimension_numbers<[1], [0], [0], [1], [0, 0, 1, 1], [], []>} : vector<16x64xbf16>, vector<64x256xbf16>, vector<16x256xf32> -> vector<16x256xf32>
    %211 = vector.extract_strided_slice %210 {offsets = [0, 0], sizes = [16, 128], strides = [1, 1]} : vector<16x256xf32> to vector<16x128xf32>
    %212 = vector.extract_strided_slice %210 {offsets = [0, 128], sizes = [16, 128], strides = [1, 1]} : vector<16x256xf32> to vector<16x128xf32>
    %c1_i32_99 = arith.constant 1 : i32
    %213 = tpu.dynamic_rotate %211 by %c1_i32_99 dim 0 : vector<16x128xf32>, i32 -> vector<16x128xf32>
    %cst_100 = arith.constant 0.000000e+00 : f32
    %214 = vector.shape_cast %18 : vector<16x1xi1> to vector<16x1xi1>
    %215 = vector.broadcast %214 : vector<16x1xi1> to vector<16x128xi1>
    %216 = vector.broadcast %cst_100 : f32 to vector<16x128xf32>
    %217 = arith.select %215, %216, %213 : vector<16x128xi1>, vector<16x128xf32>
    %218 = arith.addf %217, %207 : vector<16x128xf32>
    %219 = arith.addf %218, %212 : vector<16x128xf32>
    %c0_101 = arith.constant 0 : index
    %c0_102 = arith.constant 0 : index
    %220 = vector.load %arg21[%c0_101, %c0_102] : memref<1x128xf32, #tpu.memory_space<vmem>>, vector<1x128xf32>
    %221 = vector.broadcast %220 : vector<1x128xf32> to vector<16x128xf32>
    %222 = arith.addf %219, %221 : vector<16x128xf32>
    %cst_103 = arith.constant 0.000000e+00 : f32
    %223 = vector.broadcast %cst_103 : f32 to vector<16x128xf32>
    %224 = arith.subf %223, %222 : vector<16x128xf32>
    %225 = math.exp %224 : vector<16x128xf32>
    %cst_104 = arith.constant 1.000000e+00 : f32
    %226 = vector.broadcast %cst_104 : f32 to vector<16x128xf32>
    %227 = arith.addf %226, %225 : vector<16x128xf32>
    %228 = tpu.reciprocal %227 {approx = true} : vector<16x128xf32> -> vector<16x128xf32>
    %229 = arith.mulf %222, %228 : vector<16x128xf32>
    %230 = arith.truncf %229 : vector<16x128xf32> to vector<16x128xbf16>
    %c0_105 = arith.constant 0 : index
    %c0_106 = arith.constant 0 : index
    %231 = vector.load %arg22[%c0_105, %c0_106] : memref<128x384xbf16, #tpu.memory_space<vmem>>, vector<128x384xbf16>
    %cst_107 = arith.constant dense<0.000000e+00> : vector<16x384xf32>
    %232 = tpu.matmul %230, %231, %cst_107 {dimension_numbers = #tpu.dot_dimension_numbers<[1], [0], [0], [1], [0, 0, 1, 1], [], []>} : vector<16x128xbf16>, vector<128x384xbf16>, vector<16x384xf32> -> vector<16x384xf32>
    %233 = vector.extract_strided_slice %232 {offsets = [0, 0], sizes = [16, 128], strides = [1, 1]} : vector<16x384xf32> to vector<16x128xf32>
    %234 = vector.extract_strided_slice %232 {offsets = [0, 128], sizes = [16, 128], strides = [1, 1]} : vector<16x384xf32> to vector<16x128xf32>
    %235 = vector.extract_strided_slice %232 {offsets = [0, 256], sizes = [16, 128], strides = [1, 1]} : vector<16x384xf32> to vector<16x128xf32>
    %c1_i32_108 = arith.constant 1 : i32
    %236 = tpu.dynamic_rotate %233 by %c1_i32_108 dim 0 : vector<16x128xf32>, i32 -> vector<16x128xf32>
    %cst_109 = arith.constant 0.000000e+00 : f32
    %237 = vector.shape_cast %18 : vector<16x1xi1> to vector<16x1xi1>
    %238 = vector.broadcast %237 : vector<16x1xi1> to vector<16x128xi1>
    %239 = vector.broadcast %cst_109 : f32 to vector<16x128xf32>
    %240 = arith.select %238, %239, %236 : vector<16x128xi1>, vector<16x128xf32>
    %c15_i32_110 = arith.constant 15 : i32
    %241 = tpu.dynamic_rotate %235 by %c15_i32_110 dim 0 : vector<16x128xf32>, i32 -> vector<16x128xf32>
    %cst_111 = arith.constant 0.000000e+00 : f32
    %242 = vector.shape_cast %20 : vector<16x1xi1> to vector<16x1xi1>
    %243 = vector.broadcast %242 : vector<16x1xi1> to vector<16x128xi1>
    %244 = vector.broadcast %cst_111 : f32 to vector<16x128xf32>
    %245 = arith.select %243, %244, %241 : vector<16x128xi1>, vector<16x128xf32>
    %246 = arith.addf %240, %234 : vector<16x128xf32>
    %247 = arith.addf %246, %245 : vector<16x128xf32>
    %c0_112 = arith.constant 0 : index
    %c0_113 = arith.constant 0 : index
    %248 = vector.load %arg23[%c0_112, %c0_113] : memref<1x128xf32, #tpu.memory_space<vmem>>, vector<1x128xf32>
    %249 = vector.broadcast %248 : vector<1x128xf32> to vector<16x128xf32>
    %250 = arith.addf %247, %249 : vector<16x128xf32>
    %cst_114 = arith.constant 0.000000e+00 : f32
    %251 = vector.broadcast %cst_114 : f32 to vector<16x128xf32>
    %252 = arith.subf %251, %250 : vector<16x128xf32>
    %253 = math.exp %252 : vector<16x128xf32>
    %cst_115 = arith.constant 1.000000e+00 : f32
    %254 = vector.broadcast %cst_115 : f32 to vector<16x128xf32>
    %255 = arith.addf %254, %253 : vector<16x128xf32>
    %256 = tpu.reciprocal %255 {approx = true} : vector<16x128xf32> -> vector<16x128xf32>
    %257 = arith.mulf %250, %256 : vector<16x128xf32>
    %258 = arith.truncf %257 : vector<16x128xf32> to vector<16x128xbf16>
    %c0_116 = arith.constant 0 : index
    %c0_117 = arith.constant 0 : index
    %259 = vector.load %arg24[%c0_116, %c0_117] : memref<128x384xbf16, #tpu.memory_space<vmem>>, vector<128x384xbf16>
    %cst_118 = arith.constant dense<0.000000e+00> : vector<16x384xf32>
    %260 = tpu.matmul %258, %259, %cst_118 {dimension_numbers = #tpu.dot_dimension_numbers<[1], [0], [0], [1], [0, 0, 1, 1], [], []>} : vector<16x128xbf16>, vector<128x384xbf16>, vector<16x384xf32> -> vector<16x384xf32>
    %261 = vector.extract_strided_slice %260 {offsets = [0, 0], sizes = [16, 128], strides = [1, 1]} : vector<16x384xf32> to vector<16x128xf32>
    %262 = vector.extract_strided_slice %260 {offsets = [0, 128], sizes = [16, 128], strides = [1, 1]} : vector<16x384xf32> to vector<16x128xf32>
    %263 = vector.extract_strided_slice %260 {offsets = [0, 256], sizes = [16, 128], strides = [1, 1]} : vector<16x384xf32> to vector<16x128xf32>
    %c1_i32_119 = arith.constant 1 : i32
    %264 = tpu.dynamic_rotate %261 by %c1_i32_119 dim 0 : vector<16x128xf32>, i32 -> vector<16x128xf32>
    %cst_120 = arith.constant 0.000000e+00 : f32
    %265 = vector.shape_cast %18 : vector<16x1xi1> to vector<16x1xi1>
    %266 = vector.broadcast %265 : vector<16x1xi1> to vector<16x128xi1>
    %267 = vector.broadcast %cst_120 : f32 to vector<16x128xf32>
    %268 = arith.select %266, %267, %264 : vector<16x128xi1>, vector<16x128xf32>
    %c15_i32_121 = arith.constant 15 : i32
    %269 = tpu.dynamic_rotate %263 by %c15_i32_121 dim 0 : vector<16x128xf32>, i32 -> vector<16x128xf32>
    %cst_122 = arith.constant 0.000000e+00 : f32
    %270 = vector.shape_cast %20 : vector<16x1xi1> to vector<16x1xi1>
    %271 = vector.broadcast %270 : vector<16x1xi1> to vector<16x128xi1>
    %272 = vector.broadcast %cst_122 : f32 to vector<16x128xf32>
    %273 = arith.select %271, %272, %269 : vector<16x128xi1>, vector<16x128xf32>
    %274 = arith.addf %268, %262 : vector<16x128xf32>
    %275 = arith.addf %274, %273 : vector<16x128xf32>
    %c0_123 = arith.constant 0 : index
    %c0_124 = arith.constant 0 : index
    %276 = vector.load %arg25[%c0_123, %c0_124] : memref<1x128xf32, #tpu.memory_space<vmem>>, vector<1x128xf32>
    %277 = vector.broadcast %276 : vector<1x128xf32> to vector<16x128xf32>
    %278 = arith.addf %275, %277 : vector<16x128xf32>
    %cst_125 = arith.constant 0.000000e+00 : f32
    %279 = vector.broadcast %cst_125 : f32 to vector<16x128xf32>
    %280 = arith.subf %279, %278 : vector<16x128xf32>
    %281 = math.exp %280 : vector<16x128xf32>
    %cst_126 = arith.constant 1.000000e+00 : f32
    %282 = vector.broadcast %cst_126 : f32 to vector<16x128xf32>
    %283 = arith.addf %282, %281 : vector<16x128xf32>
    %284 = tpu.reciprocal %283 {approx = true} : vector<16x128xf32> -> vector<16x128xf32>
    %285 = arith.mulf %278, %284 : vector<16x128xf32>
    %286 = arith.addf %229, %285 : vector<16x128xf32>
    %287 = arith.truncf %286 : vector<16x128xf32> to vector<16x128xbf16>
    %c0_127 = arith.constant 0 : index
    %c0_128 = arith.constant 0 : index
    %288 = vector.load %arg28[%c0_127, %c0_128] : memref<16x128xbf16, #tpu.memory_space<vmem>>, vector<16x128xbf16>
    tpu.vector_store %arg28[%c0_127, %c0_128], %287 {strides = array<i32>} : memref<16x128xbf16, #tpu.memory_space<vmem>>, vector<16x128xbf16>,
    return
  }
  func.func @transform_0(%arg0: i32) -> (i32, i32) {
    %c0_i32 = arith.constant 0 : i32
    %c0_i32_0 = arith.constant 0 : i32
    return %arg0, %c0_i32 : i32, i32
  }
  func.func @transform_1(%arg0: i32) -> (i32, i32) {
    %c0_i32 = arith.constant 0 : i32
    %c0_i32_0 = arith.constant 0 : i32
    return %arg0, %c0_i32 : i32, i32
  }
  func.func @transform_2(%arg0: i32) -> (i32, i32) {
    %c0_i32 = arith.constant 0 : i32
    %c0_i32_0 = arith.constant 0 : i32
    return %arg0, %c0_i32 : i32, i32
  }
  func.func @transform_3(%arg0: i32) -> (i32, i32) {
    %c0_i32 = arith.constant 0 : i32
    %c0_i32_0 = arith.constant 0 : i32
    return %arg0, %c0_i32 : i32, i32
  }
  func.func @transform_4(%arg0: i32) -> (i32, i32) {
    %c0_i32 = arith.constant 0 : i32
    %c0_i32_0 = arith.constant 0 : i32
    %c0_i32_1 = arith.constant 0 : i32
    return %c0_i32, %c0_i32_0 : i32, i32
  }
  func.func @transform_5(%arg0: i32) -> (i32, i32) {
    %c0_i32 = arith.constant 0 : i32
    %c0_i32_0 = arith.constant 0 : i32
    %c0_i32_1 = arith.constant 0 : i32
    return %c0_i32, %c0_i32_0 : i32, i32
  }
  func.func @transform_6(%arg0: i32) -> (i32, i32) {
    %c0_i32 = arith.constant 0 : i32
    %c0_i32_0 = arith.constant 0 : i32
    %c0_i32_1 = arith.constant 0 : i32
    return %c0_i32, %c0_i32_0 : i32, i32
  }
  func.func @transform_7(%arg0: i32) -> (i32, i32) {
    %c0_i32 = arith.constant 0 : i32
    %c0_i32_0 = arith.constant 0 : i32
    %c0_i32_1 = arith.constant 0 : i32
    return %c0_i32, %c0_i32_0 : i32, i32
  }
  func.func @transform_8(%arg0: i32) -> (i32, i32) {
    %c0_i32 = arith.constant 0 : i32
    %c0_i32_0 = arith.constant 0 : i32
    %c0_i32_1 = arith.constant 0 : i32
    return %c0_i32, %c0_i32_0 : i32, i32
  }
  func.func @transform_9(%arg0: i32) -> (i32, i32) {
    %c0_i32 = arith.constant 0 : i32
    %c0_i32_0 = arith.constant 0 : i32
    %c0_i32_1 = arith.constant 0 : i32
    return %c0_i32, %c0_i32_0 : i32, i32
  }
  func.func @transform_10(%arg0: i32) -> (i32, i32) {
    %c0_i32 = arith.constant 0 : i32
    %c0_i32_0 = arith.constant 0 : i32
    %c0_i32_1 = arith.constant 0 : i32
    return %c0_i32, %c0_i32_0 : i32, i32
  }
  func.func @transform_11(%arg0: i32) -> (i32, i32) {
    %c0_i32 = arith.constant 0 : i32
    %c0_i32_0 = arith.constant 0 : i32
    %c0_i32_1 = arith.constant 0 : i32
    return %c0_i32, %c0_i32_0 : i32, i32
  }
  func.func @transform_12(%arg0: i32) -> (i32, i32) {
    %c0_i32 = arith.constant 0 : i32
    %c0_i32_0 = arith.constant 0 : i32
    %c0_i32_1 = arith.constant 0 : i32
    return %c0_i32, %c0_i32_0 : i32, i32
  }
  func.func @transform_13(%arg0: i32) -> (i32, i32) {
    %c0_i32 = arith.constant 0 : i32
    %c0_i32_0 = arith.constant 0 : i32
    %c0_i32_1 = arith.constant 0 : i32
    return %c0_i32, %c0_i32_0 : i32, i32
  }
  func.func @transform_14(%arg0: i32) -> (i32, i32) {
    %c0_i32 = arith.constant 0 : i32
    %c0_i32_0 = arith.constant 0 : i32
    %c0_i32_1 = arith.constant 0 : i32
    return %c0_i32, %c0_i32_0 : i32, i32
  }
  func.func @transform_15(%arg0: i32) -> (i32, i32) {
    %c0_i32 = arith.constant 0 : i32
    %c0_i32_0 = arith.constant 0 : i32
    %c0_i32_1 = arith.constant 0 : i32
    return %c0_i32, %c0_i32_0 : i32, i32
  }
  func.func @transform_16(%arg0: i32) -> (i32, i32) {
    %c0_i32 = arith.constant 0 : i32
    %c0_i32_0 = arith.constant 0 : i32
    %c0_i32_1 = arith.constant 0 : i32
    return %c0_i32, %c0_i32_0 : i32, i32
  }
  func.func @transform_17(%arg0: i32) -> (i32, i32) {
    %c0_i32 = arith.constant 0 : i32
    %c0_i32_0 = arith.constant 0 : i32
    %c0_i32_1 = arith.constant 0 : i32
    return %c0_i32, %c0_i32_0 : i32, i32
  }
  func.func @transform_18(%arg0: i32) -> (i32, i32) {
    %c0_i32 = arith.constant 0 : i32
    %c0_i32_0 = arith.constant 0 : i32
    %c0_i32_1 = arith.constant 0 : i32
    return %c0_i32, %c0_i32_0 : i32, i32
  }
  func.func @transform_19(%arg0: i32) -> (i32, i32) {
    %c0_i32 = arith.constant 0 : i32
    %c0_i32_0 = arith.constant 0 : i32
    %c0_i32_1 = arith.constant 0 : i32
    return %c0_i32, %c0_i32_0 : i32, i32
  }
  func.func @transform_20(%arg0: i32) -> (i32, i32) {
    %c0_i32 = arith.constant 0 : i32
    %c0_i32_0 = arith.constant 0 : i32
    %c0_i32_1 = arith.constant 0 : i32
    return %c0_i32, %c0_i32_0 : i32, i32
  }
  func.func @transform_21(%arg0: i32) -> (i32, i32) {
    %c0_i32 = arith.constant 0 : i32
    %c0_i32_0 = arith.constant 0 : i32
    %c0_i32_1 = arith.constant 0 : i32
    return %c0_i32, %c0_i32_0 : i32, i32
  }
  func.func @transform_22(%arg0: i32) -> (i32, i32) {
    %c0_i32 = arith.constant 0 : i32
    %c0_i32_0 = arith.constant 0 : i32
    %c0_i32_1 = arith.constant 0 : i32
    return %c0_i32, %c0_i32_0 : i32, i32
  }
  func.func @transform_23(%arg0: i32) -> (i32, i32) {
    %c0_i32 = arith.constant 0 : i32
    %c0_i32_0 = arith.constant 0 : i32
    %c0_i32_1 = arith.constant 0 : i32
    return %c0_i32, %c0_i32_0 : i32, i32
  }
  func.func @transform_24(%arg0: i32) -> (i32, i32) {
    %c0_i32 = arith.constant 0 : i32
    %c0_i32_0 = arith.constant 0 : i32
    %c0_i32_1 = arith.constant 0 : i32
    return %c0_i32, %c0_i32_0 : i32, i32
  }
  func.func @transform_25(%arg0: i32) -> (i32, i32) {
    %c0_i32 = arith.constant 0 : i32
    %c0_i32_0 = arith.constant 0 : i32
    return %arg0, %c0_i32 : i32, i32
  }
  func.func @transform_26(%arg0: i32) -> (i32, i32) {
    %c0_i32 = arith.constant 0 : i32
    %c0_i32_0 = arith.constant 0 : i32
    return %arg0, %c0_i32 : i32, i32
  }
  func.func @transform_27(%arg0: i32) -> (i32, i32) {
    %c0_i32 = arith.constant 0 : i32
    %c0_i32_0 = arith.constant 0 : i32
    return %arg0, %c0_i32 : i32, i32
  }
}

module attributes {stable_mosaic.version = 11 : i64} {
  func.func @_head_kernel(%arg0: i32, %arg1: memref<2x4096xbf16, #tpu.memory_space<vmem>>, %arg2: memref<2x2048xbf16, #tpu.memory_space<vmem>>, %arg3: memref<2x2048xbf16, #tpu.memory_space<vmem>>, %arg4: memref<2x510xf32, #tpu.memory_space<vmem>>, %arg5: memref<510x512xbf16, #tpu.memory_space<vmem>>, %arg6: memref<1x512xf32, #tpu.memory_space<vmem>>, %arg7: memref<4096x64xbf16, #tpu.memory_space<vmem>>, %arg8: memref<2048x64xbf16, #tpu.memory_space<vmem>>, %arg9: memref<2048x64xbf16, #tpu.memory_space<vmem>>, %arg10: memref<512x64xbf16, #tpu.memory_space<vmem>>, %arg11: memref<1x64xf32, #tpu.memory_space<vmem>>, %arg12: memref<2x64xf32, #tpu.memory_space<vmem>>) attributes {dimension_semantics = [#tpu.dimension_semantics<parallel>], iteration_bounds = array<i64: 1>, scalar_prefetch = 0 : i64, scratch_operands = 0 : i64, tpu.core_type = #tpu.core_type<tc>, window_params = [{transform_indices = @transform_0, window_bounds = array<i64: 2, 4096>}, {transform_indices = @transform_1, window_bounds = array<i64: 2, 2048>}, {transform_indices = @transform_2, window_bounds = array<i64: 2, 2048>}, {transform_indices = @transform_3, window_bounds = array<i64: 2, 510>}, {pipeline_mode = #tpu.pipeline_mode<synchronous>, transform_indices = @transform_4, window_bounds = array<i64: 510, 512>}, {pipeline_mode = #tpu.pipeline_mode<synchronous>, transform_indices = @transform_5, window_bounds = array<i64: 1, 512>}, {pipeline_mode = #tpu.pipeline_mode<synchronous>, transform_indices = @transform_6, window_bounds = array<i64: 4096, 64>}, {pipeline_mode = #tpu.pipeline_mode<synchronous>, transform_indices = @transform_7, window_bounds = array<i64: 2048, 64>}, {pipeline_mode = #tpu.pipeline_mode<synchronous>, transform_indices = @transform_8, window_bounds = array<i64: 2048, 64>}, {pipeline_mode = #tpu.pipeline_mode<synchronous>, transform_indices = @transform_9, window_bounds = array<i64: 512, 64>}, {pipeline_mode = #tpu.pipeline_mode<synchronous>, transform_indices = @transform_10, window_bounds = array<i64: 1, 64>}, {transform_indices = @transform_11, window_bounds = array<i64: 2, 64>}]} {
    %c0 = arith.constant 0 : index
    %c0_0 = arith.constant 0 : index
    %0 = vector.load %arg4[%c0, %c0_0] : memref<2x510xf32, #tpu.memory_space<vmem>>, vector<2x510xf32>
    %1 = arith.truncf %0 : vector<2x510xf32> to vector<2x510xbf16>
    %c0_1 = arith.constant 0 : index
    %c0_2 = arith.constant 0 : index
    %2 = vector.load %arg5[%c0_1, %c0_2] : memref<510x512xbf16, #tpu.memory_space<vmem>>, vector<510x512xbf16>
    %cst = arith.constant dense<0.000000e+00> : vector<2x512xf32>
    %3 = tpu.matmul %1, %2, %cst {dimension_numbers = #tpu.dot_dimension_numbers<[1], [0], [0], [1], [0, 0, 1, 1], [], []>} : vector<2x510xbf16>, vector<510x512xbf16>, vector<2x512xf32> -> vector<2x512xf32>
    %c0_3 = arith.constant 0 : index
    %c0_4 = arith.constant 0 : index
    %4 = vector.load %arg6[%c0_3, %c0_4] : memref<1x512xf32, #tpu.memory_space<vmem>>, vector<1x512xf32>
    %5 = vector.broadcast %4 : vector<1x512xf32> to vector<2x512xf32>
    %6 = arith.addf %3, %5 : vector<2x512xf32>
    %cst_5 = arith.constant 0.000000e+00 : f32
    %7 = vector.broadcast %cst_5 : f32 to vector<2x512xf32>
    %8 = arith.subf %7, %6 : vector<2x512xf32>
    %9 = math.exp %8 : vector<2x512xf32>
    %cst_6 = arith.constant 1.000000e+00 : f32
    %10 = vector.broadcast %cst_6 : f32 to vector<2x512xf32>
    %11 = arith.addf %10, %9 : vector<2x512xf32>
    %12 = tpu.reciprocal %11 {approx = true} : vector<2x512xf32> -> vector<2x512xf32>
    %13 = arith.mulf %6, %12 : vector<2x512xf32>
    %c0_7 = arith.constant 0 : index
    %c0_8 = arith.constant 0 : index
    %14 = vector.load %arg3[%c0_7, %c0_8] : memref<2x2048xbf16, #tpu.memory_space<vmem>>, vector<2x2048xbf16>
    %c0_9 = arith.constant 0 : index
    %c0_10 = arith.constant 0 : index
    %15 = vector.load %arg9[%c0_9, %c0_10] : memref<2048x64xbf16, #tpu.memory_space<vmem>>, vector<2048x64xbf16>
    %cst_11 = arith.constant dense<0.000000e+00> : vector<2x64xf32>
    %16 = tpu.matmul %14, %15, %cst_11 {dimension_numbers = #tpu.dot_dimension_numbers<[1], [0], [0], [1], [0, 0, 1, 1], [], []>} : vector<2x2048xbf16>, vector<2048x64xbf16>, vector<2x64xf32> -> vector<2x64xf32>
    %c0_12 = arith.constant 0 : index
    %c0_13 = arith.constant 0 : index
    %17 = vector.load %arg1[%c0_12, %c0_13] : memref<2x4096xbf16, #tpu.memory_space<vmem>>, vector<2x4096xbf16>
    %c0_14 = arith.constant 0 : index
    %c0_15 = arith.constant 0 : index
    %18 = vector.load %arg7[%c0_14, %c0_15] : memref<4096x64xbf16, #tpu.memory_space<vmem>>, vector<4096x64xbf16>
    %cst_16 = arith.constant dense<0.000000e+00> : vector<2x64xf32>
    %19 = tpu.matmul %17, %18, %cst_16 {dimension_numbers = #tpu.dot_dimension_numbers<[1], [0], [0], [1], [0, 0, 1, 1], [], []>} : vector<2x4096xbf16>, vector<4096x64xbf16>, vector<2x64xf32> -> vector<2x64xf32>
    %20 = arith.addf %16, %19 : vector<2x64xf32>
    %c0_17 = arith.constant 0 : index
    %c0_18 = arith.constant 0 : index
    %21 = vector.load %arg2[%c0_17, %c0_18] : memref<2x2048xbf16, #tpu.memory_space<vmem>>, vector<2x2048xbf16>
    %c0_19 = arith.constant 0 : index
    %c0_20 = arith.constant 0 : index
    %22 = vector.load %arg8[%c0_19, %c0_20] : memref<2048x64xbf16, #tpu.memory_space<vmem>>, vector<2048x64xbf16>
    %cst_21 = arith.constant dense<0.000000e+00> : vector<2x64xf32>
    %23 = tpu.matmul %21, %22, %cst_21 {dimension_numbers = #tpu.dot_dimension_numbers<[1], [0], [0], [1], [0, 0, 1, 1], [], []>} : vector<2x2048xbf16>, vector<2048x64xbf16>, vector<2x64xf32> -> vector<2x64xf32>
    %24 = arith.addf %20, %23 : vector<2x64xf32>
    %25 = arith.truncf %13 : vector<2x512xf32> to vector<2x512xbf16>
    %c0_22 = arith.constant 0 : index
    %c0_23 = arith.constant 0 : index
    %26 = vector.load %arg10[%c0_22, %c0_23] : memref<512x64xbf16, #tpu.memory_space<vmem>>, vector<512x64xbf16>
    %cst_24 = arith.constant dense<0.000000e+00> : vector<2x64xf32>
    %27 = tpu.matmul %25, %26, %cst_24 {dimension_numbers = #tpu.dot_dimension_numbers<[1], [0], [0], [1], [0, 0, 1, 1], [], []>} : vector<2x512xbf16>, vector<512x64xbf16>, vector<2x64xf32> -> vector<2x64xf32>
    %28 = arith.addf %24, %27 : vector<2x64xf32>
    %c0_25 = arith.constant 0 : index
    %c0_26 = arith.constant 0 : index
    %29 = vector.load %arg11[%c0_25, %c0_26] : memref<1x64xf32, #tpu.memory_space<vmem>>, vector<1x64xf32>
    %30 = vector.broadcast %29 : vector<1x64xf32> to vector<2x64xf32>
    %31 = arith.addf %28, %30 : vector<2x64xf32>
    %cst_27 = arith.constant 0.000000e+00 : f32
    %32 = vector.broadcast %cst_27 : f32 to vector<2x64xf32>
    %33 = arith.maximumf %31, %32 : vector<2x64xf32>
    %34 = math.absf %31 : vector<2x64xf32>
    %cst_28 = arith.constant 0.000000e+00 : f32
    %35 = vector.broadcast %cst_28 : f32 to vector<2x64xf32>
    %36 = arith.subf %35, %34 : vector<2x64xf32>
    %37 = math.exp %36 : vector<2x64xf32>
    %cst_29 = arith.constant 1.000000e+00 : f32
    %38 = vector.broadcast %cst_29 : f32 to vector<2x64xf32>
    %39 = arith.addf %38, %37 : vector<2x64xf32>
    %40 = math.log %39 : vector<2x64xf32>
    %41 = arith.addf %33, %40 : vector<2x64xf32>
    %42 = tpu.iota {dimensions = array<i32: 1>} : vector<2x64xi32>
    %c32_i32 = arith.constant 32 : i32
    %43 = vector.broadcast %c32_i32 : i32 to vector<2x64xi32>
    %44 = arith.cmpi slt, %42, %43 : vector<2x64xi32>
    %45 = arith.select %44, %31, %41 : vector<2x64xi1>, vector<2x64xf32>
    %c0_30 = arith.constant 0 : index
    %c0_31 = arith.constant 0 : index
    %46 = vector.load %arg12[%c0_30, %c0_31] : memref<2x64xf32, #tpu.memory_space<vmem>>, vector<2x64xf32>
    tpu.vector_store %arg12[%c0_30, %c0_31], %45 {strides = array<i32>} : memref<2x64xf32, #tpu.memory_space<vmem>>, vector<2x64xf32>,
    return
  }
  func.func @transform_0(%arg0: i32) -> (i32, i32) {
    %c0_i32 = arith.constant 0 : i32
    %c0_i32_0 = arith.constant 0 : i32
    return %arg0, %c0_i32 : i32, i32
  }
  func.func @transform_1(%arg0: i32) -> (i32, i32) {
    %c0_i32 = arith.constant 0 : i32
    %c0_i32_0 = arith.constant 0 : i32
    return %arg0, %c0_i32 : i32, i32
  }
  func.func @transform_2(%arg0: i32) -> (i32, i32) {
    %c0_i32 = arith.constant 0 : i32
    %c0_i32_0 = arith.constant 0 : i32
    return %arg0, %c0_i32 : i32, i32
  }
  func.func @transform_3(%arg0: i32) -> (i32, i32) {
    %c0_i32 = arith.constant 0 : i32
    %c0_i32_0 = arith.constant 0 : i32
    return %arg0, %c0_i32 : i32, i32
  }
  func.func @transform_4(%arg0: i32) -> (i32, i32) {
    %c0_i32 = arith.constant 0 : i32
    %c0_i32_0 = arith.constant 0 : i32
    %c0_i32_1 = arith.constant 0 : i32
    return %c0_i32, %c0_i32_0 : i32, i32
  }
  func.func @transform_5(%arg0: i32) -> (i32, i32) {
    %c0_i32 = arith.constant 0 : i32
    %c0_i32_0 = arith.constant 0 : i32
    %c0_i32_1 = arith.constant 0 : i32
    return %c0_i32, %c0_i32_0 : i32, i32
  }
  func.func @transform_6(%arg0: i32) -> (i32, i32) {
    %c0_i32 = arith.constant 0 : i32
    %c0_i32_0 = arith.constant 0 : i32
    %c0_i32_1 = arith.constant 0 : i32
    return %c0_i32, %c0_i32_0 : i32, i32
  }
  func.func @transform_7(%arg0: i32) -> (i32, i32) {
    %c0_i32 = arith.constant 0 : i32
    %c0_i32_0 = arith.constant 0 : i32
    %c0_i32_1 = arith.constant 0 : i32
    return %c0_i32, %c0_i32_0 : i32, i32
  }
  func.func @transform_8(%arg0: i32) -> (i32, i32) {
    %c0_i32 = arith.constant 0 : i32
    %c0_i32_0 = arith.constant 0 : i32
    %c0_i32_1 = arith.constant 0 : i32
    return %c0_i32, %c0_i32_0 : i32, i32
  }
  func.func @transform_9(%arg0: i32) -> (i32, i32) {
    %c0_i32 = arith.constant 0 : i32
    %c0_i32_0 = arith.constant 0 : i32
    %c0_i32_1 = arith.constant 0 : i32
    return %c0_i32, %c0_i32_0 : i32, i32
  }
  func.func @transform_10(%arg0: i32) -> (i32, i32) {
    %c0_i32 = arith.constant 0 : i32
    %c0_i32_0 = arith.constant 0 : i32
    %c0_i32_1 = arith.constant 0 : i32
    return %c0_i32, %c0_i32_0 : i32, i32
  }
  func.func @transform_11(%arg0: i32) -> (i32, i32) {
    %c0_i32 = arith.constant 0 : i32
    %c0_i32_0 = arith.constant 0 : i32
    return %arg0, %c0_i32 : i32, i32
  }
}

</mosaic_0001>

<bundles_post_ra>
// kernel: motion_prior_ik_forward.2
= control target key start
LH: loop header
LB: loop body
LE: loop exit
PB: predicated region body
PF: predicated region fallthrough
CT: control target
= control target key end

     0   :  { %s5727_s0 = inlined_call_operand.vmem [shape: f32[128,57], index: 0, kind: input, shape index: {}]   ;;  %s5728_s1 = inlined_call_operand.vmem [shape: f32[128,57], index: 1, kind: input, shape index: {}]   ;;  %s5729_s2 = inlined_call_operand.vmem [shape: f32[128,1], index: 2, kind: input, shape index: {}]   ;;  %s5730_s3 = inlined_call_operand.vmem [shape: f32[128,1], index: 3, kind: input, shape index: {}]   ;;  %s5731_s4 = inlined_call_operand.vmem [shape: bf16[57,64], index: 4, kind: input, shape index: {}]   ;;  %s5732_s5 = inlined_call_operand.vmem [shape: bf16[57,128], index: 5, kind: input, shape index: {}]   ;;  %s5733_s6 = inlined_call_operand.vmem [shape: f32[1,64], index: 6, kind: input, shape index: {}]   ;;  %s5734_s7 = inlined_call_operand.vmem [shape: bf16[64,192], index: 7, kind: input, shape index: {}]   ;;  %s5735_s8 = inlined_call_operand.vmem [shape: f32[1,64], index: 8, kind: input, shape index: {}]   ;;  %s5736_s9 = inlined_call_operand.vmem [shape: bf16[64,192], index: 9, kind: input, shape index: {}]   ;;  %s5737_s10 = inlined_call_operand.vmem [shape: f32[1,64], index: 10, kind: input, shape index: {}]   ;;  %s5738_s11 = inlined_call_operand.vmem [shape: bf16[64,64], index: 11, kind: input, shape index: {}]   ;;  %s5739_s12 = inlined_call_operand.vmem [shape: bf16[64,128], index: 12, kind: input, shape index: {}]   ;;  %s5740_s13 = inlined_call_operand.vmem [shape: f32[1,64], index: 13, kind: input, shape index: {}]   ;;  %s5741_s14 = inlined_call_operand.vmem [shape: bf16[64,192], index: 14, kind: input, shape index: {}]   ;;  %s5742_s15 = inlined_call_operand.vmem [shape: f32[1,64], index: 15, kind: input, shape index: {}]   ;;  %s5743_s16 = inlined_call_operand.vmem [shape: bf16[64,192], index: 16, kind: input, shape index: {}]   ;;  %s5744_s17 = inlined_call_operand.vmem [shape: f32[1,64], index: 17, kind: input, shape index: {}]   ;;  %s5745_s18 = inlined_call_operand.vmem [shape: bf16[64,128], index: 18, kind: input, shape index: {}]   ;;  %s5746_s19 = inlined_call_operand.vmem [shape: bf16[64,256], index: 19, kind: input, shape index: {}]   ;;  %s5747_s20 = inlined_call_operand.vmem [shape: f32[1,128], index: 20, kind: input, shape index: {}]   ;;  %s5748_s21 = inlined_call_operand.vmem [shape: bf16[128,384], index: 21, kind: input, shape index: {}]   ;;  %s5749_s22 = inlined_call_operand.vmem [shape: f32[1,128], index: 22, kind: input, shape index: {}]   ;;  %s5750_s23 = inlined_call_operand.vmem [shape: bf16[128,384], index: 23, kind: input, shape index: {}]   ;;  %s5751_s24 = inlined_call_operand.vmem [shape: f32[1,128], index: 24, kind: input, shape index: {}]   ;;  %s5752_s25 = inlined_call_operand.vmem [shape: bf16[64,128], index: 25, kind: output, shape index: {0}]   ;;  %s5753_s26 = inlined_call_operand.vmem [shape: bf16[32,128], index: 26, kind: output, shape index: {1}]   ;;  %s5754_s27 = inlined_call_operand.vmem [shape: bf16[32,128], index: 27, kind: output, shape index: {2}]  }
   0x1   :  { %5766 = sst [smem:[#allocation4_spill]] %s5727_s0 }
   0x2   :  { %5767 = sst [smem:[#allocation5_spill]] %s5728_s1 }
   0x3   :  { %5768 = sst [smem:[#allocation6_spill]] %s5729_s2 }
   0x4   :  { %5769 = sst [smem:[#allocation7_spill]] %s5730_s3 }
   0x5   :  { %5770 = sst [smem:[#allocation8_spill]] %s5731_s4 }
   0x6   :  { %5771 = sst [smem:[#allocation9_spill]] %s5732_s5 }
   0x7   :  { %5772 = sst [smem:[#allocation10_spill]] %s5733_s6 }
   0x8   :  { %5773 = sst [smem:[#allocation11_spill]] %s5734_s7  ;;  %s4403_s7 = smov 0  }
   0x9   :  { %5774 = sst [smem:[#allocation12_spill]] %s5735_s8 }
   0xa   :  { %5775 = sst [smem:[#allocation13_spill]] %s5736_s9 }
   0xb   :  { %5776 = sst [smem:[#allocation14_spill]] %s5737_s10 }
   0xc   :  { %5777 = sst [smem:[#allocation15_spill]] %s5738_s11 }
   0xd LB: > { %s4409_s4 = sadd.s32 4294967295, %s4258_s7   ;;  %p3429_p0 = scmp.ge.s32.totalorder %s4258_s7, 1  ;;  %s4258_s7 = sphi %s4403_s7, %s38_s7  }
   0xe   : > { %p776_p1 = scmp.lt.s32.totalorder %s4258_s7, 3 }
  0x10   : > { %p777_p2 = pnand %p3429_p0, %p776_p1 }
  0x11   : > { %s3430_s8 = sshll.u32 (!%p777_p2), %s4409_s4, 3  ;;  %s5778_s28 = sld [smem:[#allocation7_spill]] (!%p777_p2) }
  0x12   : > { %780 = sbr.rel (%p777_p2) target bundleno = 2436 (0x984), region = 120  ;;  %p874_p3 = scmp.lt.s32.totalorder (!%p777_p2), %s3430_s8, 15 }
  0x13   : > { %s5779_s1 = sld [smem:[#allocation9_spill]] (!%p777_p2)  ;;  %s5788_s5 = smov (!%p777_p2), 64  }
  0x14   : > { %s5781_s3 = sld [smem:[#allocation8_spill]] (!%p777_p2) }
  0x15   : > { %s5784_s11 = sld [smem:[#allocation11_spill]] (!%p777_p2) }
  0x16   : > { %s5793_s2 = sld [smem:[#allocation14_spill]] (!%p777_p2) }
  0x17   : > { %v4260_v0 = vmov 0   ;;  %s5805_s8 = smov (!%p874_p3, %s3430_s8), 15  ;;  %vm1143_vm0 = vcmask 1043456   ;;  %vm1144_vm1 = vcmask 1044480   ;;  %v4261_v7 = vmov 65535  }
  0x18   : > { %4058 = vset.pattern.permute.xlu1 %v4260_v0  ;;  %4057 = vset.pattern.permute.xlu0 %v4260_v0  ;;  %s4414_s30 = sshll.u32 %s5805_s8, 3  ;;  %v1145_v8 = vsel %vm1143_vm0, 4294967295, %v4261_v7  ;;  %s5780_s8 = sld [smem:[#allocation6_spill]]  ;;  %vm1130_vm2 = vcmask 465920   ;;  %vm1459_vm5 = vcmask 523264  }
  0x19   : > { %4059 = vset.pattern.permute.xlu2 %v4260_v0  ;;  %s895_s0 = scalar_lea.vmem %s5778_s28, %s4414_s30  ;;  %v3478_v9 = vld [vmem:[%s5779_s1 + $0x18] sm:$0xf]  ;;  %v3924_v10 = vld [vmem:[%s5779_s1 + $0x18] sm:$0x10]  ;;  %v1146_v11 = vsel %vm1144_vm1, %v1145_v8, 0  ;;  %v3923_v24 = vld [vmem:[%s5779_s1 + $0x10] sm:$0xff] }
  0x1a   : > { %v1041_v1 = vld [vmem:[%s895_s0 + $0x10] sm:$0xff]  ;;  %v1039_v2 = vld [vmem:[%s895_s0] sm:$0xff]  ;;  %v1042_v4 = vld [vmem:[%s895_s0 + $0x18] sm:$0xff]  ;;  %v3479_v12 = vor.u32 %v3924_v10, %v3478_v9  ;;  %s3438_s28 = sshll.u32 %s4409_s4, 2 }
  0x1b   : > { %1059 = vperm.xlu1 %4058, %v1041_v1   ;;  %1049 = vperm.xlu0 %4057, %v1039_v2   ;;  %v1043_v3 = vld [vmem:[%s895_s0 + $0x20] sm:$0xff]  ;;  %v1040_v5 = vld [vmem:[%s895_s0 + $0x8] sm:$0xff]  ;;  %v1046_v14 = vld [vmem:[%s895_s0 + $0x38] sm:$0xff]  ;;  %p898_p4 = scmp.lt.s32.totalorder %s3438_s28, 7 }
  0x1c   : > { %1069 = vperm.xlu2 %4059, %v1043_v3   ;;  %v1044_v6 = vld [vmem:[%s895_s0 + $0x28] sm:$0xff]  ;;  %v1227_v13 = vand.u32 %v3479_v12, %v1146_v11  ;;  %v1045_v15 = vld [vmem:[%s895_s0 + $0x30] sm:$0xff]  ;;  %v3921_v26 = vld [vmem:[%s5779_s1] sm:$0xff]  ;;  %s5783_s0 = sld [smem:[#allocation4_spill]] }
  0x1d   : > { %v3922_v25 = vld [vmem:[%s5779_s1 + $0x8] sm:$0xff]  ;;  %v3458_v27 = vld [vmem:[%s5781_s3 + $0x18] sm:$0xf]  ;;  %v3920_v28 = vld [vmem:[%s5781_s3 + $0x18] sm:$0x10]  ;;  %s5807_s28 = smov (!%p898_p4, %s3438_s28), 7 }
  0x1e   : > { %s889_s9 = scalar_lea.vmem %s5780_s8, %s4414_s30  ;;  %1233 = vmatpush.bf16.msra.mxu1 %v1227_v13  ;;  %v3459_v29 = vor.u32 %v3920_v28, %v3458_v27  ;;  %v3919_v31 = vld [vmem:[%s5781_s3 + $0x10] sm:$0xff]  ;;  %v3918_v32 = vld [vmem:[%s5781_s3 + $0x8] sm:$0xff]  ;;  %v3917_v33 = vld [vmem:[%s5781_s3] sm:$0xff]  ;;  %s5782_s8 = sld [smem:[#allocation5_spill]]  ;;  %v916_v27 = vlaneseq }
  0x1f   : > { %v975_v16 = vld [vmem:[%s889_s9] sm:$0xff]  ;;  %v977_v17 = vld [vmem:[%s889_s9 + $0x10] sm:$0xff]  ;;  %v976_v18 = vld [vmem:[%s889_s9 + $0x8] sm:$0xff] }
  0x20   : > { %v978_v19 = vld [vmem:[%s889_s9 + $0x18] sm:$0xff]  ;;  %v980_v20 = vld [vmem:[%s889_s9 + $0x28] sm:$0xff]  ;;  %v979_v21 = vld [vmem:[%s889_s9 + $0x20] sm:$0xff]  ;;  %v1148_v30 = vand.u32 %v3459_v29, %v1146_v11  ;;  %v4494_v28 = vshrl.u32 %v916_v27, 7 }
  0x21   : > { %v981_v22 = vld [vmem:[%s889_s9 + $0x30] sm:$0xff]  ;;  %v982_v23 = vld [vmem:[%s889_s9 + $0x38] sm:$0xff] }
  0x22   : > { %1234 = vmatpush.bf16.msra.mxu1 %v3923_v24  ;;  %1154 = vmatpush.bf16.msra.mxu0 %v1148_v30  ;;  %s4467_s10 = scalar_lea.vmem %s5783_s0, %s4414_s30  ;;  %vm1266_vm3 = vcmp.lt.s32.totalorder %v4494_v28, 1  ;;  %vm1562_vm6 = vcmp.lt.s32.totalorder %v4494_v28, 7  ;;  %s3439_s0 = sshll.u32 %s5807_s28, 2 }
  0x23   : > { %1064 = vperm.xlu1 %4058, %v1042_v4   ;;  %1054 = vperm.xlu0 %4057, %v1040_v5   ;;  %v967_v48 = vld [vmem:[%s4467_s10] sm:$0xff]  ;;  %v968_v50 = vld [vmem:[%s4467_s10 + $0x8] sm:$0xff]  ;;  %v969_v62 = vld [vmem:[%s4467_s10 + $0x10] sm:$0xff]  ;;  %s901_s3 = scalar_lea.vmem %s5752_s25, %s3439_s0 }
  0x24   : > { %1074 = vperm.xlu2 %4059, %v1044_v6   ;;  %s4458_s9 = scalar_lea.vmem %s5782_s8, %s4414_s30  ;;  %v970_v0 = vld [vmem:[%s4467_s10 + $0x18] sm:$0xff]  ;;  %v972_v10 = vld [vmem:[%s4467_s10 + $0x28] sm:$0xff]  ;;  %v971_v12 = vld [vmem:[%s4467_s10 + $0x20] sm:$0xff]  ;;  %s5760_s30 = smov 64  }
  0x25   : > { %v1031_v37 = vld [vmem:[%s4458_s9] sm:$0xff]  ;;  %v1032_v38 = vld [vmem:[%s4458_s9 + $0x8] sm:$0xff]  ;;  %v1033_v46 = vld [vmem:[%s4458_s9 + $0x10] sm:$0xff] }
  0x26   : > { %1235 = vmatpush.bf16.msra.mxu1 %v3922_v25  ;;  %1155 = vmatpush.bf16.msra.mxu0 %v3919_v31  ;;  %v1034_v47 = vld [vmem:[%s4458_s9 + $0x18] sm:$0xff]  ;;  %v1035_v59 = vld [vmem:[%s4458_s9 + $0x20] sm:$0xff]  ;;  %v1036_v60 = vld [vmem:[%s4458_s9 + $0x28] sm:$0xff] }
  0x27   : > { %v1038_v7 = vld [vmem:[%s4458_s9 + $0x38] sm:$0xff]  ;;  %v1037_v8 = vld [vmem:[%s4458_s9 + $0x30] sm:$0xff] }
  0x2a   : > { %1236 = vmatpush.bf16.msra.mxu1 %v3921_v26  ;;  %1156 = vmatpush.bf16.msra.mxu0 %v3918_v32 }
  0x2b   : > { %1084 = vperm.xlu1 %4058, %v1046_v14   ;;  %1079 = vperm.xlu0 %4057, %v1045_v15  }
  0x2c   : > { %985 = vperm.xlu2 %4059, %v975_v16  }
  0x2e   : > { %1157 = vmatpush.bf16.msra.mxu0 %v3917_v33 }
  0x33   : > { %995 = vperm.xlu1 %4058, %v977_v17   ;;  %990 = vperm.xlu0 %4057, %v976_v18  }
  0x34   : > { %1000 = vperm.xlu2 %4059, %v978_v19  }
  0x3b   : > { %1010 = vperm.xlu1 %4058, %v980_v20   ;;  %1005 = vperm.xlu0 %4057, %v979_v21   ;;  %v974_v20 = vld [vmem:[%s4467_s10 + $0x38] sm:$0xff] }
  0x3c   : > { %1015 = vperm.xlu2 %4059, %v981_v22   ;;  %v973_v22 = vld [vmem:[%s4467_s10 + $0x30] sm:$0xff]  ;;  %s5790_s10 = sld [smem:[#allocation12_spill]] }
  0x43   : > { %1020 = vperm.xlu0 %4057, %v982_v23  }
  0x76   : > { %v1070_v35 = vpop.permute.xlu2 %1069 }
  0x77   : > { %v1091_v1 = vmul.f32 %v1070_v35, %v1035_v59  ;;  %v3929_v59 = vld [vmem:[%s5784_s11 + $0x24] sm:$0xf] }
  0x7e   : > { %v1075_v43 = vpop.permute.xlu2 %1074 }
  0x7f   : > { %v1092_v2 = vmul.f32 %v1075_v43, %v1036_v60 }
  0x81   : > { %v1181_v5 = vpack.c.bf16 %v1092_v2, %v1091_v1 }
  0x86   : > { %v986_v49 = vpop.permute.xlu2 %985 }
  0x87   : > { %v1023_v53 = vmul.f32 %v986_v49, %v967_v48 }
  0x8d   : > { %v1050_v34 = vpop.permute.xlu0 %1049  ;;  %v1060_v36 = vpop.permute.xlu1 %1059 }
  0x8e   : > { %v1087_v40 = vmul.f32 %v1050_v34, %v1031_v37  ;;  %v1089_v51 = vmul.f32 %v1060_v36, %v1033_v46  ;;  %v1001_v63 = vpop.permute.xlu2 %1000 }
  0x8f   : > { %v1026_v4 = vmul.f32 %v1001_v63, %v970_v0 }
  0x95   : > { %v1055_v39 = vpop.permute.xlu0 %1054  ;;  %v1065_v44 = vpop.permute.xlu1 %1064 }
  0x96   : > { %v1088_v41 = vmul.f32 %v1055_v39, %v1032_v38  ;;  %v1090_v52 = vmul.f32 %v1065_v44, %v1034_v47  ;;  %v1016_v21 = vpop.permute.xlu2 %1015 }
  0x97   : > { %v1029_v24 = vmul.f32 %v1016_v21, %v973_v22 }
  0x98   : > { %v1179_v42 = vpack.c.bf16 %v1088_v41, %v1087_v40  ;;  %v1180_v57 = vpack.c.bf16 %v1090_v52, %v1089_v51  ;;  %v3510_v51 = vld [vmem:[%s5784_s11 + $0x30] sm:$0xf]  ;;  %v3932_v52 = vld [vmem:[%s5784_s11 + $0x34] sm:$0xf0] }
  0x9a   : > { %3480 = vmatmul.msk.bf16.vlgmr.msra.gmra.mxu1 %vm1130_vm2, %v1179_v42 }
  0x9d   : > { %v1080_v45 = vpop.permute.xlu0 %1079  ;;  %v1085_v56 = vpop.permute.xlu1 %1084 }
  0x9e   : > { %v1094_v13 = vmul.f32 %v1085_v56, %v1038_v7  ;;  %v1093_v14 = vmul.f32 %v1080_v45, %v1037_v8  ;;  %v3496_v8 = vld [vmem:[%s5784_s11 + $0x18] sm:$0xf0] }
  0xa0   : > { %v1182_v17 = vpack.c.bf16 %v1094_v13, %v1093_v14  ;;  %v3486_v13 = vld [vmem:[%s5784_s11] sm:$0xf]  ;;  %v3926_v14 = vld [vmem:[%s5784_s11 + $0x4] sm:$0xf0] }
  0xa5   : > { %v991_v54 = vpop.permute.xlu0 %990  ;;  %v996_v61 = vpop.permute.xlu1 %995 }
  0xa6   : > { %v1024_v55 = vmul.f32 %v991_v54, %v968_v50  ;;  %v1025_v3 = vmul.f32 %v996_v61, %v969_v62  ;;  %v3511_v54 = vor.u32 %v3932_v52, %v3510_v51  ;;  %v3504_v62 = vld [vmem:[%s5784_s11 + $0x28] sm:$0xf0] }
  0xa7   : > { %v3507_v0 = vor.u32 %v3929_v59, %v3504_v62 }
  0xa8   : > { %v1095_v58 = vpack.c.bf16 %v1024_v55, %v1023_v53  ;;  %v1096_v6 = vpack.c.bf16 %v1026_v4, %v1025_v3  ;;  %v3931_v53 = vld [vmem:[%s5784_s11 + $0x34] sm:$0xf]  ;;  %v3512_v55 = vld [vmem:[%s5784_s11 + $0x38] sm:$0xf0]  ;;  %1476 = vmatpush.bf16.msra.mxu2 %v3511_v54  ;;  %v3494_v3 = vld [vmem:[%s5784_s11 + $0x10] sm:$0xf] }
  0xa9   : > { %v3515_v56 = vor.u32 %v3931_v53, %v3512_v55  ;;  %v3928_v4 = vld [vmem:[%s5784_s11 + $0x14] sm:$0xf0] }
  0xaa   : > { %3460 = vmatmul.msk.bf16.vlgmr.msra.gmra.mxu0 %vm1130_vm2, %v1095_v58  ;;  %3481 = vmatmul.msk.bf16.gmra.mxu1 %vm1130_vm2, %v1180_v57  ;;  %v3502_v57 = vld [vmem:[%s5784_s11 + $0x20] sm:$0xf]  ;;  %v3930_v58 = vld [vmem:[%s5784_s11 + $0x24] sm:$0xf0]  ;;  %v3495_v7 = vor.u32 %v3928_v4, %v3494_v3 }
  0xab   : > { %1505 = vmatpush.bf16.msra.mxu3 %v3515_v56  ;;  %v3503_v61 = vor.u32 %v3930_v58, %v3502_v57 }
  0xad   : > { %v1011_v9 = vpop.permute.xlu1 %1010  ;;  %v1006_v11 = vpop.permute.xlu0 %1005  ;;  %1477 = vmatpush.bf16.msra.mxu2 %v3503_v61 }
  0xae   : > { %v1028_v15 = vmul.f32 %v1011_v9, %v972_v10  ;;  %v1027_v16 = vmul.f32 %v1006_v11, %v971_v12  ;;  %v925_v10 = vand.u32 63, %v4494_v28 }
  0xaf   : > { %1506 = vmatpush.bf16.msra.mxu3 %v3507_v0 }
  0xb0   : > { %v1097_v18 = vpack.c.bf16 %v1028_v15, %v1027_v16  ;;  %v3487_v15 = vor.u32 %v3926_v14, %v3486_v13  ;;  %v3925_v16 = vld [vmem:[%s5784_s11 + $0x4] sm:$0xf]  ;;  %vm4594_vm4 = vcmp.eq.s32.totalorder %v925_v10, 0 }
  0xb1   : > { %1478 = vmatpush.bf16.msra.mxu2 %v3495_v7 }
  0xb5   : > { %v1021_v19 = vpop.permute.xlu0 %1020  ;;  %1479 = vmatpush.bf16.msra.mxu2 %v3487_v15 }
  0xb6   : > { %v1030_v23 = vmul.f32 %v1021_v19, %v974_v20 }
  0xb8   : > { %v1098_v25 = vpack.c.bf16 %v1030_v23, %v1029_v24 }
  0xba   : > { %3461 = vmatmul.msk.bf16.gmra.mxu0 %vm1130_vm2, %v1096_v6  ;;  %3482 = vmatmul.msk.bf16.gmra.mxu1 %vm1130_vm2, %v1181_v5  ;;  %v3927_v5 = vld [vmem:[%s5784_s11 + $0x14] sm:$0xf] }
  0xbb   : > { %v3499_v11 = vor.u32 %v3927_v5, %v3496_v8 }
  0xbd   : > { %1507 = vmatpush.bf16.msra.mxu3 %v3499_v11 }
  0xca   : > { %3462 = vmatmul.msk.bf16.gmra.mxu0 %vm1130_vm2, %v1097_v18  ;;  %3483 = vmatmul.msk.bf16.gmra.mxu1 %vm1130_vm2, %v1182_v17  ;;  %v3488_v17 = vld [vmem:[%s5784_s11 + $0x8] sm:$0xf0] }
  0xcb   : > { %v3491_v20 = vor.u32 %v3925_v16, %v3488_v17 }
  0xcd   : > { %1508 = vmatpush.bf16.msra.mxu3 %v3491_v20 }
  0xda   : > { %3463 = vmatmul.msk.bf16.gmra.mxu0 %vm1130_vm2, %v1098_v25 }
 0x117   : > { %v4490_v26 = vpop.f32.mrf.mxu1 }
 0x118   : > { %1315 = vrot.lane.b32.xlu1 %v4490_v26, %s5760_s30  ;;  %v1258_v30 = vrot.slane %v4490_v26, 7 }
 0x11f   : > { %v1240_v29 = vpop.f32.mrf.mxu1 }
 0x120   : > { %v1259_v31 = vrot.slane %v1240_v29, 7  ;;  %1317 = vrot.lane.b32.xlu2 %v1240_v29, %s5760_s30 }
 0x122   : > { %v1273_v32 = vsel %vm1266_vm3, %v1258_v30, %v1259_v31 }
 0x127   : > { %v1243_v33 = vpop.f32.mrf.mxu1  ;;  %v1159_v49 = vpop.f32.mrf.mxu0 }
 0x128   : > { %v1260_v34 = vrot.slane %v1243_v33, 7  ;;  %1319 = vrot.lane.b32.xlu0 %v1243_v33, %s5760_s30 }
 0x12a   : > { %v4506_v35 = vsel %vm1266_vm3, %v1259_v31, %v1260_v34 }
 0x12f   : > { %v1245_v36 = vpop.f32.mrf.mxu1  ;;  %v1161_v50 = vpop.f32.mrf.mxu0 }
 0x130   : > { %v1261_v37 = vrot.slane %v1245_v36, 7  ;;  %1321 = vrot.lane.b32.xlu1 %v1245_v36, %s5760_s30  ;;  %v1300_v63 = vadd.f32 %v1273_v32, %v1161_v50 }
 0x132   : > { %v4511_v38 = vsel %vm1266_vm3, %v1260_v34, %v1261_v37 }
 0x137   : > { %v1248_v39 = vpop.f32.mrf.mxu1  ;;  %v1164_v6 = vpop.f32.mrf.mxu0 }
 0x138   : > { %v1262_v40 = vrot.slane %v1248_v39, 7  ;;  %1323 = vrot.lane.b32.xlu2 %v1248_v39, %s5760_s30 }
 0x13a   : > { %v4516_v41 = vsel %vm1266_vm3, %v1261_v37, %v1262_v40  ;;  %v1301_v37 = vadd.f32 %v4506_v35, %v1164_v6 }
 0x13f   : > { %v1250_v42 = vpop.f32.mrf.mxu1  ;;  %v1166_v23 = vpop.f32.mrf.mxu0 }
 0x140   : > { %v1263_v43 = vrot.slane %v1250_v42, 7  ;;  %1325 = vrot.lane.b32.xlu0 %v1250_v42, %s5760_s30  ;;  %v1302_v52 = vadd.f32 %v4511_v38, %v1166_v23 }
 0x142   : > { %v4521_v44 = vsel %vm1266_vm3, %v1262_v40, %v1263_v43 }
 0x147   : > { %v4523_v45 = vpop.f32.mrf.mxu1  ;;  %v1169_v33 = vpop.f32.mrf.mxu0 }
 0x148   : > { %v1264_v46 = vrot.slane %v4523_v45, 7  ;;  %1327 = vrot.lane.b32.xlu1 %v4523_v45, %s5760_s30  ;;  %v1303_v57 = vadd.f32 %v4516_v41, %v1169_v33 }
 0x14a   : > { %v4532_v47 = vsel %vm1266_vm3, %v1263_v43, %v1264_v46 }
 0x14f   : > { %v4534_v48 = vpop.f32.mrf.mxu1  ;;  %v1171_v43 = vpop.f32.mrf.mxu0 }
 0x150   : > { %1329 = vrot.lane.b32.xlu2 %v4534_v48, %s5760_s30  ;;  %s5785_s30 = sld [smem:[#allocation10_spill]]  ;;  %v1265_v9 = vrot.slane %v4534_v48, 7  ;;  %v1304_v7 = vadd.f32 %v4521_v44, %v1171_v43 }
 0x152   : > { %v1274_v19 = vsel %vm1266_vm3, %v1265_v9, %v1258_v30  ;;  %v1267_v10 = vsel %vm1266_vm3, %v1264_v46, %v1265_v9 }
 0x153   : > { %v1291_v22 = vsel %vm4594_vm4, 0.0, %v1274_v19 }
 0x154   : > { %v1299_v25 = vadd.f32 %v1291_v22, %v1159_v49 }
 0x156   : > { %v4565_v1 = vld [vmem:[%s5785_s30] ss:$0 sm:$0xff]  ;;  %s5789_s30 = sld [smem:[#allocation13_spill]] }
 0x157   : > { %v1174_v38 = vpop.f32.mrf.mxu0 }
 0x158   : > { %v1305_v48 = vadd.f32 %v4532_v47, %v1174_v38 }
 0x15f   : > { %v1176_v5 = vpop.f32.mrf.mxu0 }
 0x160   : > { %v1306_v14 = vadd.f32 %v1267_v10, %v1176_v5  ;;  %v3938_v5 = vld [vmem:[%s5789_s30 + $0x24] sm:$0xf0] }
 0x17a   : > { %v1318_v60 = vpop.permute.xlu2 %1317 }
 0x17b   : > { %v1340_v2 = vadd.f32 %v1318_v60, %v1300_v63 }
 0x17d   : > { %v1352_v12 = vadd.f32 %v4565_v1, %v1340_v2 }
 0x17f   : > { %v1360_v21 = vsub.f32 0.0, %v1352_v12 }
 0x181   : > { %v1369_v24 = vmul.f32 1.442695, %v1360_v21 }
 0x183   : > { %4084 = vpow2.f32 %v1369_v24 }
 0x189   : > { %v4085_v34 = vpop.eup %4084 }
 0x18a   : > { %v1316_v27 = vpop.permute.xlu1 %1315  ;;  %v1384_v30 = vadd.f32 1.0, %v4085_v34 }
 0x18b   : > { %v1339_v29 = vadd.f32 %v1316_v27, %v1299_v25 }
 0x18d   : > { %v1351_v26 = vadd.f32 %v4565_v1, %v1339_v29 }
 0x18f   : > { %v1359_v31 = vsub.f32 0.0, %v1351_v26 }
 0x191   : > { %v1367_v32 = vmul.f32 1.442695, %v1359_v31 }
 0x192   : > { %v1324_v55 = vpop.permute.xlu2 %1323 }
 0x193   : > { %4086 = vpow2.f32 %v1367_v32  ;;  %v1343_v60 = vadd.f32 %v1324_v55, %v1303_v57 }
 0x194   : > { %4088 = vrcp.f32 %v1384_v30 }
 0x195   : > { %v1355_v41 = vadd.f32 %v4565_v1, %v1343_v60 }
 0x197   : > { %v1363_v3 = vsub.f32 0.0, %v1355_v41 }
 0x199   : > { %v4087_v36 = vpop.eup %4086  ;;  %v1375_v8 = vmul.f32 1.442695, %v1363_v3 }
 0x19a   : > { %v1383_v39 = vadd.f32 1.0, %v4087_v36  ;;  %v1320_v40 = vpop.permute.xlu0 %1319  ;;  %v4089_v51 = vpop.eup %4088 }
 0x19b   : > { %v1341_v42 = vadd.f32 %v1320_v40, %v1301_v37  ;;  %v4611_v58 = vmul.f32 %v4089_v51, %v1352_v12 }
 0x19c   : > { %4090 = vrcp.f32 %v1383_v39 }
 0x19d   : > { %v1353_v49 = vadd.f32 %v4565_v1, %v1341_v42 }
 0x19f   : > { %v1361_v50 = vsub.f32 0.0, %v1353_v49 }
 0x1a1   : > { %v1371_v53 = vmul.f32 1.442695, %v1361_v50 }
 0x1a2   : > { %v4091_v54 = vpop.eup %4090  ;;  %v1322_v56 = vpop.permute.xlu1 %1321 }
 0x1a3   : > { %v4613_v35 = vmul.f32 %v4091_v54, %v1351_v26  ;;  %v1342_v59 = vadd.f32 %v1322_v56, %v1302_v52  ;;  %4092 = vpow2.f32 %v1371_v53 }
 0x1a5   : > { %v1354_v61 = vadd.f32 %v4565_v1, %v1342_v59  ;;  %v1407_v62 = vpack.c.bf16 %v4611_v58, %v4613_v35 }
 0x1a7   : > { %v1362_v63 = vsub.f32 0.0, %v1354_v61  ;;  %3516 = vmatmul.msk.bf16.vlgmr.msra.gmra.mxu2 %vm1459_vm5, %v1407_v62  ;;  %3520 = vmatmul.msk.bf16.vlgmr.msra.gmra.mxu3 %vm1459_vm5, %v1407_v62 }
 0x1a9   : > { %v1373_v0 = vmul.f32 1.442695, %v1362_v63  ;;  %v4093_v2 = vpop.eup %4092 }
 0x1aa   : > { %v1385_v4 = vadd.f32 1.0, %v4093_v2  ;;  %v1330_v12 = vpop.permute.xlu2 %1329  ;;  %v3940_v2 = vld [vmem:[%s5789_s30 + $0x34] sm:$0xf0] }
 0x1ab   : > { %4094 = vpow2.f32 %v1373_v0  ;;  %v1346_v16 = vadd.f32 %v1330_v12, %v1306_v14  ;;  %v3550_v0 = vld [vmem:[%s5789_s30 + $0x30] sm:$0xf] }
 0x1ac   : > { %4096 = vrcp.f32 %v1385_v4  ;;  %v3551_v3 = vor.u32 %v3940_v2, %v3550_v0  ;;  %v3542_v4 = vld [vmem:[%s5789_s30 + $0x20] sm:$0xf] }
 0x1ad   : > { %v1358_v45 = vadd.f32 %v4565_v1, %v1346_v16 }
 0x1ae   : > { %1771 = vmatpush.bf16.msrb.mxu0 %v3551_v3 }
 0x1af   : > { %v1366_v25 = vsub.f32 0.0, %v1358_v45 }
 0x1b1   : > { %v4095_v6 = vpop.eup %4094  ;;  %v1381_v32 = vmul.f32 1.442695, %v1366_v25  ;;  %v3937_v25 = vld [vmem:[%s5789_s30 + $0x24] sm:$0xf] }
 0x1b2   : > { %v1386_v11 = vadd.f32 1.0, %v4095_v6  ;;  %v1326_v13 = vpop.permute.xlu0 %1325  ;;  %v4097_v19 = vpop.eup %4096 }
 0x1b3   : > { %v1344_v15 = vadd.f32 %v1326_v13, %v1304_v7  ;;  %v4631_v22 = vmul.f32 %v4097_v19, %v1353_v49  ;;  %v3543_v7 = vor.u32 %v3938_v5, %v3542_v4 }
 0x1b4   : > { %4098 = vrcp.f32 %v1386_v11 }
 0x1b5   : > { %4100 = vpow2.f32 %v1375_v8  ;;  %v1356_v17 = vadd.f32 %v4565_v1, %v1344_v15  ;;  %1772 = vmatpush.bf16.msrb.mxu0 %v3543_v7 }
 0x1b7   : > { %v1364_v44 = vsub.f32 0.0, %v1356_v17 }
 0x1b9   : > { %v1377_v20 = vmul.f32 1.442695, %v1364_v44 }
 0x1ba   : > { %v4099_v21 = vpop.eup %4098  ;;  %v1328_v46 = vpop.permute.xlu1 %1327 }
 0x1bb   : > { %v4101_v9 = vpop.eup %4100  ;;  %v4633_v23 = vmul.f32 %v4099_v21, %v1354_v61  ;;  %4102 = vpow2.f32 %v1377_v20  ;;  %v1345_v24 = vadd.f32 %v1328_v46, %v1305_v48  ;;  %v3939_v20 = vld [vmem:[%s5789_s30 + $0x34] sm:$0xf]  ;;  %v3552_v21 = vld [vmem:[%s5789_s30 + $0x38] sm:$0xf0] }
 0x1bc   : > { %v1387_v26 = vadd.f32 1.0, %v4101_v9  ;;  %v3555_v9 = vor.u32 %v3939_v20, %v3552_v21 }
 0x1bd   : > { %v1357_v27 = vadd.f32 %v4565_v1, %v1345_v24  ;;  %v1408_v29 = vpack.c.bf16 %v4633_v23, %v4631_v22 }
 0x1be   : > { %4104 = vrcp.f32 %v1387_v26  ;;  %1800 = vmatpush.bf16.msrb.mxu1 %v3555_v9 }
 0x1bf   : > { %v1365_v47 = vsub.f32 0.0, %v1357_v27  ;;  %3517 = vmatmul.msk.bf16.gmra.mxu2 %vm1459_vm5, %v1408_v29  ;;  %3521 = vmatmul.msk.bf16.gmra.mxu3 %vm1459_vm5, %v1408_v29 }
 0x1c1   : > { %v4103_v31 = vpop.eup %4102  ;;  %v1379_v33 = vmul.f32 1.442695, %v1365_v47 }
 0x1c2   : > { %v1388_v34 = vadd.f32 1.0, %v4103_v31  ;;  %v3534_v31 = vld [vmem:[%s5789_s30 + $0x10] sm:$0xf] }
 0x1c3   : > { %4106 = vpow2.f32 %v1379_v33  ;;  %v3935_v33 = vld [vmem:[%s5789_s30 + $0x14] sm:$0xf] }
 0x1c4   : > { %4108 = vrcp.f32 %v1388_v34  ;;  %v4105_v30 = vpop.eup %4104 }
 0x1c5   : > { %4110 = vpow2.f32 %v1381_v32  ;;  %v4640_v39 = vmul.f32 %v4105_v30, %v1355_v41  ;;  %v3936_v32 = vld [vmem:[%s5789_s30 + $0x14] sm:$0xf0]  ;;  %v3536_v30 = vld [vmem:[%s5789_s30 + $0x18] sm:$0xf0] }
 0x1c6   : > { %v3535_v34 = vor.u32 %v3936_v32, %v3534_v31 }
 0x1c8   : > { %1773 = vmatpush.bf16.msrb.mxu0 %v3535_v34 }
 0x1c9   : > { %v4107_v36 = vpop.eup %4106 }
 0x1ca   : > { %v4109_v1 = vpop.eup %4108  ;;  %v1389_v42 = vadd.f32 1.0, %v4107_v36 }
 0x1cb   : > { %v4111_v37 = vpop.eup %4110  ;;  %v4642_v40 = vmul.f32 %v4109_v1, %v1356_v17 }
 0x1cc   : > { %v1390_v49 = vadd.f32 1.0, %v4111_v37  ;;  %4112 = vrcp.f32 %v1389_v42  ;;  %v3539_v42 = vor.u32 %v3935_v33, %v3536_v30 }
 0x1cd   : > { %v1409_v43 = vpack.c.bf16 %v4642_v40, %v4640_v39 }
 0x1ce   : > { %4114 = vrcp.f32 %v1390_v49  ;;  %v4751_v49 = vld [vmem:[%s5790_s10] ss:$0 sm:$0xff]  ;;  %s5794_s10 = sld [smem:[#allocation15_spill]] }
 0x1cf   : > { %3518 = vmatmul.msk.bf16.gmra.mxu2 %vm1459_vm5, %v1409_v43  ;;  %3522 = vmatmul.msk.bf16.gmra.mxu3 %vm1459_vm5, %v1409_v43 }
 0x1d2   : > { %v4113_v50 = vpop.eup %4112 }
 0x1d3   : > { %v4648_v52 = vmul.f32 %v4113_v50, %v1357_v27  ;;  %v3544_v27 = vld [vmem:[%s5789_s30 + $0x28] sm:$0xf0] }
 0x1d4   : > { %v4115_v51 = vpop.eup %4114  ;;  %v3547_v29 = vor.u32 %v3937_v25, %v3544_v27 }
 0x1d5   : > { %v4650_v53 = vmul.f32 %v4115_v51, %v1358_v45 }
 0x1d6   : > { %1801 = vmatpush.bf16.msrb.mxu1 %v3547_v29 }
 0x1d7   : > { %v1410_v54 = vpack.c.bf16 %v4650_v53, %v4648_v52 }
 0x1da   : > { %1802 = vmatpush.bf16.msrb.mxu1 %v3539_v42 }
 0x1df   : > { %3519 = vmatmul.msk.bf16.gmra.mxu2 %vm1459_vm5, %v1410_v54  ;;  %3523 = vmatmul.msk.bf16.gmra.mxu3 %vm1459_vm5, %v1410_v54  ;;  %v3526_v54 = vld [vmem:[%s5789_s30] sm:$0xf] }
 0x22a   : > { %v1481_v55 = vpop.f32.mrf.mxu2  ;;  %v4709_v19 = vpop.f32.mrf.mxu3 }
 0x22b   : > { %1603 = vrot.lane.b32.xlu0 %v1481_v55, %s5788_s5  ;;  %v1530_v57 = vrot.slane %v1481_v55, 7  ;;  %v1554_v36 = vrot.slane %v4709_v19, 1  ;;  %v3934_v55 = vld [vmem:[%s5789_s30 + $0x4] sm:$0xf0] }
 0x232   : > { %v1483_v56 = vpop.f32.mrf.mxu2  ;;  %v1512_v48 = vpop.f32.mrf.mxu3 }
 0x233   : > { %v1531_v59 = vrot.slane %v1483_v56, 7  ;;  %1605 = vrot.lane.b32.xlu1 %v1483_v56, %s5788_s5  ;;  %v1555_v26 = vrot.slane %v1512_v48, 1  ;;  %v3933_v56 = vld [vmem:[%s5789_s30 + $0x4] sm:$0xf] }
 0x235   : > { %v4660_v60 = vsel %vm1266_vm3, %v1530_v57, %v1531_v59  ;;  %v1569_v51 = vsel %vm1562_vm6, %v1554_v36, %v1555_v26 }
 0x242   : > { %v1486_v61 = vpop.f32.mrf.mxu2  ;;  %v1515_v45 = vpop.f32.mrf.mxu3 }
 0x243   : > { %v1532_v62 = vrot.slane %v1486_v61, 7  ;;  %1607 = vrot.lane.b32.xlu2 %v1486_v61, %s5788_s5  ;;  %v3528_v61 = vld [vmem:[%s5789_s30 + $0x8] sm:$0xf0] }
 0x245   : > { %v4665_v38 = vsel %vm1266_vm3, %v1531_v59, %v1532_v62  ;;  %v3527_v59 = vor.u32 %v3934_v55, %v3526_v54 }
 0x247   : > { %1774 = vmatpush.bf16.msrb.mxu0 %v3527_v59 }
 0x24a   : > { %v1488_v63 = vpop.f32.mrf.mxu2  ;;  %v4717_v46 = vpop.f32.mrf.mxu3 }
 0x24b   : > { %v1533_v41 = vrot.slane %v1488_v63, 7  ;;  %1609 = vrot.lane.b32.xlu0 %v1488_v63, %s5788_s5  ;;  %v1557_v48 = vrot.slane %v4717_v46, 1 }
 0x24d   : > { %v4682_v6 = vsel %vm1266_vm3, %v1532_v62, %v1533_v41  ;;  %v3531_v62 = vor.u32 %v3933_v56, %v3528_v61 }
 0x24f   : > { %1803 = vmatpush.bf16.msrb.mxu1 %v3531_v62 }
 0x252   : > { %v1491_v8 = vpop.f32.mrf.mxu2  ;;  %v4746_v43 = vpop.f32.mrf.mxu3 }
 0x253   : > { %v1534_v10 = vrot.slane %v1491_v8, 7  ;;  %1611 = vrot.lane.b32.xlu1 %v1491_v8, %s5788_s5 }
 0x255   : > { %v4687_v11 = vsel %vm1266_vm3, %v1533_v41, %v1534_v10  ;;  %v1556_v41 = vrot.slane %v1515_v45, 1 }
 0x257   : > { %v1568_v5 = vsel %vm1562_vm6, %v1555_v26, %v1556_v41 }
 0x25a   : > { %v1493_v12 = vpop.f32.mrf.mxu2  ;;  %v1522_v7 = vpop.f32.mrf.mxu3 }
 0x25b   : > { %v1535_v13 = vrot.slane %v1493_v12, 7  ;;  %1613 = vrot.lane.b32.xlu2 %v1493_v12, %s5788_s5  ;;  %v1559_v32 = vrot.slane %v1522_v7, 1 }
 0x25d   : > { %v4692_v14 = vsel %vm1266_vm3, %v1534_v10, %v1535_v13 }
 0x262   : > { %v4694_v15 = vpop.f32.mrf.mxu2  ;;  %v4778_v9 = vpop.f32.mrf.mxu3 }
 0x263   : > { %v1536_v16 = vrot.slane %v4694_v15, 7  ;;  %1615 = vrot.lane.b32.xlu0 %v4694_v15, %s5788_s5  ;;  %v1560_v29 = vrot.slane %v4778_v9, 1 }
 0x265   : > { %v4703_v17 = vsel %vm1266_vm3, %v1535_v13, %v1536_v16  ;;  %v1564_v33 = vsel %vm1562_vm6, %v1559_v32, %v1560_v29 }
 0x26a   : > { %v4705_v44 = vpop.f32.mrf.mxu2 }
 0x26b   : > { %1617 = vrot.lane.b32.xlu1 %v4705_v44, %s5788_s5  ;;  %v1537_v24 = vrot.slane %v4705_v44, 7 }
 0x26d   : > { %v1545_v47 = vsel %vm1266_vm3, %v1537_v24, %v1530_v57 }
 0x26e   : > { %v1546_v37 = vsel %vm4594_vm4, 0.0, %v1545_v47 }
 0x29d   : > { %v1604_v1 = vpop.permute.xlu0 %1603  ;;  %v1608_v12 = vpop.permute.xlu2 %1607 }
 0x29e   : > { %v1627_v50 = vadd.f32 %v1604_v1, %v1546_v37  ;;  %v1629_v45 = vadd.f32 %v1608_v12, %v4665_v38  ;;  %v1558_v1 = vrot.slane %v4746_v43, 1 }
 0x2a0   : > { %v1635_v57 = vadd.f32 %v1627_v50, %v1569_v51  ;;  %v1566_v55 = vsel %vm1562_vm6, %v1557_v48, %v1558_v1 }
 0x2a2   : > { %v1647_v63 = vadd.f32 %v4751_v49, %v1635_v57 }
 0x2a4   : > { %v1655_v0 = vsub.f32 0.0, %v1647_v63 }
 0x2a5   : > { %v1606_v2 = vpop.permute.xlu1 %1605 }
 0x2a6   : > { %v1663_v3 = vmul.f32 1.442695, %v1655_v0  ;;  %v1628_v4 = vadd.f32 %v1606_v2, %v4660_v60  ;;  %v1567_v60 = vsel %vm1562_vm6, %v1556_v41, %v1557_v48 }
 0x2a7   : > { %v1637_v25 = vadd.f32 %v1629_v45, %v1567_v60  ;;  %v924_v60 = vadd.s32 56, %v4494_v28 }
 0x2a8   : > { %v1636_v8 = vadd.f32 %v1628_v4, %v1568_v5  ;;  %4116 = vpow2.f32 %v1663_v3 }
 0x2a9   : > { %v1649_v31 = vadd.f32 %v4751_v49, %v1637_v25 }
 0x2aa   : > { %v1648_v10 = vadd.f32 %v4751_v49, %v1636_v8 }
 0x2ab   : > { %v1657_v34 = vsub.f32 0.0, %v1649_v31 }
 0x2ac   : > { %v1656_v13 = vsub.f32 0.0, %v1648_v10 }
 0x2ad   : > { %v1667_v50 = vmul.f32 1.442695, %v1657_v34 }
 0x2ae   : > { %v1665_v20 = vmul.f32 1.442695, %v1656_v13  ;;  %v4117_v21 = vpop.eup %4116 }
 0x2af   : > { %v1679_v27 = vadd.f32 1.0, %v4117_v21 }
 0x2b0   : > { %4118 = vpow2.f32 %v1665_v20  ;;  %v1527_v20 = vpop.f32.mrf.mxu3 }
 0x2b1   : > { %4120 = vrcp.f32 %v1679_v27 }
 0x2b5   : > { %v1614_v26 = vpop.permute.xlu2 %1613 }
 0x2b6   : > { %v4119_v47 = vpop.eup %4118  ;;  %v1632_v46 = vadd.f32 %v1614_v26, %v4692_v14 }
 0x2b7   : > { %v1680_v38 = vadd.f32 1.0, %v4119_v47  ;;  %v4121_v37 = vpop.eup %4120 }
 0x2b8   : > { %v1640_v30 = vadd.f32 %v1632_v46, %v1564_v33  ;;  %v1695_v56 = vmul.f32 %v4121_v37, %v1647_v63  ;;  %v1565_v63 = vsel %vm1562_vm6, %v1558_v1, %v1559_v32 }
 0x2b9   : > { %4122 = vrcp.f32 %v1680_v38 }
 0x2ba   : > { %v4787_v51 = vadd.f32 %v4751_v49, %v1640_v30  ;;  %4124 = vpow2.f32 %v1667_v50  ;;  %v932_v30 = vand.u32 63, %v924_v60 }
 0x2bc   : > { %v1660_v61 = vsub.f32 0.0, %v4787_v51  ;;  %vm4807_vm7 = vcmp.eq.s32.totalorder %v932_v30, 63 }
 0x2bd   : > { %v1610_v42 = vpop.permute.xlu0 %1609 }
 0x2be   : > { %v1630_v54 = vadd.f32 %v1610_v42, %v4682_v6  ;;  %v1673_v6 = vmul.f32 1.442695, %v1660_v61 }
 0x2bf   : > { %v4123_v14 = vpop.eup %4122 }
 0x2c0   : > { %v1696_v57 = vmul.f32 %v4123_v14, %v1648_v10  ;;  %v1638_v59 = vadd.f32 %v1630_v54, %v1566_v55  ;;  %v4125_v4 = vpop.eup %4124  ;;  %v1538_v54 = vsel %vm1266_vm3, %v1536_v16, %v1537_v24 }
 0x2c1   : > { %v1681_v8 = vadd.f32 1.0, %v4125_v4 }
 0x2c2   : > { %v1650_v43 = vadd.f32 %v4751_v49, %v1638_v59  ;;  %v1703_v62 = vpack.c.bf16 %v1696_v57, %v1695_v56 }
 0x2c4   : > { %v1658_v41 = vsub.f32 0.0, %v1650_v43  ;;  %3556 = vmatmul.msk.bf16.vlgmr.msrb.gmra.mxu0 %vm1459_vm5, %v1703_v62  ;;  %3560 = vmatmul.msk.bf16.vlgmr.msrb.gmra.mxu1 %vm1459_vm5, %v1703_v62 }
 0x2c5   : > { %v1612_v0 = vpop.permute.xlu1 %1611 }
 0x2c6   : > { %v1669_v2 = vmul.f32 1.442695, %v1658_v41  ;;  %v1631_v3 = vadd.f32 %v1612_v0, %v4687_v11  ;;  %v1561_v11 = vrot.slane %v1527_v20, 1 }
 0x2c8   : > { %4126 = vpow2.f32 %v1669_v2  ;;  %v1639_v5 = vadd.f32 %v1631_v3, %v1565_v63  ;;  %v1563_v32 = vsel %vm1562_vm6, %v1560_v29, %v1561_v11  ;;  %v1570_v29 = vsel %vm1562_vm6, %v1561_v11, %v1554_v36 }
 0x2c9   : > { %4128 = vpow2.f32 %v1673_v6  ;;  %v1594_v57 = vsel %vm4807_vm7, 0.0, %v1570_v29 }
 0x2ca   : > { %v1651_v7 = vadd.f32 %v4751_v49, %v1639_v5  ;;  %4130 = vrcp.f32 %v1681_v8 }
 0x2cc   : > { %v1659_v10 = vsub.f32 0.0, %v1651_v7 }
 0x2ce   : > { %v4127_v12 = vpop.eup %4126  ;;  %v1671_v13 = vmul.f32 1.442695, %v1659_v10 }
 0x2cf   : > { %v1682_v48 = vadd.f32 1.0, %v4127_v12  ;;  %v4129_v45 = vpop.eup %4128 }
 0x2d0   : > { %4132 = vpow2.f32 %v1671_v13  ;;  %v1684_v21 = vadd.f32 1.0, %v4129_v45  ;;  %v4131_v9 = vpop.eup %4130 }
 0x2d1   : > { %4134 = vrcp.f32 %v1682_v48  ;;  %v1697_v33 = vmul.f32 %v4131_v9, %v1649_v31 }
 0x2d2   : > { %4136 = vrcp.f32 %v1684_v21 }
 0x2d5   : > { %v1616_v25 = vpop.permute.xlu0 %1615 }
 0x2d6   : > { %v4133_v27 = vpop.eup %4132  ;;  %v1633_v26 = vadd.f32 %v1616_v25, %v4703_v17 }
 0x2d7   : > { %v4135_v47 = vpop.eup %4134  ;;  %v1683_v46 = vadd.f32 1.0, %v4133_v27 }
 0x2d8   : > { %v1641_v38 = vadd.f32 %v1633_v26, %v1563_v32  ;;  %v1698_v34 = vmul.f32 %v4135_v47, %v1650_v43  ;;  %v4137_v31 = vpop.eup %4136 }
 0x2d9   : > { %4138 = vrcp.f32 %v1683_v46  ;;  %v1700_v61 = vmul.f32 %v4137_v31, %v4787_v51 }
 0x2da   : > { %v1653_v1 = vadd.f32 %v4751_v49, %v1641_v38  ;;  %v1704_v37 = vpack.c.bf16 %v1698_v34, %v1697_v33 }
 0x2dc   : > { %v1661_v42 = vsub.f32 0.0, %v1653_v1  ;;  %3557 = vmatmul.msk.bf16.gmra.mxu0 %vm1459_vm5, %v1704_v37  ;;  %3561 = vmatmul.msk.bf16.gmra.mxu1 %vm1459_vm5, %v1704_v37 }
 0x2dd   : > { %v1618_v50 = vpop.permute.xlu1 %1617 }
 0x2de   : > { %v1675_v14 = vmul.f32 1.442695, %v1661_v42  ;;  %v1634_v55 = vadd.f32 %v1618_v50, %v1538_v54  ;;  %v4871_v50 = vld [vmem:[%s5793_s2] ss:$0 sm:$0xff] }
 0x2df   : > { %v4139_v56 = vpop.eup %4138 }
 0x2e0   : > { %v1642_v59 = vadd.f32 %v1634_v55, %v1594_v57  ;;  %v1699_v19 = vmul.f32 %v4139_v56, %v1651_v7  ;;  %4140 = vpow2.f32 %v1675_v14 }
 0x2e2   : > { %v1654_v36 = vadd.f32 %v4751_v49, %v1642_v59  ;;  %v1705_v43 = vpack.c.bf16 %v1700_v61, %v1699_v19 }
 0x2e4   : > { %v1662_v44 = vsub.f32 0.0, %v1654_v36 }
 0x2e6   : > { %v1677_v62 = vmul.f32 1.442695, %v1662_v44  ;;  %v4141_v15 = vpop.eup %4140 }
 0x2e7   : > { %v1685_v41 = vadd.f32 1.0, %v4141_v15 }
 0x2e8   : > { %4142 = vpow2.f32 %v1677_v62 }
 0x2e9   : > { %4144 = vrcp.f32 %v1685_v41 }
 0x2ec   : > { %3558 = vmatmul.msk.bf16.gmra.mxu0 %vm1459_vm5, %v1705_v43  ;;  %3562 = vmatmul.msk.bf16.gmra.mxu1 %vm1459_vm5, %v1705_v43 }
 0x2ee   : > { %v4143_v16 = vpop.eup %4142 }
 0x2ef   : > { %v1686_v24 = vadd.f32 1.0, %v4143_v16  ;;  %v4145_v0 = vpop.eup %4144 }
 0x2f0   : > { %v1701_v51 = vmul.f32 %v4145_v0, %v1653_v1 }
 0x2f1   : > { %4146 = vrcp.f32 %v1686_v24 }
 0x2f7   : > { %v4147_v6 = vpop.eup %4146 }
 0x2f8   : > { %v1702_v2 = vmul.f32 %v4147_v6, %v1654_v36 }
 0x2fa   : > { %v1706_v3 = vpack.c.bf16 %v1702_v2, %v1701_v51 }
 0x2fc   : > { %3559 = vmatmul.msk.bf16.gmra.mxu0 %vm1459_vm5, %v1706_v3  ;;  %3563 = vmatmul.msk.bf16.gmra.mxu1 %vm1459_vm5, %v1706_v3 }
 0x341   : > { %v1776_v49 = vpop.f32.mrf.mxu0  ;;  %v4861_v33 = vpop.f32.mrf.mxu1 }
 0x342   : > { %1881 = vrot.lane.b32.xlu2 %v1776_v49, %s5788_s5  ;;  %v1825_v4 = vrot.slane %v1776_v49, 7  ;;  %v1849_v37 = vrot.slane %v4861_v33, 1 }
 0x349   : > { %v1778_v63 = vpop.f32.mrf.mxu0  ;;  %v1807_v34 = vpop.f32.mrf.mxu1 }
 0x34a   : > { %v1826_v5 = vrot.slane %v1778_v63, 7  ;;  %1883 = vrot.lane.b32.xlu0 %v1778_v63, %s5788_s5  ;;  %v1850_v1 = vrot.slane %v1807_v34, 1 }
 0x34c   : > { %v1839_v7 = vsel %vm1266_vm3, %v1825_v4, %v1826_v5  ;;  %v1863_v14 = vsel %vm1562_vm6, %v1849_v37, %v1850_v1 }
 0x359   : > { %v1781_v8 = vpop.f32.mrf.mxu0  ;;  %v1810_v31 = vpop.f32.mrf.mxu1 }
 0x35a   : > { %v1827_v10 = vrot.slane %v1781_v8, 7  ;;  %1885 = vrot.lane.b32.xlu1 %v1781_v8, %s5788_s5  ;;  %v1851_v15 = vrot.slane %v1810_v31, 1 }
 0x35c   : > { %v4836_v12 = vsel %vm1266_vm3, %v1826_v5, %v1827_v10  ;;  %v1862_v3 = vsel %vm1562_vm6, %v1850_v1, %v1851_v15 }
 0x361   : > { %v1783_v13 = vpop.f32.mrf.mxu0  ;;  %v1812_v19 = vpop.f32.mrf.mxu1 }
 0x362   : > { %v1828_v48 = vrot.slane %v1783_v13, 7  ;;  %1887 = vrot.lane.b32.xlu2 %v1783_v13, %s5788_s5  ;;  %v1852_v24 = vrot.slane %v1812_v19, 1 }
 0x364   : > { %v1837_v45 = vsel %vm1266_vm3, %v1827_v10, %v1828_v48  ;;  %v1861_v1 = vsel %vm1562_vm6, %v1851_v15, %v1852_v24 }
 0x369   : > { %v1786_v20 = vpop.f32.mrf.mxu0  ;;  %v4878_v36 = vpop.f32.mrf.mxu1 }
 0x36a   : > { %v1829_v11 = vrot.slane %v1786_v20, 7  ;;  %1889 = vrot.lane.b32.xlu0 %v1786_v20, %s5788_s5  ;;  %v1853_v41 = vrot.slane %v4878_v36, 1  ;;  %v3944_v20 = vld [vmem:[%s5794_s10 + $0x18] sm:$0xff] }
 0x36b   : > { %2084 = vmatpush.bf16.msrb.mxu2 %v3944_v20 }
 0x36c   : > { %v4844_v21 = vsel %vm1266_vm3, %v1828_v48, %v1829_v11 }
 0x371   : > { %v1788_v60 = vpop.f32.mrf.mxu0  ;;  %v4882_v16 = vpop.f32.mrf.mxu1 }
 0x372   : > { %v1830_v9 = vrot.slane %v1788_v60, 7  ;;  %1891 = vrot.lane.b32.xlu1 %v1788_v60, %s5788_s5  ;;  %v3943_v60 = vld [vmem:[%s5794_s10 + $0x10] sm:$0xff] }
 0x373   : > { %2085 = vmatpush.bf16.msrb.mxu2 %v3943_v60 }
 0x374   : > { %v4849_v25 = vsel %vm1266_vm3, %v1829_v11, %v1830_v9  ;;  %v3947_v11 = vld [vmem:[%s5739_s12 + $0x10] sm:$0xff] }
 0x379   : > { %v1791_v27 = vpop.f32.mrf.mxu0  ;;  %v4893_v13 = vpop.f32.mrf.mxu1 }
 0x37a   : > { %v1831_v26 = vrot.slane %v1791_v27, 7  ;;  %1893 = vrot.lane.b32.xlu2 %v1791_v27, %s5788_s5 }
 0x37c   : > { %v4854_v47 = vsel %vm1266_vm3, %v1830_v9, %v1831_v26 }
 0x381   : > { %v1793_v46 = vpop.f32.mrf.mxu0 }
 0x382   : > { %v1832_v32 = vrot.slane %v1793_v46, 7  ;;  %1895 = vrot.lane.b32.xlu0 %v1793_v46, %s5788_s5  ;;  %v3946_v46 = vld [vmem:[%s5739_s12 + $0x8] sm:$0xff] }
 0x384   : > { %v4859_v38 = vsel %vm1266_vm3, %v1831_v26, %v1832_v32  ;;  %v1840_v30 = vsel %vm1266_vm3, %v1832_v32, %v1825_v4  ;;  %v3942_v32 = vld [vmem:[%s5794_s10 + $0x8] sm:$0xff] }
 0x385   : > { %v1841_v29 = vsel %vm4594_vm4, 0.0, %v1840_v30  ;;  %2086 = vmatpush.bf16.msrb.mxu2 %v3942_v32 }
 0x39c   : > { %v1882_v42 = vpop.permute.xlu2 %1881 }
 0x39d   : > { %v1905_v54 = vadd.f32 %v1882_v42, %v1841_v29  ;;  %v4916_v42 = vpop.f32.mrf.mxu1 }
 0x39f   : > { %v1913_v55 = vadd.f32 %v1905_v54, %v1863_v14  ;;  %v3941_v54 = vld [vmem:[%s5794_s10] sm:$0xff]  ;;  %s3440_s10 = sshll.u32 %s4409_s4, 1 }
 0x3a0   : > { %v3945_v14 = vld [vmem:[%s5739_s12] sm:$0xff]  ;;  %2087 = vmatpush.bf16.msrb.mxu2 %v3941_v54  ;;  %p904_p5 = scmp.lt.s32.totalorder %s3440_s10, 3 }
 0x3a1   : > { %v1925_v56 = vadd.f32 %v4871_v50, %v1913_v55  ;;  %v1856_v55 = vrot.slane %v4916_v42, 1 }
 0x3a2   : > { %s5809_s10 = smov (!%p904_p5, %s3440_s10), 3 }
 0x3a3   : > { %v1933_v57 = vsub.f32 0.0, %v1925_v56  ;;  %v1864_v42 = vsel %vm1562_vm6, %v1856_v55, %v1849_v37  ;;  %s5765_s6 = sshll.u32 %s5809_s10, 2  ;;  %s5803_s9 = sshll.u32 %s5809_s10, 2 }
 0x3a4   : > { %v1872_v37 = vsel %vm4807_vm7, 0.0, %v1864_v42  ;;  %v3952_v42 = vld [vmem:[%s5741_s14 + $0x14] sm:$0xf0]  ;;  %s913_s0 = scalar_lea.vmem %s5754_s27, %s5803_s9 }
 0x3a5   : > { %v1941_v59 = vmul.f32 1.442695, %v1933_v57  ;;  %v1855_v57 = vrot.slane %v4893_v13, 1 }
 0x3a7   : > { %4148 = vpow2.f32 %v1941_v59 }
 0x3ad   : > { %v4149_v18 = vpop.eup %4148 }
 0x3ae   : > { %v1957_v61 = vadd.f32 1.0, %v4149_v18 }
 0x3b0   : > { %4150 = vrcp.f32 %v1957_v61 }
 0x3b6   : > { %v4151_v43 = vpop.eup %4150 }
 0x3b7   : > { %v1973_v44 = vmul.f32 %v4151_v43, %v1925_v56  ;;  %v1857_v43 = vsel %vm1562_vm6, %v1855_v57, %v1856_v55 }
 0x3b9   : > { %v1981_v62 = vadd.f32 %v1973_v44, %v4613_v35  ;;  %v1860_v35 = vsel %vm1562_vm6, %v1852_v24, %v1853_v41 }
 0x3bb   : > { %1989 = vst.msk [vmem:[#allocation2] sm:$0xff] %vm1459_vm5, %v1981_v62 }
 0x3bc   : > { %v1884_v0 = vpop.permute.xlu0 %1883  ;;  %v1888_v6 = vpop.permute.xlu2 %1887 }
 0x3bd   : > { %v1906_v51 = vadd.f32 %v1884_v0, %v1839_v7  ;;  %v1908_v2 = vadd.f32 %v1888_v6, %v1837_v45  ;;  %v3948_v45 = vld [vmem:[%s5739_s12 + $0x18] sm:$0xff] }
 0x3be   : > { %2143 = vmatpush.bf16.msrb.mxu3 %v3948_v45 }
 0x3bf   : > { %v1914_v49 = vadd.f32 %v1906_v51, %v1862_v3  ;;  %v1916_v63 = vadd.f32 %v1908_v2, %v1860_v35  ;;  %v1854_v51 = vrot.slane %v4882_v16, 1 }
 0x3c1   : > { %v1926_v4 = vadd.f32 %v4871_v50, %v1914_v49  ;;  %v1928_v5 = vadd.f32 %v4871_v50, %v1916_v63 }
 0x3c2   : > { %2144 = vmatpush.bf16.msrb.mxu3 %v3947_v11 }
 0x3c3   : > { %v1934_v8 = vsub.f32 0.0, %v1926_v4  ;;  %v1936_v10 = vsub.f32 0.0, %v1928_v5 }
 0x3c5   : > { %v1943_v7 = vmul.f32 1.442695, %v1934_v8  ;;  %v1947_v48 = vmul.f32 1.442695, %v1936_v10 }
 0x3c6   : > { %2145 = vmatpush.bf16.msrb.mxu3 %v3946_v46 }
 0x3c7   : > { %4152 = vpow2.f32 %v1943_v7 }
 0x3c8   : > { %4154 = vpow2.f32 %v1947_v48 }
 0x3ca   : > { %2146 = vmatpush.bf16.msrb.mxu3 %v3945_v14 }
 0x3cc   : > { %v1886_v9 = vpop.permute.xlu1 %1885 }
 0x3cd   : > { %v4153_v27 = vpop.eup %4152  ;;  %v1907_v26 = vadd.f32 %v1886_v9, %v4836_v12 }
 0x3ce   : > { %v4155_v34 = vpop.eup %4154  ;;  %v1958_v30 = vadd.f32 1.0, %v4153_v27 }
 0x3cf   : > { %v1960_v29 = vadd.f32 1.0, %v4155_v34  ;;  %v1915_v31 = vadd.f32 %v1907_v26, %v1861_v1 }
 0x3d0   : > { %4156 = vrcp.f32 %v1958_v30 }
 0x3d1   : > { %4158 = vrcp.f32 %v1960_v29  ;;  %v1927_v12 = vadd.f32 %v4871_v50, %v1915_v31 }
 0x3d3   : > { %v1935_v56 = vsub.f32 0.0, %v1927_v12 }
 0x3d4   : > { %v1894_v59 = vpop.permute.xlu2 %1893 }
 0x3d5   : > { %v1945_v19 = vmul.f32 1.442695, %v1935_v56  ;;  %v1911_v18 = vadd.f32 %v1894_v59, %v4854_v47 }
 0x3d6   : > { %v4157_v61 = vpop.eup %4156 }
 0x3d7   : > { %v4159_v44 = vpop.eup %4158  ;;  %v1974_v62 = vmul.f32 %v4157_v61, %v1926_v4  ;;  %4160 = vpow2.f32 %v1945_v19  ;;  %v1919_v15 = vadd.f32 %v1911_v18, %v1857_v43 }
 0x3d8   : > { %v1976_v24 = vmul.f32 %v4159_v44, %v1928_v5 }
 0x3d9   : > { %v1982_v0 = vadd.f32 %v1974_v62, %v4611_v58  ;;  %v1931_v6 = vadd.f32 %v4871_v50, %v1919_v15  ;;  %v1859_v58 = vsel %vm1562_vm6, %v1853_v41, %v1854_v51 }
 0x3da   : > { %v1984_v2 = vadd.f32 %v1976_v24, %v4633_v23 }
 0x3db   : > { %1990 = vst.msk [vmem:[#allocation2 + $0x8] sm:$0xff] %vm1459_vm5, %v1982_v0  ;;  %v1939_v47 = vsub.f32 0.0, %v1931_v6 }
 0x3dc   : > { %1992 = vst.msk [vmem:[#allocation2 + $0x18] sm:$0xff] %vm1459_vm5, %v1984_v2  ;;  %v1890_v3 = vpop.permute.xlu0 %1889 }
 0x3dd   : > { %v4161_v35 = vpop.eup %4160  ;;  %v1953_v49 = vmul.f32 1.442695, %v1939_v47  ;;  %v1909_v63 = vadd.f32 %v1890_v3, %v4844_v21  ;;  %v1858_v21 = vsel %vm1562_vm6, %v1854_v51, %v1855_v57 }
 0x3de   : > { %v1959_v4 = vadd.f32 1.0, %v4161_v35 }
 0x3df   : > { %4162 = vpow2.f32 %v1953_v49  ;;  %v1917_v16 = vadd.f32 %v1909_v63, %v1859_v58 }
 0x3e0   : > { %4164 = vrcp.f32 %v1959_v4 }
 0x3e1   : > { %v1929_v23 = vadd.f32 %v4871_v50, %v1917_v16 }
 0x3e2   : > { %v4949_v34 = vld [vmem:[#allocation2] ss:$2 sm:$0xff]  ;;  %v4953_v1 = vld [vmem:[#allocation2 + $0x1] ss:$2 sm:$0xff] }
 0x3e3   : > { %v1937_v5 = vsub.f32 0.0, %v1929_v23 }
 0x3e4   : > { %v1892_v8 = vpop.permute.xlu1 %1891 }
 0x3e5   : > { %v4163_v10 = vpop.eup %4162  ;;  %v1949_v13 = vmul.f32 1.442695, %v1937_v5  ;;  %v1910_v7 = vadd.f32 %v1892_v8, %v4849_v25  ;;  %v3626_v8 = vld [vmem:[%s5741_s14 + $0x30] sm:$0xf] }
 0x3e6   : > { %v4165_v48 = vpop.eup %4164  ;;  %v1963_v45 = vadd.f32 1.0, %v4163_v10  ;;  %v3956_v10 = vld [vmem:[%s5741_s14 + $0x34] sm:$0xf0] }
 0x3e7   : > { %v1975_v36 = vmul.f32 %v4165_v48, %v1927_v12  ;;  %4166 = vpow2.f32 %v1949_v13  ;;  %v1918_v20 = vadd.f32 %v1910_v7, %v1858_v21  ;;  %v3955_v13 = vld [vmem:[%s5741_s14 + $0x34] sm:$0xf]  ;;  %v3627_v7 = vor.u32 %v3956_v10, %v3626_v8  ;;  %v3628_v48 = vld [vmem:[%s5741_s14 + $0x38] sm:$0xf0] }
 0x3e8   : > { %4168 = vrcp.f32 %v1963_v45  ;;  %v3631_v45 = vor.u32 %v3955_v13, %v3628_v48 }
 0x3e9   : > { %v1983_v41 = vadd.f32 %v1975_v36, %v4631_v22  ;;  %v1930_v11 = vadd.f32 %v4871_v50, %v1918_v20  ;;  %2294 = vmatpush.bf16.msra.mxu2 %v3627_v7  ;;  %v3618_v20 = vld [vmem:[%s5741_s14 + $0x20] sm:$0xf] }
 0x3ea   : > { %2313 = vmatpush.bf16.msra.mxu3 %v3631_v45 }
 0x3eb   : > { %1991 = vst.msk [vmem:[#allocation2 + $0x10] sm:$0xff] %vm1459_vm5, %v1983_v41  ;;  %v1938_v60 = vsub.f32 0.0, %v1930_v11  ;;  %v3954_v41 = vld [vmem:[%s5741_s14 + $0x24] sm:$0xf0] }
 0x3ed   : > { %v4167_v9 = vpop.eup %4166  ;;  %v1951_v27 = vmul.f32 1.442695, %v1938_v60 }
 0x3ee   : > { %v4169_v26 = vpop.eup %4168  ;;  %v1961_v25 = vadd.f32 1.0, %v4167_v9  ;;  %v3619_v9 = vor.u32 %v3954_v41, %v3618_v20 }
 0x3ef   : > { %v1979_v46 = vmul.f32 %v4169_v26, %v1931_v6  ;;  %4170 = vpow2.f32 %v1951_v27  ;;  %v3620_v27 = vld [vmem:[%s5741_s14 + $0x28] sm:$0xf0] }
 0x3f0   : > { %4172 = vrcp.f32 %v1961_v25  ;;  %v4078_v25 = vld [vmem:[%s5740_s13] ss:$0 sm:$0xff]  ;;  %2295 = vmatpush.bf16.msra.mxu2 %v3619_v9 }
 0x3f1   : > { %v1987_v32 = vadd.f32 %v1979_v46, %v4648_v52 }
 0x3f2   : > { %v4951_v30 = vld [vmem:[#allocation2 + $0x10] ss:$2 sm:$0xff]  ;;  %v4955_v22 = vld [vmem:[#allocation2 + $0x11] ss:$2 sm:$0xff] }
 0x3f3   : > { %1995 = vst.msk [vmem:[#allocation2 + $0x30] sm:$0xff] %vm1459_vm5, %v1987_v32  ;;  %v2040_v29 = vpack.c.bf16 %v4951_v30, %v4949_v34  ;;  %v2099_v52 = vpack.c.bf16 %v4955_v22, %v4953_v1  ;;  %v4060_v31 = vpack.i.bf16 %v4955_v22, %v4953_v1  ;;  %v3610_v32 = vld [vmem:[%s5741_s14 + $0x10] sm:$0xf] }
 0x3f4   : > { %v1896_v12 = vpop.permute.xlu0 %1895 }
 0x3f5   : > { %v4171_v54 = vpop.eup %4170  ;;  %v1912_v14 = vadd.f32 %v1896_v12, %v4859_v38  ;;  %3580 = vmatmul.msk.bf16.vlgmr.msrb.gmra.mxu2 %vm1459_vm5, %v2040_v29  ;;  %3598 = vmatmul.msk.bf16.vlgmr.msrb.gmra.mxu3 %vm1459_vm5, %v2099_v52  ;;  %v3951_v29 = vld [vmem:[%s5741_s14 + $0x14] sm:$0xf]  ;;  %v949_v12 = vand.u32 31, %v4494_v28 }
 0x3f6   : > { %v4173_v33 = vpop.eup %4172  ;;  %v1962_v56 = vadd.f32 1.0, %v4171_v54  ;;  %v3611_v54 = vor.u32 %v3952_v42, %v3610_v32 }
 0x3f7   : > { %v1977_v55 = vmul.f32 %v4173_v33, %v1929_v23  ;;  %v1920_v57 = vadd.f32 %v1912_v14, %v1872_v37  ;;  %v3612_v14 = vld [vmem:[%s5741_s14 + $0x18] sm:$0xf0]  ;;  %v3602_v37 = vld [vmem:[%s5741_s14] sm:$0xf]  ;;  %vm5065_vm8 = vcmp.eq.s32.totalorder %v949_v12, 0 }
 0x3f8   : > { %4174 = vrcp.f32 %v1962_v56  ;;  %v3615_v33 = vor.u32 %v3951_v29, %v3612_v14  ;;  %2296 = vmatpush.bf16.msra.mxu2 %v3611_v54 }
 0x3f9   : > { %v1985_v59 = vadd.f32 %v1977_v55, %v4640_v39  ;;  %v1932_v19 = vadd.f32 %v4871_v50, %v1920_v57  ;;  %v3950_v55 = vld [vmem:[%s5741_s14 + $0x4] sm:$0xf0]  ;;  %v3949_v57 = vld [vmem:[%s5741_s14 + $0x4] sm:$0xf] }
 0x3fb   : > { %1993 = vst.msk [vmem:[#allocation2 + $0x20] sm:$0xff] %vm1459_vm5, %v1985_v59  ;;  %v1940_v18 = vsub.f32 0.0, %v1932_v19 }
 0x3fd   : > { %v1955_v38 = vmul.f32 1.442695, %v1940_v18  ;;  %v3603_v18 = vor.u32 %v3950_v55, %v3602_v37 }
 0x3fe   : > { %v4175_v61 = vpop.eup %4174 }
 0x3ff   : > { %v1978_v43 = vmul.f32 %v4175_v61, %v1930_v11  ;;  %4176 = vpow2.f32 %v1955_v38  ;;  %v3953_v11 = vld [vmem:[%s5741_s14 + $0x24] sm:$0xf]  ;;  %v3604_v38 = vld [vmem:[%s5741_s14 + $0x8] sm:$0xf0]  ;;  %2297 = vmatpush.bf16.msra.mxu2 %v3603_v18 }
 0x400   : > { %v3623_v26 = vor.u32 %v3953_v11, %v3620_v27  ;;  %v3607_v61 = vor.u32 %v3949_v57, %v3604_v38 }
 0x401   : > { %v1986_v44 = vadd.f32 %v1978_v43, %v4642_v40 }
 0x402   : > { %2314 = vmatpush.bf16.msra.mxu3 %v3623_v26 }
 0x403   : > { %1994 = vst.msk [vmem:[#allocation2 + $0x28] sm:$0xff] %vm1459_vm5, %v1986_v44 }
 0x405   : > { %v4177_v17 = vpop.eup %4176 }
 0x406   : > { %v1964_v62 = vadd.f32 1.0, %v4177_v17  ;;  %2315 = vmatpush.bf16.msra.mxu3 %v3615_v33 }
 0x408   : > { %4178 = vrcp.f32 %v1964_v62 }
 0x40a   : > { %v4980_v50 = vld [vmem:[#allocation2 + $0x20] ss:$2 sm:$0xff]  ;;  %v4984_v6 = vld [vmem:[#allocation2 + $0x21] ss:$2 sm:$0xff]  ;;  %2316 = vmatpush.bf16.msra.mxu3 %v3607_v61 }
 0x40b   : > { %v3662_v61 = vld [vmem:[%s5743_s16 + $0x30] sm:$0xf] }
 0x40e   : > { %v4179_v15 = vpop.eup %4178 }
 0x40f   : > { %v1980_v24 = vmul.f32 %v4179_v15, %v1932_v19 }
 0x411   : > { %v1988_v39 = vadd.f32 %v1980_v24, %v4650_v53 }
 0x413   : > { %1996 = vst.msk [vmem:[#allocation2 + $0x38] sm:$0xff] %vm1459_vm5, %v1988_v39 }
 0x41a   : > { %v4982_v0 = vld [vmem:[#allocation2 + $0x30] ss:$2 sm:$0xff]  ;;  %v4986_v51 = vld [vmem:[#allocation2 + $0x31] ss:$2 sm:$0xff] }
 0x41b   : > { %v2041_v40 = vpack.c.bf16 %v4982_v0, %v4980_v50  ;;  %v2100_v2 = vpack.c.bf16 %v4986_v51, %v4984_v6  ;;  %v4065_v47 = vpack.i.bf16 %v4986_v51, %v4984_v6 }
 0x41d   : > { %3581 = vmatmul.msk.bf16.gmra.mxu2 %vm1459_vm5, %v2041_v40  ;;  %3599 = vmatmul.msk.bf16.gmra.mxu3 %vm1459_vm5, %v2100_v2 }
 0x478   : > { %v2148_v53 = vpop.f32.mrf.mxu3  ;;  %v2089_v5 = vpop.f32.mrf.mxu2 }
 0x479   : > { %2186 = vrot.lane.b32.xlu1 %v2148_v53, %s5788_s5  ;;  %v2158_v35 = vrot.slane %v2148_v53, 7 }
 0x480   : > { %v2150_v3 = vpop.f32.mrf.mxu3  ;;  %v2091_v21 = vpop.f32.mrf.mxu2 }
 0x481   : > { %v2159_v49 = vrot.slane %v2150_v3, 7  ;;  %2188 = vrot.lane.b32.xlu2 %v2150_v3, %s5788_s5 }
 0x483   : > { %v2164_v63 = vsel %vm1266_vm3, %v2158_v35, %v2159_v49 }
 0x484   : > { %v2179_v60 = vadd.f32 %v2164_v63, %v2091_v21 }
 0x4a0   : > { %v5000_v4 = vpop.f32.mrf.mxu3  ;;  %v2094_v13 = vpop.f32.mrf.mxu2 }
 0x4a1   : > { %v2160_v58 = vrot.slane %v5000_v4, 7  ;;  %2190 = vrot.lane.b32.xlu0 %v5000_v4, %s5788_s5 }
 0x4a3   : > { %v5009_v16 = vsel %vm1266_vm3, %v2159_v49, %v2160_v58 }
 0x4a4   : > { %v2180_v7 = vadd.f32 %v5009_v16, %v2094_v13 }
 0x4a8   : > { %v5011_v23 = vpop.f32.mrf.mxu3  ;;  %v2096_v41 = vpop.f32.mrf.mxu2 }
 0x4a9   : > { %2192 = vrot.lane.b32.xlu1 %v5011_v23, %s5788_s5  ;;  %v2161_v52 = vrot.slane %v5011_v23, 7 }
 0x4ab   : > { %v2165_v19 = vsel %vm1266_vm3, %v2161_v52, %v2158_v35 }
 0x4ac   : > { %v2174_v44 = vsel %vm5065_vm8, 0.0, %v2165_v19 }
 0x4ad   : > { %v2178_v62 = vadd.f32 %v2174_v44, %v2089_v5 }
 0x4db   : > { %v2189_v36 = vpop.permute.xlu2 %2188 }
 0x4dc   : > { %v2199_v46 = vadd.f32 %v2189_v36, %v2179_v60  ;;  %v2162_v36 = vsel %vm1266_vm3, %v2160_v58, %v2161_v52 }
 0x4dd   : > { %v2181_v60 = vadd.f32 %v2162_v36, %v2096_v41  ;;  %v5155_v36 = vld [vmem:[%s5742_s15] ss:$0 sm:$0xff]  ;;  %v3646_v41 = vld [vmem:[%s5743_s16 + $0x10] sm:$0xf] }
 0x4de   : > { %v2207_v56 = vadd.f32 %v4078_v25, %v2199_v46 }
 0x4e0   : > { %v2211_v43 = vsub.f32 0.0, %v2207_v56 }
 0x4e2   : > { %v2216_v17 = vmul.f32 1.442695, %v2211_v43  ;;  %v3964_v43 = vld [vmem:[%s5743_s16 + $0x34] sm:$0xf0] }
 0x4e3   : > { %v3663_v44 = vor.u32 %v3964_v43, %v3662_v61 }
 0x4e4   : > { %4180 = vpow2.f32 %v2216_v17 }
 0x4e5   : > { %2476 = vmatpush.bf16.msra.mxu0 %v3663_v44 }
 0x4ea   : > { %v4181_v53 = vpop.eup %4180 }
 0x4eb   : > { %v2187_v15 = vpop.permute.xlu1 %2186  ;;  %v2223_v3 = vadd.f32 1.0, %v4181_v53 }
 0x4ec   : > { %v2198_v24 = vadd.f32 %v2187_v15, %v2178_v62 }
 0x4ee   : > { %v2206_v39 = vadd.f32 %v4078_v25, %v2198_v24 }
 0x4f0   : > { %v2210_v40 = vsub.f32 0.0, %v2206_v39 }
 0x4f2   : > { %v2214_v2 = vmul.f32 1.442695, %v2210_v40  ;;  %v3963_v40 = vld [vmem:[%s5743_s16 + $0x34] sm:$0xf] }
 0x4f4   : > { %4182 = vpow2.f32 %v2214_v2  ;;  %v3664_v2 = vld [vmem:[%s5743_s16 + $0x38] sm:$0xf0] }
 0x4f5   : > { %4184 = vrcp.f32 %v2223_v3  ;;  %v3667_v53 = vor.u32 %v3963_v40, %v3664_v2  ;;  %v920_v2 = vadd.s32 24, %v4494_v28 }
 0x4f7   : > { %2495 = vmatpush.bf16.msra.mxu1 %v3667_v53 }
 0x4fa   : > { %v4183_v35 = vpop.eup %4182 }
 0x4fb   : > { %v2222_v49 = vadd.f32 1.0, %v4183_v35  ;;  %v4185_v63 = vpop.eup %4184 }
 0x4fc   : > { %v5076_v8 = vmul.f32 %v4185_v63, %v2207_v56 }
 0x4fd   : > { %4186 = vrcp.f32 %v2222_v49 }
 0x503   : > { %v4187_v23 = vpop.eup %4186 }
 0x504   : > { %v5078_v10 = vmul.f32 %v4187_v23, %v2206_v39  ;;  %v3654_v23 = vld [vmem:[%s5743_s16 + $0x20] sm:$0xf] }
 0x506   : > { %v2234_v5 = vpack.c.bf16 %v5076_v8, %v5078_v10 }
 0x508   : > { %3632 = vmatmul.msk.bf16.vlgmr.msra.gmra.mxu2 %vm1459_vm5, %v2234_v5  ;;  %3634 = vmatmul.msk.bf16.vlgmr.msra.gmra.mxu3 %vm1459_vm5, %v2234_v5  ;;  %v3962_v5 = vld [vmem:[%s5743_s16 + $0x24] sm:$0xf0] }
 0x509   : > { %v3655_v13 = vor.u32 %v3962_v5, %v3654_v23 }
 0x50b   : > { %2477 = vmatpush.bf16.msra.mxu0 %v3655_v13  ;;  %v3973_v13 = vld [vmem:[%s5746_s19 + $0x24] sm:$0xf] }
 0x513   : > { %v2191_v48 = vpop.permute.xlu0 %2190 }
 0x514   : > { %v2200_v45 = vadd.f32 %v2191_v48, %v2180_v7  ;;  %v3961_v7 = vld [vmem:[%s5743_s16 + $0x24] sm:$0xf]  ;;  %v3656_v48 = vld [vmem:[%s5743_s16 + $0x28] sm:$0xf0] }
 0x516   : > { %v2208_v21 = vadd.f32 %v4078_v25, %v2200_v45 }
 0x518   : > { %v2212_v20 = vsub.f32 0.0, %v2208_v21 }
 0x51a   : > { %v2218_v11 = vmul.f32 1.442695, %v2212_v20 }
 0x51b   : > { %v2193_v9 = vpop.permute.xlu1 %2192 }
 0x51c   : > { %v2201_v27 = vadd.f32 %v2193_v9, %v2181_v60  ;;  %4188 = vpow2.f32 %v2218_v11  ;;  %v3960_v11 = vld [vmem:[%s5743_s16 + $0x14] sm:$0xf0]  ;;  %v3959_v60 = vld [vmem:[%s5743_s16 + $0x14] sm:$0xf] }
 0x51d   : > { %v3647_v9 = vor.u32 %v3960_v11, %v3646_v41 }
 0x51e   : > { %v2209_v26 = vadd.f32 %v4078_v25, %v2201_v27  ;;  %v3648_v27 = vld [vmem:[%s5743_s16 + $0x18] sm:$0xf0] }
 0x51f   : > { %2478 = vmatpush.bf16.msra.mxu0 %v3647_v9 }
 0x520   : > { %v2213_v46 = vsub.f32 0.0, %v2209_v26 }
 0x522   : > { %v2220_v32 = vmul.f32 1.442695, %v2213_v46  ;;  %v4189_v42 = vpop.eup %4188 }
 0x523   : > { %v2224_v16 = vadd.f32 1.0, %v4189_v42  ;;  %v3958_v42 = vld [vmem:[%s5743_s16 + $0x4] sm:$0xf0] }
 0x524   : > { %4190 = vpow2.f32 %v2220_v32  ;;  %v3638_v32 = vld [vmem:[%s5743_s16] sm:$0xf] }
 0x525   : > { %4192 = vrcp.f32 %v2224_v16  ;;  %v3957_v16 = vld [vmem:[%s5743_s16 + $0x4] sm:$0xf] }
 0x52a   : > { %v4191_v29 = vpop.eup %4190 }
 0x52b   : > { %v2225_v12 = vadd.f32 1.0, %v4191_v29  ;;  %v4193_v4 = vpop.eup %4192 }
 0x52c   : > { %v5089_v58 = vmul.f32 %v4193_v4, %v2208_v21  ;;  %v3659_v21 = vor.u32 %v3961_v7, %v3656_v48  ;;  %v3640_v4 = vld [vmem:[%s5743_s16 + $0x8] sm:$0xf0] }
 0x52d   : > { %4194 = vrcp.f32 %v2225_v12  ;;  %v3639_v12 = vor.u32 %v3958_v42, %v3638_v32 }
 0x52e   : > { %2496 = vmatpush.bf16.msra.mxu1 %v3659_v21 }
 0x52f   : > { %2479 = vmatpush.bf16.msra.mxu0 %v3639_v12 }
 0x533   : > { %v4195_v54 = vpop.eup %4194 }
 0x534   : > { %v5091_v52 = vmul.f32 %v4195_v54, %v2209_v26  ;;  %v3651_v26 = vor.u32 %v3959_v60, %v3648_v27  ;;  %v3643_v54 = vor.u32 %v3957_v16, %v3640_v4 }
 0x536   : > { %v2235_v14 = vpack.c.bf16 %v5091_v52, %v5089_v58  ;;  %2497 = vmatpush.bf16.msra.mxu1 %v3651_v26 }
 0x538   : > { %3633 = vmatmul.msk.bf16.gmra.mxu2 %vm1459_vm5, %v2235_v14  ;;  %3635 = vmatmul.msk.bf16.gmra.mxu3 %vm1459_vm5, %v2235_v14 }
 0x53a   : > { %2498 = vmatpush.bf16.msra.mxu1 %v3643_v54 }
 0x58b   : > { %v2299_v25 = vpop.f32.mrf.mxu2  ;;  %v5122_v17 = vpop.f32.mrf.mxu3 }
 0x58c   : > { %2364 = vrot.lane.b32.xlu2 %v2299_v25, %s5788_s5  ;;  %v2328_v56 = vrot.slane %v2299_v25, 7  ;;  %v2340_v63 = vrot.slane %v5122_v17, 1 }
 0x593   : > { %v2301_v33 = vpop.f32.mrf.mxu2  ;;  %v2320_v15 = vpop.f32.mrf.mxu3 }
 0x594   : > { %v2329_v37 = vrot.slane %v2301_v33, 7  ;;  %2366 = vrot.lane.b32.xlu0 %v2301_v33, %s5788_s5  ;;  %v2341_v3 = vrot.slane %v2320_v15, 1 }
 0x596   : > { %v2334_v55 = vsel %vm1266_vm3, %v2328_v56, %v2329_v37  ;;  %v2346_v45 = vsel %vm1562_vm6, %v2340_v63, %v2341_v3 }
 0x5bb   : > { %v5101_v57 = vpop.f32.mrf.mxu2  ;;  %v2323_v29 = vpop.f32.mrf.mxu3 }
 0x5bc   : > { %v2330_v19 = vrot.slane %v5101_v57, 7  ;;  %2368 = vrot.lane.b32.xlu1 %v5101_v57, %s5788_s5  ;;  %v2342_v25 = vrot.slane %v2323_v29, 1 }
 0x5be   : > { %v5110_v18 = vsel %vm1266_vm3, %v2329_v37, %v2330_v19  ;;  %v2345_v61 = vsel %vm1562_vm6, %v2341_v3, %v2342_v25 }
 0x5c3   : > { %v5112_v38 = vpop.f32.mrf.mxu2  ;;  %v2325_v53 = vpop.f32.mrf.mxu3 }
 0x5c4   : > { %2370 = vrot.lane.b32.xlu2 %v5112_v38, %s5788_s5  ;;  %v2331_v62 = vrot.slane %v5112_v38, 7 }
 0x5c6   : > { %v2335_v24 = vsel %vm1266_vm3, %v2331_v62, %v2328_v56  ;;  %v2332_v5 = vsel %vm1266_vm3, %v2330_v19, %v2331_v62 }
 0x5c7   : > { %v2336_v35 = vsel %vm5065_vm8, 0.0, %v2335_v24 }
 0x5e6   : > { %v2365_v39 = vpop.permute.xlu2 %2364 }
 0x5e7   : > { %v2376_v49 = vadd.f32 %v2365_v39, %v2336_v35 }
 0x5e9   : > { %v2380_v20 = vadd.f32 %v2376_v49, %v2346_v45  ;;  %v952_v49 = vand.u32 31, %v920_v2 }
 0x5eb   : > { %v2388_v46 = vadd.f32 %v5155_v36, %v2380_v20  ;;  %vm5192_vm9 = vcmp.eq.s32.totalorder %v952_v49, 31 }
 0x5ed   : > { %v2392_v14 = vsub.f32 0.0, %v2388_v46 }
 0x5ef   : > { %v2396_v56 = vmul.f32 1.442695, %v2392_v14 }
 0x5f1   : > { %4196 = vpow2.f32 %v2396_v56 }
 0x5f7   : > { %v4197_v24 = vpop.eup %4196 }
 0x5f8   : > { %v2404_v39 = vadd.f32 1.0, %v4197_v24 }
 0x606   : > { %v2367_v33 = vpop.permute.xlu0 %2366 }
 0x607   : > { %v2377_v37 = vadd.f32 %v2367_v33, %v2334_v55  ;;  %v2343_v55 = vrot.slane %v2325_v53, 1 }
 0x609   : > { %v2381_v43 = vadd.f32 %v2377_v37, %v2345_v61  ;;  %v2347_v7 = vsel %vm1562_vm6, %v2343_v55, %v2340_v63  ;;  %v2344_v9 = vsel %vm1562_vm6, %v2342_v25, %v2343_v55 }
 0x60a   : > { %v2359_v41 = vsel %vm5192_vm9, 0.0, %v2347_v7 }
 0x60b   : > { %v2389_v44 = vadd.f32 %v5155_v36, %v2381_v43 }
 0x60d   : > { %v2393_v17 = vsub.f32 0.0, %v2389_v44 }
 0x60f   : > { %v2398_v15 = vmul.f32 1.442695, %v2393_v17 }
 0x611   : > { %4198 = vpow2.f32 %v2398_v15 }
 0x612   : > { %4200 = vrcp.f32 %v2404_v39 }
 0x617   : > { %v4199_v40 = vpop.eup %4198 }
 0x618   : > { %v2405_v35 = vadd.f32 1.0, %v4199_v40  ;;  %v4201_v23 = vpop.eup %4200 }
 0x619   : > { %v2412_v21 = vmul.f32 %v4201_v23, %v2388_v46 }
 0x61a   : > { %4202 = vrcp.f32 %v2405_v35 }
 0x61e   : > { %v2371_v3 = vpop.permute.xlu2 %2370 }
 0x61f   : > { %v2379_v48 = vadd.f32 %v2371_v3, %v2332_v5 }
 0x620   : > { %v4203_v45 = vpop.eup %4202 }
 0x621   : > { %v2413_v20 = vmul.f32 %v4203_v45, %v2389_v44  ;;  %v2383_v11 = vadd.f32 %v2379_v48, %v2359_v41 }
 0x623   : > { %v2416_v38 = vpack.c.bf16 %v2413_v20, %v2412_v21  ;;  %v2391_v57 = vadd.f32 %v5155_v36, %v2383_v11 }
 0x625   : > { %3668 = vmatmul.msk.bf16.vlgmr.msra.gmra.mxu0 %vm1459_vm5, %v2416_v38  ;;  %3670 = vmatmul.msk.bf16.vlgmr.msra.gmra.mxu1 %vm1459_vm5, %v2416_v38  ;;  %v2395_v19 = vsub.f32 0.0, %v2391_v57 }
 0x627   : > { %v2402_v60 = vmul.f32 1.442695, %v2395_v19 }
 0x629   : > { %4204 = vpow2.f32 %v2402_v60 }
 0x62e   : > { %v2369_v62 = vpop.permute.xlu1 %2368 }
 0x62f   : > { %v2378_v63 = vadd.f32 %v2369_v62, %v5110_v18  ;;  %v4205_v42 = vpop.eup %4204 }
 0x630   : > { %v2407_v16 = vadd.f32 1.0, %v4205_v42 }
 0x631   : > { %v2382_v27 = vadd.f32 %v2378_v63, %v2344_v9 }
 0x633   : > { %v2390_v26 = vadd.f32 %v5155_v36, %v2382_v27 }
 0x635   : > { %v2394_v46 = vsub.f32 0.0, %v2390_v26 }
 0x637   : > { %v2400_v32 = vmul.f32 1.442695, %v2394_v46 }
 0x639   : > { %4206 = vpow2.f32 %v2400_v32 }
 0x63a   : > { %4208 = vrcp.f32 %v2407_v16 }
 0x63f   : > { %v4207_v29 = vpop.eup %4206 }
 0x640   : > { %v2406_v12 = vadd.f32 1.0, %v4207_v29  ;;  %v4209_v4 = vpop.eup %4208 }
 0x641   : > { %v2415_v18 = vmul.f32 %v4209_v4, %v2391_v57 }
 0x642   : > { %4210 = vrcp.f32 %v2406_v12 }
 0x648   : > { %v4211_v54 = vpop.eup %4210 }
 0x649   : > { %v2414_v14 = vmul.f32 %v4211_v54, %v2390_v26 }
 0x64b   : > { %v2417_v33 = vpack.c.bf16 %v2415_v18, %v2414_v14 }
 0x64d   : > { %3669 = vmatmul.msk.bf16.gmra.mxu0 %vm1459_vm5, %v2417_v33  ;;  %3671 = vmatmul.msk.bf16.gmra.mxu1 %vm1459_vm5, %v2417_v33 }
 0x6a2   : > { %v2481_v25 = vpop.f32.mrf.mxu0  ;;  %v5234_v1 = vpop.f32.mrf.mxu1 }
 0x6a3   : > { %2538 = vrot.lane.b32.xlu0 %v2481_v25, %s5788_s5  ;;  %v2510_v56 = vrot.slane %v2481_v25, 7  ;;  %v2522_v40 = vrot.slane %v5234_v1, 1 }
 0x6aa   : > { %v2483_v36 = vpop.f32.mrf.mxu0  ;;  %v2502_v22 = vpop.f32.mrf.mxu1 }
 0x6ab   : > { %v2511_v37 = vrot.slane %v2483_v36, 7  ;;  %2540 = vrot.lane.b32.xlu1 %v2483_v36, %s5788_s5  ;;  %v2523_v39 = vrot.slane %v2502_v22, 1 }
 0x6ad   : > { %v2516_v61 = vsel %vm1266_vm3, %v2510_v56, %v2511_v37  ;;  %v2528_v35 = vsel %vm1562_vm6, %v2522_v40, %v2523_v39 }
 0x6b3   : > { %4061 = vrot.lane.b32.xlu1 %v4060_v31, %s5788_s5 }
 0x6ca   : > { %v5217_v43 = vpop.f32.mrf.mxu0  ;;  %v2505_v51 = vpop.f32.mrf.mxu1 }
 0x6cb   : > { %v2512_v44 = vrot.slane %v5217_v43, 7  ;;  %2542 = vrot.lane.b32.xlu2 %v5217_v43, %s5788_s5  ;;  %v2524_v23 = vrot.slane %v2505_v51, 1  ;;  %v3975_v43 = vld [vmem:[%s5746_s19 + $0x34] sm:$0xf] }
 0x6cd   : > { %v2515_v17 = vsel %vm1266_vm3, %v2511_v37, %v2512_v44  ;;  %v2527_v48 = vsel %vm1562_vm6, %v2523_v39, %v2524_v23 }
 0x6d2   : > { %v5226_v15 = vpop.f32.mrf.mxu0  ;;  %v5257_v45 = vpop.f32.mrf.mxu1 }
 0x6d3   : > { %4066 = vrot.lane.b32.xlu2 %v4065_v47, %s5788_s5  ;;  %2544 = vrot.lane.b32.xlu0 %v5226_v15, %s5788_s5  ;;  %v2513_v31 = vrot.slane %v5226_v15, 7  ;;  %v5247_v47 = vld [vmem:[%s5744_s17] ss:$0 sm:$0xff]  ;;  %v2525_v41 = vrot.slane %v5257_v45, 1 }
 0x6d5   : > { %v2517_v24 = vsel %vm1266_vm3, %v2513_v31, %v2510_v56  ;;  %v2526_v26 = vsel %vm1562_vm6, %v2524_v23, %v2525_v41  ;;  %v2514_v1 = vsel %vm1266_vm3, %v2512_v44, %v2513_v31  ;;  %v3717_v44 = vld [vmem:[%s5746_s19 + $0x38] sm:$0xf0] }
 0x6d6   : > { %v2518_v6 = vsel %vm5065_vm8, 0.0, %v2517_v24 }
 0x715   : > { %v2539_v2 = vpop.permute.xlu0 %2538 }
 0x716   : > { %v2550_v53 = vadd.f32 %v2539_v2, %v2518_v6 }
 0x718   : > { %v2554_v55 = vadd.f32 %v2550_v53, %v2528_v35  ;;  %v3974_v35 = vld [vmem:[%s5746_s19 + $0x24] sm:$0xf0] }
 0x71a   : > { %v2562_v49 = vadd.f32 %v5247_v47, %v2554_v55 }
 0x71c   : > { %v2566_v3 = vsub.f32 0.0, %v2562_v49 }
 0x71d   : > { %v2541_v59 = vpop.permute.xlu1 %2540 }
 0x71e   : > { %v2570_v5 = vmul.f32 1.442695, %v2566_v3  ;;  %v2551_v7 = vadd.f32 %v2541_v59, %v2516_v61  ;;  %v2529_v3 = vsel %vm1562_vm6, %v2525_v41, %v2522_v40  ;;  %v3966_v59 = vld [vmem:[%s5745_s18 + $0x8] sm:$0xff]  ;;  %v3972_v40 = vld [vmem:[%s5746_s19 + $0x14] sm:$0xf0] }
 0x71f   : > { %v2533_v15 = vsel %vm5192_vm9, 0.0, %v2529_v3 }
 0x720   : > { %4212 = vpow2.f32 %v2570_v5  ;;  %v2555_v21 = vadd.f32 %v2551_v7, %v2527_v48  ;;  %v3691_v7 = vld [vmem:[%s5746_s19] sm:$0xf]  ;;  %v3970_v48 = vld [vmem:[%s5746_s19 + $0x4] sm:$0xf0] }
 0x721   : > { %v3692_v41 = vor.u32 %v3970_v48, %v3691_v7  ;;  %v3787_v7 = vld [vmem:[%s5748_s21 + $0x84] sm:$0xf0]  ;;  %v3793_v48 = vld [vmem:[%s5748_s21 + $0x80] sm:$0xf] }
 0x722   : > { %v2563_v20 = vadd.f32 %v5247_v47, %v2555_v21 }
 0x724   : > { %v2567_v38 = vsub.f32 0.0, %v2563_v20 }
 0x725   : > { %v4062_v11 = vpop.permute.xlu1 %4061  ;;  %v2543_v57 = vpop.permute.xlu2 %2542 }
 0x726   : > { %v4213_v19 = vpop.eup %4212  ;;  %v2572_v62 = vmul.f32 1.442695, %v2567_v38  ;;  %v4064_v60 = vunpack.i.h.bf16 %v4062_v11  ;;  %v4063_v63 = vunpack.i.l.bf16 %v4062_v11  ;;  %v2552_v9 = vadd.f32 %v2543_v57, %v2515_v17 }
 0x727   : > { %v2578_v27 = vadd.f32 1.0, %v4213_v19  ;;  %v3720_v38 = vor.u32 %v3975_v43, %v3717_v44 }
 0x728   : > { %4214 = vpow2.f32 %v2572_v62  ;;  %v2029_v46 = vsel %vm1459_vm5, %v4951_v30, %v4064_v60  ;;  %v2028_v32 = vsel %vm1459_vm5, %v4949_v34, %v4063_v63  ;;  %v2556_v42 = vadd.f32 %v2552_v9, %v2526_v26  ;;  %v3709_v62 = vld [vmem:[%s5746_s19 + $0x28] sm:$0xf0]  ;;  %v3971_v60 = vld [vmem:[%s5746_s19 + $0x14] sm:$0xf] }
 0x729   : > { %4216 = vrcp.f32 %v2578_v27  ;;  %v4028_v16 = vpack.c.bf16 %v2029_v46, %v2028_v32  ;;  %v3712_v63 = vor.u32 %v3973_v13, %v3709_v62  ;;  %v3969_v27 = vld [vmem:[%s5746_s19 + $0x4] sm:$0xf]  ;;  %v3693_v26 = vld [vmem:[%s5746_s19 + $0x8] sm:$0xf0] }
 0x72a   : > { %v2564_v29 = vadd.f32 %v5247_v47, %v2556_v42  ;;  %v3696_v32 = vor.u32 %v3969_v27, %v3693_v26  ;;  %v3763_v26 = vld [vmem:[%s5748_s21 + $0x54] sm:$0xf0] }
 0x72b   : > { %4029 = vst [vmem:[%s901_s3] sm:$0xff] %v4028_v16  }
 0x72c   : > { %v2568_v12 = vsub.f32 0.0, %v2564_v29 }
 0x72d   : > { %v4067_v4 = vpop.permute.xlu2 %4066 }
 0x72e   : > { %v4215_v54 = vpop.eup %4214  ;;  %v2574_v14 = vmul.f32 1.442695, %v2568_v12  ;;  %v4069_v18 = vunpack.i.h.bf16 %v4067_v4  ;;  %v4068_v33 = vunpack.i.l.bf16 %v4067_v4 }
 0x72f   : > { %v4217_v25 = vpop.eup %4216  ;;  %v2579_v36 = vadd.f32 1.0, %v4215_v54 }
 0x730   : > { %v2586_v56 = vmul.f32 %v4217_v25, %v2562_v49  ;;  %4218 = vpow2.f32 %v2574_v14  ;;  %v2031_v30 = vsel %vm1459_vm5, %v4982_v0, %v4069_v18  ;;  %v2030_v34 = vsel %vm1459_vm5, %v4980_v50, %v4068_v33  ;;  %v3715_v50 = vld [vmem:[%s5746_s19 + $0x30] sm:$0xf]  ;;  %v3976_v0 = vld [vmem:[%s5746_s19 + $0x34] sm:$0xf0] }
 0x731   : > { %4220 = vrcp.f32 %v2579_v36  ;;  %v4033_v37 = vpack.c.bf16 %v2031_v30, %v2030_v34  ;;  %v3716_v6 = vor.u32 %v3976_v0, %v3715_v50  ;;  %v3967_v49 = vld [vmem:[%s5745_s18 + $0x10] sm:$0xff]  ;;  %v4000_v0 = vld [vmem:[%s5748_s21 + $0xb8] sm:$0xf0] }
 0x732   : > { %v2590_v61 = vadd.f32 %v2586_v56, %v5078_v10  ;;  %v3968_v10 = vld [vmem:[%s5745_s18 + $0x18] sm:$0xff]  ;;  %v3817_v50 = vld [vmem:[%s5748_s21 + $0xb0] sm:$0xf] }
 0x733   : > { %4045 = vst [vmem:[%s901_s3 + $0x8] sm:$0xff] %v4033_v37   ;;  %2659 = vmatpush.bf16.msrb.mxu2 %v3968_v10  ;;  %2725 = vmatpush.bf16.msrb.mxu3 %v3716_v6  ;;  %v3818_v6 = vor.u32 %v4000_v0, %v3817_v50  ;;  %v3739_v50 = vld [vmem:[%s5748_s21 + $0x24] sm:$0xf0]  ;;  %v3745_v0 = vld [vmem:[%s5748_s21 + $0x20] sm:$0xf] }
 0x734   : > { %2594 = vst.msk [vmem:[#allocation3] sm:$0xff] %vm1459_vm5, %v2590_v61 }
 0x736   : > { %v4219_v17 = vpop.eup %4218 }
 0x737   : > { %v4221_v22 = vpop.eup %4220  ;;  %v2580_v24 = vadd.f32 1.0, %v4219_v17  ;;  %2660 = vmatpush.bf16.msrb.mxu2 %v3967_v49  ;;  %v3809_v17 = vld [vmem:[%s5748_s21 + $0xa8] sm:$0xf]  ;;  %v3805_v49 = vld [vmem:[%s5748_s21 + $0x98] sm:$0xf] }
 0x738   : > { %v2587_v39 = vmul.f32 %v4221_v22, %v2563_v20  ;;  %v3965_v20 = vld [vmem:[%s5745_s18] sm:$0xff]  ;;  %v3999_v22 = vld [vmem:[%s5748_s21 + $0xb0] sm:$0xf0] }
 0x739   : > { %4222 = vrcp.f32 %v2580_v24  ;;  %v3998_v24 = vld [vmem:[%s5748_s21 + $0xac] sm:$0xf] }
 0x73a   : > { %v2591_v2 = vadd.f32 %v2587_v39, %v5076_v8  ;;  %v3707_v8 = vld [vmem:[%s5746_s19 + $0x20] sm:$0xf]  ;;  %v3810_v39 = vor.u32 %v3999_v22, %v3809_v17  ;;  %v3737_v17 = vld [vmem:[%s5748_s21 + $0x18] sm:$0xf]  ;;  %v3981_v22 = vld [vmem:[%s5748_s21 + $0x20] sm:$0xf0] }
 0x73b   : > { %v3708_v23 = vor.u32 %v3974_v35, %v3707_v8  ;;  %2661 = vmatpush.bf16.msrb.mxu2 %v3966_v59  ;;  %v3995_v8 = vld [vmem:[%s5748_s21 + $0x94] sm:$0xf] }
 0x73c   : > { %2595 = vst.msk [vmem:[#allocation3 + $0x8] sm:$0xff] %vm1459_vm5, %v2591_v2  ;;  %v3811_v2 = vld [vmem:[%s5748_s21 + $0xb4] sm:$0xf0]  ;;  %2942 = vmatpush.bf16.msrb.mxu0 %v3810_v39 }
 0x73d   : > { %2726 = vmatpush.bf16.msrb.mxu3 %v3708_v23  ;;  %v3814_v10 = vor.u32 %v3998_v24, %v3811_v2  ;;  %v3997_v23 = vld [vmem:[%s5748_s21 + $0xa0] sm:$0xf0]  ;;  %v3980_v24 = vld [vmem:[%s5748_s21 + $0x1c] sm:$0xf]  ;;  %v3738_v2 = vor.u32 %v3981_v22, %v3737_v17 }
 0x73e   : > { %v3806_v59 = vor.u32 %v3997_v23, %v3805_v49  ;;  %v3978_v49 = vld [vmem:[%s5748_s21 + $0x8] sm:$0xf0]  ;;  %v3977_v23 = vld [vmem:[%s5748_s21 + $0x4] sm:$0xf]  ;;  %v4016_v17 = vld [vmem:[%s5750_s23 + $0x7c] sm:$0xf] }
 0x73f   : > { %v4223_v51 = vpop.eup %4222  ;;  %2662 = vmatpush.bf16.msrb.mxu2 %v3965_v20  ;;  %2956 = vmatpush.bf16.msrb.mxu1 %v3814_v10  ;;  %v3989_v20 = vld [vmem:[%s5748_s21 + $0x64] sm:$0xf]  ;;  %v3742_v10 = vor.u32 %v3980_v24, %v3739_v50  ;;  %v3883_v24 = vld [vmem:[%s5750_s23 + $0x84] sm:$0xf0] }
 0x740   : > { %v2588_v53 = vmul.f32 %v4223_v51, %v2564_v29  ;;  %v3797_v51 = vld [vmem:[%s5748_s21 + $0x90] sm:$0xf]  ;;  %v3886_v50 = vor.u32 %v4016_v17, %v3883_v24 }
 0x742   : > { %v2592_v55 = vadd.f32 %v2588_v53, %v5089_v58  ;;  %v3699_v58 = vld [vmem:[%s5746_s19 + $0x10] sm:$0xf]  ;;  %v3996_v53 = vld [vmem:[%s5748_s21 + $0x98] sm:$0xf0] }
 0x743   : > { %v3700_v21 = vor.u32 %v3972_v40, %v3699_v58  ;;  %2739 = vmatpush.bf16.msra.mxu2 %v3720_v38  ;;  %v2602_v4 = vld [vmem:[#allocation3 + $0x1] ss:$2 sm:$0xff]  ;;  %v2598_v14 = vld [vmem:[#allocation3] ss:$2 sm:$0xff]  ;;  %v3798_v35 = vor.u32 %v3996_v53, %v3797_v51  ;;  %v4081_v53 = vld [vmem:[%s5747_s20] ss:$0 sm:$0xff] }
 0x744   : > { %2596 = vst.msk [vmem:[#allocation3 + $0x10] sm:$0xff] %vm1459_vm5, %v2592_v55  ;;  %v3799_v55 = vld [vmem:[%s5748_s21 + $0x9c] sm:$0xf0]  ;;  %v3785_v58 = vld [vmem:[%s5748_s21 + $0x78] sm:$0xf] }
 0x745   : > { %v2545_v5 = vpop.permute.xlu0 %2544  ;;  %2727 = vmatpush.bf16.msrb.mxu3 %v3700_v21  ;;  %v3802_v3 = vor.u32 %v3995_v8, %v3799_v55  ;;  %2943 = vmatpush.bf16.msrb.mxu0 %v3798_v35  ;;  %v3725_v55 = vld [vmem:[%s5748_s21] sm:$0xf] }
 0x746   : > { %v2553_v45 = vadd.f32 %v2545_v5, %v2514_v1  ;;  %v3993_v5 = vld [vmem:[%s5748_s21 + $0x80] sm:$0xf0]  ;;  %v3992_v1 = vld [vmem:[%s5748_s21 + $0x7c] sm:$0xf] }
 0x747   : > { %2740 = vmatpush.bf16.msra.mxu2 %v3712_v63  ;;  %2957 = vmatpush.bf16.msrb.mxu1 %v3802_v3  ;;  %v3786_v40 = vor.u32 %v3993_v5, %v3785_v58  ;;  %v3790_v21 = vor.u32 %v3992_v1, %v3787_v7  ;;  %v3761_v63 = vld [vmem:[%s5748_s21 + $0x48] sm:$0xf]  ;;  %v3727_v58 = vld [vmem:[%s5748_s21 + $0xc] sm:$0xf0]  ;;  %v3979_v1 = vld [vmem:[%s5748_s21 + $0x10] sm:$0xf0] }
 0x748   : > { %v2557_v31 = vadd.f32 %v2553_v45, %v2533_v15  ;;  %v3994_v45 = vld [vmem:[%s5748_s21 + $0x88] sm:$0xf0]  ;;  %v3773_v15 = vld [vmem:[%s5748_s21 + $0x60] sm:$0xf]  ;;  %v3733_v5 = vld [vmem:[%s5748_s21 + $0x8] sm:$0xf] }
 0x749   : > { %2728 = vmatpush.bf16.msrb.mxu3 %v3692_v41  ;;  %v3794_v43 = vor.u32 %v3994_v45, %v3793_v48  ;;  %2944 = vmatpush.bf16.msrb.mxu0 %v3786_v40  ;;  %v3730_v40 = vor.u32 %v3977_v23, %v3727_v58  ;;  %v3734_v7 = vor.u32 %v3979_v1, %v3733_v5  ;;  %v4010_v58 = vld [vmem:[%s5750_s23 + $0x4c] sm:$0xf]  ;;  %v3859_v1 = vld [vmem:[%s5750_s23 + $0x54] sm:$0xf0] }
 0x74a   : > { %v2565_v11 = vadd.f32 %v5247_v47, %v2557_v31  ;;  %v3701_v47 = vld [vmem:[%s5746_s19 + $0x18] sm:$0xf0]  ;;  %v3990_v31 = vld [vmem:[%s5748_s21 + $0x68] sm:$0xf0] }
 0x74b   : > { %v3704_v9 = vor.u32 %v3971_v60, %v3701_v47  ;;  %2958 = vmatpush.bf16.msrb.mxu1 %v3790_v21  ;;  %v3774_v38 = vor.u32 %v3990_v31, %v3773_v15  ;;  %v961_v60 = vand.u32 15, %v4494_v28  ;;  %v3987_v47 = vld [vmem:[%s5748_s21 + $0x50] sm:$0xf0] }
 0x74c   : > { %v2569_v57 = vsub.f32 0.0, %v2565_v11  ;;  %v3762_v27 = vor.u32 %v3987_v47, %v3761_v63 }
 0x74d   : > { %2741 = vmatpush.bf16.msra.mxu2 %v3704_v9  ;;  %2970 = vmatpush.bf16.msra.mxu3 %v3818_v6  ;;  %v3986_v9 = vld [vmem:[%s5748_s21 + $0x4c] sm:$0xf]  ;;  %vm5464_vm10 = vcmp.eq.s32.totalorder %v961_v60, 0 }
 0x74e   : > { %v2576_v19 = vmul.f32 1.442695, %v2569_v57  ;;  %v3781_v57 = vld [vmem:[%s5748_s21 + $0x68] sm:$0xf]  ;;  %2945 = vmatpush.bf16.msrb.mxu0 %v3774_v38  ;;  %v3982_v6 = vld [vmem:[%s5748_s21 + $0x28] sm:$0xf0] }
 0x74f   : > { %v3746_v8 = vor.u32 %v3982_v6, %v3745_v0  ;;  %v4014_v6 = vld [vmem:[%s5750_s23 + $0x68] sm:$0xf0] }
 0x750   : > { %4224 = vpow2.f32 %v2576_v19  ;;  %v3991_v19 = vld [vmem:[%s5748_s21 + $0x70] sm:$0xf0] }
 0x751   : > { %2742 = vmatpush.bf16.msra.mxu2 %v3696_v32  ;;  %2971 = vmatpush.bf16.msra.mxu3 %v3806_v59  ;;  %v3782_v62 = vor.u32 %v3991_v19, %v3781_v57  ;;  %v3988_v32 = vld [vmem:[%s5748_s21 + $0x58] sm:$0xf0]  ;;  %v3726_v59 = vor.u32 %v3978_v49, %v3725_v55  ;;  %v4015_v55 = vld [vmem:[%s5750_s23 + $0x70] sm:$0xf0] }
 0x752   : > { %2946 = vmatpush.bf16.msrb.mxu0 %v3762_v27  ;;  %v3905_v27 = vld [vmem:[%s5750_s23 + $0xa8] sm:$0xf] }
 0x755   : > { %2972 = vmatpush.bf16.msra.mxu3 %v3794_v43 }
 0x756   : > { %v4225_v46 = vpop.eup %4224 }
 0x757   : > { %v2581_v42 = vadd.f32 1.0, %v4225_v46  ;;  %v3769_v46 = vld [vmem:[%s5748_s21 + $0x50] sm:$0xf] }
 0x759   : > { %4226 = vrcp.f32 %v2581_v42  ;;  %2973 = vmatpush.bf16.msra.mxu3 %v3782_v62  ;;  %v3766_v42 = vor.u32 %v3986_v9, %v3763_v26  ;;  %v4023_v26 = vld [vmem:[%s5750_s23 + $0xb0] sm:$0xf0] }
 0x75f   : > { %v4227_v16 = vpop.eup %4226 }
 0x760   : > { %v2589_v29 = vmul.f32 %v4227_v16, %v2565_v11  ;;  %v3775_v11 = vld [vmem:[%s5748_s21 + $0x6c] sm:$0xf0]  ;;  %v3770_v16 = vor.u32 %v3988_v32, %v3769_v46  ;;  %v4022_v46 = vld [vmem:[%s5750_s23 + $0xac] sm:$0xf]  ;;  %v3906_v32 = vor.u32 %v4023_v26, %v3905_v27  ;;  %v3835_v26 = vld [vmem:[%s5750_s23 + $0x24] sm:$0xf0] }
 0x761   : > { %v3778_v13 = vor.u32 %v3989_v20, %v3775_v11 }
 0x762   : > { %v2593_v12 = vadd.f32 %v2589_v29, %v5091_v52  ;;  %2974 = vmatpush.bf16.msra.mxu3 %v3770_v16  ;;  %v3913_v16 = vld [vmem:[%s5750_s23 + $0xb0] sm:$0xf] }
 0x763   : > { %2959 = vmatpush.bf16.msrb.mxu1 %v3778_v13 }
 0x764   : > { %2597 = vst.msk [vmem:[#allocation3 + $0x18] sm:$0xff] %vm1459_vm5, %v2593_v12 }
 0x767   : > { %2960 = vmatpush.bf16.msrb.mxu1 %v3766_v42  ;;  %v3907_v42 = vld [vmem:[%s5750_s23 + $0xb4] sm:$0xf0] }
 0x76b   : > { %v2604_v54 = vld [vmem:[#allocation3 + $0x11] ss:$2 sm:$0xff]  ;;  %v2600_v18 = vld [vmem:[#allocation3 + $0x10] ss:$2 sm:$0xff] }
 0x76c   : > { %v4070_v33 = vpack.i.bf16 %v2604_v54, %v2602_v4  ;;  %v2669_v25 = vpack.c.bf16 %v2604_v54, %v2602_v4  ;;  %v2619_v36 = vpack.c.bf16 %v2600_v18, %v2598_v14  ;;  %v3749_v4 = vld [vmem:[%s5748_s21 + $0x30] sm:$0xf]  ;;  %v3984_v54 = vld [vmem:[%s5748_s21 + $0x38] sm:$0xf0] }
 0x76e   : > { %4071 = vrot.lane.b32.xlu0 %v4070_v33, %s5788_s5  ;;  %3688 = vmatmul.msk.bf16.vlgmr.msrb.gmra.mxu2 %vm1459_vm5, %v2619_v36  ;;  %s907_s5 = scalar_lea.vmem %s5753_s26, %s5765_s6  ;;  %v3750_v33 = vor.u32 %v3984_v54, %v3749_v4  ;;  %v3757_v36 = vld [vmem:[%s5748_s21 + $0x38] sm:$0xf]  ;;  %v4024_v4 = vld [vmem:[%s5750_s23 + $0xb8] sm:$0xf0] }
 0x76f   : > { %3721 = vmatmul.msk.bf16.vlgmr.msrb.gmra.mxu3 %vm1459_vm5, %v2669_v25  ;;  %3183 = vmatpush.bf16.msrb.mxu2 %v3906_v32  ;;  %v3914_v54 = vor.u32 %v4024_v4, %v3913_v16  ;;  %v4006_v32 = vld [vmem:[%s5750_s23 + $0x28] sm:$0xf0]  ;;  %v918_v16 = vadd.s32 8, %v4494_v28 }
 0x770   : > { %2947 = vmatpush.bf16.msrb.mxu0 %v3750_v33  ;;  %v4019_v33 = vld [vmem:[%s5750_s23 + $0x94] sm:$0xf] }
 0x774   : > { %2948 = vmatpush.bf16.msrb.mxu0 %v3738_v2  ;;  %v4018_v2 = vld [vmem:[%s5750_s23 + $0x88] sm:$0xf0] }
 0x778   : > { %2949 = vmatpush.bf16.msrb.mxu0 %v3726_v59  ;;  %v4011_v59 = vld [vmem:[%s5750_s23 + $0x50] sm:$0xf0] }
 0x77e   : > { %3722 = vmatmul.msk.bf16.vlgmr.msra.gmra.mxu2 %vm1459_vm5, %v2669_v25  ;;  %v3751_v25 = vld [vmem:[%s5748_s21 + $0x3c] sm:$0xf0] }
 0x7e0   : > { %v4072_v52 = vpop.permute.xlu0 %4071 }
 0x7e1   : > { %v4074_v56 = vunpack.i.h.bf16 %v4072_v52  ;;  %v4073_v30 = vunpack.i.l.bf16 %v4072_v52  ;;  %v3985_v52 = vld [vmem:[%s5748_s21 + $0x40] sm:$0xf0] }
 0x7e3   : > { %v2613_v34 = vsel %vm1459_vm5, %v2598_v14, %v4073_v30  ;;  %v2614_v37 = vsel %vm1459_vm5, %v2600_v18, %v4074_v56  ;;  %v3983_v14 = vld [vmem:[%s5748_s21 + $0x34] sm:$0xf] }
 0x7e4   : > { %v4038_v61 = vpack.c.bf16 %v2614_v37, %v2613_v34  ;;  %v3754_v34 = vor.u32 %v3983_v14, %v3751_v25  ;;  %v3758_v37 = vor.u32 %v3985_v52, %v3757_v36  ;;  %v3893_v14 = vld [vmem:[%s5750_s23 + $0x90] sm:$0xf]  ;;  %v3895_v36 = vld [vmem:[%s5750_s23 + $0x9c] sm:$0xf0]  ;;  %v3901_v52 = vld [vmem:[%s5750_s23 + $0x98] sm:$0xf] }
 0x7e6   : > { %4039 = vst [vmem:[%s907_s5] sm:$0xff] %v4038_v61   ;;  %2961 = vmatpush.bf16.msrb.mxu1 %v3754_v34  ;;  %2975 = vmatpush.bf16.msra.mxu3 %v3758_v37  ;;  %v3881_v37 = vld [vmem:[%s5750_s23 + $0x78] sm:$0xf] }
 0x7ea   : > { %2962 = vmatpush.bf16.msrb.mxu1 %v3742_v10  ;;  %2976 = vmatpush.bf16.msra.mxu3 %v3746_v8  ;;  %v3869_v10 = vld [vmem:[%s5750_s23 + $0x60] sm:$0xf]  ;;  %v3871_v8 = vld [vmem:[%s5750_s23 + $0x6c] sm:$0xf0] }
 0x7ee   : > { %2963 = vmatpush.bf16.msrb.mxu1 %v3730_v40  ;;  %2977 = vmatpush.bf16.msra.mxu3 %v3734_v7  ;;  %v3865_v40 = vld [vmem:[%s5750_s23 + $0x50] sm:$0xf]  ;;  %v4012_v7 = vld [vmem:[%s5750_s23 + $0x58] sm:$0xf0] }
 0x7f1   : > { %v2664_v44 = vpop.f32.mrf.mxu2 }
 0x7f2   : > { %v5434_v41 = vpop.f32.mrf.mxu3  ;;  %3211 = vmatpush.bf16.msra.mxu1 %v3914_v54 }
 0x7f3   : > { %v2749_v56 = vrot.slane %v5434_v41, 7 }
 0x7f9   : > { %v2666_v12 = vpop.f32.mrf.mxu2 }
 0x7fa   : > { %v2732_v18 = vpop.f32.mrf.mxu3 }
 0x7fb   : > { %v2750_v30 = vrot.slane %v2732_v18, 7  ;;  %v4020_v18 = vld [vmem:[%s5750_s23 + $0x98] sm:$0xf0] }
 0x7fc   : > { %v3894_v25 = vor.u32 %v4020_v18, %v3893_v14  ;;  %v3821_v18 = vld [vmem:[%s5750_s23] sm:$0xf] }
 0x7fd   : > { %v2752_v61 = vsel %vm1266_vm3, %v2750_v30, %v2749_v56  ;;  %v2751_v45 = vsel %vm1266_vm3, %v2749_v56, %v2750_v30  ;;  %v3898_v56 = vor.u32 %v4019_v33, %v3895_v36  ;;  %v4021_v30 = vld [vmem:[%s5750_s23 + $0xa0] sm:$0xf0]  ;;  %v4002_v33 = vld [vmem:[%s5750_s23 + $0x8] sm:$0xf0] }
 0x7fe   : > { %v2757_v39 = vsel %vm5464_vm10, 0.0, %v2752_v61  ;;  %3184 = vmatpush.bf16.msrb.mxu2 %v3894_v25  ;;  %v3902_v34 = vor.u32 %v4021_v30, %v3901_v52  ;;  %v4017_v61 = vld [vmem:[%s5750_s23 + $0x80] sm:$0xf0]  ;;  %v3822_v52 = vor.u32 %v4002_v33, %v3821_v18  ;;  %v3829_v30 = vld [vmem:[%s5750_s23 + $0x8] sm:$0xf] }
 0x7ff   : > { %v2759_v51 = vadd.f32 %v2757_v39, %v2664_v44  ;;  %v2760_v44 = vadd.f32 %v2751_v45, %v2666_v12  ;;  %v3910_v12 = vor.u32 %v4022_v46, %v3907_v42  ;;  %v3882_v22 = vor.u32 %v4017_v61, %v3881_v37  ;;  %v3889_v39 = vld [vmem:[%s5750_s23 + $0x80] sm:$0xf]  ;;  %v4001_v25 = vld [vmem:[%s5750_s23 + $0x4] sm:$0xf] }
 0x800   : > { %3212 = vmatpush.bf16.msra.mxu1 %v3902_v34  ;;  %v3890_v0 = vor.u32 %v4018_v2, %v3889_v39  ;;  %v3862_v45 = vor.u32 %v4010_v58, %v3859_v1  ;;  %v3841_v46 = vld [vmem:[%s5750_s23 + $0x20] sm:$0xf]  ;;  %v4003_v34 = vld [vmem:[%s5750_s23 + $0x10] sm:$0xf0]  ;;  %v962_v37 = vand.u32 15, %v918_v16 }
 0x801   : > { %v2744_v35 = vpop.f32.mrf.mxu2  ;;  %3197 = vmatpush.bf16.msra.mxu0 %v3910_v12  ;;  %v3842_v4 = vor.u32 %v4006_v32, %v3841_v46  ;;  %v3830_v17 = vor.u32 %v4003_v34, %v3829_v30 }
 0x802   : > { %v2761_v3 = vadd.f32 %v2759_v51, %v2744_v35  ;;  %3185 = vmatpush.bf16.msrb.mxu2 %v3882_v22  ;;  %v4013_v51 = vld [vmem:[%s5750_s23 + $0x64] sm:$0xf]  ;;  %v3877_v35 = vld [vmem:[%s5750_s23 + $0x68] sm:$0xf]  ;;  %vm5689_vm11 = vcmp.eq.s32.totalorder %v962_v37, 15 }
 0x803   : > { %v3874_v49 = vor.u32 %v4013_v51, %v3871_v8  ;;  %v3878_v23 = vor.u32 %v4015_v55, %v3877_v35  ;;  %v4082_v51 = vld [vmem:[%s5749_s22] ss:$0 sm:$0xff] }
 0x804   : > { %v2767_v48 = vadd.f32 %v4081_v53, %v2761_v3  ;;  %3213 = vmatpush.bf16.msra.mxu1 %v3890_v0  ;;  %v3857_v3 = vld [vmem:[%s5750_s23 + $0x48] sm:$0xf] }
 0x805   : > { %3198 = vmatpush.bf16.msra.mxu0 %v3898_v56  ;;  %v3858_v5 = vor.u32 %v4011_v59, %v3857_v3  ;;  %v3823_v56 = vld [vmem:[%s5750_s23 + $0xc] sm:$0xf0] }
 0x806   : > { %v2769_v21 = vsub.f32 0.0, %v2767_v48  ;;  %v3826_v61 = vor.u32 %v4001_v25, %v3823_v56 }
 0x808   : > { %v2771_v43 = vmul.f32 1.442695, %v2769_v21  ;;  %3214 = vmatpush.bf16.msra.mxu1 %v3878_v23  ;;  %v3866_v21 = vor.u32 %v4012_v7, %v3865_v40 }
 0x809   : > { %v2746_v15 = vpop.f32.mrf.mxu2  ;;  %3199 = vmatpush.bf16.msra.mxu0 %v3886_v50 }
 0x80a   : > { %v2762_v31 = vadd.f32 %v2760_v44, %v2746_v15  ;;  %4228 = vpow2.f32 %v2771_v43  ;;  %v3845_v43 = vld [vmem:[%s5750_s23 + $0x30] sm:$0xf]  ;;  %v4008_v44 = vld [vmem:[%s5750_s23 + $0x38] sm:$0xf0]  ;;  %v4007_v15 = vld [vmem:[%s5750_s23 + $0x34] sm:$0xf] }
 0x80c   : > { %v2768_v20 = vadd.f32 %v4081_v53, %v2762_v31  ;;  %v3870_v53 = vor.u32 %v4014_v6, %v3869_v10  ;;  %3215 = vmatpush.bf16.msra.mxu1 %v3866_v21  ;;  %v3846_v31 = vor.u32 %v4008_v44, %v3845_v43 }
 0x80d   : > { %3200 = vmatpush.bf16.msra.mxu0 %v3874_v49 }
 0x80e   : > { %v2770_v41 = vsub.f32 0.0, %v2768_v20  ;;  %3186 = vmatpush.bf16.msrb.mxu2 %v3870_v53 }
 0x810   : > { %v2773_v38 = vmul.f32 1.442695, %v2770_v41  ;;  %v4229_v11 = vpop.eup %4228  ;;  %v3853_v41 = vld [vmem:[%s5750_s23 + $0x38] sm:$0xf] }
 0x811   : > { %v2775_v57 = vadd.f32 1.0, %v4229_v11  ;;  %3201 = vmatpush.bf16.msra.mxu0 %v3862_v45 }
 0x812   : > { %4230 = vpow2.f32 %v2773_v38  ;;  %3187 = vmatpush.bf16.msrb.mxu2 %v3858_v5  ;;  %v4009_v38 = vld [vmem:[%s5750_s23 + $0x40] sm:$0xf0] }
 0x813   : > { %4232 = vrcp.f32 %v2775_v57  ;;  %v3854_v57 = vor.u32 %v4009_v38, %v3853_v41 }
 0x815   : > { %3216 = vmatpush.bf16.msra.mxu1 %v3854_v57 }
 0x816   : > { %3188 = vmatpush.bf16.msrb.mxu2 %v3846_v31 }
 0x818   : > { %v4231_v19 = vpop.eup %4230 }
 0x819   : > { %v2776_v13 = vadd.f32 1.0, %v4231_v19  ;;  %v4233_v62 = vpop.eup %4232  ;;  %v3833_v19 = vld [vmem:[%s5750_s23 + $0x18] sm:$0xf]  ;;  %3217 = vmatpush.bf16.msra.mxu1 %v3842_v4 }
 0x81a   : > { %v5532_v63 = vmul.f32 %v4233_v62, %v2767_v48  ;;  %v4004_v62 = vld [vmem:[%s5750_s23 + $0x1c] sm:$0xf] }
 0x81b   : > { %4234 = vrcp.f32 %v2776_v13  ;;  %v4005_v13 = vld [vmem:[%s5750_s23 + $0x20] sm:$0xf0]  ;;  %v3838_v12 = vor.u32 %v4004_v62, %v3835_v26 }
 0x81c   : > { %v3834_v27 = vor.u32 %v4005_v13, %v3833_v19 }
 0x81d   : > { %3218 = vmatpush.bf16.msra.mxu1 %v3830_v17 }
 0x81e   : > { %3189 = vmatpush.bf16.msrb.mxu2 %v3834_v27 }
 0x821   : > { %v4235_v60 = vpop.eup %4234 }
 0x822   : > { %v5534_v47 = vmul.f32 %v4235_v60, %v2768_v20  ;;  %v3847_v20 = vld [vmem:[%s5750_s23 + $0x3c] sm:$0xf0]  ;;  %3190 = vmatpush.bf16.msrb.mxu2 %v3822_v52 }
 0x823   : > { %v3850_v11 = vor.u32 %v4007_v15, %v3847_v20 }
 0x824   : > { %v2781_v9 = vpack.c.bf16 %v5534_v47, %v5532_v63 }
 0x825   : > { %3202 = vmatpush.bf16.msra.mxu0 %v3850_v11 }
 0x826   : > { %2950 = vmatmul.bf16.vlgmr.msrb.gmra.mxu0 %v2781_v9  ;;  %2964 = vmatmul.bf16.vlgmr.msrb.gmra.mxu1 %v2781_v9 }
 0x827   : > { %2978 = vmatmul.bf16.vlgmr.msra.gmra.mxu3 %v2781_v9 }
 0x829   : > { %3203 = vmatpush.bf16.msra.mxu0 %v3838_v12  ;;  %v4083_v12 = vld [vmem:[%s5751_s24] ss:$0 sm:$0xff] }
 0x82d   : > { %3204 = vmatpush.bf16.msra.mxu0 %v3826_v61 }
 0x8a3   : > { %v2951_v48 = vpop.f32.mrf.mxu0  ;;  %v2965_v60 = vpop.f32.mrf.mxu1 }
 0x8a4   : > { %v2984_v54 = vrot.slane %v2951_v48, 7 }
 0x8aa   : > { %v2979_v9 = vpop.f32.mrf.mxu3 }
 0x8ab   : > { %v2953_v42 = vpop.f32.mrf.mxu0  ;;  %v2990_v2 = vrot.slane %v2979_v9, 1  ;;  %v2967_v6 = vpop.f32.mrf.mxu1 }
 0x8ac   : > { %v2985_v14 = vrot.slane %v2953_v42, 7 }
 0x8ae   : > { %v2987_v36 = vsel %vm1266_vm3, %v2985_v14, %v2984_v54  ;;  %v2986_v24 = vsel %vm1266_vm3, %v2984_v54, %v2985_v14 }
 0x8af   : > { %v2988_v22 = vsel %vm5464_vm10, 0.0, %v2987_v36  ;;  %v3001_v53 = vadd.f32 %v2986_v24, %v2967_v6 }
 0x8b0   : > { %v3000_v10 = vadd.f32 %v2988_v22, %v2965_v60 }
 0x8b2   : > { %v2981_v39 = vpop.f32.mrf.mxu3 }
 0x8b3   : > { %v2991_v0 = vrot.slane %v2981_v39, 1 }
 0x8b5   : > { %v2992_v8 = vsel %vm1562_vm6, %v2990_v2, %v2991_v0  ;;  %v2993_v35 = vsel %vm1562_vm6, %v2991_v0, %v2990_v2 }
 0x8b6   : > { %v2999_v55 = vsel %vm5689_vm11, 0.0, %v2993_v35  ;;  %v3002_v49 = vadd.f32 %v3000_v10, %v2992_v8 }
 0x8b7   : > { %v3003_v23 = vadd.f32 %v3001_v53, %v2999_v55 }
 0x8b8   : > { %v3008_v3 = vadd.f32 %v4082_v51, %v3002_v49 }
 0x8b9   : > { %v3009_v59 = vadd.f32 %v4082_v51, %v3003_v23 }
 0x8ba   : > { %v3010_v58 = vsub.f32 0.0, %v3008_v3 }
 0x8bb   : > { %v3011_v5 = vsub.f32 0.0, %v3009_v59 }
 0x8bc   : > { %v3012_v1 = vmul.f32 1.442695, %v3010_v58 }
 0x8bd   : > { %v3014_v40 = vmul.f32 1.442695, %v3011_v5 }
 0x8be   : > { %4236 = vpow2.f32 %v3012_v1 }
 0x8bf   : > { %4238 = vpow2.f32 %v3014_v40 }
 0x8c4   : > { %v4237_v7 = vpop.eup %4236 }
 0x8c5   : > { %v4239_v48 = vpop.eup %4238  ;;  %v3016_v45 = vadd.f32 1.0, %v4237_v7 }
 0x8c6   : > { %v3017_v21 = vadd.f32 1.0, %v4239_v48 }
 0x8c7   : > { %4240 = vrcp.f32 %v3016_v45 }
 0x8c8   : > { %4242 = vrcp.f32 %v3017_v21 }
 0x8cd   : > { %v4241_v43 = vpop.eup %4240 }
 0x8ce   : > { %v4243_v44 = vpop.eup %4242  ;;  %v3020_v15 = vmul.f32 %v4241_v43, %v3008_v3 }
 0x8cf   : > { %v3021_v31 = vmul.f32 %v4243_v44, %v3009_v59 }
 0x8d1   : > { %v3022_v20 = vpack.c.bf16 %v3021_v31, %v3020_v15 }
 0x8d3   : > { %3191 = vmatmul.bf16.vlgmr.msrb.gmra.mxu2 %v3022_v20  ;;  %3205 = vmatmul.bf16.vlgmr.msra.gmra.mxu0 %v3022_v20 }
 0x8d4   : > { %3219 = vmatmul.bf16.vlgmr.msra.gmra.mxu1 %v3022_v20 }
 0x950   : > { %v3206_v11 = vpop.f32.mrf.mxu0 }
 0x951   : > { %v3220_v41 = vpop.f32.mrf.mxu1 }
 0x952   : > { %v3231_v13 = vrot.slane %v3220_v41, 1 }
 0x956   : > { %v3192_v38 = vpop.f32.mrf.mxu2 }
 0x957   : > { %v3225_v60 = vrot.slane %v3192_v38, 7 }
 0x958   : > { %v3208_v26 = vpop.f32.mrf.mxu0 }
 0x959   : > { %v3222_v57 = vpop.f32.mrf.mxu1 }
 0x95a   : > { %v3232_v19 = vrot.slane %v3222_v57, 1 }
 0x95c   : > { %v3234_v27 = vsel %vm1562_vm6, %v3232_v19, %v3231_v13  ;;  %v3233_v14 = vsel %vm1562_vm6, %v3231_v13, %v3232_v19 }
 0x95d   : > { %v3236_v4 = vsel %vm5689_vm11, 0.0, %v3234_v27 }
 0x95e   : > { %v3194_v62 = vpop.f32.mrf.mxu2 }
 0x95f   : > { %v3226_v9 = vrot.slane %v3194_v62, 7 }
 0x961   : > { %v3227_v46 = vsel %vm1266_vm3, %v3225_v60, %v3226_v9  ;;  %v3228_v32 = vsel %vm1266_vm3, %v3226_v9, %v3225_v60 }
 0x962   : > { %v3229_v42 = vsel %vm5464_vm10, 0.0, %v3228_v32  ;;  %v3238_v16 = vadd.f32 %v3227_v46, %v3208_v26 }
 0x963   : > { %v3237_v54 = vadd.f32 %v3229_v42, %v3206_v11 }
 0x964   : > { %v3240_v18 = vadd.f32 %v3238_v16, %v3236_v4 }
 0x965   : > { %v3239_v33 = vadd.f32 %v3237_v54, %v3233_v14 }
 0x966   : > { %v3246_v25 = vadd.f32 %v4083_v12, %v3240_v18 }
 0x967   : > { %v3245_v36 = vadd.f32 %v4083_v12, %v3239_v33 }
 0x968   : > { %v3248_v52 = vsub.f32 0.0, %v3246_v25 }
 0x969   : > { %v3247_v56 = vsub.f32 0.0, %v3245_v36 }
 0x96a   : > { %v3251_v29 = vmul.f32 1.442695, %v3248_v52 }
 0x96b   : > { %v3249_v30 = vmul.f32 1.442695, %v3247_v56 }
 0x96c   : > { %4244 = vpow2.f32 %v3251_v29 }
 0x96d   : > { %4246 = vpow2.f32 %v3249_v30 }
 0x972   : > { %v4245_v34 = vpop.eup %4244 }
 0x973   : > { %v4247_v37 = vpop.eup %4246  ;;  %v3254_v61 = vadd.f32 1.0, %v4245_v34 }
 0x974   : > { %v3253_v17 = vadd.f32 1.0, %v4247_v37 }
 0x975   : > { %4248 = vrcp.f32 %v3254_v61 }
 0x976   : > { %4250 = vrcp.f32 %v3253_v17 }
 0x97b   : > { %v4249_v22 = vpop.eup %4248 }
 0x97c   : > { %v4251_v28 = vpop.eup %4250  ;;  %v3258_v24 = vmul.f32 %v4249_v22, %v3246_v25 }
 0x97d   : > { %v3257_v39 = vmul.f32 %v4251_v28, %v3245_v36 }
 0x97e   : > { %v3260_v2 = vadd.f32 %v3258_v24, %v5534_v47 }
 0x97f   : > { %v3259_v50 = vadd.f32 %v3257_v39, %v5532_v63 }
 0x981   : > { %v4043_v0 = vpack.c.bf16 %v3260_v2, %v3259_v50 }
 0x983   : > { %4044 = vst [vmem:[%s913_s0] sm:$0xff] %v4043_v0  }
 0x984 PF: > { %s38_s7 = sadd.s32 1, %s4258_s7  }
 0x985   : > { %p35_p6 = scmp.ge.s32.totalorder %s38_s7, 4  }
 0x987   :  { %37 = sbr.rel (!%p35_p6) target bundleno = 13 (0xd), region = 193 }

// kernel: motion_prior_ik_forward.3
= control target key start
LH: loop header
LB: loop body
LE: loop exit
PB: predicated region body
PF: predicated region fallthrough
CT: control target
= control target key end

     0   :  { %vm831_vm0 = vcmask 1046528   ;;  %vm827_vm1 = vcmask 1031168   ;;  %vm6488_vm3 = vcmask 517120   ;;  %s12498_s4 = inlined_call_operand.vmem [shape: bf16[510,512], index: 4, kind: input, shape index: {}]   ;;  %s12499_s3 = inlined_call_operand.vmem [shape: f32[2,510], index: 3, kind: input, shape index: {}]   ;;  %s12500_s6 = inlined_call_operand.vmem [shape: bf16[4096,64], index: 6, kind: input, shape index: {}]   ;;  %s12501_s0 = inlined_call_operand.vmem [shape: bf16[2,4096], index: 0, kind: input, shape index: {}]   ;;  %s12502_s5 = inlined_call_operand.vmem [shape: f32[1,512], index: 5, kind: input, shape index: {}]   ;;  %s12503_s2 = inlined_call_operand.vmem [shape: bf16[2,2048], index: 2, kind: input, shape index: {}]   ;;  %s12504_s8 = inlined_call_operand.vmem [shape: bf16[2048,64], index: 8, kind: input, shape index: {}]   ;;  %s12505_s7 = inlined_call_operand.vmem [shape: bf16[2048,64], index: 7, kind: input, shape index: {}]   ;;  %s12506_s1 = inlined_call_operand.vmem [shape: bf16[2,2048], index: 1, kind: input, shape index: {}]   ;;  %s12507_s9 = inlined_call_operand.vmem [shape: bf16[512,64], index: 9, kind: input, shape index: {}]   ;;  %s12508_s10 = inlined_call_operand.vmem [shape: f32[1,64], index: 10, kind: input, shape index: {}]   ;;  %s12509_s11 = inlined_call_operand.vmem [shape: f32[2,64], index: 11, kind: output, shape index: {}]  }
   0x1   :  { %v6608_v0 = vld [vmem:[%s12498_s4 + $0xe0] sm:$0xf]  ;;  %v9216_v1 = vld [vmem:[%s12498_s4 + $0xec] sm:$0xf0] }
   0x2   :  { %v6736_v2 = vld [vmem:[%s12498_s4 + $0x1e0] sm:$0xf]  ;;  %v6609_v3 = vor.u32 %v9216_v1, %v6608_v0  ;;  %v9248_v4 = vld [vmem:[%s12498_s4 + $0x1ec] sm:$0xf0] }
   0x3   :  { %v6864_v5 = vld [vmem:[%s12498_s4 + $0x2e0] sm:$0xf]  ;;  %v9280_v6 = vld [vmem:[%s12498_s4 + $0x2ec] sm:$0xf0]  ;;  %v6737_v7 = vor.u32 %v9248_v4, %v6736_v2 }
   0x4   :  { %v6865_v8 = vor.u32 %v9280_v6, %v6864_v5  ;;  %v6992_v9 = vld [vmem:[%s12498_s4 + $0x3e0] sm:$0xf]  ;;  %v9312_v10 = vld [vmem:[%s12498_s4 + $0x3ec] sm:$0x70]  ;;  %844 = vmatpush.bf16.msra.mxu0 %v6609_v3 }
   0x5   :  { %v6592_v11 = vld [vmem:[%s12498_s4 + $0xc0] sm:$0xf]  ;;  %v6993_v12 = vor.u32 %v9312_v10, %v6992_v9  ;;  %v9212_v13 = vld [vmem:[%s12498_s4 + $0xcc] sm:$0xf0]  ;;  %857 = vmatpush.bf16.msra.mxu1 %v6737_v7 }
   0x6   :  { %v6720_v14 = vld [vmem:[%s12498_s4 + $0x1c0] sm:$0xf]  ;;  %v9244_v15 = vld [vmem:[%s12498_s4 + $0x1cc] sm:$0xf0]  ;;  %870 = vmatpush.bf16.msra.mxu2 %v6865_v8  ;;  %v6593_v16 = vor.u32 %v9212_v13, %v6592_v11 }
   0x7   :  { %v6721_v17 = vor.u32 %v9244_v15, %v6720_v14  ;;  %v6848_v18 = vld [vmem:[%s12498_s4 + $0x2c0] sm:$0xf]  ;;  %v9276_v19 = vld [vmem:[%s12498_s4 + $0x2cc] sm:$0xf0]  ;;  %v833_v21 = vsel %vm831_vm0, %v6993_v12, 0 }
   0x8   :  { %v6976_v20 = vld [vmem:[%s12498_s4 + $0x3c0] sm:$0xf]  ;;  %v6849_v22 = vor.u32 %v9276_v19, %v6848_v18  ;;  %v9308_v23 = vld [vmem:[%s12498_s4 + $0x3cc] sm:$0xf0]  ;;  %883 = vmatpush.bf16.msra.mxu3 %v833_v21  ;;  %845 = vmatpush.bf16.msra.mxu0 %v6593_v16 }
   0x9   :  { %v6576_v24 = vld [vmem:[%s12498_s4 + $0xa0] sm:$0xf]  ;;  %v6977_v25 = vor.u32 %v9308_v23, %v6976_v20  ;;  %v9208_v26 = vld [vmem:[%s12498_s4 + $0xac] sm:$0xf0]  ;;  %858 = vmatpush.bf16.msra.mxu1 %v6721_v17 }
   0xa   :  { %v6704_v27 = vld [vmem:[%s12498_s4 + $0x1a0] sm:$0xf]  ;;  %v9240_v28 = vld [vmem:[%s12498_s4 + $0x1ac] sm:$0xf0]  ;;  %v6577_v29 = vor.u32 %v9208_v26, %v6576_v24  ;;  %871 = vmatpush.bf16.msra.mxu2 %v6849_v22 }
   0xb   :  { %v6832_v30 = vld [vmem:[%s12498_s4 + $0x2a0] sm:$0xf]  ;;  %v9272_v31 = vld [vmem:[%s12498_s4 + $0x2ac] sm:$0xf0]  ;;  %v6705_v33 = vor.u32 %v9240_v28, %v6704_v27  ;;  %v9214_v28 = vld [vmem:[%s12498_s4 + $0xe4] sm:$0xf] }
   0xc   :  { %v6960_v32 = vld [vmem:[%s12498_s4 + $0x3a0] sm:$0xf]  ;;  %v6833_v34 = vor.u32 %v9272_v31, %v6832_v30  ;;  %v9304_v35 = vld [vmem:[%s12498_s4 + $0x3ac] sm:$0xf0]  ;;  %884 = vmatpush.bf16.msra.mxu3 %v6977_v25  ;;  %846 = vmatpush.bf16.msra.mxu0 %v6577_v29  ;;  %v9310_v29 = vld [vmem:[%s12498_s4 + $0x3e4] sm:$0xf] }
   0xd   :  { %v6560_v36 = vld [vmem:[%s12498_s4 + $0x80] sm:$0xf]  ;;  %v9204_v37 = vld [vmem:[%s12498_s4 + $0x8c] sm:$0xf0]  ;;  %v6961_v41 = vor.u32 %v9304_v35, %v6960_v32  ;;  %859 = vmatpush.bf16.msra.mxu1 %v6705_v33  ;;  %v6994_v30 = vld [vmem:[%s12498_s4 + $0x3f0] sm:$0x70] }
   0xe   :  { %v6688_v38 = vld [vmem:[%s12498_s4 + $0x180] sm:$0xf]  ;;  %v9236_v39 = vld [vmem:[%s12498_s4 + $0x18c] sm:$0xf0]  ;;  %v6561_v43 = vor.u32 %v9204_v37, %v6560_v36  ;;  %872 = vmatpush.bf16.msra.mxu2 %v6833_v34  ;;  %v6610_v32 = vld [vmem:[%s12498_s4 + $0xf0] sm:$0xf0] }
   0xf   :  { %v6816_v40 = vld [vmem:[%s12498_s4 + $0x280] sm:$0xf]  ;;  %v9268_v42 = vld [vmem:[%s12498_s4 + $0x28c] sm:$0xf0]  ;;  %v6689_v46 = vor.u32 %v9236_v39, %v6688_v38  ;;  %v9246_v33 = vld [vmem:[%s12498_s4 + $0x1e4] sm:$0xf] }
  0x10   :  { %v6944_v44 = vld [vmem:[%s12498_s4 + $0x380] sm:$0xf]  ;;  %v9300_v45 = vld [vmem:[%s12498_s4 + $0x38c] sm:$0xf0]  ;;  %v6817_v47 = vor.u32 %v9268_v42, %v6816_v40  ;;  %885 = vmatpush.bf16.msra.mxu3 %v6961_v41  ;;  %847 = vmatpush.bf16.msra.mxu0 %v6561_v43  ;;  %v6738_v34 = vld [vmem:[%s12498_s4 + $0x1f0] sm:$0xf0]  ;;  %v6997_v41 = vor.u32 %v9310_v29, %v6994_v30  ;;  %v6613_v42 = vor.u32 %v9214_v28, %v6610_v32 }
  0x11   :  { %v6544_v48 = vld [vmem:[%s12498_s4 + $0x60] sm:$0xf]  ;;  %v9200_v49 = vld [vmem:[%s12498_s4 + $0x6c] sm:$0xf0]  ;;  %v6945_v54 = vor.u32 %v9300_v45, %v6944_v44  ;;  %860 = vmatpush.bf16.msra.mxu1 %v6689_v46  ;;  %v9278_v37 = vld [vmem:[%s12498_s4 + $0x2e4] sm:$0xf]  ;;  %v6741_v43 = vor.u32 %v9246_v33, %v6738_v34 }
  0x12   :  { %v6672_v50 = vld [vmem:[%s12498_s4 + $0x160] sm:$0xf]  ;;  %v9232_v51 = vld [vmem:[%s12498_s4 + $0x16c] sm:$0xf0]  ;;  %v6545_v55 = vor.u32 %v9200_v49, %v6544_v48  ;;  %873 = vmatpush.bf16.msra.mxu2 %v6817_v47  ;;  %v6866_v38 = vld [vmem:[%s12498_s4 + $0x2f0] sm:$0xf0] }
  0x13   :  { %v6800_v52 = vld [vmem:[%s12498_s4 + $0x260] sm:$0xf]  ;;  %v9264_v53 = vld [vmem:[%s12498_s4 + $0x26c] sm:$0xf0]  ;;  %v6673_v58 = vor.u32 %v9232_v51, %v6672_v50  ;;  %v9210_v44 = vld [vmem:[%s12498_s4 + $0xc4] sm:$0xf]  ;;  %v6869_v46 = vor.u32 %v9278_v37, %v6866_v38 }
  0x14   :  { %v6928_v56 = vld [vmem:[%s12498_s4 + $0x360] sm:$0xf]  ;;  %v9296_v57 = vld [vmem:[%s12498_s4 + $0x36c] sm:$0xf0]  ;;  %v6801_v59 = vor.u32 %v9264_v53, %v6800_v52  ;;  %886 = vmatpush.bf16.msra.mxu3 %v6945_v54  ;;  %848 = vmatpush.bf16.msra.mxu0 %v6545_v55  ;;  %v6594_v47 = vld [vmem:[%s12498_s4 + $0xd0] sm:$0xf0] }
  0x15   :  { %v6528_v60 = vld [vmem:[%s12498_s4 + $0x40] sm:$0xf]  ;;  %v9196_v61 = vld [vmem:[%s12498_s4 + $0x4c] sm:$0xf0]  ;;  %v6929_v2 = vor.u32 %v9296_v57, %v6928_v56  ;;  %861 = vmatpush.bf16.msra.mxu1 %v6673_v58  ;;  %v9242_v48 = vld [vmem:[%s12498_s4 + $0x1c4] sm:$0xf]  ;;  %v6597_v55 = vor.u32 %v9210_v44, %v6594_v47 }
  0x16   :  { %v6656_v62 = vld [vmem:[%s12498_s4 + $0x140] sm:$0xf]  ;;  %v9228_v63 = vld [vmem:[%s12498_s4 + $0x14c] sm:$0xf0]  ;;  %v6529_v3 = vor.u32 %v9196_v61, %v6528_v60  ;;  %874 = vmatpush.bf16.msra.mxu2 %v6801_v59  ;;  %v6722_v49 = vld [vmem:[%s12498_s4 + $0x1d0] sm:$0xf0] }
  0x17   :  { %v6784_v0 = vld [vmem:[%s12498_s4 + $0x240] sm:$0xf]  ;;  %v9260_v1 = vld [vmem:[%s12498_s4 + $0x24c] sm:$0xf0]  ;;  %v6657_v6 = vor.u32 %v9228_v63, %v6656_v62  ;;  %v9274_v50 = vld [vmem:[%s12498_s4 + $0x2c4] sm:$0xf]  ;;  %v6725_v56 = vor.u32 %v9242_v48, %v6722_v49 }
  0x18   :  { %v6912_v4 = vld [vmem:[%s12498_s4 + $0x340] sm:$0xf]  ;;  %v9292_v5 = vld [vmem:[%s12498_s4 + $0x34c] sm:$0xf0]  ;;  %v6785_v7 = vor.u32 %v9260_v1, %v6784_v0  ;;  %887 = vmatpush.bf16.msra.mxu3 %v6929_v2  ;;  %849 = vmatpush.bf16.msra.mxu0 %v6529_v3  ;;  %v6850_v51 = vld [vmem:[%s12498_s4 + $0x2d0] sm:$0xf0] }
  0x19   :  { %v6512_v8 = vld [vmem:[%s12498_s4 + $0x20] sm:$0xf]  ;;  %v9192_v9 = vld [vmem:[%s12498_s4 + $0x2c] sm:$0xf0]  ;;  %v6913_v14 = vor.u32 %v9292_v5, %v6912_v4  ;;  %862 = vmatpush.bf16.msra.mxu1 %v6657_v6  ;;  %v836_v52 = vsel %vm831_vm0, %v6997_v41, 0  ;;  %v6853_v59 = vor.u32 %v9274_v50, %v6850_v51 }
  0x1a   :  { %v6640_v10 = vld [vmem:[%s12498_s4 + $0x120] sm:$0xf]  ;;  %v9224_v11 = vld [vmem:[%s12498_s4 + $0x12c] sm:$0xf0]  ;;  %v6513_v17 = vor.u32 %v9192_v9, %v6512_v8  ;;  %875 = vmatpush.bf16.msra.mxu2 %v6785_v7  ;;  %v9306_v53 = vld [vmem:[%s12498_s4 + $0x3c4] sm:$0xf] }
  0x1b   :  { %v6768_v12 = vld [vmem:[%s12498_s4 + $0x220] sm:$0xf]  ;;  %v9256_v13 = vld [vmem:[%s12498_s4 + $0x22c] sm:$0xf0]  ;;  %v6641_v21 = vor.u32 %v9224_v11, %v6640_v10  ;;  %v6978_v54 = vld [vmem:[%s12498_s4 + $0x3d0] sm:$0xf0] }
  0x1c   :  { %v6896_v15 = vld [vmem:[%s12498_s4 + $0x320] sm:$0xf]  ;;  %v9288_v16 = vld [vmem:[%s12498_s4 + $0x32c] sm:$0xf0]  ;;  %v6769_v22 = vor.u32 %v9256_v13, %v6768_v12  ;;  %888 = vmatpush.bf16.msra.mxu3 %v6913_v14  ;;  %850 = vmatpush.bf16.msra.mxu0 %v6513_v17  ;;  %v9206_v57 = vld [vmem:[%s12498_s4 + $0xa4] sm:$0xf]  ;;  %v6981_v63 = vor.u32 %v9306_v53, %v6978_v54 }
  0x1d   :  { %v6496_v18 = vld [vmem:[%s12498_s4] sm:$0xf]  ;;  %v9188_v19 = vld [vmem:[%s12498_s4 + $0xc] sm:$0xf0]  ;;  %v6897_v31 = vor.u32 %v9288_v16, %v6896_v15  ;;  %863 = vmatpush.bf16.msra.mxu1 %v6641_v21  ;;  %v6578_v58 = vld [vmem:[%s12498_s4 + $0xb0] sm:$0xf0] }
  0x1e   :  { %v6624_v20 = vld [vmem:[%s12498_s4 + $0x100] sm:$0xf]  ;;  %v9220_v23 = vld [vmem:[%s12498_s4 + $0x10c] sm:$0xf0]  ;;  %v6497_v35 = vor.u32 %v9188_v19, %v6496_v18  ;;  %876 = vmatpush.bf16.msra.mxu2 %v6769_v22  ;;  %v9238_v60 = vld [vmem:[%s12498_s4 + $0x1a4] sm:$0xf]  ;;  %v6581_v3 = vor.u32 %v9206_v57, %v6578_v58 }
  0x1f   :  { %v6752_v24 = vld [vmem:[%s12498_s4 + $0x200] sm:$0xf]  ;;  %v9252_v25 = vld [vmem:[%s12498_s4 + $0x20c] sm:$0xf0]  ;;  %v6625_v39 = vor.u32 %v9220_v23, %v6624_v20  ;;  %v6706_v61 = vld [vmem:[%s12498_s4 + $0x1b0] sm:$0xf0] }
  0x20   :  { %v38_v26 = vld [vmem:[%s12499_s3] sm:$0xff]  ;;  %v9284_v36 = vld [vmem:[%s12498_s4 + $0x30c] sm:$0xf0]  ;;  %v6753_v40 = vor.u32 %v9252_v25, %v6752_v24  ;;  %889 = vmatpush.bf16.msra.mxu3 %v6897_v31  ;;  %851 = vmatpush.bf16.msra.mxu0 %v6497_v35  ;;  %v6834_v0 = vld [vmem:[%s12498_s4 + $0x2b0] sm:$0xf0]  ;;  %v6709_v7 = vor.u32 %v9238_v60, %v6706_v61 }
  0x21   :  { %v6880_v27 = vld [vmem:[%s12498_s4 + $0x300] sm:$0xf]  ;;  %40 = vst [vmem:[#allocation1] ss:$4 sm:$0xff] %v38_v26  ;;  %864 = vmatpush.bf16.msra.mxu1 %v6625_v39  ;;  %v9270_v62 = vld [vmem:[%s12498_s4 + $0x2a4] sm:$0xf] }
  0x22   :  { %v6881_v45 = vor.u32 %v9284_v36, %v6880_v27  ;;  %877 = vmatpush.bf16.msra.mxu2 %v6753_v40  ;;  %v9302_v1 = vld [vmem:[%s12498_s4 + $0x3a4] sm:$0xf]  ;;  %v6962_v2 = vld [vmem:[%s12498_s4 + $0x3b0] sm:$0xf0]  ;;  %v6837_v12 = vor.u32 %v9270_v62, %v6834_v0 }
  0x23   :  { %v9202_v6 = vld [vmem:[%s12498_s4 + $0x84] sm:$0xf]  ;;  %v6562_v14 = vld [vmem:[%s12498_s4 + $0x90] sm:$0xf0]  ;;  %v6965_v18 = vor.u32 %v9302_v1, %v6962_v2 }
  0x24   :  { %896 = vmatpush.bf16.msrb.mxu0 %v6613_v42  ;;  %890 = vmatpush.bf16.msra.mxu3 %v6881_v45  ;;  %v9234_v15 = vld [vmem:[%s12498_s4 + $0x184] sm:$0xf]  ;;  %v6690_v16 = vld [vmem:[%s12498_s4 + $0x190] sm:$0xf0]  ;;  %v6565_v23 = vor.u32 %v9202_v6, %v6562_v14  ;;  %v6744_v14 = vld [vmem:[%s12498_s4 + $0x1e8] sm:$0xf] }
  0x25   :  { %909 = vmatpush.bf16.msrb.mxu1 %v6741_v43  ;;  %v9266_v19 = vld [vmem:[%s12498_s4 + $0x284] sm:$0xf]  ;;  %v6818_v20 = vld [vmem:[%s12498_s4 + $0x290] sm:$0xf0]  ;;  %v6693_v24 = vor.u32 %v9234_v15, %v6690_v16  ;;  %v9249_v15 = vld [vmem:[%s12498_s4 + $0x1f4] sm:$0xf0] }
  0x26   :  { %922 = vmatpush.bf16.msrb.mxu2 %v6869_v46  ;;  %v9298_v21 = vld [vmem:[%s12498_s4 + $0x384] sm:$0xf]  ;;  %v6946_v22 = vld [vmem:[%s12498_s4 + $0x390] sm:$0xf0]  ;;  %v6821_v26 = vor.u32 %v9266_v19, %v6818_v20  ;;  %v6872_v19 = vld [vmem:[%s12498_s4 + $0x2e8] sm:$0xf] }
  0x27   :  { %v9198_v25 = vld [vmem:[%s12498_s4 + $0x64] sm:$0xf]  ;;  %v6546_v27 = vld [vmem:[%s12498_s4 + $0x70] sm:$0xf0]  ;;  %v6949_v30 = vor.u32 %v9298_v21, %v6946_v22  ;;  %v9281_v20 = vld [vmem:[%s12498_s4 + $0x2f4] sm:$0xf0] }
  0x28   :  { %935 = vmatpush.bf16.msrb.mxu3 %v836_v52  ;;  %v43_v4 = vld.sshfl [vmem:[#allocation1 + $0x10] sm:$0xff pattern:$0x73625140]  ;;  %v41_v5 = vld.sshfl [vmem:[#allocation1] sm:$0xff pattern:$0x73625140]  ;;  %897 = vmatpush.bf16.msrb.mxu0 %v6597_v55  ;;  %v6549_v35 = vor.u32 %v9198_v25, %v6546_v27  ;;  %v6745_v25 = vor.u32 %v9249_v15, %v6744_v14 }
  0x29   :  { %910 = vmatpush.bf16.msrb.mxu1 %v6725_v56  ;;  %v10211_v8 = vpack.c.bf16 %v43_v4, %v43_v4  ;;  %v10213_v9 = vpack.c.bf16 %v41_v5, %v41_v5  ;;  %v44_v10 = vld.sshfl [vmem:[#allocation1 + $0x18] sm:$0xff pattern:$0x73625140]  ;;  %v42_v11 = vld.sshfl [vmem:[#allocation1 + $0x8] sm:$0xff pattern:$0x73625140] }
  0x2a   :  { %923 = vmatpush.bf16.msrb.mxu2 %v6853_v59  ;;  %v10215_v13 = vpack.c.bf16 %v44_v10, %v44_v10  ;;  %v10226_v17 = vpack.c.bf16 %v42_v11, %v42_v11  ;;  %v9230_v28 = vld [vmem:[%s12498_s4 + $0x164] sm:$0xf]  ;;  %v6674_v29 = vld [vmem:[%s12498_s4 + $0x170] sm:$0xf0]  ;;  %v7000_v4 = vld [vmem:[%s12498_s4 + $0x3e8] sm:$0xf] }
  0x2b   :  { %878 = vmatmul.bf16.vlgmr.msra.gmra.mxu2 %v10211_v8  ;;  %852 = vmatmul.bf16.vlgmr.msra.gmra.mxu0 %v10213_v9  ;;  %v9262_v31 = vld [vmem:[%s12498_s4 + $0x264] sm:$0xf]  ;;  %v6802_v32 = vld [vmem:[%s12498_s4 + $0x270] sm:$0xf0]  ;;  %v6677_v36 = vor.u32 %v9230_v28, %v6674_v29  ;;  %v9313_v5 = vld [vmem:[%s12498_s4 + $0x3f4] sm:$0x70]  ;;  %v6873_v29 = vor.u32 %v9281_v20, %v6872_v19 }
  0x2c   :  { %936 = vmatpush.bf16.msrb.mxu3 %v6981_v63  ;;  %898 = vmatpush.bf16.msrb.mxu0 %v6581_v3  ;;  %v9294_v33 = vld [vmem:[%s12498_s4 + $0x364] sm:$0xf]  ;;  %v6930_v34 = vld [vmem:[%s12498_s4 + $0x370] sm:$0xf0]  ;;  %v6805_v38 = vor.u32 %v9262_v31, %v6802_v32  ;;  %v6616_v10 = vld [vmem:[%s12498_s4 + $0xe8] sm:$0xf]  ;;  %v7001_v21 = vor.u32 %v9313_v5, %v7000_v4 }
  0x2d   :  { %7006 = vmatmul.msk.bf16.vlgmr.msra.gmra.mxu3 %vm827_vm1, %v10215_v13  ;;  %911 = vmatpush.bf16.msrb.mxu1 %v6709_v7  ;;  %v9194_v37 = vld [vmem:[%s12498_s4 + $0x44] sm:$0xf]  ;;  %v6530_v39 = vld [vmem:[%s12498_s4 + $0x50] sm:$0xf0]  ;;  %v6933_v42 = vor.u32 %v9294_v33, %v6930_v34  ;;  %v9217_v11 = vld [vmem:[%s12498_s4 + $0xf4] sm:$0xf0] }
  0x2e   :  { %924 = vmatpush.bf16.msrb.mxu2 %v6837_v12  ;;  %865 = vmatmul.bf16.vlgmr.msra.gmra.mxu1 %v10226_v17  ;;  %v9226_v40 = vld [vmem:[%s12498_s4 + $0x144] sm:$0xf]  ;;  %v6658_v41 = vld [vmem:[%s12498_s4 + $0x150] sm:$0xf0]  ;;  %v6533_v47 = vor.u32 %v9194_v37, %v6530_v39  ;;  %v9213_v27 = vld [vmem:[%s12498_s4 + $0xd4] sm:$0xf0] }
  0x2f   :  { %v9258_v43 = vld [vmem:[%s12498_s4 + $0x244] sm:$0xf]  ;;  %v6786_v44 = vld [vmem:[%s12498_s4 + $0x250] sm:$0xf0]  ;;  %v6661_v48 = vor.u32 %v9226_v40, %v6658_v41  ;;  %v6728_v28 = vld [vmem:[%s12498_s4 + $0x1c8] sm:$0xf] }
  0x30   :  { %937 = vmatpush.bf16.msrb.mxu3 %v6965_v18  ;;  %899 = vmatpush.bf16.msrb.mxu0 %v6565_v23  ;;  %v9290_v45 = vld [vmem:[%s12498_s4 + $0x344] sm:$0xf]  ;;  %v6914_v46 = vld [vmem:[%s12498_s4 + $0x350] sm:$0xf0]  ;;  %v6789_v50 = vor.u32 %v9258_v43, %v6786_v44  ;;  %v6617_v23 = vor.u32 %v9217_v11, %v6616_v10  ;;  %v6856_v31 = vld [vmem:[%s12498_s4 + $0x2c8] sm:$0xf] }
  0x31   :  { %912 = vmatpush.bf16.msrb.mxu1 %v6693_v24  ;;  %v9190_v49 = vld [vmem:[%s12498_s4 + $0x24] sm:$0xf]  ;;  %v6514_v51 = vld [vmem:[%s12498_s4 + $0x30] sm:$0xf0]  ;;  %v6917_v54 = vor.u32 %v9290_v45, %v6914_v46  ;;  %v9277_v32 = vld [vmem:[%s12498_s4 + $0x2d4] sm:$0xf0] }
  0x32   :  { %925 = vmatpush.bf16.msrb.mxu2 %v6821_v26  ;;  %v9222_v52 = vld [vmem:[%s12498_s4 + $0x124] sm:$0xf]  ;;  %v6642_v53 = vld [vmem:[%s12498_s4 + $0x130] sm:$0xf0]  ;;  %v6517_v61 = vor.u32 %v9190_v49, %v6514_v51  ;;  %v6600_v26 = vld [vmem:[%s12498_s4 + $0xc8] sm:$0xf]  ;;  %v6857_v40 = vor.u32 %v9277_v32, %v6856_v31 }
  0x33   :  { %v9254_v55 = vld [vmem:[%s12498_s4 + $0x224] sm:$0xf]  ;;  %v6770_v56 = vld [vmem:[%s12498_s4 + $0x230] sm:$0xf0]  ;;  %v6645_v62 = vor.u32 %v9222_v52, %v6642_v53  ;;  %v839_v33 = vsel %vm831_vm0, %v7001_v21, 0 }
  0x34   :  { %938 = vmatpush.bf16.msrb.mxu3 %v6949_v30  ;;  %900 = vmatpush.bf16.msrb.mxu0 %v6549_v35  ;;  %v9286_v57 = vld [vmem:[%s12498_s4 + $0x324] sm:$0xf]  ;;  %v6898_v58 = vld [vmem:[%s12498_s4 + $0x330] sm:$0xf0]  ;;  %v6773_v2 = vor.u32 %v9254_v55, %v6770_v56  ;;  %v9245_v30 = vld [vmem:[%s12498_s4 + $0x1d4] sm:$0xf0] }
  0x35   :  { %913 = vmatpush.bf16.msrb.mxu1 %v6677_v36  ;;  %v9186_v59 = vld [vmem:[%s12498_s4 + $0x4] sm:$0xf]  ;;  %v6498_v60 = vld [vmem:[%s12498_s4 + $0x10] sm:$0xf0]  ;;  %v6901_v6 = vor.u32 %v9286_v57, %v6898_v58  ;;  %v6984_v34 = vld [vmem:[%s12498_s4 + $0x3c8] sm:$0xf]  ;;  %v6601_v36 = vor.u32 %v9213_v27, %v6600_v26  ;;  %v6729_v37 = vor.u32 %v9245_v30, %v6728_v28 }
  0x36   :  { %926 = vmatpush.bf16.msrb.mxu2 %v6805_v38  ;;  %v9218_v63 = vld [vmem:[%s12498_s4 + $0x104] sm:$0xf]  ;;  %v6626_v0 = vld [vmem:[%s12498_s4 + $0x110] sm:$0xf0]  ;;  %v6501_v16 = vor.u32 %v9186_v59, %v6498_v60  ;;  %v9309_v35 = vld [vmem:[%s12498_s4 + $0x3d4] sm:$0xf0] }
  0x37   :  { %v9250_v1 = vld [vmem:[%s12498_s4 + $0x204] sm:$0xf]  ;;  %v6754_v3 = vld [vmem:[%s12498_s4 + $0x210] sm:$0xf0]  ;;  %v6629_v18 = vor.u32 %v9218_v63, %v6626_v0  ;;  %v6584_v38 = vld [vmem:[%s12498_s4 + $0xa8] sm:$0xf]  ;;  %v6985_v41 = vor.u32 %v9309_v35, %v6984_v34 }
  0x38   :  { %939 = vmatpush.bf16.msrb.mxu3 %v6933_v42  ;;  %901 = vmatpush.bf16.msrb.mxu0 %v6533_v47  ;;  %v9282_v7 = vld [vmem:[%s12498_s4 + $0x304] sm:$0xf]  ;;  %v6882_v12 = vld [vmem:[%s12498_s4 + $0x310] sm:$0xf0]  ;;  %v6757_v22 = vor.u32 %v9250_v1, %v6754_v3  ;;  %v9209_v39 = vld [vmem:[%s12498_s4 + $0xb4] sm:$0xf0] }
  0x39   :  { %914 = vmatpush.bf16.msrb.mxu1 %v6661_v48  ;;  %v6885_v24 = vor.u32 %v9282_v7, %v6882_v12  ;;  %v6712_v42 = vld [vmem:[%s12498_s4 + $0x1a8] sm:$0xf]  ;;  %v9241_v43 = vld [vmem:[%s12498_s4 + $0x1b4] sm:$0xf0]  ;;  %v6585_v48 = vor.u32 %v9209_v39, %v6584_v38 }
  0x3a   :  { %927 = vmatpush.bf16.msrb.mxu2 %v6789_v50  ;;  %v6840_v44 = vld [vmem:[%s12498_s4 + $0x2a8] sm:$0xf]  ;;  %v9273_v45 = vld [vmem:[%s12498_s4 + $0x2b4] sm:$0xf0]  ;;  %v6713_v49 = vor.u32 %v9241_v43, %v6712_v42 }
  0x3b   :  { %v6968_v46 = vld [vmem:[%s12498_s4 + $0x3a8] sm:$0xf]  ;;  %v9305_v47 = vld [vmem:[%s12498_s4 + $0x3b4] sm:$0xf0]  ;;  %v6841_v52 = vor.u32 %v9273_v45, %v6840_v44  ;;  %v9215_v44 = vld [vmem:[%s12498_s4 + $0xec] sm:$0xf] }
  0x3c   :  { %940 = vmatpush.bf16.msrb.mxu3 %v6917_v54  ;;  %902 = vmatpush.bf16.msrb.mxu0 %v6517_v61  ;;  %v6568_v50 = vld [vmem:[%s12498_s4 + $0x88] sm:$0xf]  ;;  %v9205_v51 = vld [vmem:[%s12498_s4 + $0x94] sm:$0xf0]  ;;  %v6969_v53 = vor.u32 %v9305_v47, %v6968_v46  ;;  %v6618_v47 = vld [vmem:[%s12498_s4 + $0xf8] sm:$0xf0] }
  0x3d   :  { %915 = vmatpush.bf16.msrb.mxu1 %v6645_v62  ;;  %v6696_v54 = vld [vmem:[%s12498_s4 + $0x188] sm:$0xf]  ;;  %v9237_v55 = vld [vmem:[%s12498_s4 + $0x194] sm:$0xf0]  ;;  %v6569_v60 = vor.u32 %v9205_v51, %v6568_v50 }
  0x3e   :  { %928 = vmatpush.bf16.msrb.mxu2 %v6773_v2  ;;  %v6824_v56 = vld [vmem:[%s12498_s4 + $0x288] sm:$0xf]  ;;  %v9269_v57 = vld [vmem:[%s12498_s4 + $0x294] sm:$0xf0]  ;;  %v6697_v61 = vor.u32 %v9237_v55, %v6696_v54  ;;  %v6746_v54 = vld [vmem:[%s12498_s4 + $0x1f8] sm:$0xf0] }
  0x3f   :  { %v6952_v58 = vld [vmem:[%s12498_s4 + $0x388] sm:$0xf]  ;;  %v9301_v59 = vld [vmem:[%s12498_s4 + $0x394] sm:$0xf0]  ;;  %v6825_v0 = vor.u32 %v9269_v57, %v6824_v56  ;;  %v9279_v55 = vld [vmem:[%s12498_s4 + $0x2ec] sm:$0xf] }
  0x40   :  { %941 = vmatpush.bf16.msrb.mxu3 %v6901_v6  ;;  %903 = vmatpush.bf16.msrb.mxu0 %v6501_v16  ;;  %v6552_v62 = vld [vmem:[%s12498_s4 + $0x68] sm:$0xf]  ;;  %v9201_v63 = vld [vmem:[%s12498_s4 + $0x74] sm:$0xf0]  ;;  %v6953_v1 = vor.u32 %v9301_v59, %v6952_v58  ;;  %v6874_v56 = vld [vmem:[%s12498_s4 + $0x2f8] sm:$0xf0]  ;;  %v6621_v58 = vor.u32 %v9215_v44, %v6618_v47 }
  0x41   :  { %916 = vmatpush.bf16.msrb.mxu1 %v6629_v18  ;;  %v6680_v2 = vld [vmem:[%s12498_s4 + $0x168] sm:$0xf]  ;;  %v9233_v3 = vld [vmem:[%s12498_s4 + $0x174] sm:$0xf0]  ;;  %v6553_v10 = vor.u32 %v9201_v63, %v6552_v62  ;;  %v9211_v62 = vld [vmem:[%s12498_s4 + $0xcc] sm:$0xf] }
  0x42   :  { %929 = vmatpush.bf16.msrb.mxu2 %v6757_v22  ;;  %v6808_v4 = vld [vmem:[%s12498_s4 + $0x268] sm:$0xf]  ;;  %v9265_v5 = vld [vmem:[%s12498_s4 + $0x274] sm:$0xf0]  ;;  %v6681_v11 = vor.u32 %v9233_v3, %v6680_v2  ;;  %v6602_v63 = vld [vmem:[%s12498_s4 + $0xd8] sm:$0xf0] }
  0x43   :  { %904 = vmatmul.bf16.vlgmr.msrb.gmra.mxu0 %v10213_v9  ;;  %v6936_v6 = vld [vmem:[%s12498_s4 + $0x368] sm:$0xf]  ;;  %v9297_v7 = vld [vmem:[%s12498_s4 + $0x374] sm:$0xf0]  ;;  %v6809_v15 = vor.u32 %v9265_v5, %v6808_v4  ;;  %v9243_v2 = vld [vmem:[%s12498_s4 + $0x1cc] sm:$0xf] }
  0x44   :  { %948 = vmatpush.bf16.msra.mxu0 %v6617_v23  ;;  %942 = vmatpush.bf16.msrb.mxu3 %v6885_v24  ;;  %v6536_v12 = vld [vmem:[%s12498_s4 + $0x48] sm:$0xf]  ;;  %v9197_v14 = vld [vmem:[%s12498_s4 + $0x54] sm:$0xf0]  ;;  %v6937_v16 = vor.u32 %v9297_v7, %v6936_v6  ;;  %v6730_v3 = vld [vmem:[%s12498_s4 + $0x1d8] sm:$0xf0]  ;;  %v6605_v7 = vor.u32 %v9211_v62, %v6602_v63 }
  0x45   :  { %961 = vmatpush.bf16.msra.mxu1 %v6745_v25  ;;  %930 = vmatmul.bf16.vlgmr.msrb.gmra.mxu2 %v10211_v8  ;;  %v6664_v18 = vld [vmem:[%s12498_s4 + $0x148] sm:$0xf]  ;;  %v9229_v19 = vld [vmem:[%s12498_s4 + $0x154] sm:$0xf0]  ;;  %v6537_v24 = vor.u32 %v9197_v14, %v6536_v12  ;;  %v9275_v4 = vld [vmem:[%s12498_s4 + $0x2cc] sm:$0xf] }
  0x46   :  { %974 = vmatpush.bf16.msra.mxu2 %v6873_v29  ;;  %917 = vmatmul.bf16.vlgmr.msrb.gmra.mxu1 %v10226_v17  ;;  %v6792_v20 = vld [vmem:[%s12498_s4 + $0x248] sm:$0xf]  ;;  %v9261_v21 = vld [vmem:[%s12498_s4 + $0x254] sm:$0xf0]  ;;  %v6665_v25 = vor.u32 %v9229_v19, %v6664_v18  ;;  %v6858_v5 = vld [vmem:[%s12498_s4 + $0x2d8] sm:$0xf0] }
  0x47   :  { %7007 = vmatmul.msk.bf16.vlgmr.msrb.gmra.mxu3 %vm827_vm1, %v10215_v13  ;;  %v6920_v22 = vld [vmem:[%s12498_s4 + $0x348] sm:$0xf]  ;;  %v9293_v23 = vld [vmem:[%s12498_s4 + $0x354] sm:$0xf0]  ;;  %v6793_v29 = vor.u32 %v9261_v21, %v6792_v20  ;;  %v9207_v12 = vld [vmem:[%s12498_s4 + $0xac] sm:$0xf] }
  0x48   :  { %987 = vmatpush.bf16.msra.mxu3 %v839_v33  ;;  %949 = vmatpush.bf16.msra.mxu0 %v6601_v36  ;;  %v6520_v26 = vld [vmem:[%s12498_s4 + $0x28] sm:$0xf]  ;;  %v9193_v27 = vld [vmem:[%s12498_s4 + $0x34] sm:$0xf0]  ;;  %v6921_v30 = vor.u32 %v9293_v23, %v6920_v22  ;;  %v6586_v14 = vld [vmem:[%s12498_s4 + $0xb8] sm:$0xf0] }
  0x49   :  { %962 = vmatpush.bf16.msra.mxu1 %v6729_v37  ;;  %v6648_v28 = vld [vmem:[%s12498_s4 + $0x128] sm:$0xf]  ;;  %v9225_v31 = vld [vmem:[%s12498_s4 + $0x134] sm:$0xf0]  ;;  %v6521_v37 = vor.u32 %v9193_v27, %v6520_v26  ;;  %v9239_v18 = vld [vmem:[%s12498_s4 + $0x1ac] sm:$0xf]  ;;  %v6589_v23 = vor.u32 %v9207_v12, %v6586_v14 }
  0x4a   :  { %975 = vmatpush.bf16.msra.mxu2 %v6857_v40  ;;  %v6776_v32 = vld [vmem:[%s12498_s4 + $0x228] sm:$0xf]  ;;  %v9257_v33 = vld [vmem:[%s12498_s4 + $0x234] sm:$0xf0]  ;;  %v6714_v20 = vld [vmem:[%s12498_s4 + $0x1b8] sm:$0xf0] }
  0x4b   :  { %v6904_v34 = vld [vmem:[%s12498_s4 + $0x328] sm:$0xf]  ;;  %v9289_v35 = vld [vmem:[%s12498_s4 + $0x334] sm:$0xf0]  ;;  %v6777_v45 = vor.u32 %v9257_v33, %v6776_v32  ;;  %v9271_v21 = vld [vmem:[%s12498_s4 + $0x2ac] sm:$0xf] }
  0x4c   :  { %988 = vmatpush.bf16.msra.mxu3 %v6985_v41  ;;  %950 = vmatpush.bf16.msra.mxu0 %v6585_v48  ;;  %v6504_v36 = vld [vmem:[%s12498_s4 + $0x8] sm:$0xf]  ;;  %v9189_v38 = vld [vmem:[%s12498_s4 + $0x14] sm:$0xf0]  ;;  %v6649_v41 = vor.u32 %v9225_v31, %v6648_v28  ;;  %v6905_v46 = vor.u32 %v9289_v35, %v6904_v34  ;;  %v9311_v48 = vld [vmem:[%s12498_s4 + $0x3ec] sm:$0xf]  ;;  %v6717_v28 = vor.u32 %v9239_v18, %v6714_v20 }
  0x4d   :  { %963 = vmatpush.bf16.msra.mxu1 %v6713_v49  ;;  %v6632_v39 = vld [vmem:[%s12498_s4 + $0x108] sm:$0xf]  ;;  %v9221_v40 = vld [vmem:[%s12498_s4 + $0x114] sm:$0xf0]  ;;  %v7002_v49 = vld [vmem:[%s12498_s4 + $0x3f8] sm:$0x70] }
  0x4e   :  { %976 = vmatpush.bf16.msra.mxu2 %v6841_v52  ;;  %v6760_v42 = vld [vmem:[%s12498_s4 + $0x208] sm:$0xf]  ;;  %v9253_v43 = vld [vmem:[%s12498_s4 + $0x214] sm:$0xf0]  ;;  %v9247_v52 = vld [vmem:[%s12498_s4 + $0x1ec] sm:$0xf]  ;;  %v6633_v57 = vor.u32 %v9221_v40, %v6632_v39  ;;  %v7005_v59 = vor.u32 %v9311_v48, %v7002_v49 }
  0x4f   :  { %v6888_v50 = vld [vmem:[%s12498_s4 + $0x308] sm:$0xf]  ;;  %v9285_v51 = vld [vmem:[%s12498_s4 + $0x314] sm:$0xf0]  ;;  %v6842_v22 = vld [vmem:[%s12498_s4 + $0x2b8] sm:$0xf0] }
  0x50   :  { %989 = vmatpush.bf16.msra.mxu3 %v6969_v53  ;;  %951 = vmatpush.bf16.msra.mxu0 %v6569_v60  ;;  %v6505_v53 = vor.u32 %v9189_v38, %v6504_v36  ;;  %v6761_v60 = vor.u32 %v9253_v43, %v6760_v42  ;;  %v842_v6 = vsel %vm831_vm0, %v7005_v59, 0  ;;  %v9203_v26 = vld [vmem:[%s12498_s4 + $0x8c] sm:$0xf]  ;;  %v6570_v27 = vld [vmem:[%s12498_s4 + $0x98] sm:$0xf0] }
  0x51   :  { %964 = vmatpush.bf16.msra.mxu1 %v6697_v61  ;;  %v6889_v61 = vor.u32 %v9285_v51, %v6888_v50  ;;  %v6698_v32 = vld [vmem:[%s12498_s4 + $0x198] sm:$0xf0]  ;;  %v9267_v33 = vld [vmem:[%s12498_s4 + $0x28c] sm:$0xf]  ;;  %v6573_v35 = vor.u32 %v9203_v26, %v6570_v27 }
  0x52   :  { %977 = vmatpush.bf16.msra.mxu2 %v6825_v0  ;;  %v6749_v0 = vor.u32 %v9247_v52, %v6746_v54  ;;  %v6826_v34 = vld [vmem:[%s12498_s4 + $0x298] sm:$0xf0]  ;;  %v9299_v36 = vld [vmem:[%s12498_s4 + $0x38c] sm:$0xf] }
  0x53   :  { %v9199_v38 = vld [vmem:[%s12498_s4 + $0x6c] sm:$0xf]  ;;  %v6554_v39 = vld [vmem:[%s12498_s4 + $0x78] sm:$0xf0] }
  0x54   :  { %990 = vmatpush.bf16.msra.mxu3 %v6953_v1  ;;  %952 = vmatpush.bf16.msra.mxu0 %v6553_v10  ;;  %v6877_v1 = vor.u32 %v9279_v55, %v6874_v56  ;;  %v9307_v10 = vld [vmem:[%s12498_s4 + $0x3cc] sm:$0xf]  ;;  %v6682_v44 = vld [vmem:[%s12498_s4 + $0x178] sm:$0xf0]  ;;  %v6557_v47 = vor.u32 %v9199_v38, %v6554_v39 }
  0x55   :  { %965 = vmatpush.bf16.msra.mxu1 %v6681_v11  ;;  %v6986_v11 = vld [vmem:[%s12498_s4 + $0x3d8] sm:$0xf0]  ;;  %v9231_v42 = vld [vmem:[%s12498_s4 + $0x16c] sm:$0xf] }
  0x56   :  { %978 = vmatpush.bf16.msra.mxu2 %v6809_v15  ;;  %v6733_v15 = vor.u32 %v9243_v2, %v6730_v3  ;;  %v6989_v19 = vor.u32 %v9307_v10, %v6986_v11  ;;  %v9295_v48 = vld [vmem:[%s12498_s4 + $0x36c] sm:$0xf]  ;;  %v6938_v49 = vld [vmem:[%s12498_s4 + $0x378] sm:$0xf0]  ;;  %v6685_v52 = vor.u32 %v9231_v42, %v6682_v44  ;;  %v1334_v42 = vld [vmem:[%s12501_s0] sm:$0xff] }
  0x57   :  { %v9195_v50 = vld [vmem:[%s12498_s4 + $0x4c] sm:$0xf]  ;;  %v6538_v51 = vld [vmem:[%s12498_s4 + $0x58] sm:$0xf0]  ;;  %v6941_v55 = vor.u32 %v9295_v48, %v6938_v49  ;;  %1851 = vst [vmem:[#allocation1] ss:$9 sm:$0xff] %v1334_v42 }
  0x58   :  { %991 = vmatpush.bf16.msra.mxu3 %v6937_v16  ;;  %953 = vmatpush.bf16.msra.mxu0 %v6537_v24  ;;  %v6861_v16 = vor.u32 %v9275_v4, %v6858_v5  ;;  %v9303_v24 = vld [vmem:[%s12498_s4 + $0x3ac] sm:$0xf]  ;;  %v6666_v56 = vld [vmem:[%s12498_s4 + $0x158] sm:$0xf0]  ;;  %v6541_v59 = vor.u32 %v9195_v50, %v6538_v51  ;;  %v9460_v48 = vld [vmem:[%s12500_s6 + $0x90] sm:$0xff] }
  0x59   :  { %966 = vmatpush.bf16.msra.mxu1 %v6665_v25  ;;  %v6970_v25 = vld [vmem:[%s12498_s4 + $0x3b8] sm:$0xf0]  ;;  %v9227_v54 = vld [vmem:[%s12498_s4 + $0x14c] sm:$0xf]  ;;  %v9468_v49 = vld [vmem:[%s12500_s6 + $0xd0] sm:$0xff] }
  0x5a   :  { %979 = vmatpush.bf16.msra.mxu2 %v6793_v29  ;;  %v6845_v29 = vor.u32 %v9271_v21, %v6842_v22  ;;  %v6973_v31 = vor.u32 %v9303_v24, %v6970_v25  ;;  %v9191_v62 = vld [vmem:[%s12498_s4 + $0x2c] sm:$0xf]  ;;  %v6522_v63 = vld [vmem:[%s12498_s4 + $0x38] sm:$0xf0] }
  0x5b   :  { %v9223_v2 = vld [vmem:[%s12498_s4 + $0x12c] sm:$0xf]  ;;  %v6650_v4 = vld [vmem:[%s12498_s4 + $0x138] sm:$0xf0] }
  0x5c   :  { %992 = vmatpush.bf16.msra.mxu3 %v6921_v30  ;;  %954 = vmatpush.bf16.msra.mxu0 %v6521_v37  ;;  %v9235_v30 = vld [vmem:[%s12498_s4 + $0x18c] sm:$0xf]  ;;  %v6954_v37 = vld [vmem:[%s12498_s4 + $0x398] sm:$0xf0] }
  0x5d   :  { %967 = vmatpush.bf16.msra.mxu1 %v6649_v41  ;;  %v6701_v40 = vor.u32 %v9235_v30, %v6698_v32  ;;  %v6829_v41 = vor.u32 %v9267_v33, %v6826_v34  ;;  %v6957_v43 = vor.u32 %v9299_v36, %v6954_v37  ;;  %v9255_v5 = vld [vmem:[%s12498_s4 + $0x22c] sm:$0xf]  ;;  %v6906_v11 = vld [vmem:[%s12498_s4 + $0x338] sm:$0xf0]  ;;  %v9448_v33 = vld [vmem:[%s12500_s6 + $0x30] sm:$0xff] }
  0x5e   :  { %980 = vmatpush.bf16.msra.mxu2 %v6777_v45  ;;  %v9263_v45 = vld [vmem:[%s12498_s4 + $0x26c] sm:$0xf]  ;;  %v6506_v14 = vld [vmem:[%s12498_s4 + $0x18] sm:$0xf0]  ;;  %v9456_v34 = vld [vmem:[%s12500_s6 + $0x70] sm:$0xff] }
  0x5f   :  { %v9287_v10 = vld [vmem:[%s12498_s4 + $0x32c] sm:$0xf]  ;;  %v6634_v20 = vld [vmem:[%s12498_s4 + $0x118] sm:$0xf0]  ;;  %v9472_v36 = vld [vmem:[%s12500_s6 + $0xf0] sm:$0xff] }
  0x60   :  { %993 = vmatpush.bf16.msra.mxu3 %v6905_v46  ;;  %955 = vmatpush.bf16.msra.mxu0 %v6505_v53  ;;  %v6810_v46 = vld [vmem:[%s12498_s4 + $0x278] sm:$0xf0]  ;;  %v9187_v12 = vld [vmem:[%s12498_s4 + $0xc] sm:$0xf] }
  0x61   :  { %968 = vmatpush.bf16.msra.mxu1 %v6633_v57  ;;  %v6813_v53 = vor.u32 %v9263_v45, %v6810_v46  ;;  %v9259_v57 = vld [vmem:[%s12498_s4 + $0x24c] sm:$0xf]  ;;  %v6762_v22 = vld [vmem:[%s12498_s4 + $0x218] sm:$0xf0]  ;;  %v9444_v46 = vld [vmem:[%s12500_s6 + $0x10] sm:$0xff] }
  0x62   :  { %981 = vmatpush.bf16.msra.mxu2 %v6761_v60  ;;  %v9291_v60 = vld [vmem:[%s12498_s4 + $0x34c] sm:$0xf]  ;;  %v6890_v25 = vld [vmem:[%s12498_s4 + $0x318] sm:$0xf0] }
  0x63   :  { %956 = vmatmul.bf16.vlgmr.msra.gmra.mxu0 %v10213_v9  ;;  %v9219_v18 = vld [vmem:[%s12498_s4 + $0x10c] sm:$0xf]  ;;  %v9449_v26 = vld [vmem:[%s12500_s6 + $0x38] sm:$0xff] }
  0x64   :  { %1000 = vmatpush.bf16.msrb.mxu0 %v6621_v58  ;;  %994 = vmatpush.bf16.msra.mxu3 %v6889_v61  ;;  %v6794_v58 = vld [vmem:[%s12498_s4 + $0x258] sm:$0xf0]  ;;  %v9251_v21 = vld [vmem:[%s12498_s4 + $0x20c] sm:$0xf]  ;;  %v6637_v27 = vor.u32 %v9219_v18, %v6634_v20 }
  0x65   :  { %1013 = vmatpush.bf16.msrb.mxu1 %v6749_v0  ;;  %982 = vmatmul.bf16.vlgmr.msra.gmra.mxu2 %v10211_v8  ;;  %v6922_v61 = vld [vmem:[%s12498_s4 + $0x358] sm:$0xf0]  ;;  %v6669_v0 = vor.u32 %v9227_v54, %v6666_v56  ;;  %v9283_v24 = vld [vmem:[%s12498_s4 + $0x30c] sm:$0xf]  ;;  %v9442_v54 = vld [vmem:[%s12500_s6] sm:$0xff] }
  0x66   :  { %1026 = vmatpush.bf16.msrb.mxu2 %v6877_v1  ;;  %969 = vmatmul.bf16.vlgmr.msra.gmra.mxu1 %v10226_v17  ;;  %v6797_v1 = vor.u32 %v9259_v57, %v6794_v58  ;;  %v6925_v3 = vor.u32 %v9291_v60, %v6922_v61  ;;  %v9457_v30 = vld [vmem:[%s12500_s6 + $0x78] sm:$0xff]  ;;  %v9447_v37 = vld [vmem:[%s12500_s6 + $0x28] sm:$0xff]  ;;  %v9450_v56 = vld [vmem:[%s12500_s6 + $0x40] sm:$0xff] }
  0x67   :  { %7008 = vmatmul.msk.bf16.vlgmr.msra.gmra.mxu3 %vm827_vm1, %v10215_v13  ;;  %v9473_v32 = vld [vmem:[%s12500_s6 + $0xf8] sm:$0xff]  ;;  %v9455_v38 = vld [vmem:[%s12500_s6 + $0x68] sm:$0xff]  ;;  %v9458_v57 = vld [vmem:[%s12500_s6 + $0x80] sm:$0xff] }
  0x68   :  { %1039 = vmatpush.bf16.msrb.mxu3 %v842_v6  ;;  %1001 = vmatpush.bf16.msrb.mxu0 %v6605_v7  ;;  %v6778_v6 = vld [vmem:[%s12498_s4 + $0x238] sm:$0xf0]  ;;  %v6525_v7 = vor.u32 %v9191_v62, %v6522_v63  ;;  %v9463_v39 = vld [vmem:[%s12500_s6 + $0xa8] sm:$0xff]  ;;  %v9466_v58 = vld [vmem:[%s12500_s6 + $0xc0] sm:$0xff] }
  0x69   :  { %1014 = vmatpush.bf16.msrb.mxu1 %v6733_v15  ;;  %v6653_v15 = vor.u32 %v9223_v2, %v6650_v4  ;;  %v9461_v44 = vld [vmem:[%s12500_s6 + $0x98] sm:$0xff]  ;;  %v9443_v50 = vld [vmem:[%s12500_s6 + $0x8] sm:$0xff]  ;;  %v9480_v62 = vld [vmem:[%s12500_s6 + $0x130] sm:$0xff] }
  0x6a   :  { %1027 = vmatpush.bf16.msrb.mxu2 %v6861_v16  ;;  %v6781_v16 = vor.u32 %v9255_v5, %v6778_v6  ;;  %v9469_v45 = vld [vmem:[%s12500_s6 + $0xd8] sm:$0xff]  ;;  %v9451_v51 = vld [vmem:[%s12500_s6 + $0x48] sm:$0xff]  ;;  %v9488_v63 = vld [vmem:[%s12500_s6 + $0x170] sm:$0xff] }
  0x6b   :  { %v9497_v60 = vld [vmem:[%s12500_s6 + $0x1b8] sm:$0xff]  ;;  %v9496_v2 = vld [vmem:[%s12500_s6 + $0x1b0] sm:$0xff]  ;;  %v9479_v6 = vld [vmem:[%s12500_s6 + $0x128] sm:$0xff] }
  0x6c   :  { %1040 = vmatpush.bf16.msrb.mxu3 %v6989_v19  ;;  %1002 = vmatpush.bf16.msrb.mxu0 %v6589_v23  ;;  %v6909_v19 = vor.u32 %v9287_v10, %v6906_v11  ;;  %v6509_v23 = vor.u32 %v9187_v12, %v6506_v14  ;;  %v9505_v61 = vld [vmem:[%s12500_s6 + $0x1f8] sm:$0xff]  ;;  %v9504_v5 = vld [vmem:[%s12500_s6 + $0x1f0] sm:$0xff]  ;;  %v9495_v10 = vld [vmem:[%s12500_s6 + $0x1a8] sm:$0xff] }
  0x6d   :  { %1015 = vmatpush.bf16.msrb.mxu1 %v6717_v28  ;;  %v6765_v28 = vor.u32 %v9251_v21, %v6762_v22  ;;  %v1853_v4 = vld [vmem:[#allocation1 + $0x9] sm:$0xff]  ;;  %v9503_v11 = vld [vmem:[%s12500_s6 + $0x1e8] sm:$0xff] }
  0x6e   :  { %1028 = vmatpush.bf16.msrb.mxu2 %v6845_v29  ;;  %v6893_v29 = vor.u32 %v9283_v24, %v6890_v25  ;;  %v9478_v12 = vld [vmem:[%s12500_s6 + $0x120] sm:$0xff]  ;;  %v1335_v18 = vld [vmem:[%s12501_s0 + $0x8] sm:$0xff]  ;;  %v9477_v20 = vld [vmem:[%s12500_s6 + $0x118] sm:$0xff] }
  0x6f   :  { %v9486_v14 = vld [vmem:[%s12500_s6 + $0x160] sm:$0xff]  ;;  %v10902_v22 = vld [vmem:[#allocation1 + $0x24] sm:$0xff] }
  0x70   :  { %1041 = vmatpush.bf16.msrb.mxu3 %v6973_v31  ;;  %1003 = vmatpush.bf16.msrb.mxu0 %v6573_v35  ;;  %v9465_v31 = vld [vmem:[%s12500_s6 + $0xb8] sm:$0xff]  ;;  %v9464_v35 = vld [vmem:[%s12500_s6 + $0xb0] sm:$0xff]  ;;  %v10900_v21 = vld [vmem:[#allocation1 + $0x36] sm:$0xff] }
  0x71   :  { %1016 = vmatpush.bf16.msrb.mxu1 %v6701_v40  ;;  %v9462_v40 = vld [vmem:[%s12500_s6 + $0xa0] sm:$0xff] }
  0x72   :  { %1029 = vmatpush.bf16.msrb.mxu2 %v6829_v41  ;;  %v9470_v41 = vld [vmem:[%s12500_s6 + $0xe0] sm:$0xff] }
  0x73   :  { %v10906_v24 = vld [vmem:[#allocation1 + $0x2d] sm:$0xff] }
  0x74   :  { %1042 = vmatpush.bf16.msrb.mxu3 %v6957_v43  ;;  %1004 = vmatpush.bf16.msrb.mxu0 %v6557_v47  ;;  %v9453_v43 = vld [vmem:[%s12500_s6 + $0x58] sm:$0xff]  ;;  %v9452_v47 = vld [vmem:[%s12500_s6 + $0x50] sm:$0xff] }
  0x75   :  { %1017 = vmatpush.bf16.msrb.mxu1 %v6685_v52  ;;  %v9459_v52 = vld [vmem:[%s12500_s6 + $0x88] sm:$0xff] }
  0x76   :  { %1030 = vmatpush.bf16.msrb.mxu2 %v6813_v53  ;;  %v9467_v53 = vld [vmem:[%s12500_s6 + $0xc8] sm:$0xff] }
  0x78   :  { %1043 = vmatpush.bf16.msrb.mxu3 %v6941_v55  ;;  %1005 = vmatpush.bf16.msrb.mxu0 %v6541_v59  ;;  %v9481_v55 = vld [vmem:[%s12500_s6 + $0x138] sm:$0xff] }
  0x79   :  { %1018 = vmatpush.bf16.msrb.mxu1 %v6669_v0  ;;  %v9489_v59 = vld [vmem:[%s12500_s6 + $0x178] sm:$0xff]  ;;  %v1854_v0 = vld [vmem:[#allocation1 + $0x12] sm:$0xff] }
  0x7a   :  { %1031 = vmatpush.bf16.msrb.mxu2 %v6797_v1  ;;  %v1852_v1 = vld [vmem:[#allocation1] sm:$0xff] }
  0x7c   :  { %1044 = vmatpush.bf16.msrb.mxu3 %v6925_v3  ;;  %1006 = vmatpush.bf16.msrb.mxu0 %v6525_v7  ;;  %v1855_v3 = vld [vmem:[#allocation1 + $0x1b] sm:$0xff] }
  0x7d   :  { %1019 = vmatpush.bf16.msrb.mxu1 %v6653_v15  ;;  %v9487_v7 = vld [vmem:[%s12500_s6 + $0x168] sm:$0xff]  ;;  %v9494_v15 = vld [vmem:[%s12500_s6 + $0x1a0] sm:$0xff] }
  0x7e   :  { %1032 = vmatpush.bf16.msrb.mxu2 %v6781_v16  ;;  %v10889_v16 = vld [vmem:[%s12502_s5] sm:$0xf] }
  0x7f   :  { %v183_v25 = vperm.slane %v10889_v16, 0 }
  0x80   :  { %1045 = vmatpush.bf16.msrb.mxu3 %v6909_v19  ;;  %1007 = vmatpush.bf16.msrb.mxu0 %v6509_v23  ;;  %v9502_v19 = vld [vmem:[%s12500_s6 + $0x1e0] sm:$0xff]  ;;  %v10904_v23 = vld [vmem:[#allocation1 + $0x3f] sm:$0xff] }
  0x81   :  { %1020 = vmatpush.bf16.msrb.mxu1 %v6637_v27  ;;  %1861 = vst [vmem:[#allocation1] ss:$9 sm:$0xff] %v1335_v18  ;;  %v9493_v27 = vld [vmem:[%s12500_s6 + $0x198] sm:$0xff] }
  0x82   :  { %1033 = vmatpush.bf16.msrb.mxu2 %v6765_v28  ;;  %v9501_v28 = vld [vmem:[%s12500_s6 + $0x1d8] sm:$0xff] }
  0x83   :  { %1008 = vmatmul.bf16.vlgmr.msrb.gmra.mxu0 %v10213_v9  ;;  %v9446_v9 = vld [vmem:[%s12500_s6 + $0x20] sm:$0xff] }
  0x84   :  { %3458 = vmatpush.bf16.msra.mxu0 %v9449_v26  ;;  %1046 = vmatpush.bf16.msrb.mxu3 %v6893_v29  ;;  %v9485_v26 = vld [vmem:[%s12500_s6 + $0x158] sm:$0xff] }
  0x85   :  { %3471 = vmatpush.bf16.msra.mxu1 %v9457_v30  ;;  %1034 = vmatmul.bf16.vlgmr.msrb.gmra.mxu2 %v10211_v8  ;;  %v9471_v8 = vld [vmem:[%s12500_s6 + $0xe8] sm:$0xff]  ;;  %v9476_v30 = vld [vmem:[%s12500_s6 + $0x110] sm:$0xff] }
  0x86   :  { %3484 = vmatpush.bf16.msra.mxu2 %v9465_v31  ;;  %1021 = vmatmul.bf16.vlgmr.msrb.gmra.mxu1 %v10226_v17  ;;  %v9445_v17 = vld [vmem:[%s12500_s6 + $0x18] sm:$0xff] }
  0x87   :  { %7009 = vmatmul.msk.bf16.vlgmr.msrb.gmra.mxu3 %vm827_vm1, %v10215_v13  ;;  %v9454_v13 = vld [vmem:[%s12500_s6 + $0x60] sm:$0xff] }
  0x88   :  { %3497 = vmatpush.bf16.msra.mxu3 %v9473_v32  ;;  %3459 = vmatpush.bf16.msra.mxu0 %v9448_v33  ;;  %v9484_v33 = vld [vmem:[%s12500_s6 + $0x150] sm:$0xff] }
  0x89   :  { %3472 = vmatpush.bf16.msra.mxu1 %v9456_v34  ;;  %v9492_v34 = vld [vmem:[%s12500_s6 + $0x190] sm:$0xff] }
  0x8a   :  { %3485 = vmatpush.bf16.msra.mxu2 %v9464_v35 }
  0x8c   :  { %3498 = vmatpush.bf16.msra.mxu3 %v9472_v36  ;;  %3460 = vmatpush.bf16.msra.mxu0 %v9447_v37  ;;  %v9500_v36 = vld [vmem:[%s12500_s6 + $0x1d0] sm:$0xff]  ;;  %v9475_v37 = vld [vmem:[%s12500_s6 + $0x108] sm:$0xff] }
  0x8d   :  { %3473 = vmatpush.bf16.msra.mxu1 %v9455_v38 }
  0x8e   :  { %3486 = vmatpush.bf16.msra.mxu2 %v9463_v39 }
  0x90   :  { %3499 = vmatpush.bf16.msra.mxu3 %v9471_v8  ;;  %3461 = vmatpush.bf16.msra.mxu0 %v9446_v9  ;;  %v9483_v9 = vld [vmem:[%s12500_s6 + $0x148] sm:$0xff] }
  0x91   :  { %3474 = vmatpush.bf16.msra.mxu1 %v9454_v13  ;;  %v9491_v13 = vld [vmem:[%s12500_s6 + $0x188] sm:$0xff] }
  0x92   :  { %3487 = vmatpush.bf16.msra.mxu2 %v9462_v40  ;;  %v9499_v40 = vld [vmem:[%s12500_s6 + $0x1c8] sm:$0xff] }
  0x94   :  { %3500 = vmatpush.bf16.msra.mxu3 %v9470_v41  ;;  %3462 = vmatpush.bf16.msra.mxu0 %v9445_v17  ;;  %v9474_v17 = vld [vmem:[%s12500_s6 + $0x100] sm:$0xff] }
  0x95   :  { %3475 = vmatpush.bf16.msra.mxu1 %v9453_v43  ;;  %v9513_v43 = vld [vmem:[%s12500_s6 + $0x238] sm:$0xff] }
  0x96   :  { %3488 = vmatpush.bf16.msra.mxu2 %v9461_v44 }
  0x98   :  { %3501 = vmatpush.bf16.msra.mxu3 %v9469_v45  ;;  %3463 = vmatpush.bf16.msra.mxu0 %v9444_v46  ;;  %v9482_v45 = vld [vmem:[%s12500_s6 + $0x140] sm:$0xff] }
  0x99   :  { %3476 = vmatpush.bf16.msra.mxu1 %v9452_v47  ;;  %v9490_v46 = vld [vmem:[%s12500_s6 + $0x180] sm:$0xff] }
  0x9a   :  { %3489 = vmatpush.bf16.msra.mxu2 %v9460_v48  ;;  %v9498_v47 = vld [vmem:[%s12500_s6 + $0x1c0] sm:$0xff]  ;;  %v9521_v48 = vld [vmem:[%s12500_s6 + $0x278] sm:$0xff] }
  0x9c   :  { %3502 = vmatpush.bf16.msra.mxu3 %v9468_v49  ;;  %3464 = vmatpush.bf16.msra.mxu0 %v9443_v50  ;;  %v9529_v49 = vld [vmem:[%s12500_s6 + $0x2b8] sm:$0xff] }
  0x9d   :  { %3477 = vmatpush.bf16.msra.mxu1 %v9451_v51  ;;  %v9537_v50 = vld [vmem:[%s12500_s6 + $0x2f8] sm:$0xff] }
  0x9e   :  { %3490 = vmatpush.bf16.msra.mxu2 %v9459_v52  ;;  %v9512_v52 = vld [vmem:[%s12500_s6 + $0x230] sm:$0xff] }
  0xa0   :  { %3503 = vmatpush.bf16.msra.mxu3 %v9467_v53  ;;  %3465 = vmatpush.bf16.msra.mxu0 %v9442_v54  ;;  %v9520_v54 = vld [vmem:[%s12500_s6 + $0x270] sm:$0xff] }
  0xa1   :  { %3478 = vmatpush.bf16.msra.mxu1 %v9450_v56  ;;  %v9536_v56 = vld [vmem:[%s12500_s6 + $0x2f0] sm:$0xff] }
  0xa2   :  { %3491 = vmatpush.bf16.msra.mxu2 %v9458_v57  ;;  %v9511_v57 = vld [vmem:[%s12500_s6 + $0x228] sm:$0xff] }
  0xa3   :  { %3466 = vmatmul.bf16.vlgmr.msra.gmra.mxu0 %v1852_v1  ;;  %v9534_v1 = vld [vmem:[%s12500_s6 + $0x2e0] sm:$0xff] }
  0xa4   :  { %3510 = vmatpush.bf16.msrb.mxu0 %v9481_v55  ;;  %3504 = vmatpush.bf16.msra.mxu3 %v9466_v58  ;;  %v9528_v55 = vld [vmem:[%s12500_s6 + $0x2b0] sm:$0xff]  ;;  %v9519_v58 = vld [vmem:[%s12500_s6 + $0x268] sm:$0xff] }
  0xa5   :  { %3523 = vmatpush.bf16.msrb.mxu1 %v9489_v59  ;;  %3492 = vmatmul.bf16.vlgmr.msra.gmra.mxu2 %v1854_v0  ;;  %v9527_v59 = vld [vmem:[%s12500_s6 + $0x2a8] sm:$0xff]  ;;  %v9526_v0 = vld [vmem:[%s12500_s6 + $0x2a0] sm:$0xff] }
  0xa6   :  { %3536 = vmatpush.bf16.msrb.mxu2 %v9497_v60  ;;  %3479 = vmatmul.bf16.vlgmr.msra.gmra.mxu1 %v1853_v4  ;;  %v9535_v60 = vld [vmem:[%s12500_s6 + $0x2e8] sm:$0xff] }
  0xa7   :  { %3505 = vmatmul.bf16.vlgmr.msra.gmra.mxu3 %v1855_v3  ;;  %v9509_v3 = vld [vmem:[%s12500_s6 + $0x218] sm:$0xff] }
  0xa8   :  { %3549 = vmatpush.bf16.msrb.mxu3 %v9505_v61  ;;  %3511 = vmatpush.bf16.msrb.mxu0 %v9480_v62  ;;  %v853_v29 = vpop.f32.mrf.mxu0  ;;  %v9510_v61 = vld [vmem:[%s12500_s6 + $0x220] sm:$0xff]  ;;  %v184_v62 = vperm.slane %v10889_v16, 1 }
  0xa9   :  { %3524 = vmatpush.bf16.msrb.mxu1 %v9488_v63  ;;  %v854_v31 = vadd.f32 %v853_v29, %v183_v25  ;;  %v9518_v63 = vld [vmem:[%s12500_s6 + $0x260] sm:$0xff]  ;;  %v9515_v25 = vld [vmem:[%s12500_s6 + $0x248] sm:$0xff] }
  0xaa   :  { %3537 = vmatpush.bf16.msrb.mxu2 %v9496_v2  ;;  %v9506_v29 = vld [vmem:[%s12500_s6 + $0x200] sm:$0xff] }
  0xab   :  { %v866_v32 = vpop.f32.mrf.mxu1 }
  0xac   :  { %3550 = vmatpush.bf16.msrb.mxu3 %v9504_v5  ;;  %3512 = vmatpush.bf16.msrb.mxu0 %v9479_v6  ;;  %v867_v35 = vadd.f32 %v866_v32, %v854_v31  ;;  %v9517_v5 = vld [vmem:[%s12500_s6 + $0x258] sm:$0xff]  ;;  %v9514_v32 = vld [vmem:[%s12500_s6 + $0x240] sm:$0xff] }
  0xad   :  { %3525 = vmatpush.bf16.msrb.mxu1 %v9487_v7  ;;  %v9525_v6 = vld [vmem:[%s12500_s6 + $0x298] sm:$0xff] }
  0xae   :  { %3538 = vmatpush.bf16.msrb.mxu2 %v9495_v10  ;;  %v879_v38 = vpop.f32.mrf.mxu2  ;;  %v9533_v7 = vld [vmem:[%s12500_s6 + $0x2d8] sm:$0xff] }
  0xaf   :  { %v880_v39 = vadd.f32 %v879_v38, %v867_v35  ;;  %v9530_v35 = vld [vmem:[%s12500_s6 + $0x2c0] sm:$0xff]  ;;  %v1336_v38 = vld [vmem:[%s12501_s0 + $0x10] sm:$0xff] }
  0xb0   :  { %3551 = vmatpush.bf16.msrb.mxu3 %v9503_v11  ;;  %3513 = vmatpush.bf16.msrb.mxu0 %v9478_v12  ;;  %v892_v8 = vpop.f32.mrf.mxu3  ;;  %v855_v42 = vpop.f32.mrf.mxu0  ;;  %v9508_v11 = vld [vmem:[%s12500_s6 + $0x210] sm:$0xff] }
  0xb1   :  { %3526 = vmatpush.bf16.msrb.mxu1 %v9486_v14  ;;  %v10942_v41 = vadd.f32 %v892_v8, %v880_v39  ;;  %v9569_v39 = vld [vmem:[%s12500_s6 + $0x3f8] sm:$0xff]  ;;  %v1862_v8 = vld [vmem:[#allocation1] sm:$0xff] }
  0xb2   :  { %3539 = vmatpush.bf16.msrb.mxu2 %v9494_v15  ;;  %v9516_v15 = vld [vmem:[%s12500_s6 + $0x250] sm:$0xff] }
  0xb3   :  { %v868_v44 = vpop.f32.mrf.mxu1  ;;  %v9560_v42 = vld [vmem:[%s12500_s6 + $0x3b0] sm:$0xff] }
  0xb4   :  { %3552 = vmatpush.bf16.msrb.mxu3 %v9502_v19  ;;  %3514 = vmatpush.bf16.msrb.mxu0 %v9477_v20  ;;  %v9524_v20 = vld [vmem:[%s12500_s6 + $0x290] sm:$0xff] }
  0xb5   :  { %3527 = vmatpush.bf16.msrb.mxu1 %v9485_v26  ;;  %v9523_v26 = vld [vmem:[%s12500_s6 + $0x288] sm:$0xff]  ;;  %v9568_v44 = vld [vmem:[%s12500_s6 + $0x3f0] sm:$0xff] }
  0xb6   :  { %3540 = vmatpush.bf16.msrb.mxu2 %v9493_v27  ;;  %v881_v51 = vpop.f32.mrf.mxu2  ;;  %v9531_v27 = vld [vmem:[%s12500_s6 + $0x2c8] sm:$0xff] }
  0xb7   :  { %v9559_v51 = vld [vmem:[%s12500_s6 + $0x3a8] sm:$0xff] }
  0xb8   :  { %3553 = vmatpush.bf16.msrb.mxu3 %v9501_v28  ;;  %3515 = vmatpush.bf16.msrb.mxu0 %v9476_v30  ;;  %v894_v53 = vpop.f32.mrf.mxu3  ;;  %v9545_v30 = vld [vmem:[%s12500_s6 + $0x338] sm:$0xff] }
  0xb9   :  { %3528 = vmatpush.bf16.msrb.mxu1 %v9484_v33  ;;  %v185_v53 = vperm.slane %v10889_v16, 2 }
  0xba   :  { %3541 = vmatpush.bf16.msrb.mxu2 %v9492_v34  ;;  %v9522_v34 = vld [vmem:[%s12500_s6 + $0x280] sm:$0xff] }
  0xbc   :  { %3554 = vmatpush.bf16.msrb.mxu3 %v9500_v36  ;;  %3516 = vmatpush.bf16.msrb.mxu0 %v9475_v37  ;;  %v9553_v36 = vld [vmem:[%s12500_s6 + $0x378] sm:$0xff] }
  0xbd   :  { %3529 = vmatpush.bf16.msrb.mxu1 %v9483_v9  ;;  %v9561_v37 = vld [vmem:[%s12500_s6 + $0x3b8] sm:$0xff]  ;;  %v1864_v9 = vld [vmem:[#allocation1 + $0x12] sm:$0xff] }
  0xbe   :  { %3542 = vmatpush.bf16.msrb.mxu2 %v9491_v13  ;;  %v9544_v13 = vld [vmem:[%s12500_s6 + $0x330] sm:$0xff] }
  0xc0   :  { %3555 = vmatpush.bf16.msrb.mxu3 %v9499_v40  ;;  %3517 = vmatpush.bf16.msrb.mxu0 %v9474_v17  ;;  %v905_v2 = vpop.f32.mrf.mxu0  ;;  %v1863_v40 = vld [vmem:[#allocation1 + $0x9] sm:$0xff]  ;;  %v9552_v17 = vld [vmem:[%s12500_s6 + $0x370] sm:$0xff] }
  0xc1   :  { %3530 = vmatpush.bf16.msrb.mxu1 %v9482_v45  ;;  %v906_v4 = vadd.f32 %v905_v2, %v184_v62  ;;  %v11086_v45 = vld [vmem:[#allocation1 + $0x24] sm:$0xff] }
  0xc2   :  { %3543 = vmatpush.bf16.msrb.mxu2 %v9490_v46  ;;  %v11088_v46 = vld [vmem:[#allocation1 + $0x36] sm:$0xff]  ;;  %v9540_v2 = vld [vmem:[%s12500_s6 + $0x310] sm:$0xff] }
  0xc3   :  { %3518 = vmatmul.bf16.vlgmr.msrb.gmra.mxu0 %v10902_v22  ;;  %v918_v10 = vpop.f32.mrf.mxu1 }
  0xc4   :  { %3562 = vmatpush.bf16.msra.mxu0 %v9513_v43  ;;  %3556 = vmatpush.bf16.msrb.mxu3 %v9498_v47  ;;  %v919_v12 = vadd.f32 %v918_v10, %v906_v4  ;;  %v1865_v43 = vld [vmem:[#allocation1 + $0x1b] sm:$0xff]  ;;  %v11090_v47 = vld [vmem:[#allocation1 + $0x2d] sm:$0xff] }
  0xc5   :  { %3575 = vmatpush.bf16.msra.mxu1 %v9521_v48  ;;  %3544 = vmatmul.bf16.vlgmr.msrb.gmra.mxu2 %v10900_v21  ;;  %v9532_v21 = vld [vmem:[%s12500_s6 + $0x2d0] sm:$0xff] }
  0xc6   :  { %3588 = vmatpush.bf16.msra.mxu2 %v9529_v49  ;;  %3531 = vmatmul.bf16.vlgmr.msrb.gmra.mxu1 %v10906_v24  ;;  %v11092_v48 = vld [vmem:[#allocation1 + $0x3f] sm:$0xff] }
  0xc7   :  { %3557 = vmatmul.bf16.vlgmr.msrb.gmra.mxu3 %v10904_v23  ;;  %v9507_v23 = vld [vmem:[%s12500_s6 + $0x208] sm:$0xff]  ;;  %1871 = vst [vmem:[#allocation1] ss:$9 sm:$0xff] %v1336_v38  ;;  %v9548_v4 = vld [vmem:[%s12500_s6 + $0x350] sm:$0xff] }
  0xc8   :  { %3601 = vmatpush.bf16.msra.mxu3 %v9537_v50  ;;  %3563 = vmatpush.bf16.msra.mxu0 %v9512_v52  ;;  %v931_v14 = vpop.f32.mrf.mxu2  ;;  %v907_v22 = vpop.f32.mrf.mxu0  ;;  %v9543_v49 = vld [vmem:[%s12500_s6 + $0x328] sm:$0xff] }
  0xc9   :  { %3576 = vmatpush.bf16.msra.mxu1 %v9520_v54  ;;  %v932_v18 = vadd.f32 %v931_v14, %v919_v12  ;;  %v9551_v50 = vld [vmem:[%s12500_s6 + $0x368] sm:$0xff]  ;;  %v9542_v54 = vld [vmem:[%s12500_s6 + $0x320] sm:$0xff] }
  0xca   :  { %3589 = vmatpush.bf16.msra.mxu2 %v9528_v55  ;;  %v944_v19 = vpop.f32.mrf.mxu3  ;;  %v9567_v52 = vld [vmem:[%s12500_s6 + $0x3e8] sm:$0xff]  ;;  %v9550_v55 = vld [vmem:[%s12500_s6 + $0x360] sm:$0xff] }
  0xcb   :  { %v11036_v24 = vadd.f32 %v944_v19, %v932_v18  ;;  %v920_v28 = vpop.f32.mrf.mxu1  ;;  %v9547_v18 = vld [vmem:[%s12500_s6 + $0x348] sm:$0xff] }
  0xcc   :  { %3602 = vmatpush.bf16.msra.mxu3 %v9536_v56  ;;  %3564 = vmatpush.bf16.msra.mxu0 %v9511_v57  ;;  %v9558_v56 = vld [vmem:[%s12500_s6 + $0x3a0] sm:$0xff]  ;;  %v9555_v19 = vld [vmem:[%s12500_s6 + $0x388] sm:$0xff]  ;;  %v9577_v28 = vld [vmem:[%s12500_s6 + $0x438] sm:$0xff] }
  0xcd   :  { %3577 = vmatpush.bf16.msra.mxu1 %v9519_v58  ;;  %v9566_v58 = vld [vmem:[%s12500_s6 + $0x3e0] sm:$0xff]  ;;  %v9591_v38 = vld [vmem:[%s12500_s6 + $0x4a8] sm:$0xff] }
  0xce   :  { %3590 = vmatpush.bf16.msra.mxu2 %v9527_v59 }
  0xd0   :  { %3603 = vmatpush.bf16.msra.mxu3 %v9535_v60  ;;  %3565 = vmatpush.bf16.msra.mxu0 %v9510_v61  ;;  %v933_v31 = vpop.f32.mrf.mxu2  ;;  %v9541_v61 = vld [vmem:[%s12500_s6 + $0x318] sm:$0xff] }
  0xd1   :  { %3578 = vmatpush.bf16.msra.mxu1 %v9518_v63  ;;  %v9549_v63 = vld [vmem:[%s12500_s6 + $0x358] sm:$0xff] }
  0xd2   :  { %3591 = vmatpush.bf16.msra.mxu2 %v9526_v0  ;;  %v946_v33 = vpop.f32.mrf.mxu3  ;;  %v9557_v0 = vld [vmem:[%s12500_s6 + $0x398] sm:$0xff] }
  0xd3   :  { %v9601_v31 = vld [vmem:[%s12500_s6 + $0x4f8] sm:$0xff]  ;;  %v9584_v33 = vld [vmem:[%s12500_s6 + $0x470] sm:$0xff] }
  0xd4   :  { %3604 = vmatpush.bf16.msra.mxu3 %v9534_v1  ;;  %3566 = vmatpush.bf16.msra.mxu0 %v9509_v3  ;;  %v9565_v1 = vld [vmem:[%s12500_s6 + $0x3d8] sm:$0xff] }
  0xd5   :  { %3579 = vmatpush.bf16.msra.mxu1 %v9517_v5  ;;  %v9556_v5 = vld [vmem:[%s12500_s6 + $0x390] sm:$0xff] }
  0xd6   :  { %3592 = vmatpush.bf16.msra.mxu2 %v9525_v6 }
  0xd8   :  { %3605 = vmatpush.bf16.msra.mxu3 %v9533_v7  ;;  %3567 = vmatpush.bf16.msra.mxu0 %v9508_v11  ;;  %v9564_v11 = vld [vmem:[%s12500_s6 + $0x3d0] sm:$0xff] }
  0xd9   :  { %3580 = vmatpush.bf16.msra.mxu1 %v9516_v15  ;;  %v9539_v15 = vld [vmem:[%s12500_s6 + $0x308] sm:$0xff] }
  0xda   :  { %3593 = vmatpush.bf16.msra.mxu2 %v9524_v20  ;;  %v9563_v20 = vld [vmem:[%s12500_s6 + $0x3c8] sm:$0xff] }
  0xdc   :  { %3606 = vmatpush.bf16.msra.mxu3 %v9532_v21  ;;  %3568 = vmatpush.bf16.msra.mxu0 %v9507_v23  ;;  %v9538_v21 = vld [vmem:[%s12500_s6 + $0x300] sm:$0xff] }
  0xdd   :  { %3581 = vmatpush.bf16.msra.mxu1 %v9515_v25  ;;  %v9546_v23 = vld [vmem:[%s12500_s6 + $0x340] sm:$0xff] }
  0xde   :  { %3594 = vmatpush.bf16.msra.mxu2 %v9523_v26  ;;  %v9554_v25 = vld [vmem:[%s12500_s6 + $0x380] sm:$0xff] }
  0xe0   :  { %3607 = vmatpush.bf16.msra.mxu3 %v9531_v27  ;;  %3569 = vmatpush.bf16.msra.mxu0 %v9506_v29  ;;  %v957_v57 = vpop.f32.mrf.mxu0  ;;  %v9562_v27 = vld [vmem:[%s12500_s6 + $0x3c0] sm:$0xff]  ;;  %v9585_v29 = vld [vmem:[%s12500_s6 + $0x478] sm:$0xff] }
  0xe1   :  { %3582 = vmatpush.bf16.msra.mxu1 %v9514_v32  ;;  %v958_v59 = vadd.f32 %v957_v57, %v185_v53  ;;  %v9576_v32 = vld [vmem:[%s12500_s6 + $0x430] sm:$0xff] }
  0xe2   :  { %3595 = vmatpush.bf16.msra.mxu2 %v9522_v34  ;;  %v9592_v34 = vld [vmem:[%s12500_s6 + $0x4b0] sm:$0xff] }
  0xe3   :  { %3570 = vmatmul.bf16.vlgmr.msra.gmra.mxu0 %v1862_v8  ;;  %v970_v60 = vpop.f32.mrf.mxu1  ;;  %v186_v8 = vperm.slane %v10889_v16, 3  ;;  %v9598_v16 = vld [vmem:[%s12500_s6 + $0x4e0] sm:$0xff]  ;;  %v9580_v53 = vld [vmem:[%s12500_s6 + $0x450] sm:$0xff] }
  0xe4   :  { %3614 = vmatpush.bf16.msrb.mxu0 %v9545_v30  ;;  %3608 = vmatpush.bf16.msra.mxu3 %v9530_v35  ;;  %v971_v62 = vadd.f32 %v970_v60, %v958_v59  ;;  %v9593_v30 = vld [vmem:[%s12500_s6 + $0x4b8] sm:$0xff]  ;;  %v9600_v35 = vld [vmem:[%s12500_s6 + $0x4f0] sm:$0xff]  ;;  %v9579_v59 = vld [vmem:[%s12500_s6 + $0x448] sm:$0xff] }
  0xe5   :  { %3627 = vmatpush.bf16.msrb.mxu1 %v9553_v36  ;;  %3596 = vmatmul.bf16.vlgmr.msra.gmra.mxu2 %v1864_v9  ;;  %v9575_v36 = vld [vmem:[%s12500_s6 + $0x428] sm:$0xff]  ;;  %v9574_v9 = vld [vmem:[%s12500_s6 + $0x420] sm:$0xff] }
  0xe6   :  { %3640 = vmatpush.bf16.msrb.mxu2 %v9561_v37  ;;  %3583 = vmatmul.bf16.vlgmr.msra.gmra.mxu1 %v1863_v40  ;;  %v9583_v37 = vld [vmem:[%s12500_s6 + $0x468] sm:$0xff]  ;;  %v9590_v40 = vld [vmem:[%s12500_s6 + $0x4a0] sm:$0xff] }
  0xe7   :  { %3609 = vmatmul.bf16.vlgmr.msra.gmra.mxu3 %v1865_v43  ;;  %v9573_v43 = vld [vmem:[%s12500_s6 + $0x418] sm:$0xff]  ;;  %v9587_v60 = vld [vmem:[%s12500_s6 + $0x488] sm:$0xff] }
  0xe8   :  { %3653 = vmatpush.bf16.msrb.mxu3 %v9569_v39  ;;  %3615 = vmatpush.bf16.msrb.mxu0 %v9544_v13  ;;  %v983_v3 = vpop.f32.mrf.mxu2  ;;  %v959_v10 = vpop.f32.mrf.mxu0  ;;  %v9599_v39 = vld [vmem:[%s12500_s6 + $0x4e8] sm:$0xff]  ;;  %v9582_v13 = vld [vmem:[%s12500_s6 + $0x460] sm:$0xff] }
  0xe9   :  { %3628 = vmatpush.bf16.msrb.mxu1 %v9552_v17  ;;  %v984_v6 = vadd.f32 %v983_v3, %v971_v62  ;;  %v9595_v62 = vld [vmem:[%s12500_s6 + $0x4c8] sm:$0xff]  ;;  %v9586_v3 = vld [vmem:[%s12500_s6 + $0x480] sm:$0xff]  ;;  %v9625_v10 = vld [vmem:[%s12500_s6 + $0x5b8] sm:$0xff] }
  0xea   :  { %3641 = vmatpush.bf16.msrb.mxu2 %v9560_v42  ;;  %v996_v7 = vpop.f32.mrf.mxu3 }
  0xeb   :  { %v11143_v12 = vadd.f32 %v996_v7, %v984_v6  ;;  %v972_v14 = vpop.f32.mrf.mxu1  ;;  %v1337_v6 = vld [vmem:[%s12501_s0 + $0x18] sm:$0xff] }
  0xec   :  { %3654 = vmatpush.bf16.msrb.mxu3 %v9568_v44  ;;  %3616 = vmatpush.bf16.msrb.mxu0 %v9543_v49  ;;  %v9581_v44 = vld [vmem:[%s12500_s6 + $0x458] sm:$0xff]  ;;  %v1872_v14 = vld [vmem:[#allocation1] sm:$0xff] }
  0xed   :  { %3629 = vmatpush.bf16.msrb.mxu1 %v9551_v50  ;;  %v9572_v50 = vld [vmem:[%s12500_s6 + $0x410] sm:$0xff]  ;;  %v9617_v7 = vld [vmem:[%s12500_s6 + $0x578] sm:$0xff] }
  0xee   :  { %3642 = vmatpush.bf16.msrb.mxu2 %v9559_v51 }
  0xf0   :  { %3655 = vmatpush.bf16.msrb.mxu3 %v9567_v52  ;;  %3617 = vmatpush.bf16.msrb.mxu0 %v9542_v54  ;;  %v985_v22 = vpop.f32.mrf.mxu2  ;;  %v9588_v54 = vld [vmem:[%s12500_s6 + $0x490] sm:$0xff] }
  0xf1   :  { %3630 = vmatpush.bf16.msrb.mxu1 %v9550_v55  ;;  %v9596_v55 = vld [vmem:[%s12500_s6 + $0x4d0] sm:$0xff] }
  0xf2   :  { %3643 = vmatpush.bf16.msrb.mxu2 %v9558_v56  ;;  %v998_v26 = vpop.f32.mrf.mxu3  ;;  %v1875_v22 = vld [vmem:[#allocation1 + $0x1b] sm:$0xff] }
  0xf3   :  { %v11300_v26 = vld [vmem:[#allocation1 + $0x2d] sm:$0xff] }
  0xf4   :  { %3656 = vmatpush.bf16.msrb.mxu3 %v9566_v58  ;;  %3618 = vmatpush.bf16.msrb.mxu0 %v9541_v61  ;;  %v9571_v58 = vld [vmem:[%s12500_s6 + $0x408] sm:$0xff] }
  0xf5   :  { %3631 = vmatpush.bf16.msrb.mxu1 %v9549_v63 }
  0xf6   :  { %3644 = vmatpush.bf16.msrb.mxu2 %v9557_v0  ;;  %v9570_v0 = vld [vmem:[%s12500_s6 + $0x400] sm:$0xff] }
  0xf8   :  { %3657 = vmatpush.bf16.msrb.mxu3 %v9565_v1  ;;  %3619 = vmatpush.bf16.msrb.mxu0 %v9540_v2  ;;  %v9578_v2 = vld [vmem:[%s12500_s6 + $0x440] sm:$0xff] }
  0xf9   :  { %3632 = vmatpush.bf16.msrb.mxu1 %v9548_v4  ;;  %v9594_v4 = vld [vmem:[%s12500_s6 + $0x4c0] sm:$0xff] }
  0xfa   :  { %3645 = vmatpush.bf16.msrb.mxu2 %v9556_v5  ;;  %v9609_v5 = vld [vmem:[%s12500_s6 + $0x538] sm:$0xff] }
  0xfc   :  { %3658 = vmatpush.bf16.msrb.mxu3 %v9564_v11  ;;  %3620 = vmatpush.bf16.msrb.mxu0 %v9539_v15  ;;  %v9633_v11 = vld [vmem:[%s12500_s6 + $0x5f8] sm:$0xff]  ;;  %v1874_v15 = vld [vmem:[#allocation1 + $0x12] sm:$0xff] }
  0xfd   :  { %3633 = vmatpush.bf16.msrb.mxu1 %v9547_v18  ;;  %v9608_v18 = vld [vmem:[%s12500_s6 + $0x530] sm:$0xff] }
  0xfe   :  { %3646 = vmatpush.bf16.msrb.mxu2 %v9555_v19  ;;  %v9616_v19 = vld [vmem:[%s12500_s6 + $0x570] sm:$0xff] }
 0x100   :  { %3659 = vmatpush.bf16.msrb.mxu3 %v9563_v20  ;;  %3621 = vmatpush.bf16.msrb.mxu0 %v9538_v21  ;;  %v1009_v17 = vpop.f32.mrf.mxu0  ;;  %v9624_v20 = vld [vmem:[%s12500_s6 + $0x5b0] sm:$0xff]  ;;  %v1873_v21 = vld [vmem:[#allocation1 + $0x9] sm:$0xff] }
 0x101   :  { %3634 = vmatpush.bf16.msrb.mxu1 %v9546_v23  ;;  %v1010_v42 = vadd.f32 %v1009_v17, %v186_v8  ;;  %v11296_v23 = vld [vmem:[#allocation1 + $0x24] sm:$0xff] }
 0x102   :  { %3647 = vmatpush.bf16.msrb.mxu2 %v9554_v25  ;;  %v11298_v25 = vld [vmem:[#allocation1 + $0x36] sm:$0xff]  ;;  %v9605_v8 = vld [vmem:[%s12500_s6 + $0x518] sm:$0xff]  ;;  %v9604_v17 = vld [vmem:[%s12500_s6 + $0x510] sm:$0xff] }
 0x103   :  { %3622 = vmatmul.bf16.vlgmr.msrb.gmra.mxu0 %v11086_v45  ;;  %v9589_v45 = vld [vmem:[%s12500_s6 + $0x498] sm:$0xff] }
 0x104   :  { %3660 = vmatpush.bf16.msrb.mxu3 %v9562_v27  ;;  %3666 = vmatpush.bf16.msra.mxu0 %v9577_v28  ;;  %v11302_v27 = vld [vmem:[#allocation1 + $0x3f] sm:$0xff] }
 0x105   :  { %3679 = vmatpush.bf16.msra.mxu1 %v9585_v29  ;;  %3648 = vmatmul.bf16.vlgmr.msrb.gmra.mxu2 %v11088_v46  ;;  %v1022_v46 = vpop.f32.mrf.mxu1  ;;  %v9632_v28 = vld [vmem:[%s12500_s6 + $0x5f0] sm:$0xff]  ;;  %1881 = vst [vmem:[#allocation1] ss:$9 sm:$0xff] %v1337_v6  ;;  %v9607_v29 = vld [vmem:[%s12500_s6 + $0x528] sm:$0xff] }
 0x106   :  { %3692 = vmatpush.bf16.msra.mxu2 %v9593_v30  ;;  %3635 = vmatmul.bf16.vlgmr.msrb.gmra.mxu1 %v11090_v47  ;;  %v9597_v47 = vld [vmem:[%s12500_s6 + $0x4d8] sm:$0xff]  ;;  %v9615_v30 = vld [vmem:[%s12500_s6 + $0x568] sm:$0xff] }
 0x107   :  { %3661 = vmatmul.bf16.vlgmr.msrb.gmra.mxu3 %v11092_v48  ;;  %v1023_v48 = vadd.f32 %v1022_v46, %v1010_v42  ;;  %v9647_v6 = vld [vmem:[%s12500_s6 + $0x668] sm:$0xff] }
 0x108   :  { %3705 = vmatpush.bf16.msra.mxu3 %v9601_v31  ;;  %3667 = vmatpush.bf16.msra.mxu0 %v9576_v32  ;;  %v1035_v49 = vpop.f32.mrf.mxu2  ;;  %v1011_v57 = vpop.f32.mrf.mxu0  ;;  %v9623_v31 = vld [vmem:[%s12500_s6 + $0x5a8] sm:$0xff] }
 0x109   :  { %3680 = vmatpush.bf16.msra.mxu1 %v9584_v33  ;;  %v1036_v51 = vadd.f32 %v1035_v49, %v1023_v48  ;;  %v9631_v32 = vld [vmem:[%s12500_s6 + $0x5e8] sm:$0xff]  ;;  %v9606_v33 = vld [vmem:[%s12500_s6 + $0x520] sm:$0xff] }
 0x10a   :  { %3693 = vmatpush.bf16.msra.mxu2 %v9592_v34  ;;  %v1048_v52 = vpop.f32.mrf.mxu3  ;;  %v9614_v34 = vld [vmem:[%s12500_s6 + $0x560] sm:$0xff] }
 0x10b   :  { %v11246_v56 = vadd.f32 %v1048_v52, %v1036_v51  ;;  %v9611_v51 = vld [vmem:[%s12500_s6 + $0x548] sm:$0xff] }
 0x10c   :  { %3706 = vmatpush.bf16.msra.mxu3 %v9600_v35  ;;  %3668 = vmatpush.bf16.msra.mxu0 %v9575_v36  ;;  %v9622_v35 = vld [vmem:[%s12500_s6 + $0x5a0] sm:$0xff]  ;;  %v9619_v52 = vld [vmem:[%s12500_s6 + $0x588] sm:$0xff] }
 0x10d   :  { %3681 = vmatpush.bf16.msra.mxu1 %v9583_v37  ;;  %v1024_v61 = vpop.f32.mrf.mxu1  ;;  %v9630_v37 = vld [vmem:[%s12500_s6 + $0x5e0] sm:$0xff] }
 0x10e   :  { %3694 = vmatpush.bf16.msra.mxu2 %v9591_v38  ;;  %v9641_v61 = vld [vmem:[%s12500_s6 + $0x638] sm:$0xff] }
 0x110   :  { %3707 = vmatpush.bf16.msra.mxu3 %v9599_v39  ;;  %3669 = vmatpush.bf16.msra.mxu0 %v9574_v9  ;;  %v1037_v63 = vpop.f32.mrf.mxu2  ;;  %v9613_v9 = vld [vmem:[%s12500_s6 + $0x558] sm:$0xff] }
 0x111   :  { %3682 = vmatpush.bf16.msra.mxu1 %v9582_v13  ;;  %v9621_v13 = vld [vmem:[%s12500_s6 + $0x598] sm:$0xff] }
 0x112   :  { %3695 = vmatpush.bf16.msra.mxu2 %v9590_v40  ;;  %v1050_v1 = vpop.f32.mrf.mxu3  ;;  %v9629_v40 = vld [vmem:[%s12500_s6 + $0x5d8] sm:$0xff] }
 0x113   :  { %v9657_v63 = vld [vmem:[%s12500_s6 + $0x6b8] sm:$0xff]  ;;  %v9640_v1 = vld [vmem:[%s12500_s6 + $0x630] sm:$0xff] }
 0x114   :  { %3708 = vmatpush.bf16.msra.mxu3 %v9598_v16  ;;  %3670 = vmatpush.bf16.msra.mxu0 %v9573_v43 }
 0x115   :  { %3683 = vmatpush.bf16.msra.mxu1 %v9581_v44  ;;  %v9612_v44 = vld [vmem:[%s12500_s6 + $0x550] sm:$0xff] }
 0x116   :  { %3696 = vmatpush.bf16.msra.mxu2 %v9589_v45  ;;  %v9620_v45 = vld [vmem:[%s12500_s6 + $0x590] sm:$0xff] }
 0x118   :  { %3709 = vmatpush.bf16.msra.mxu3 %v9597_v47  ;;  %3671 = vmatpush.bf16.msra.mxu0 %v9572_v50  ;;  %v9628_v47 = vld [vmem:[%s12500_s6 + $0x5d0] sm:$0xff]  ;;  %v9603_v50 = vld [vmem:[%s12500_s6 + $0x508] sm:$0xff] }
 0x119   :  { %3684 = vmatpush.bf16.msra.mxu1 %v9580_v53  ;;  %v9627_v53 = vld [vmem:[%s12500_s6 + $0x5c8] sm:$0xff] }
 0x11a   :  { %3697 = vmatpush.bf16.msra.mxu2 %v9588_v54 }
 0x11c   :  { %3710 = vmatpush.bf16.msra.mxu3 %v9596_v55  ;;  %3672 = vmatpush.bf16.msra.mxu0 %v9571_v58  ;;  %v9602_v55 = vld [vmem:[%s12500_s6 + $0x500] sm:$0xff] }
 0x11d   :  { %3685 = vmatpush.bf16.msra.mxu1 %v9579_v59  ;;  %v9610_v58 = vld [vmem:[%s12500_s6 + $0x540] sm:$0xff] }
 0x11e   :  { %3698 = vmatpush.bf16.msra.mxu2 %v9587_v60  ;;  %v9618_v59 = vld [vmem:[%s12500_s6 + $0x580] sm:$0xff] }
 0x11f   :  { %v9626_v60 = vld [vmem:[%s12500_s6 + $0x5c0] sm:$0xff] }
 0x120   :  { %3711 = vmatpush.bf16.msra.mxu3 %v9595_v62  ;;  %3673 = vmatpush.bf16.msra.mxu0 %v9570_v0  ;;  %v3467_v36 = vpop.f32.mrf.mxu0  ;;  %v9649_v62 = vld [vmem:[%s12500_s6 + $0x678] sm:$0xff] }
 0x121   :  { %3686 = vmatpush.bf16.msra.mxu1 %v9578_v2  ;;  %v9665_v0 = vld [vmem:[%s12500_s6 + $0x6f8] sm:$0xff]  ;;  %v9648_v2 = vld [vmem:[%s12500_s6 + $0x670] sm:$0xff] }
 0x122   :  { %3699 = vmatpush.bf16.msra.mxu2 %v9586_v3  ;;  %v9656_v3 = vld [vmem:[%s12500_s6 + $0x6b0] sm:$0xff] }
 0x123   :  { %3674 = vmatmul.bf16.vlgmr.msra.gmra.mxu0 %v1872_v14  ;;  %v3480_v38 = vpop.f32.mrf.mxu1  ;;  %v9646_v14 = vld [vmem:[%s12500_s6 + $0x660] sm:$0xff] }
 0x124   :  { %3712 = vmatpush.bf16.msra.mxu3 %v9594_v4  ;;  %3718 = vmatpush.bf16.msrb.mxu0 %v9609_v5  ;;  %v3481_v39 = vadd.f32 %v3480_v38, %v3467_v36  ;;  %v9664_v4 = vld [vmem:[%s12500_s6 + $0x6f0] sm:$0xff]  ;;  %v9639_v5 = vld [vmem:[%s12500_s6 + $0x628] sm:$0xff] }
 0x125   :  { %3731 = vmatpush.bf16.msrb.mxu1 %v9617_v7  ;;  %3700 = vmatmul.bf16.vlgmr.msra.gmra.mxu2 %v1874_v15  ;;  %v9655_v7 = vld [vmem:[%s12500_s6 + $0x6a8] sm:$0xff]  ;;  %v9654_v15 = vld [vmem:[%s12500_s6 + $0x6a0] sm:$0xff]  ;;  %v9660_v36 = vld [vmem:[%s12500_s6 + $0x6d0] sm:$0xff] }
 0x126   :  { %3744 = vmatpush.bf16.msrb.mxu2 %v9625_v10  ;;  %3687 = vmatmul.bf16.vlgmr.msra.gmra.mxu1 %v1873_v21  ;;  %v9663_v10 = vld [vmem:[%s12500_s6 + $0x6e8] sm:$0xff]  ;;  %v9637_v21 = vld [vmem:[%s12500_s6 + $0x618] sm:$0xff] }
 0x127   :  { %3713 = vmatmul.bf16.vlgmr.msra.gmra.mxu3 %v1875_v22 }
 0x128   :  { %3757 = vmatpush.bf16.msrb.mxu3 %v9633_v11  ;;  %3719 = vmatpush.bf16.msrb.mxu0 %v9608_v18  ;;  %v3493_v16 = vpop.f32.mrf.mxu2  ;;  %v3469_v46 = vpop.f32.mrf.mxu0  ;;  %v9638_v11 = vld [vmem:[%s12500_s6 + $0x620] sm:$0xff] }
 0x129   :  { %3732 = vmatpush.bf16.msrb.mxu1 %v9616_v19  ;;  %v3494_v42 = vadd.f32 %v3493_v16, %v3481_v39  ;;  %v9662_v19 = vld [vmem:[%s12500_s6 + $0x6e0] sm:$0xff]  ;;  %v9643_v39 = vld [vmem:[%s12500_s6 + $0x648] sm:$0xff]  ;;  %v9689_v46 = vld [vmem:[%s12500_s6 + $0x7b8] sm:$0xff] }
 0x12a   :  { %3745 = vmatpush.bf16.msrb.mxu2 %v9624_v20  ;;  %v3506_v43 = vpop.f32.mrf.mxu3  ;;  %v9634_v16 = vld [vmem:[%s12500_s6 + $0x600] sm:$0xff] }
 0x12b   :  { %v3507_v48 = vadd.f32 %v3506_v43, %v3494_v42  ;;  %v3482_v49 = vpop.f32.mrf.mxu1  ;;  %v9650_v42 = vld [vmem:[%s12500_s6 + $0x680] sm:$0xff] }
 0x12c   :  { %3758 = vmatpush.bf16.msrb.mxu3 %v9632_v28  ;;  %3720 = vmatpush.bf16.msrb.mxu0 %v9607_v29  ;;  %v9658_v43 = vld [vmem:[%s12500_s6 + $0x6c0] sm:$0xff] }
 0x12d   :  { %3733 = vmatpush.bf16.msrb.mxu1 %v9615_v30  ;;  %v1884_v49 = vld [vmem:[#allocation1 + $0x12] sm:$0xff] }
 0x12e   :  { %3746 = vmatpush.bf16.msrb.mxu2 %v9623_v31  ;;  %v9636_v31 = vld [vmem:[%s12500_s6 + $0x610] sm:$0xff] }
 0x130   :  { %3759 = vmatpush.bf16.msrb.mxu3 %v9631_v32  ;;  %3721 = vmatpush.bf16.msrb.mxu0 %v9606_v33  ;;  %v3495_v54 = vpop.f32.mrf.mxu2  ;;  %v9644_v32 = vld [vmem:[%s12500_s6 + $0x650] sm:$0xff] }
 0x131   :  { %3734 = vmatpush.bf16.msrb.mxu1 %v9614_v34  ;;  %v9652_v33 = vld [vmem:[%s12500_s6 + $0x690] sm:$0xff] }
 0x132   :  { %3747 = vmatpush.bf16.msrb.mxu2 %v9622_v35  ;;  %v3508_v57 = vpop.f32.mrf.mxu3  ;;  %v9688_v54 = vld [vmem:[%s12500_s6 + $0x7b0] sm:$0xff] }
 0x133   :  { %v9671_v57 = vld [vmem:[%s12500_s6 + $0x728] sm:$0xff] }
 0x134   :  { %3760 = vmatpush.bf16.msrb.mxu3 %v9630_v37  ;;  %3722 = vmatpush.bf16.msrb.mxu0 %v9605_v8  ;;  %v9635_v37 = vld [vmem:[%s12500_s6 + $0x608] sm:$0xff] }
 0x135   :  { %3735 = vmatpush.bf16.msrb.mxu1 %v9613_v9  ;;  %v9651_v8 = vld [vmem:[%s12500_s6 + $0x688] sm:$0xff] }
 0x136   :  { %3748 = vmatpush.bf16.msrb.mxu2 %v9621_v13  ;;  %v9659_v9 = vld [vmem:[%s12500_s6 + $0x6c8] sm:$0xff] }
 0x138   :  { %3761 = vmatpush.bf16.msrb.mxu3 %v9629_v40  ;;  %3723 = vmatpush.bf16.msrb.mxu0 %v9604_v17  ;;  %v9642_v17 = vld [vmem:[%s12500_s6 + $0x640] sm:$0xff] }
 0x139   :  { %3736 = vmatpush.bf16.msrb.mxu1 %v9612_v44  ;;  %v9673_v44 = vld [vmem:[%s12500_s6 + $0x738] sm:$0xff] }
 0x13a   :  { %3749 = vmatpush.bf16.msrb.mxu2 %v9620_v45  ;;  %v9681_v45 = vld [vmem:[%s12500_s6 + $0x778] sm:$0xff] }
 0x13c   :  { %3762 = vmatpush.bf16.msrb.mxu3 %v9628_v47  ;;  %3724 = vmatpush.bf16.msrb.mxu0 %v9603_v50  ;;  %v9697_v47 = vld [vmem:[%s12500_s6 + $0x7f8] sm:$0xff] }
 0x13d   :  { %3737 = vmatpush.bf16.msrb.mxu1 %v9611_v51  ;;  %v1883_v50 = vld [vmem:[#allocation1 + $0x9] sm:$0xff]  ;;  %v9672_v51 = vld [vmem:[%s12500_s6 + $0x730] sm:$0xff] }
 0x13e   :  { %3750 = vmatpush.bf16.msrb.mxu2 %v9619_v52  ;;  %v1885_v52 = vld [vmem:[#allocation1 + $0x1b] sm:$0xff] }
 0x140   :  { %3763 = vmatpush.bf16.msrb.mxu3 %v9627_v53  ;;  %3725 = vmatpush.bf16.msrb.mxu0 %v9602_v55  ;;  %v3519_v18 = vpop.f32.mrf.mxu0  ;;  %v9680_v53 = vld [vmem:[%s12500_s6 + $0x770] sm:$0xff] }
 0x141   :  { %3738 = vmatpush.bf16.msrb.mxu1 %v9610_v58  ;;  %v3520_v20 = vadd.f32 %v3519_v18, %v3507_v48  ;;  %v1882_v48 = vld [vmem:[#allocation1] sm:$0xff]  ;;  %v9679_v58 = vld [vmem:[%s12500_s6 + $0x768] sm:$0xff] }
 0x142   :  { %3751 = vmatpush.bf16.msrb.mxu2 %v9618_v59  ;;  %v9696_v55 = vld [vmem:[%s12500_s6 + $0x7f0] sm:$0xff]  ;;  %v9687_v59 = vld [vmem:[%s12500_s6 + $0x7a8] sm:$0xff] }
 0x143   :  { %3726 = vmatmul.bf16.vlgmr.msrb.gmra.mxu0 %v11296_v23  ;;  %v3532_v22 = vpop.f32.mrf.mxu1  ;;  %v9645_v23 = vld [vmem:[%s12500_s6 + $0x658] sm:$0xff] }
 0x144   :  { %3764 = vmatpush.bf16.msrb.mxu3 %v9626_v60  ;;  %3770 = vmatpush.bf16.msra.mxu0 %v9641_v61  ;;  %v9695_v60 = vld [vmem:[%s12500_s6 + $0x7e8] sm:$0xff] }
 0x145   :  { %3783 = vmatpush.bf16.msra.mxu1 %v9649_v62  ;;  %3752 = vmatmul.bf16.vlgmr.msrb.gmra.mxu2 %v11298_v25  ;;  %v9653_v25 = vld [vmem:[%s12500_s6 + $0x698] sm:$0xff] }
 0x146   :  { %3796 = vmatpush.bf16.msra.mxu2 %v9657_v63  ;;  %3739 = vmatmul.bf16.vlgmr.msrb.gmra.mxu1 %v11300_v26  ;;  %v3533_v26 = vadd.f32 %v3532_v22, %v3520_v20  ;;  %v9670_v63 = vld [vmem:[%s12500_s6 + $0x720] sm:$0xff]  ;;  %v9676_v22 = vld [vmem:[%s12500_s6 + $0x750] sm:$0xff] }
 0x147   :  { %3765 = vmatmul.bf16.vlgmr.msrb.gmra.mxu3 %v11302_v27  ;;  %v9661_v27 = vld [vmem:[%s12500_s6 + $0x6d8] sm:$0xff] }
 0x148   :  { %3809 = vmatpush.bf16.msra.mxu3 %v9665_v0  ;;  %3771 = vmatpush.bf16.msra.mxu0 %v9640_v1  ;;  %v3545_v28 = vpop.f32.mrf.mxu2  ;;  %v3521_v35 = vpop.f32.mrf.mxu0  ;;  %v9678_v1 = vld [vmem:[%s12500_s6 + $0x760] sm:$0xff] }
 0x149   :  { %3784 = vmatpush.bf16.msra.mxu1 %v9648_v2  ;;  %v3546_v29 = vadd.f32 %v3545_v28, %v3533_v26  ;;  %v9686_v2 = vld [vmem:[%s12500_s6 + $0x7a0] sm:$0xff]  ;;  %v9667_v26 = vld [vmem:[%s12500_s6 + $0x708] sm:$0xff] }
 0x14a   :  { %3797 = vmatpush.bf16.msra.mxu2 %v9656_v3  ;;  %v3558_v30 = vpop.f32.mrf.mxu3  ;;  %v9683_v28 = vld [vmem:[%s12500_s6 + $0x788] sm:$0xff]  ;;  %v1076_v35 = vld [vmem:[%s12503_s2] sm:$0xff] }
 0x14b   :  { %v3559_v34 = vadd.f32 %v3558_v30, %v3546_v29  ;;  %v3534_v38 = vpop.f32.mrf.mxu1  ;;  %v9691_v29 = vld [vmem:[%s12500_s6 + $0x7c8] sm:$0xff]  ;;  %v1886_v30 = vld [vmem:[#allocation1 + $0x24] sm:$0xff] }
 0x14c   :  { %3810 = vmatpush.bf16.msra.mxu3 %v9664_v4  ;;  %3772 = vmatpush.bf16.msra.mxu0 %v9639_v5  ;;  %v9694_v4 = vld [vmem:[%s12500_s6 + $0x7e0] sm:$0xff]  ;;  %v9669_v5 = vld [vmem:[%s12500_s6 + $0x718] sm:$0xff] }
 0x14d   :  { %3785 = vmatpush.bf16.msra.mxu1 %v9647_v6  ;;  %v9677_v6 = vld [vmem:[%s12500_s6 + $0x758] sm:$0xff]  ;;  %v9674_v38 = vld [vmem:[%s12500_s6 + $0x740] sm:$0xff] }
 0x14e   :  { %3798 = vmatpush.bf16.msra.mxu2 %v9655_v7  ;;  %v9685_v7 = vld [vmem:[%s12500_s6 + $0x798] sm:$0xff] }
 0x150   :  { %3811 = vmatpush.bf16.msra.mxu3 %v9663_v10  ;;  %3773 = vmatpush.bf16.msra.mxu0 %v9638_v11  ;;  %v3547_v13 = vpop.f32.mrf.mxu2  ;;  %v9693_v11 = vld [vmem:[%s12500_s6 + $0x7d8] sm:$0xff] }
 0x151   :  { %3786 = vmatpush.bf16.msra.mxu1 %v9646_v14  ;;  %v9329_v13 = vld [vmem:[%s12504_s8 + $0x78] sm:$0xff] }
 0x152   :  { %3799 = vmatpush.bf16.msra.mxu2 %v9654_v15  ;;  %v3560_v40 = vpop.f32.mrf.mxu3 }
 0x153   :  { %v9337_v40 = vld [vmem:[%s12504_s8 + $0xb8] sm:$0xff] }
 0x154   :  { %3812 = vmatpush.bf16.msra.mxu3 %v9662_v19  ;;  %3774 = vmatpush.bf16.msra.mxu0 %v9637_v21  ;;  %v9668_v19 = vld [vmem:[%s12500_s6 + $0x710] sm:$0xff] }
 0x155   :  { %3787 = vmatpush.bf16.msra.mxu1 %v9645_v23  ;;  %v9684_v23 = vld [vmem:[%s12500_s6 + $0x790] sm:$0xff] }
 0x156   :  { %3800 = vmatpush.bf16.msra.mxu2 %v9653_v25  ;;  %v9692_v25 = vld [vmem:[%s12500_s6 + $0x7d0] sm:$0xff] }
 0x158   :  { %3813 = vmatpush.bf16.msra.mxu3 %v9661_v27  ;;  %3775 = vmatpush.bf16.msra.mxu0 %v9636_v31  ;;  %v9675_v27 = vld [vmem:[%s12500_s6 + $0x748] sm:$0xff] }
 0x159   :  { %3788 = vmatpush.bf16.msra.mxu1 %v9644_v32  ;;  %v1888_v31 = vld [vmem:[#allocation1 + $0x36] sm:$0xff]  ;;  %v1887_v32 = vld [vmem:[#allocation1 + $0x2d] sm:$0xff] }
 0x15a   :  { %3801 = vmatpush.bf16.msra.mxu2 %v9652_v33  ;;  %v1889_v33 = vld [vmem:[#allocation1 + $0x3f] sm:$0xff] }
 0x15b   :  { %3875 = vst [vmem:[#allocation1] ss:$9 sm:$0xff] %v1076_v35  ;;  %v9360_v35 = vld [vmem:[%s12504_s8 + $0x170] sm:$0xff] }
 0x15c   :  { %3814 = vmatpush.bf16.msra.mxu3 %v9660_v36  ;;  %3776 = vmatpush.bf16.msra.mxu0 %v9635_v37  ;;  %v9666_v37 = vld [vmem:[%s12500_s6 + $0x700] sm:$0xff] }
 0x15d   :  { %3789 = vmatpush.bf16.msra.mxu1 %v9643_v39  ;;  %v9682_v39 = vld [vmem:[%s12500_s6 + $0x780] sm:$0xff] }
 0x15e   :  { %3802 = vmatpush.bf16.msra.mxu2 %v9651_v8  ;;  %v9690_v8 = vld [vmem:[%s12500_s6 + $0x7c0] sm:$0xff] }
 0x160   :  { %3815 = vmatpush.bf16.msra.mxu3 %v9659_v9  ;;  %3777 = vmatpush.bf16.msra.mxu0 %v9634_v16  ;;  %v3571_v61 = vpop.f32.mrf.mxu0  ;;  %v9321_v9 = vld [vmem:[%s12504_s8 + $0x38] sm:$0xff] }
 0x161   :  { %3790 = vmatpush.bf16.msra.mxu1 %v9642_v17  ;;  %v3572_v62 = vadd.f32 %v3571_v61, %v3559_v34  ;;  %v9345_v16 = vld [vmem:[%s12504_s8 + $0xf8] sm:$0xff]  ;;  %v9320_v17 = vld [vmem:[%s12504_s8 + $0x30] sm:$0xff] }
 0x162   :  { %3803 = vmatpush.bf16.msra.mxu2 %v9650_v42  ;;  %v9328_v42 = vld [vmem:[%s12504_s8 + $0x70] sm:$0xff] }
 0x163   :  { %3778 = vmatmul.bf16.vlgmr.msra.gmra.mxu0 %v1882_v48  ;;  %v3584_v0 = vpop.f32.mrf.mxu1  ;;  %v9343_v48 = vld [vmem:[%s12504_s8 + $0xe8] sm:$0xff] }
 0x164   :  { %3816 = vmatpush.bf16.msra.mxu3 %v9658_v43  ;;  %3822 = vmatpush.bf16.msrb.mxu0 %v9673_v44  ;;  %v3585_v3 = vadd.f32 %v3584_v0, %v3572_v62  ;;  %v9336_v43 = vld [vmem:[%s12504_s8 + $0xb0] sm:$0xff]  ;;  %v9341_v62 = vld [vmem:[%s12504_s8 + $0xd8] sm:$0xff] }
 0x165   :  { %3835 = vmatpush.bf16.msrb.mxu1 %v9681_v45  ;;  %3804 = vmatmul.bf16.vlgmr.msra.gmra.mxu2 %v1884_v49  ;;  %v9344_v44 = vld [vmem:[%s12504_s8 + $0xf0] sm:$0xff]  ;;  %v9319_v45 = vld [vmem:[%s12504_s8 + $0x28] sm:$0xff] }
 0x166   :  { %3848 = vmatpush.bf16.msrb.mxu2 %v9689_v46  ;;  %3791 = vmatmul.bf16.vlgmr.msra.gmra.mxu1 %v1883_v50  ;;  %v9327_v46 = vld [vmem:[%s12504_s8 + $0x68] sm:$0xff] }
 0x167   :  { %3817 = vmatmul.bf16.vlgmr.msra.gmra.mxu3 %v1885_v52 }
 0x168   :  { %3861 = vmatpush.bf16.msrb.mxu3 %v9697_v47  ;;  %3823 = vmatpush.bf16.msrb.mxu0 %v9672_v51  ;;  %v3597_v10 = vpop.f32.mrf.mxu2  ;;  %v3573_v18 = vpop.f32.mrf.mxu0  ;;  %v9335_v47 = vld [vmem:[%s12504_s8 + $0xa8] sm:$0xff]  ;;  %v9318_v51 = vld [vmem:[%s12504_s8 + $0x20] sm:$0xff] }
 0x169   :  { %3836 = vmatpush.bf16.msrb.mxu1 %v9680_v53  ;;  %v3598_v14 = vadd.f32 %v3597_v10, %v3585_v3  ;;  %v9326_v53 = vld [vmem:[%s12504_s8 + $0x60] sm:$0xff]  ;;  %v9315_v10 = vld [vmem:[%s12504_s8 + $0x8] sm:$0xff] }
 0x16a   :  { %3849 = vmatpush.bf16.msrb.mxu2 %v9688_v54  ;;  %v3610_v15 = vpop.f32.mrf.mxu3  ;;  %v9334_v54 = vld [vmem:[%s12504_s8 + $0xa0] sm:$0xff] }
 0x16b   :  { %v3586_v20 = vpop.f32.mrf.mxu1  ;;  %v3611_v21 = vadd.f32 %v3610_v15, %v3598_v14  ;;  %v9331_v14 = vld [vmem:[%s12504_s8 + $0x88] sm:$0xff] }
 0x16c   :  { %3862 = vmatpush.bf16.msrb.mxu3 %v9696_v55  ;;  %3824 = vmatpush.bf16.msrb.mxu0 %v9671_v57  ;;  %v9342_v57 = vld [vmem:[%s12504_s8 + $0xe0] sm:$0xff]  ;;  %v9339_v15 = vld [vmem:[%s12504_s8 + $0xc8] sm:$0xff] }
 0x16d   :  { %3837 = vmatpush.bf16.msrb.mxu1 %v9679_v58  ;;  %v9317_v58 = vld [vmem:[%s12504_s8 + $0x18] sm:$0xff]  ;;  %v9314_v20 = vld [vmem:[%s12504_s8] sm:$0xff] }
 0x16e   :  { %3850 = vmatpush.bf16.msrb.mxu2 %v9687_v59  ;;  %v9325_v59 = vld [vmem:[%s12504_s8 + $0x58] sm:$0xff] }
 0x170   :  { %3863 = vmatpush.bf16.msrb.mxu3 %v9695_v60  ;;  %3825 = vmatpush.bf16.msrb.mxu0 %v9670_v63  ;;  %v3599_v34 = vpop.f32.mrf.mxu2  ;;  %v9333_v60 = vld [vmem:[%s12504_s8 + $0x98] sm:$0xff] }
 0x171   :  { %3838 = vmatpush.bf16.msrb.mxu1 %v9678_v1  ;;  %v9352_v34 = vld [vmem:[%s12504_s8 + $0x130] sm:$0xff] }
 0x172   :  { %3851 = vmatpush.bf16.msrb.mxu2 %v9686_v2  ;;  %v3612_v36 = vpop.f32.mrf.mxu3  ;;  %v9316_v2 = vld [vmem:[%s12504_s8 + $0x10] sm:$0xff] }
 0x173   :  { %v9368_v36 = vld [vmem:[%s12504_s8 + $0x1b0] sm:$0xff] }
 0x174   :  { %3864 = vmatpush.bf16.msrb.mxu3 %v9694_v4  ;;  %3826 = vmatpush.bf16.msrb.mxu0 %v9669_v5  ;;  %v9324_v5 = vld [vmem:[%s12504_s8 + $0x50] sm:$0xff] }
 0x175   :  { %3839 = vmatpush.bf16.msrb.mxu1 %v9677_v6  ;;  %v9332_v6 = vld [vmem:[%s12504_s8 + $0x90] sm:$0xff] }
 0x176   :  { %3852 = vmatpush.bf16.msrb.mxu2 %v9685_v7  ;;  %v9340_v7 = vld [vmem:[%s12504_s8 + $0xd0] sm:$0xff] }
 0x178   :  { %3865 = vmatpush.bf16.msrb.mxu3 %v9693_v11  ;;  %3827 = vmatpush.bf16.msrb.mxu0 %v9668_v19  ;;  %v9323_v11 = vld [vmem:[%s12504_s8 + $0x48] sm:$0xff] }
 0x179   :  { %3840 = vmatpush.bf16.msrb.mxu1 %v9676_v22  ;;  %v9330_v22 = vld [vmem:[%s12504_s8 + $0x80] sm:$0xff] }
 0x17a   :  { %3853 = vmatpush.bf16.msrb.mxu2 %v9684_v23  ;;  %v9338_v23 = vld [vmem:[%s12504_s8 + $0xc0] sm:$0xff] }
 0x17c   :  { %3866 = vmatpush.bf16.msrb.mxu3 %v9692_v25  ;;  %3828 = vmatpush.bf16.msrb.mxu0 %v9667_v26  ;;  %v9353_v25 = vld [vmem:[%s12504_s8 + $0x138] sm:$0xff] }
 0x17d   :  { %3841 = vmatpush.bf16.msrb.mxu1 %v9675_v27  ;;  %v9361_v26 = vld [vmem:[%s12504_s8 + $0x178] sm:$0xff] }
 0x17e   :  { %3854 = vmatpush.bf16.msrb.mxu2 %v9683_v28  ;;  %v9369_v27 = vld [vmem:[%s12504_s8 + $0x1b8] sm:$0xff] }
 0x17f   :  { %v9377_v28 = vld [vmem:[%s12504_s8 + $0x1f8] sm:$0xff] }
 0x180   :  { %3867 = vmatpush.bf16.msrb.mxu3 %v9691_v29  ;;  %3829 = vmatpush.bf16.msrb.mxu0 %v9666_v37  ;;  %v3623_v49 = vpop.f32.mrf.mxu0  ;;  %v1077_v29 = vld [vmem:[%s12503_s2 + $0x8] sm:$0xff]  ;;  %v11700_v37 = vld [vmem:[#allocation1 + $0x24] sm:$0xff] }
 0x181   :  { %3842 = vmatpush.bf16.msrb.mxu1 %v9674_v38  ;;  %v3624_v50 = vadd.f32 %v3623_v49, %v3611_v21  ;;  %v9322_v21 = vld [vmem:[%s12504_s8 + $0x40] sm:$0xff] }
 0x182   :  { %3855 = vmatpush.bf16.msrb.mxu2 %v9682_v39  ;;  %v11702_v38 = vld [vmem:[#allocation1 + $0x36] sm:$0xff]  ;;  %v11704_v39 = vld [vmem:[#allocation1 + $0x2d] sm:$0xff] }
 0x183   :  { %3830 = vmatmul.bf16.vlgmr.msrb.gmra.mxu0 %v1886_v30  ;;  %v3636_v52 = vpop.f32.mrf.mxu1  ;;  %v3876_v30 = vld [vmem:[#allocation1] sm:$0xff]  ;;  %v9374_v49 = vld [vmem:[%s12504_s8 + $0x1e0] sm:$0xff] }
 0x184   :  { %3868 = vmatpush.bf16.msrb.mxu3 %v9690_v8  ;;  %4678 = vmatpush.bf16.msra.mxu0 %v9321_v9  ;;  %v3637_v55 = vadd.f32 %v3636_v52, %v3624_v50  ;;  %v11706_v8 = vld [vmem:[#allocation1 + $0x3f] sm:$0xff]  ;;  %v9349_v50 = vld [vmem:[%s12504_s8 + $0x118] sm:$0xff] }
 0x185   :  { %4691 = vmatpush.bf16.msra.mxu1 %v9329_v13  ;;  %3856 = vmatmul.bf16.vlgmr.msrb.gmra.mxu2 %v1888_v31  ;;  %v3878_v31 = vld [vmem:[#allocation1 + $0x12] sm:$0xff]  ;;  %v9376_v9 = vld [vmem:[%s12504_s8 + $0x1f0] sm:$0xff]  ;;  %v9365_v52 = vld [vmem:[%s12504_s8 + $0x198] sm:$0xff] }
 0x186   :  { %4704 = vmatpush.bf16.msra.mxu2 %v9337_v40  ;;  %3843 = vmatmul.bf16.vlgmr.msrb.gmra.mxu1 %v1887_v32  ;;  %v3877_v32 = vld [vmem:[#allocation1 + $0x9] sm:$0xff]  ;;  %v9351_v13 = vld [vmem:[%s12504_s8 + $0x128] sm:$0xff] }
 0x187   :  { %3869 = vmatmul.bf16.vlgmr.msrb.gmra.mxu3 %v1889_v33  ;;  %v3879_v33 = vld [vmem:[#allocation1 + $0x1b] sm:$0xff] }
 0x188   :  { %4717 = vmatpush.bf16.msra.mxu3 %v9345_v16  ;;  %4679 = vmatpush.bf16.msra.mxu0 %v9320_v17  ;;  %v3649_v61 = vpop.f32.mrf.mxu2  ;;  %v3625_v1 = vpop.f32.mrf.mxu0  ;;  %3885 = vst [vmem:[#allocation1] ss:$9 sm:$0xff] %v1077_v29  ;;  %v9359_v40 = vld [vmem:[%s12504_s8 + $0x168] sm:$0xff] }
 0x189   :  { %4692 = vmatpush.bf16.msra.mxu1 %v9328_v42  ;;  %v3650_v63 = vadd.f32 %v3649_v61, %v3637_v55  ;;  %v9367_v16 = vld [vmem:[%s12504_s8 + $0x1a8] sm:$0xff] }
 0x18a   :  { %4705 = vmatpush.bf16.msra.mxu2 %v9336_v43  ;;  %v3662_v0 = vpop.f32.mrf.mxu3  ;;  %v9375_v17 = vld [vmem:[%s12504_s8 + $0x1e8] sm:$0xff] }
 0x18b   :  { %v3638_v3 = vpop.f32.mrf.mxu1  ;;  %v11641_v4 = vadd.f32 %v3662_v0, %v3650_v63  ;;  %v9364_v63 = vld [vmem:[%s12504_s8 + $0x190] sm:$0xff]  ;;  %v9347_v1 = vld [vmem:[%s12504_s8 + $0x108] sm:$0xff] }
 0x18c   :  { %4718 = vmatpush.bf16.msra.mxu3 %v9344_v44  ;;  %4680 = vmatpush.bf16.msra.mxu0 %v9319_v45  ;;  %v9350_v44 = vld [vmem:[%s12504_s8 + $0x120] sm:$0xff]  ;;  %v9372_v0 = vld [vmem:[%s12504_s8 + $0x1d0] sm:$0xff]  ;;  %v9363_v3 = vld [vmem:[%s12504_s8 + $0x188] sm:$0xff] }
 0x18d   :  { %4693 = vmatpush.bf16.msra.mxu1 %v9327_v46  ;;  %v9358_v46 = vld [vmem:[%s12504_s8 + $0x160] sm:$0xff]  ;;  %v9407_v29 = vld [vmem:[%s12504_s8 + $0x2e8] sm:$0xff] }
 0x18e   :  { %4706 = vmatpush.bf16.msra.mxu2 %v9335_v47  ;;  %v9366_v47 = vld [vmem:[%s12504_s8 + $0x1a0] sm:$0xff] }
 0x190   :  { %4719 = vmatpush.bf16.msra.mxu3 %v9343_v48  ;;  %4681 = vmatpush.bf16.msra.mxu0 %v9318_v51  ;;  %v3651_v18 = vpop.f32.mrf.mxu2  ;;  %v9357_v51 = vld [vmem:[%s12504_s8 + $0x158] sm:$0xff] }
 0x191   :  { %4694 = vmatpush.bf16.msra.mxu1 %v9326_v53  ;;  %v9393_v18 = vld [vmem:[%s12504_s8 + $0x278] sm:$0xff] }
 0x192   :  { %4707 = vmatpush.bf16.msra.mxu2 %v9334_v54  ;;  %v3664_v19 = vpop.f32.mrf.mxu3  ;;  %v9373_v54 = vld [vmem:[%s12504_s8 + $0x1d8] sm:$0xff] }
 0x193   :  { %v9401_v19 = vld [vmem:[%s12504_s8 + $0x2b8] sm:$0xff] }
 0x194   :  { %4720 = vmatpush.bf16.msra.mxu3 %v9342_v57  ;;  %4682 = vmatpush.bf16.msra.mxu0 %v9317_v58 }
 0x195   :  { %4695 = vmatpush.bf16.msra.mxu1 %v9325_v59  ;;  %v9348_v59 = vld [vmem:[%s12504_s8 + $0x110] sm:$0xff] }
 0x196   :  { %4708 = vmatpush.bf16.msra.mxu2 %v9333_v60 }
 0x198   :  { %4721 = vmatpush.bf16.msra.mxu3 %v9341_v62  ;;  %4683 = vmatpush.bf16.msra.mxu0 %v9316_v2  ;;  %v9356_v62 = vld [vmem:[%s12504_s8 + $0x150] sm:$0xff]  ;;  %v9355_v2 = vld [vmem:[%s12504_s8 + $0x148] sm:$0xff] }
 0x199   :  { %4696 = vmatpush.bf16.msra.mxu1 %v9324_v5 }
 0x19a   :  { %4709 = vmatpush.bf16.msra.mxu2 %v9332_v6 }
 0x19c   :  { %4722 = vmatpush.bf16.msra.mxu3 %v9340_v7  ;;  %4684 = vmatpush.bf16.msra.mxu0 %v9315_v10  ;;  %v9346_v7 = vld [vmem:[%s12504_s8 + $0x100] sm:$0xff] }
 0x19d   :  { %4697 = vmatpush.bf16.msra.mxu1 %v9323_v11  ;;  %v9354_v10 = vld [vmem:[%s12504_s8 + $0x140] sm:$0xff] }
 0x19e   :  { %4710 = vmatpush.bf16.msra.mxu2 %v9331_v14  ;;  %v9362_v11 = vld [vmem:[%s12504_s8 + $0x180] sm:$0xff] }
 0x19f   :  { %v9370_v14 = vld [vmem:[%s12504_s8 + $0x1c0] sm:$0xff] }
 0x1a0   :  { %4723 = vmatpush.bf16.msra.mxu3 %v9339_v15  ;;  %4685 = vmatpush.bf16.msra.mxu0 %v9314_v20  ;;  %v3675_v42 = vpop.f32.mrf.mxu0  ;;  %v9385_v15 = vld [vmem:[%s12504_s8 + $0x238] sm:$0xff] }
 0x1a1   :  { %4698 = vmatpush.bf16.msra.mxu1 %v9322_v21  ;;  %v3676_v43 = vadd.f32 %v3675_v42, %v11641_v4  ;;  %v9371_v4 = vld [vmem:[%s12504_s8 + $0x1c8] sm:$0xff]  ;;  %v9409_v20 = vld [vmem:[%s12504_s8 + $0x2f8] sm:$0xff]  ;;  %v9384_v21 = vld [vmem:[%s12504_s8 + $0x230] sm:$0xff] }
 0x1a2   :  { %4711 = vmatpush.bf16.msra.mxu2 %v9330_v22  ;;  %v9392_v22 = vld [vmem:[%s12504_s8 + $0x270] sm:$0xff] }
 0x1a3   :  { %4686 = vmatmul.bf16.vlgmr.msra.gmra.mxu0 %v3876_v30  ;;  %v3688_v45 = vpop.f32.mrf.mxu1  ;;  %v9380_v42 = vld [vmem:[%s12504_s8 + $0x210] sm:$0xff] }
 0x1a4   :  { %4724 = vmatpush.bf16.msra.mxu3 %v9338_v23  ;;  %4730 = vmatpush.bf16.msrb.mxu0 %v9353_v25  ;;  %v3689_v48 = vadd.f32 %v3688_v45, %v3676_v43  ;;  %v9400_v23 = vld [vmem:[%s12504_s8 + $0x2b0] sm:$0xff] }
 0x1a5   :  { %4743 = vmatpush.bf16.msrb.mxu1 %v9361_v26  ;;  %4712 = vmatmul.bf16.vlgmr.msra.gmra.mxu2 %v3878_v31  ;;  %v9408_v25 = vld [vmem:[%s12504_s8 + $0x2f0] sm:$0xff]  ;;  %v9383_v26 = vld [vmem:[%s12504_s8 + $0x228] sm:$0xff] }
 0x1a6   :  { %4756 = vmatpush.bf16.msrb.mxu2 %v9369_v27  ;;  %4699 = vmatmul.bf16.vlgmr.msra.gmra.mxu1 %v3877_v32  ;;  %v9391_v27 = vld [vmem:[%s12504_s8 + $0x268] sm:$0xff]  ;;  %v9382_v32 = vld [vmem:[%s12504_s8 + $0x220] sm:$0xff]  ;;  %v9388_v45 = vld [vmem:[%s12504_s8 + $0x250] sm:$0xff] }
 0x1a7   :  { %4725 = vmatmul.bf16.vlgmr.msra.gmra.mxu3 %v3879_v33 }
 0x1a8   :  { %4769 = vmatpush.bf16.msrb.mxu3 %v9377_v28  ;;  %4731 = vmatpush.bf16.msrb.mxu0 %v9352_v34  ;;  %v3701_v53 = vpop.f32.mrf.mxu2  ;;  %v3677_v58 = vpop.f32.mrf.mxu0  ;;  %v9399_v28 = vld [vmem:[%s12504_s8 + $0x2a8] sm:$0xff]  ;;  %v9390_v34 = vld [vmem:[%s12504_s8 + $0x260] sm:$0xff] }
 0x1a9   :  { %4744 = vmatpush.bf16.msrb.mxu1 %v9360_v35  ;;  %v3702_v55 = vadd.f32 %v3701_v53, %v3689_v48  ;;  %v9398_v35 = vld [vmem:[%s12504_s8 + $0x2a0] sm:$0xff]  ;;  %v9379_v48 = vld [vmem:[%s12504_s8 + $0x208] sm:$0xff] }
 0x1aa   :  { %4757 = vmatpush.bf16.msrb.mxu2 %v9368_v36  ;;  %v3714_v57 = vpop.f32.mrf.mxu3  ;;  %v9402_v58 = vld [vmem:[%s12504_s8 + $0x2c0] sm:$0xff] }
 0x1ab   :  { %v3690_v60 = vpop.f32.mrf.mxu1  ;;  %v3715_v61 = vadd.f32 %v3714_v57, %v3702_v55  ;;  %v9386_v55 = vld [vmem:[%s12504_s8 + $0x240] sm:$0xff] }
 0x1ac   :  { %4770 = vmatpush.bf16.msrb.mxu3 %v9376_v9  ;;  %4732 = vmatpush.bf16.msrb.mxu0 %v9351_v13  ;;  %v9405_v13 = vld [vmem:[%s12504_s8 + $0x2d8] sm:$0xff]  ;;  %v9394_v57 = vld [vmem:[%s12504_s8 + $0x280] sm:$0xff] }
 0x1ad   :  { %4745 = vmatpush.bf16.msrb.mxu1 %v9359_v40  ;;  %v9425_v60 = vld [vmem:[%s12504_s8 + $0x378] sm:$0xff] }
 0x1ae   :  { %4758 = vmatpush.bf16.msrb.mxu2 %v9367_v16 }
 0x1b0   :  { %4771 = vmatpush.bf16.msrb.mxu3 %v9375_v17  ;;  %4733 = vmatpush.bf16.msrb.mxu0 %v9350_v44  ;;  %v3703_v5 = vpop.f32.mrf.mxu2 }
 0x1b1   :  { %4746 = vmatpush.bf16.msrb.mxu1 %v9358_v46  ;;  %v9396_v46 = vld [vmem:[%s12504_s8 + $0x290] sm:$0xff] }
 0x1b2   :  { %4759 = vmatpush.bf16.msrb.mxu2 %v9366_v47  ;;  %v3716_v6 = vpop.f32.mrf.mxu3  ;;  %v9404_v47 = vld [vmem:[%s12504_s8 + $0x2d0] sm:$0xff] }
 0x1b3   :  { %v9432_v5 = vld [vmem:[%s12504_s8 + $0x3b0] sm:$0xff] }
 0x1b4   :  { %4772 = vmatpush.bf16.msrb.mxu3 %v9374_v49  ;;  %4734 = vmatpush.bf16.msrb.mxu0 %v9349_v50  ;;  %v9387_v49 = vld [vmem:[%s12504_s8 + $0x248] sm:$0xff]  ;;  %v9440_v6 = vld [vmem:[%s12504_s8 + $0x3f0] sm:$0xff] }
 0x1b5   :  { %4747 = vmatpush.bf16.msrb.mxu1 %v9357_v51  ;;  %v9395_v50 = vld [vmem:[%s12504_s8 + $0x288] sm:$0xff] }
 0x1b6   :  { %4760 = vmatpush.bf16.msrb.mxu2 %v9365_v52  ;;  %v9403_v51 = vld [vmem:[%s12504_s8 + $0x2c8] sm:$0xff] }
 0x1b8   :  { %4773 = vmatpush.bf16.msrb.mxu3 %v9373_v54  ;;  %4735 = vmatpush.bf16.msrb.mxu0 %v9348_v59  ;;  %v9378_v54 = vld [vmem:[%s12504_s8 + $0x200] sm:$0xff]  ;;  %v9417_v59 = vld [vmem:[%s12504_s8 + $0x338] sm:$0xff] }
 0x1b9   :  { %4748 = vmatpush.bf16.msrb.mxu1 %v9356_v62  ;;  %v9441_v62 = vld [vmem:[%s12504_s8 + $0x3f8] sm:$0xff] }
 0x1ba   :  { %4761 = vmatpush.bf16.msrb.mxu2 %v9364_v63  ;;  %v3886_v63 = vld [vmem:[#allocation1] sm:$0xff] }
 0x1bc   :  { %4774 = vmatpush.bf16.msrb.mxu3 %v9372_v0  ;;  %4736 = vmatpush.bf16.msrb.mxu0 %v9347_v1  ;;  %v3888_v0 = vld [vmem:[#allocation1 + $0x12] sm:$0xff]  ;;  %v3887_v1 = vld [vmem:[#allocation1 + $0x9] sm:$0xff] }
 0x1bd   :  { %4749 = vmatpush.bf16.msrb.mxu1 %v9355_v2  ;;  %v9416_v2 = vld [vmem:[%s12504_s8 + $0x330] sm:$0xff] }
 0x1be   :  { %4762 = vmatpush.bf16.msrb.mxu2 %v9363_v3  ;;  %v3889_v3 = vld [vmem:[#allocation1 + $0x1b] sm:$0xff] }
 0x1c0   :  { %4775 = vmatpush.bf16.msrb.mxu3 %v9371_v4  ;;  %4737 = vmatpush.bf16.msrb.mxu0 %v9346_v7  ;;  %v3727_v30 = vpop.f32.mrf.mxu0  ;;  %v9424_v4 = vld [vmem:[%s12504_s8 + $0x370] sm:$0xff]  ;;  %v9415_v7 = vld [vmem:[%s12504_s8 + $0x328] sm:$0xff] }
 0x1c1   :  { %4750 = vmatpush.bf16.msrb.mxu1 %v9354_v10  ;;  %v3728_v31 = vadd.f32 %v3727_v30, %v3715_v61  ;;  %v9433_v61 = vld [vmem:[%s12504_s8 + $0x3b8] sm:$0xff]  ;;  %v9423_v10 = vld [vmem:[%s12504_s8 + $0x368] sm:$0xff] }
 0x1c2   :  { %4763 = vmatpush.bf16.msrb.mxu2 %v9362_v11  ;;  %v9431_v11 = vld [vmem:[%s12504_s8 + $0x3a8] sm:$0xff]  ;;  %v9437_v30 = vld [vmem:[%s12504_s8 + $0x3d8] sm:$0xff] }
 0x1c3   :  { %4738 = vmatmul.bf16.vlgmr.msrb.gmra.mxu0 %v11700_v37  ;;  %v3740_v33 = vpop.f32.mrf.mxu1  ;;  %v9406_v37 = vld [vmem:[%s12504_s8 + $0x2e0] sm:$0xff] }
 0x1c4   :  { %4776 = vmatpush.bf16.msrb.mxu3 %v9370_v14  ;;  %4782 = vmatpush.bf16.msra.mxu0 %v9385_v15  ;;  %v3741_v36 = vadd.f32 %v3740_v33, %v3728_v31  ;;  %v9439_v14 = vld [vmem:[%s12504_s8 + $0x3e8] sm:$0xff] }
 0x1c5   :  { %4795 = vmatpush.bf16.msra.mxu1 %v9393_v18  ;;  %4764 = vmatmul.bf16.vlgmr.msrb.gmra.mxu2 %v11702_v38  ;;  %v9381_v38 = vld [vmem:[%s12504_s8 + $0x218] sm:$0xff] }
 0x1c6   :  { %4808 = vmatpush.bf16.msra.mxu2 %v9401_v19  ;;  %4751 = vmatmul.bf16.vlgmr.msrb.gmra.mxu1 %v11704_v39  ;;  %v9389_v39 = vld [vmem:[%s12504_s8 + $0x258] sm:$0xff]  ;;  %v9414_v19 = vld [vmem:[%s12504_s8 + $0x320] sm:$0xff] }
 0x1c7   :  { %4777 = vmatmul.bf16.vlgmr.msrb.gmra.mxu3 %v11706_v8  ;;  %v9397_v8 = vld [vmem:[%s12504_s8 + $0x298] sm:$0xff] }
 0x1c8   :  { %4821 = vmatpush.bf16.msra.mxu3 %v9409_v20  ;;  %4783 = vmatpush.bf16.msra.mxu0 %v9384_v21  ;;  %v3753_v9 = vpop.f32.mrf.mxu2  ;;  %v3729_v17 = vpop.f32.mrf.mxu0  ;;  %v9422_v21 = vld [vmem:[%s12504_s8 + $0x360] sm:$0xff] }
 0x1c9   :  { %4796 = vmatpush.bf16.msra.mxu1 %v9392_v22  ;;  %v3754_v40 = vadd.f32 %v3753_v9, %v3741_v36  ;;  %v9430_v22 = vld [vmem:[%s12504_s8 + $0x3a0] sm:$0xff]  ;;  %v9419_v9 = vld [vmem:[%s12504_s8 + $0x348] sm:$0xff] }
 0x1ca   :  { %4809 = vmatpush.bf16.msra.mxu2 %v9400_v23  ;;  %v3766_v16 = vpop.f32.mrf.mxu3 }
 0x1cb   :  { %v3742_v43 = vpop.f32.mrf.mxu1  ;;  %v3767_v44 = vadd.f32 %v3766_v16, %v3754_v40  ;;  %v9435_v40 = vld [vmem:[%s12504_s8 + $0x3c8] sm:$0xff] }
 0x1cc   :  { %4822 = vmatpush.bf16.msra.mxu3 %v9408_v25  ;;  %4784 = vmatpush.bf16.msra.mxu0 %v9383_v26  ;;  %v9438_v25 = vld [vmem:[%s12504_s8 + $0x3e0] sm:$0xff]  ;;  %v9413_v26 = vld [vmem:[%s12504_s8 + $0x318] sm:$0xff] }
 0x1cd   :  { %4797 = vmatpush.bf16.msra.mxu1 %v9391_v27  ;;  %v9421_v27 = vld [vmem:[%s12504_s8 + $0x358] sm:$0xff]  ;;  %v9418_v43 = vld [vmem:[%s12504_s8 + $0x340] sm:$0xff] }
 0x1ce   :  { %4810 = vmatpush.bf16.msra.mxu2 %v9399_v28  ;;  %v9429_v28 = vld [vmem:[%s12504_s8 + $0x398] sm:$0xff] }
 0x1d0   :  { %4823 = vmatpush.bf16.msra.mxu3 %v9407_v29  ;;  %4785 = vmatpush.bf16.msra.mxu0 %v9382_v32  ;;  %v3755_v52 = vpop.f32.mrf.mxu2 }
 0x1d1   :  { %4798 = vmatpush.bf16.msra.mxu1 %v9390_v34  ;;  %v9412_v34 = vld [vmem:[%s12504_s8 + $0x310] sm:$0xff]  ;;  %v3891_v52 = vld [vmem:[#allocation1 + $0x2d] sm:$0xff] }
 0x1d2   :  { %4811 = vmatpush.bf16.msra.mxu2 %v9398_v35  ;;  %v3768_v53 = vpop.f32.mrf.mxu3 }
 0x1d3   :  { %v9704_v53 = vld [vmem:[%s12505_s7 + $0x30] sm:$0xff] }
 0x1d4   :  { %4824 = vmatpush.bf16.msra.mxu3 %v9406_v37  ;;  %4786 = vmatpush.bf16.msra.mxu0 %v9381_v38  ;;  %v9420_v37 = vld [vmem:[%s12504_s8 + $0x350] sm:$0xff] }
 0x1d5   :  { %4799 = vmatpush.bf16.msra.mxu1 %v9389_v39  ;;  %v9428_v38 = vld [vmem:[%s12504_s8 + $0x390] sm:$0xff] }
 0x1d6   :  { %4812 = vmatpush.bf16.msra.mxu2 %v9397_v8  ;;  %v9436_v39 = vld [vmem:[%s12504_s8 + $0x3d0] sm:$0xff]  ;;  %v9411_v8 = vld [vmem:[%s12504_s8 + $0x308] sm:$0xff] }
 0x1d8   :  { %4825 = vmatpush.bf16.msra.mxu3 %v9405_v13  ;;  %4787 = vmatpush.bf16.msra.mxu0 %v9380_v42  ;;  %v9427_v13 = vld [vmem:[%s12504_s8 + $0x388] sm:$0xff]  ;;  %v9410_v42 = vld [vmem:[%s12504_s8 + $0x300] sm:$0xff] }
 0x1d9   :  { %4800 = vmatpush.bf16.msra.mxu1 %v9388_v45  ;;  %v9434_v45 = vld [vmem:[%s12504_s8 + $0x3c0] sm:$0xff] }
 0x1da   :  { %4813 = vmatpush.bf16.msra.mxu2 %v9396_v46  ;;  %v9705_v46 = vld [vmem:[%s12505_s7 + $0x38] sm:$0xff] }
 0x1dc   :  { %4826 = vmatpush.bf16.msra.mxu3 %v9404_v47  ;;  %4788 = vmatpush.bf16.msra.mxu0 %v9379_v48  ;;  %v9713_v47 = vld [vmem:[%s12505_s7 + $0x78] sm:$0xff] }
 0x1dd   :  { %4801 = vmatpush.bf16.msra.mxu1 %v9387_v49  ;;  %v9721_v48 = vld [vmem:[%s12505_s7 + $0xb8] sm:$0xff] }
 0x1de   :  { %4814 = vmatpush.bf16.msra.mxu2 %v9395_v50  ;;  %v9729_v49 = vld [vmem:[%s12505_s7 + $0xf8] sm:$0xff] }
 0x1df   :  { %v3890_v50 = vld [vmem:[#allocation1 + $0x24] sm:$0xff] }
 0x1e0   :  { %4827 = vmatpush.bf16.msra.mxu3 %v9403_v51  ;;  %4789 = vmatpush.bf16.msra.mxu0 %v9378_v54  ;;  %v3779_v15 = vpop.f32.mrf.mxu0  ;;  %v3892_v51 = vld [vmem:[#allocation1 + $0x36] sm:$0xff]  ;;  %v3893_v54 = vld [vmem:[#allocation1 + $0x3f] sm:$0xff] }
 0x1e1   :  { %4802 = vmatpush.bf16.msra.mxu1 %v9386_v55  ;;  %v3780_v18 = vadd.f32 %v3779_v15, %v3767_v44  ;;  %v9426_v44 = vld [vmem:[%s12504_s8 + $0x380] sm:$0xff]  ;;  %v9712_v55 = vld [vmem:[%s12505_s7 + $0x70] sm:$0xff] }
 0x1e2   :  { %4815 = vmatpush.bf16.msra.mxu2 %v9394_v57  ;;  %v9720_v57 = vld [vmem:[%s12505_s7 + $0xb0] sm:$0xff] }
 0x1e3   :  { %4790 = vmatmul.bf16.vlgmr.msra.gmra.mxu0 %v3886_v63  ;;  %v3792_v20 = vpop.f32.mrf.mxu1 }
 0x1e4   :  { %4828 = vmatpush.bf16.msra.mxu3 %v9402_v58  ;;  %4834 = vmatpush.bf16.msrb.mxu0 %v9417_v59  ;;  %v3793_v23 = vadd.f32 %v3792_v20, %v3780_v18  ;;  %v9728_v58 = vld [vmem:[%s12505_s7 + $0xf0] sm:$0xff]  ;;  %v9703_v59 = vld [vmem:[%s12505_s7 + $0x28] sm:$0xff]  ;;  %v9725_v18 = vld [vmem:[%s12505_s7 + $0xd8] sm:$0xff] }
 0x1e5   :  { %4847 = vmatpush.bf16.msrb.mxu1 %v9425_v60  ;;  %4816 = vmatmul.bf16.vlgmr.msra.gmra.mxu2 %v3888_v0  ;;  %v9711_v60 = vld [vmem:[%s12505_s7 + $0x68] sm:$0xff] }
 0x1e6   :  { %4860 = vmatpush.bf16.msrb.mxu2 %v9433_v61  ;;  %4803 = vmatmul.bf16.vlgmr.msra.gmra.mxu1 %v3887_v1  ;;  %v9719_v61 = vld [vmem:[%s12505_s7 + $0xa8] sm:$0xff]  ;;  %v9702_v1 = vld [vmem:[%s12505_s7 + $0x20] sm:$0xff] }
 0x1e7   :  { %4829 = vmatmul.bf16.vlgmr.msra.gmra.mxu3 %v3889_v3  ;;  %v9710_v3 = vld [vmem:[%s12505_s7 + $0x60] sm:$0xff] }
 0x1e8   :  { %4873 = vmatpush.bf16.msrb.mxu3 %v9441_v62  ;;  %4835 = vmatpush.bf16.msrb.mxu0 %v9416_v2  ;;  %v3805_v29 = vpop.f32.mrf.mxu2  ;;  %v3781_v33 = vpop.f32.mrf.mxu0  ;;  %v9727_v62 = vld [vmem:[%s12505_s7 + $0xe8] sm:$0xff] }
 0x1e9   :  { %4848 = vmatpush.bf16.msrb.mxu1 %v9424_v4  ;;  %v3806_v31 = vadd.f32 %v3805_v29, %v3793_v23  ;;  %v9718_v4 = vld [vmem:[%s12505_s7 + $0xa0] sm:$0xff]  ;;  %v9699_v29 = vld [vmem:[%s12505_s7 + $0x8] sm:$0xff] }
 0x1ea   :  { %4861 = vmatpush.bf16.msrb.mxu2 %v9432_v5  ;;  %v3818_v32 = vpop.f32.mrf.mxu3 }
 0x1eb   :  { %v3794_v35 = vpop.f32.mrf.mxu1  ;;  %v3819_v36 = vadd.f32 %v3818_v32, %v3806_v31  ;;  %v9715_v31 = vld [vmem:[%s12505_s7 + $0x88] sm:$0xff] }
 0x1ec   :  { %4874 = vmatpush.bf16.msrb.mxu3 %v9440_v6  ;;  %4836 = vmatpush.bf16.msrb.mxu0 %v9415_v7  ;;  %v9726_v6 = vld [vmem:[%s12505_s7 + $0xe0] sm:$0xff]  ;;  %v9723_v32 = vld [vmem:[%s12505_s7 + $0xc8] sm:$0xff] }
 0x1ed   :  { %4849 = vmatpush.bf16.msrb.mxu1 %v9423_v10  ;;  %v4886_v7 = vld [vmem:[%s12506_s1] sm:$0xff]  ;;  %v9701_v10 = vld [vmem:[%s12505_s7 + $0x18] sm:$0xff] }
 0x1ee   :  { %4862 = vmatpush.bf16.msrb.mxu2 %v9431_v11  ;;  %5145 = vst [vmem:[#allocation1] ss:$9 sm:$0xff] %v4886_v7  ;;  %v9709_v11 = vld [vmem:[%s12505_s7 + $0x58] sm:$0xff]  ;;  %v9698_v35 = vld [vmem:[%s12505_s7] sm:$0xff] }
 0x1f0   :  { %4875 = vmatpush.bf16.msrb.mxu3 %v9439_v14  ;;  %4837 = vmatpush.bf16.msrb.mxu0 %v9414_v19  ;;  %v3807_v16 = vpop.f32.mrf.mxu2  ;;  %v9717_v14 = vld [vmem:[%s12505_s7 + $0x98] sm:$0xff] }
 0x1f1   :  { %4850 = vmatpush.bf16.msrb.mxu1 %v9422_v21  ;;  %v9736_v16 = vld [vmem:[%s12505_s7 + $0x130] sm:$0xff] }
 0x1f2   :  { %4863 = vmatpush.bf16.msrb.mxu2 %v9430_v22  ;;  %v3820_v17 = vpop.f32.mrf.mxu3  ;;  %v9700_v22 = vld [vmem:[%s12505_s7 + $0x10] sm:$0xff] }
 0x1f4   :  { %4876 = vmatpush.bf16.msrb.mxu3 %v9438_v25  ;;  %4838 = vmatpush.bf16.msrb.mxu0 %v9413_v26  ;;  %v9708_v26 = vld [vmem:[%s12505_s7 + $0x50] sm:$0xff] }
 0x1f5   :  { %4851 = vmatpush.bf16.msrb.mxu1 %v9421_v27  ;;  %v9716_v27 = vld [vmem:[%s12505_s7 + $0x90] sm:$0xff] }
 0x1f6   :  { %4864 = vmatpush.bf16.msrb.mxu2 %v9429_v28  ;;  %v9724_v28 = vld [vmem:[%s12505_s7 + $0xd0] sm:$0xff] }
 0x1f7   :  { %v5146_v17 = vld [vmem:[#allocation1] sm:$0xff] }
 0x1f8   :  { %4877 = vmatpush.bf16.msrb.mxu3 %v9437_v30  ;;  %4839 = vmatpush.bf16.msrb.mxu0 %v9412_v34  ;;  %v9707_v30 = vld [vmem:[%s12505_s7 + $0x48] sm:$0xff] }
 0x1f9   :  { %4852 = vmatpush.bf16.msrb.mxu1 %v9420_v37  ;;  %v9714_v37 = vld [vmem:[%s12505_s7 + $0x80] sm:$0xff] }
 0x1fa   :  { %4865 = vmatpush.bf16.msrb.mxu2 %v9428_v38  ;;  %v9722_v38 = vld [vmem:[%s12505_s7 + $0xc0] sm:$0xff] }
 0x1fc   :  { %4878 = vmatpush.bf16.msrb.mxu3 %v9436_v39  ;;  %4840 = vmatpush.bf16.msrb.mxu0 %v9411_v8  ;;  %v9737_v39 = vld [vmem:[%s12505_s7 + $0x138] sm:$0xff] }
 0x1fd   :  { %4853 = vmatpush.bf16.msrb.mxu1 %v9419_v9  ;;  %v9745_v8 = vld [vmem:[%s12505_s7 + $0x178] sm:$0xff] }
 0x1fe   :  { %4866 = vmatpush.bf16.msrb.mxu2 %v9427_v13  ;;  %v9753_v9 = vld [vmem:[%s12505_s7 + $0x1b8] sm:$0xff] }
 0x1ff   :  { %v9761_v13 = vld [vmem:[%s12505_s7 + $0x1f8] sm:$0xff] }
 0x200   :  { %4879 = vmatpush.bf16.msrb.mxu3 %v9435_v40  ;;  %4841 = vmatpush.bf16.msrb.mxu0 %v9410_v42  ;;  %v3831_v63 = vpop.f32.mrf.mxu0  ;;  %v5148_v40 = vld [vmem:[#allocation1 + $0x12] sm:$0xff]  ;;  %v5149_v42 = vld [vmem:[#allocation1 + $0x1b] sm:$0xff] }
 0x201   :  { %4854 = vmatpush.bf16.msrb.mxu1 %v9418_v43  ;;  %v3832_v0 = vadd.f32 %v3831_v63, %v3819_v36  ;;  %v9706_v36 = vld [vmem:[%s12505_s7 + $0x40] sm:$0xff]  ;;  %v9744_v43 = vld [vmem:[%s12505_s7 + $0x170] sm:$0xff] }
 0x202   :  { %4867 = vmatpush.bf16.msrb.mxu2 %v9426_v44  ;;  %v9752_v44 = vld [vmem:[%s12505_s7 + $0x1b0] sm:$0xff] }
 0x203   :  { %4842 = vmatmul.bf16.vlgmr.msrb.gmra.mxu0 %v3890_v50  ;;  %v3844_v2 = vpop.f32.mrf.mxu1  ;;  %v9759_v50 = vld [vmem:[%s12505_s7 + $0x1e8] sm:$0xff] }
 0x204   :  { %4880 = vmatpush.bf16.msrb.mxu3 %v9434_v45  ;;  %5948 = vmatpush.bf16.msra.mxu0 %v9705_v46  ;;  %v3845_v5 = vadd.f32 %v3844_v2, %v3832_v0  ;;  %v5147_v45 = vld [vmem:[#allocation1 + $0x9] sm:$0xff]  ;;  %v9760_v46 = vld [vmem:[%s12505_s7 + $0x1f0] sm:$0xff] }
 0x205   :  { %5961 = vmatpush.bf16.msra.mxu1 %v9713_v47  ;;  %4868 = vmatmul.bf16.vlgmr.msrb.gmra.mxu2 %v3892_v51  ;;  %v9735_v47 = vld [vmem:[%s12505_s7 + $0x128] sm:$0xff]  ;;  %v9758_v0 = vld [vmem:[%s12505_s7 + $0x1e0] sm:$0xff]  ;;  %v9741_v2 = vld [vmem:[%s12505_s7 + $0x158] sm:$0xff] }
 0x206   :  { %5974 = vmatpush.bf16.msra.mxu2 %v9721_v48  ;;  %4855 = vmatmul.bf16.vlgmr.msrb.gmra.mxu1 %v3891_v52  ;;  %v9743_v48 = vld [vmem:[%s12505_s7 + $0x168] sm:$0xff] }
 0x207   :  { %4881 = vmatmul.bf16.vlgmr.msrb.gmra.mxu3 %v3893_v54  ;;  %v4887_v51 = vld [vmem:[%s12506_s1 + $0x8] sm:$0xff] }
 0x208   :  { %5987 = vmatpush.bf16.msra.mxu3 %v9729_v49  ;;  %5949 = vmatpush.bf16.msra.mxu0 %v9704_v53  ;;  %v3857_v15 = vpop.f32.mrf.mxu2  ;;  %v3833_v21 = vpop.f32.mrf.mxu0  ;;  %v9751_v49 = vld [vmem:[%s12505_s7 + $0x1a8] sm:$0xff]  ;;  %v9734_v53 = vld [vmem:[%s12505_s7 + $0x120] sm:$0xff] }
 0x209   :  { %5962 = vmatpush.bf16.msra.mxu1 %v9712_v55  ;;  %v3858_v19 = vadd.f32 %v3857_v15, %v3845_v5  ;;  %v12121_v54 = vld [vmem:[#allocation1 + $0x36] sm:$0xff]  ;;  %v9757_v5 = vld [vmem:[%s12505_s7 + $0x1d8] sm:$0xff] }
 0x20a   :  { %5975 = vmatpush.bf16.msra.mxu2 %v9720_v57  ;;  %v3870_v20 = vpop.f32.mrf.mxu3  ;;  %v9731_v21 = vld [vmem:[%s12505_s7 + $0x108] sm:$0xff] }
 0x20b   :  { %v3846_v23 = vpop.f32.mrf.mxu1  ;;  %v3871_v25 = vadd.f32 %v3870_v20, %v3858_v19  ;;  %v9748_v19 = vld [vmem:[%s12505_s7 + $0x190] sm:$0xff] }
 0x20c   :  { %5988 = vmatpush.bf16.msra.mxu3 %v9728_v58  ;;  %5950 = vmatpush.bf16.msra.mxu0 %v9703_v59  ;;  %v12123_v58 = vld [vmem:[#allocation1 + $0x24] sm:$0xff]  ;;  %v9747_v23 = vld [vmem:[%s12505_s7 + $0x188] sm:$0xff] }
 0x20d   :  { %5963 = vmatpush.bf16.msra.mxu1 %v9711_v60  ;;  %v12125_v59 = vld [vmem:[#allocation1 + $0x3f] sm:$0xff]  ;;  %v12127_v60 = vld [vmem:[#allocation1 + $0x2d] sm:$0xff] }
 0x20e   :  { %5976 = vmatpush.bf16.msra.mxu2 %v9719_v61  ;;  %v9742_v61 = vld [vmem:[%s12505_s7 + $0x160] sm:$0xff]  ;;  %5155 = vst [vmem:[#allocation1] ss:$9 sm:$0xff] %v4887_v51  ;;  %v9756_v20 = vld [vmem:[%s12505_s7 + $0x1d0] sm:$0xff] }
 0x210   :  { %5989 = vmatpush.bf16.msra.mxu3 %v9727_v62  ;;  %5951 = vmatpush.bf16.msra.mxu0 %v9702_v1  ;;  %v3859_v33 = vpop.f32.mrf.mxu2  ;;  %v9750_v62 = vld [vmem:[%s12505_s7 + $0x1a0] sm:$0xff]  ;;  %v9733_v1 = vld [vmem:[%s12505_s7 + $0x118] sm:$0xff] }
 0x211   :  { %5964 = vmatpush.bf16.msra.mxu1 %v9710_v3  ;;  %v9749_v3 = vld [vmem:[%s12505_s7 + $0x198] sm:$0xff] }
 0x212   :  { %5977 = vmatpush.bf16.msra.mxu2 %v9718_v4  ;;  %v3872_v34 = vpop.f32.mrf.mxu3  ;;  %v9777_v33 = vld [vmem:[%s12505_s7 + $0x278] sm:$0xff] }
 0x213   :  { %v9785_v34 = vld [vmem:[%s12505_s7 + $0x2b8] sm:$0xff] }
 0x214   :  { %5990 = vmatpush.bf16.msra.mxu3 %v9726_v6  ;;  %5952 = vmatpush.bf16.msra.mxu0 %v9701_v10 }
 0x215   :  { %5965 = vmatpush.bf16.msra.mxu1 %v9709_v11  ;;  %v9732_v11 = vld [vmem:[%s12505_s7 + $0x110] sm:$0xff] }
 0x216   :  { %5978 = vmatpush.bf16.msra.mxu2 %v9717_v14 }
 0x218   :  { %5991 = vmatpush.bf16.msra.mxu3 %v9725_v18  ;;  %5953 = vmatpush.bf16.msra.mxu0 %v9700_v22  ;;  %v9740_v18 = vld [vmem:[%s12505_s7 + $0x150] sm:$0xff]  ;;  %v9739_v22 = vld [vmem:[%s12505_s7 + $0x148] sm:$0xff] }
 0x219   :  { %5966 = vmatpush.bf16.msra.mxu1 %v9708_v26 }
 0x21a   :  { %5979 = vmatpush.bf16.msra.mxu2 %v9716_v27 }
 0x21c   :  { %5992 = vmatpush.bf16.msra.mxu3 %v9724_v28  ;;  %5954 = vmatpush.bf16.msra.mxu0 %v9699_v29  ;;  %v9730_v28 = vld [vmem:[%s12505_s7 + $0x100] sm:$0xff] }
 0x21d   :  { %5967 = vmatpush.bf16.msra.mxu1 %v9707_v30  ;;  %v9738_v29 = vld [vmem:[%s12505_s7 + $0x140] sm:$0xff] }
 0x21e   :  { %5980 = vmatpush.bf16.msra.mxu2 %v9715_v31  ;;  %v9746_v30 = vld [vmem:[%s12505_s7 + $0x180] sm:$0xff] }
 0x21f   :  { %v9754_v31 = vld [vmem:[%s12505_s7 + $0x1c0] sm:$0xff] }
 0x220   :  { %5993 = vmatpush.bf16.msra.mxu3 %v9723_v32  ;;  %5955 = vmatpush.bf16.msra.mxu0 %v9698_v35  ;;  %v4687_v52 = vpop.f32.mrf.mxu0  ;;  %v9769_v32 = vld [vmem:[%s12505_s7 + $0x238] sm:$0xff] }
 0x221   :  { %5968 = vmatpush.bf16.msra.mxu1 %v9706_v36  ;;  %v4688_v55 = vadd.f32 %v4687_v52, %v3871_v25  ;;  %v9755_v25 = vld [vmem:[%s12505_s7 + $0x1c8] sm:$0xff]  ;;  %v9793_v35 = vld [vmem:[%s12505_s7 + $0x2f8] sm:$0xff]  ;;  %v9768_v36 = vld [vmem:[%s12505_s7 + $0x230] sm:$0xff] }
 0x222   :  { %5981 = vmatpush.bf16.msra.mxu2 %v9714_v37  ;;  %v9776_v37 = vld [vmem:[%s12505_s7 + $0x270] sm:$0xff]  ;;  %v9789_v52 = vld [vmem:[%s12505_s7 + $0x2d8] sm:$0xff] }
 0x223   :  { %5956 = vmatmul.bf16.vlgmr.msra.gmra.mxu0 %v5146_v17  ;;  %v4700_v57 = vpop.f32.mrf.mxu1 }
 0x224   :  { %5994 = vmatpush.bf16.msra.mxu3 %v9722_v38  ;;  %6000 = vmatpush.bf16.msrb.mxu0 %v9737_v39  ;;  %v4701_v63 = vadd.f32 %v4700_v57, %v4688_v55  ;;  %v9784_v38 = vld [vmem:[%s12505_s7 + $0x2b0] sm:$0xff] }
 0x225   :  { %6013 = vmatpush.bf16.msrb.mxu1 %v9745_v8  ;;  %5982 = vmatmul.bf16.vlgmr.msra.gmra.mxu2 %v5148_v40  ;;  %v9792_v39 = vld [vmem:[%s12505_s7 + $0x2f0] sm:$0xff]  ;;  %v9767_v8 = vld [vmem:[%s12505_s7 + $0x228] sm:$0xff] }
 0x226   :  { %6026 = vmatpush.bf16.msrb.mxu2 %v9753_v9  ;;  %5969 = vmatmul.bf16.vlgmr.msra.gmra.mxu1 %v5147_v45  ;;  %v9775_v9 = vld [vmem:[%s12505_s7 + $0x268] sm:$0xff]  ;;  %v9782_v45 = vld [vmem:[%s12505_s7 + $0x2a0] sm:$0xff]  ;;  %v9764_v57 = vld [vmem:[%s12505_s7 + $0x210] sm:$0xff] }
 0x227   :  { %5995 = vmatmul.bf16.vlgmr.msra.gmra.mxu3 %v5149_v42  ;;  %v9791_v40 = vld [vmem:[%s12505_s7 + $0x2e8] sm:$0xff]  ;;  %v9766_v42 = vld [vmem:[%s12505_s7 + $0x220] sm:$0xff] }
 0x228   :  { %6039 = vmatpush.bf16.msrb.mxu3 %v9761_v13  ;;  %6001 = vmatpush.bf16.msrb.mxu0 %v9736_v16  ;;  %v4713_v4 = vpop.f32.mrf.mxu2  ;;  %v4689_v10 = vpop.f32.mrf.mxu0  ;;  %v9783_v13 = vld [vmem:[%s12505_s7 + $0x2a8] sm:$0xff] }
 0x229   :  { %6014 = vmatpush.bf16.msrb.mxu1 %v9744_v43  ;;  %v4714_v6 = vadd.f32 %v4713_v4, %v4701_v63  ;;  %v9763_v63 = vld [vmem:[%s12505_s7 + $0x208] sm:$0xff]  ;;  %v9786_v10 = vld [vmem:[%s12505_s7 + $0x2c0] sm:$0xff] }
 0x22a   :  { %6027 = vmatpush.bf16.msrb.mxu2 %v9752_v44  ;;  %v4726_v7 = vpop.f32.mrf.mxu3  ;;  %v9774_v44 = vld [vmem:[%s12505_s7 + $0x260] sm:$0xff] }
 0x22b   :  { %v4702_v14 = vpop.f32.mrf.mxu1  ;;  %v4727_v15 = vadd.f32 %v4726_v7, %v4714_v6  ;;  %v9770_v6 = vld [vmem:[%s12505_s7 + $0x240] sm:$0xff] }
 0x22c   :  { %6040 = vmatpush.bf16.msrb.mxu3 %v9760_v46  ;;  %6002 = vmatpush.bf16.msrb.mxu0 %v9735_v47  ;;  %v9790_v47 = vld [vmem:[%s12505_s7 + $0x2e0] sm:$0xff]  ;;  %v9809_v14 = vld [vmem:[%s12505_s7 + $0x378] sm:$0xff] }
 0x22d   :  { %6015 = vmatpush.bf16.msrb.mxu1 %v9743_v48  ;;  %v9765_v48 = vld [vmem:[%s12505_s7 + $0x218] sm:$0xff]  ;;  %v9778_v7 = vld [vmem:[%s12505_s7 + $0x280] sm:$0xff] }
 0x22e   :  { %6028 = vmatpush.bf16.msrb.mxu2 %v9751_v49  ;;  %v9773_v49 = vld [vmem:[%s12505_s7 + $0x258] sm:$0xff] }
 0x230   :  { %6041 = vmatpush.bf16.msrb.mxu3 %v9759_v50  ;;  %6003 = vmatpush.bf16.msrb.mxu0 %v9734_v53  ;;  %v4715_v26 = vpop.f32.mrf.mxu2  ;;  %v9781_v50 = vld [vmem:[%s12505_s7 + $0x298] sm:$0xff] }
 0x231   :  { %6016 = vmatpush.bf16.msrb.mxu1 %v9742_v61  ;;  %v9780_v61 = vld [vmem:[%s12505_s7 + $0x290] sm:$0xff] }
 0x232   :  { %6029 = vmatpush.bf16.msrb.mxu2 %v9750_v62  ;;  %v4728_v27 = vpop.f32.mrf.mxu3  ;;  %v9788_v62 = vld [vmem:[%s12505_s7 + $0x2d0] sm:$0xff] }
 0x233   :  { %v9816_v26 = vld [vmem:[%s12505_s7 + $0x3b0] sm:$0xff] }
 0x234   :  { %6042 = vmatpush.bf16.msrb.mxu3 %v9758_v0  ;;  %6004 = vmatpush.bf16.msrb.mxu0 %v9733_v1  ;;  %v9771_v0 = vld [vmem:[%s12505_s7 + $0x248] sm:$0xff]  ;;  %v9824_v27 = vld [vmem:[%s12505_s7 + $0x3f0] sm:$0xff] }
 0x235   :  { %6017 = vmatpush.bf16.msrb.mxu1 %v9741_v2  ;;  %v9779_v1 = vld [vmem:[%s12505_s7 + $0x288] sm:$0xff] }
 0x236   :  { %6030 = vmatpush.bf16.msrb.mxu2 %v9749_v3  ;;  %v9787_v2 = vld [vmem:[%s12505_s7 + $0x2c8] sm:$0xff] }
 0x238   :  { %6043 = vmatpush.bf16.msrb.mxu3 %v9757_v5  ;;  %6005 = vmatpush.bf16.msrb.mxu0 %v9732_v11  ;;  %v9762_v5 = vld [vmem:[%s12505_s7 + $0x200] sm:$0xff]  ;;  %v9801_v11 = vld [vmem:[%s12505_s7 + $0x338] sm:$0xff] }
 0x239   :  { %6018 = vmatpush.bf16.msrb.mxu1 %v9740_v18  ;;  %v9825_v18 = vld [vmem:[%s12505_s7 + $0x3f8] sm:$0xff] }
 0x23a   :  { %6031 = vmatpush.bf16.msrb.mxu2 %v9748_v19  ;;  %v5156_v19 = vld [vmem:[#allocation1] sm:$0xff] }
 0x23c   :  { %6044 = vmatpush.bf16.msrb.mxu3 %v9756_v20  ;;  %6006 = vmatpush.bf16.msrb.mxu0 %v9731_v21  ;;  %v5158_v20 = vld [vmem:[#allocation1 + $0x12] sm:$0xff]  ;;  %v5157_v21 = vld [vmem:[#allocation1 + $0x9] sm:$0xff] }
 0x23d   :  { %6019 = vmatpush.bf16.msrb.mxu1 %v9739_v22  ;;  %v9800_v22 = vld [vmem:[%s12505_s7 + $0x330] sm:$0xff] }
 0x23e   :  { %6032 = vmatpush.bf16.msrb.mxu2 %v9747_v23  ;;  %v5159_v23 = vld [vmem:[#allocation1 + $0x1b] sm:$0xff] }
 0x240   :  { %6045 = vmatpush.bf16.msrb.mxu3 %v9755_v25  ;;  %6007 = vmatpush.bf16.msrb.mxu0 %v9730_v28  ;;  %v4739_v16 = vpop.f32.mrf.mxu0  ;;  %v9808_v25 = vld [vmem:[%s12505_s7 + $0x370] sm:$0xff]  ;;  %v9799_v28 = vld [vmem:[%s12505_s7 + $0x328] sm:$0xff] }
 0x241   :  { %6020 = vmatpush.bf16.msrb.mxu1 %v9738_v29  ;;  %v4740_v17 = vadd.f32 %v4739_v16, %v4727_v15  ;;  %v9817_v15 = vld [vmem:[%s12505_s7 + $0x3b8] sm:$0xff]  ;;  %v9807_v29 = vld [vmem:[%s12505_s7 + $0x368] sm:$0xff] }
 0x242   :  { %6033 = vmatpush.bf16.msrb.mxu2 %v9746_v30  ;;  %v9815_v30 = vld [vmem:[%s12505_s7 + $0x3a8] sm:$0xff]  ;;  %v9821_v16 = vld [vmem:[%s12505_s7 + $0x3d8] sm:$0xff] }
 0x243   :  { %6008 = vmatmul.bf16.vlgmr.msrb.gmra.mxu0 %v12123_v58  ;;  %v4752_v43 = vpop.f32.mrf.mxu1 }
 0x244   :  { %6046 = vmatpush.bf16.msrb.mxu3 %v9754_v31  ;;  %6052 = vmatpush.bf16.msra.mxu0 %v9769_v32  ;;  %v4753_v46 = vadd.f32 %v4752_v43, %v4740_v17  ;;  %v9823_v31 = vld [vmem:[%s12505_s7 + $0x3e8] sm:$0xff] }
 0x245   :  { %6065 = vmatpush.bf16.msra.mxu1 %v9777_v33  ;;  %6034 = vmatmul.bf16.vlgmr.msrb.gmra.mxu2 %v12121_v54 }
 0x246   :  { %6078 = vmatpush.bf16.msra.mxu2 %v9785_v34  ;;  %6021 = vmatmul.bf16.vlgmr.msrb.gmra.mxu1 %v12127_v60  ;;  %v9772_v60 = vld [vmem:[%s12505_s7 + $0x250] sm:$0xff]  ;;  %v9798_v34 = vld [vmem:[%s12505_s7 + $0x320] sm:$0xff] }
 0x247   :  { %6047 = vmatmul.bf16.vlgmr.msrb.gmra.mxu3 %v12125_v59 }
 0x248   :  { %6091 = vmatpush.bf16.msra.mxu3 %v9793_v35  ;;  %6053 = vmatpush.bf16.msra.mxu0 %v9768_v36  ;;  %v4765_v51 = vpop.f32.mrf.mxu2  ;;  %v4741_v55 = vpop.f32.mrf.mxu0  ;;  %v9806_v36 = vld [vmem:[%s12505_s7 + $0x360] sm:$0xff] }
 0x249   :  { %6066 = vmatpush.bf16.msra.mxu1 %v9776_v37  ;;  %v4766_v53 = vadd.f32 %v4765_v51, %v4753_v46  ;;  %v9814_v37 = vld [vmem:[%s12505_s7 + $0x3a0] sm:$0xff]  ;;  %v9803_v51 = vld [vmem:[%s12505_s7 + $0x348] sm:$0xff] }
 0x24a   :  { %6079 = vmatpush.bf16.msra.mxu2 %v9784_v38  ;;  %v4778_v54 = vpop.f32.mrf.mxu3 }
 0x24b   :  { %v4754_v58 = vpop.f32.mrf.mxu1  ;;  %v4779_v59 = vadd.f32 %v4778_v54, %v4766_v53  ;;  %v9819_v53 = vld [vmem:[%s12505_s7 + $0x3c8] sm:$0xff] }
 0x24c   :  { %6092 = vmatpush.bf16.msra.mxu3 %v9792_v39  ;;  %6054 = vmatpush.bf16.msra.mxu0 %v9767_v8  ;;  %v9822_v39 = vld [vmem:[%s12505_s7 + $0x3e0] sm:$0xff]  ;;  %v9797_v8 = vld [vmem:[%s12505_s7 + $0x318] sm:$0xff] }
 0x24d   :  { %6067 = vmatpush.bf16.msra.mxu1 %v9775_v9  ;;  %v9805_v9 = vld [vmem:[%s12505_s7 + $0x358] sm:$0xff]  ;;  %v9794_v58 = vld [vmem:[%s12505_s7 + $0x300] sm:$0xff] }
 0x24e   :  { %6080 = vmatpush.bf16.msra.mxu2 %v9783_v13  ;;  %v9813_v13 = vld [vmem:[%s12505_s7 + $0x398] sm:$0xff] }
 0x250   :  { %6093 = vmatpush.bf16.msra.mxu3 %v9791_v40  ;;  %6055 = vmatpush.bf16.msra.mxu0 %v9766_v42  ;;  %v4767_v3 = vpop.f32.mrf.mxu2 }
 0x251   :  { %6068 = vmatpush.bf16.msra.mxu1 %v9774_v44  ;;  %v9796_v44 = vld [vmem:[%s12505_s7 + $0x310] sm:$0xff]  ;;  %v9849_v3 = vld [vmem:[%s12507_s9 + $0xb8] sm:$0xff] }
 0x252   :  { %6081 = vmatpush.bf16.msra.mxu2 %v9782_v45  ;;  %v4780_v4 = vpop.f32.mrf.mxu3 }
 0x254   :  { %6094 = vmatpush.bf16.msra.mxu3 %v9790_v47  ;;  %6056 = vmatpush.bf16.msra.mxu0 %v9765_v48  ;;  %v9804_v47 = vld [vmem:[%s12505_s7 + $0x350] sm:$0xff] }
 0x255   :  { %6069 = vmatpush.bf16.msra.mxu1 %v9773_v49  ;;  %v9812_v48 = vld [vmem:[%s12505_s7 + $0x390] sm:$0xff] }
 0x256   :  { %6082 = vmatpush.bf16.msra.mxu2 %v9781_v50  ;;  %v9820_v49 = vld [vmem:[%s12505_s7 + $0x3d0] sm:$0xff]  ;;  %v9795_v50 = vld [vmem:[%s12505_s7 + $0x308] sm:$0xff] }
 0x258   :  { %6095 = vmatpush.bf16.msra.mxu3 %v9789_v52  ;;  %6057 = vmatpush.bf16.msra.mxu0 %v9764_v57  ;;  %v9811_v52 = vld [vmem:[%s12505_s7 + $0x388] sm:$0xff]  ;;  %v1052_v57 = vsub.f32 0.0, %v10942_v41 }
 0x259   :  { %6070 = vmatpush.bf16.msra.mxu1 %v9772_v60  ;;  %v9802_v60 = vld [vmem:[%s12505_s7 + $0x340] sm:$0xff] }
 0x25a   :  { %6083 = vmatpush.bf16.msra.mxu2 %v9780_v61  ;;  %v9810_v61 = vld [vmem:[%s12505_s7 + $0x380] sm:$0xff]  ;;  %v1056_v4 = vmul.f32 1.442695, %v1052_v57  ;;  %v9835_v57 = vld [vmem:[%s12507_s9 + $0x48] sm:$0xff] }
 0x25c   :  { %6096 = vmatpush.bf16.msra.mxu3 %v9788_v62  ;;  %6058 = vmatpush.bf16.msra.mxu0 %v9763_v63  ;;  %v1054_v62 = vsub.f32 0.0, %v11143_v12  ;;  %v9818_v63 = vld [vmem:[%s12505_s7 + $0x3c0] sm:$0xff]  ;;  %9859 = vpow2.f32 %v1056_v4 }
 0x25d   :  { %6071 = vmatpush.bf16.msra.mxu1 %v9771_v0  ;;  %v9833_v0 = vld [vmem:[%s12507_s9 + $0x38] sm:$0xff]  ;;  %v9842_v4 = vld [vmem:[%s12507_s9 + $0x80] sm:$0xff] }
 0x25e   :  { %6084 = vmatpush.bf16.msra.mxu2 %v9779_v1  ;;  %v1055_v1 = vsub.f32 0.0, %v11246_v56 }
 0x260   :  { %6097 = vmatpush.bf16.msra.mxu3 %v9787_v2  ;;  %6059 = vmatpush.bf16.msra.mxu0 %v9762_v5  ;;  %v4791_v32 = vpop.f32.mrf.mxu0  ;;  %v9841_v2 = vld [vmem:[%s12507_s9 + $0x78] sm:$0xff] }
 0x261   :  { %6072 = vmatpush.bf16.msra.mxu1 %v9770_v6  ;;  %v4792_v33 = vadd.f32 %v4791_v32, %v4779_v59  ;;  %v1053_v59 = vsub.f32 0.0, %v11036_v24  ;;  %v9857_v5 = vld [vmem:[%s12507_s9 + $0xf8] sm:$0xff] }
 0x262   :  { %6085 = vmatpush.bf16.msra.mxu2 %v9778_v7  ;;  %v5160_v7 = vld [vmem:[#allocation1 + $0x24] sm:$0xff] }
 0x263   :  { %6060 = vmatmul.bf16.vlgmr.msra.gmra.mxu0 %v5156_v19  ;;  %v4804_v35 = vpop.f32.mrf.mxu1  ;;  %v1058_v6 = vmul.f32 1.442695, %v1053_v59  ;;  %v5163_v19 = vld [vmem:[#allocation1 + $0x3f] sm:$0xff] }
 0x264   :  { %6098 = vmatpush.bf16.msra.mxu3 %v9786_v10  ;;  %6104 = vmatpush.bf16.msrb.mxu0 %v9801_v11  ;;  %v4805_v38 = vadd.f32 %v4804_v35, %v4792_v33  ;;  %v1060_v10 = vmul.f32 1.442695, %v1054_v62  ;;  %v5162_v11 = vld [vmem:[#allocation1 + $0x36] sm:$0xff] }
 0x265   :  { %6117 = vmatpush.bf16.msrb.mxu1 %v9809_v14  ;;  %6086 = vmatmul.bf16.vlgmr.msra.gmra.mxu2 %v5158_v20  ;;  %v5161_v14 = vld [vmem:[#allocation1 + $0x2d] sm:$0xff]  ;;  %v9840_v20 = vld [vmem:[%s12507_s9 + $0x70] sm:$0xff]  ;;  %9861 = vpow2.f32 %v1058_v6 }
 0x266   :  { %6130 = vmatpush.bf16.msrb.mxu2 %v9817_v15  ;;  %6073 = vmatmul.bf16.vlgmr.msra.gmra.mxu1 %v5157_v21  ;;  %v9832_v15 = vld [vmem:[%s12507_s9 + $0x30] sm:$0xff]  ;;  %9863 = vpow2.f32 %v1060_v10  ;;  %v9846_v35 = vld [vmem:[%s12507_s9 + $0xa0] sm:$0xff] }
 0x267   :  { %6099 = vmatmul.bf16.vlgmr.msra.gmra.mxu3 %v5159_v23  ;;  %v9848_v21 = vld [vmem:[%s12507_s9 + $0xb0] sm:$0xff]  ;;  %v9831_v23 = vld [vmem:[%s12507_s9 + $0x28] sm:$0xff] }
 0x268   :  { %6143 = vmatpush.bf16.msrb.mxu3 %v9825_v18  ;;  %6105 = vmatpush.bf16.msrb.mxu0 %v9800_v22  ;;  %v4817_v40 = vpop.f32.mrf.mxu2  ;;  %v4793_v43 = vpop.f32.mrf.mxu0  ;;  %v1062_v18 = vmul.f32 1.442695, %v1055_v1  ;;  %v9856_v22 = vld [vmem:[%s12507_s9 + $0xf0] sm:$0xff]  ;;  %v9826_v1 = vld [vmem:[%s12507_s9] sm:$0xff] }
 0x269   :  { %6118 = vmatpush.bf16.msrb.mxu1 %v9808_v25  ;;  %v4818_v17 = vadd.f32 %v4817_v40, %v4805_v38  ;;  %v9839_v25 = vld [vmem:[%s12507_s9 + $0x68] sm:$0xff]  ;;  %v9854_v38 = vld [vmem:[%s12507_s9 + $0xe0] sm:$0xff] }
 0x26a   :  { %6131 = vmatpush.bf16.msrb.mxu2 %v9816_v26  ;;  %v4830_v42 = vpop.f32.mrf.mxu3  ;;  %9865 = vpow2.f32 %v1062_v18  ;;  %v9847_v26 = vld [vmem:[%s12507_s9 + $0xa8] sm:$0xff] }
 0x26b   :  { %v4806_v45 = vpop.f32.mrf.mxu1  ;;  %v12349_v46 = vadd.f32 %v4830_v42, %v4818_v17  ;;  %v9845_v17 = vld [vmem:[%s12507_s9 + $0x98] sm:$0xff] }
 0x26c   :  { %6144 = vmatpush.bf16.msrb.mxu3 %v9824_v27  ;;  %6106 = vmatpush.bf16.msrb.mxu0 %v9799_v28  ;;  %v9855_v27 = vld [vmem:[%s12507_s9 + $0xe8] sm:$0xff] }
 0x26d   :  { %6119 = vmatpush.bf16.msrb.mxu1 %v9807_v29  ;;  %v9860_v29 = vpop.eup %9859 }
 0x26e   :  { %6132 = vmatpush.bf16.msrb.mxu2 %v9815_v30  ;;  %v9862_v33 = vpop.eup %9861 }
 0x270   :  { %6145 = vmatpush.bf16.msrb.mxu3 %v9823_v31  ;;  %6107 = vmatpush.bf16.msrb.mxu0 %v9798_v34  ;;  %v4819_v54 = vpop.f32.mrf.mxu2  ;;  %v9830_v31 = vld [vmem:[%s12507_s9 + $0x20] sm:$0xff] }
 0x271   :  { %6120 = vmatpush.bf16.msrb.mxu1 %v9806_v36  ;;  %v9838_v34 = vld [vmem:[%s12507_s9 + $0x60] sm:$0xff]  ;;  %v9864_v36 = vpop.eup %9863  ;;  %v9827_v54 = vld [vmem:[%s12507_s9 + $0x8] sm:$0xff] }
 0x272   :  { %6133 = vmatpush.bf16.msrb.mxu2 %v9814_v37  ;;  %v4832_v55 = vpop.f32.mrf.mxu3  ;;  %v1066_v40 = vadd.f32 1.0, %v9864_v36 }
 0x274   :  { %6146 = vmatpush.bf16.msrb.mxu3 %v9822_v39  ;;  %6108 = vmatpush.bf16.msrb.mxu0 %v9797_v8  ;;  %v9866_v39 = vpop.eup %9865  ;;  %v1064_v8 = vadd.f32 1.0, %v9860_v29 }
 0x275   :  { %6121 = vmatpush.bf16.msrb.mxu1 %v9805_v9  ;;  %v1065_v9 = vadd.f32 1.0, %v9862_v33  ;;  %v1067_v42 = vadd.f32 1.0, %v9866_v39 }
 0x276   :  { %6134 = vmatpush.bf16.msrb.mxu2 %v9813_v13  ;;  %v9829_v13 = vld [vmem:[%s12507_s9 + $0x18] sm:$0xff]  ;;  %9867 = vrcp.f32 %v1064_v8 }
 0x277   :  { %9869 = vrcp.f32 %v1065_v9 }
 0x278   :  { %6147 = vmatpush.bf16.msrb.mxu3 %v9821_v16  ;;  %6109 = vmatpush.bf16.msrb.mxu0 %v9796_v44  ;;  %v9837_v16 = vld [vmem:[%s12507_s9 + $0x58] sm:$0xff]  ;;  %9871 = vrcp.f32 %v1066_v40 }
 0x279   :  { %6122 = vmatpush.bf16.msrb.mxu1 %v9804_v47  ;;  %v9853_v44 = vld [vmem:[%s12507_s9 + $0xd8] sm:$0xff]  ;;  %9873 = vrcp.f32 %v1067_v42 }
 0x27a   :  { %6135 = vmatpush.bf16.msrb.mxu2 %v9812_v48  ;;  %v9828_v48 = vld [vmem:[%s12507_s9 + $0x10] sm:$0xff] }
 0x27c   :  { %6148 = vmatpush.bf16.msrb.mxu3 %v9820_v49  ;;  %6110 = vmatpush.bf16.msrb.mxu0 %v9795_v50  ;;  %v9868_v55 = vpop.eup %9867 }
 0x27d   :  { %6123 = vmatpush.bf16.msrb.mxu1 %v9803_v51  ;;  %v9836_v51 = vld [vmem:[%s12507_s9 + $0x50] sm:$0xff]  ;;  %v9870_v59 = vpop.eup %9869 }
 0x27e   :  { %6136 = vmatpush.bf16.msrb.mxu2 %v9811_v52  ;;  %v9844_v52 = vld [vmem:[%s12507_s9 + $0x90] sm:$0xff]  ;;  %v9872_v62 = vpop.eup %9871 }
 0x27f   :  { %v1074_v6 = vmul.f32 %v9872_v62, %v11143_v12 }
 0x280   :  { %6149 = vmatpush.bf16.msrb.mxu3 %v9819_v53  ;;  %6111 = vmatpush.bf16.msrb.mxu0 %v9794_v58  ;;  %v4843_v28 = vpop.f32.mrf.mxu0  ;;  %v9852_v53 = vld [vmem:[%s12507_s9 + $0xd0] sm:$0xff]  ;;  %v9843_v58 = vld [vmem:[%s12507_s9 + $0x88] sm:$0xff] }
 0x281   :  { %6124 = vmatpush.bf16.msrb.mxu1 %v9802_v60  ;;  %v4844_v30 = vadd.f32 %v4843_v28, %v12349_v46  ;;  %v9851_v60 = vld [vmem:[%s12507_s9 + $0xc8] sm:$0xff] }
 0x282   :  { %6137 = vmatpush.bf16.msrb.mxu2 %v9810_v61 }
 0x283   :  { %6112 = vmatmul.bf16.vlgmr.msrb.gmra.mxu0 %v5160_v7  ;;  %v4856_v32 = vpop.f32.mrf.mxu1  ;;  %v9850_v7 = vld [vmem:[%s12507_s9 + $0xc0] sm:$0xff] }
 0x284   :  { %6150 = vmatpush.bf16.msrb.mxu3 %v9818_v63  ;;  %6417 = vmatpush.bf16.msra.mxu0 %v9833_v0  ;;  %v4857_v37 = vadd.f32 %v4856_v32, %v4844_v30  ;;  %v9874_v0 = vpop.eup %9873 }
 0x285   :  { %6430 = vmatpush.bf16.msra.mxu1 %v9841_v2  ;;  %6138 = vmatmul.bf16.vlgmr.msrb.gmra.mxu2 %v5162_v11  ;;  %v1072_v2 = vmul.f32 %v9868_v55, %v10942_v41  ;;  %v1075_v41 = vmul.f32 %v9874_v0, %v11246_v56 }
 0x286   :  { %6443 = vmatpush.bf16.msra.mxu2 %v9849_v3  ;;  %6125 = vmatmul.bf16.vlgmr.msrb.gmra.mxu1 %v5161_v14  ;;  %v9834_v3 = vld [vmem:[%s12507_s9 + $0x40] sm:$0xff]  ;;  %v6159_v14 = vpack.c.bf16 %v1074_v6, %v1074_v6 }
 0x287   :  { %6151 = vmatmul.bf16.vlgmr.msrb.gmra.mxu3 %v5163_v19  ;;  %v6157_v10 = vpack.c.bf16 %v1072_v2, %v1072_v2 }
 0x288   :  { %6456 = vmatpush.bf16.msra.mxu3 %v9857_v5  ;;  %6418 = vmatpush.bf16.msra.mxu0 %v9832_v15  ;;  %v4869_v43 = vpop.f32.mrf.mxu2  ;;  %v4845_v47 = vpop.f32.mrf.mxu0  ;;  %v1073_v5 = vmul.f32 %v9870_v59, %v11036_v24  ;;  %v6160_v15 = vpack.c.bf16 %v1075_v41, %v1075_v41 }
 0x289   :  { %6431 = vmatpush.bf16.msra.mxu1 %v9840_v20  ;;  %v4870_v45 = vadd.f32 %v4869_v43, %v4857_v37 }
 0x28a   :  { %6444 = vmatpush.bf16.msra.mxu2 %v9848_v21  ;;  %v4882_v46 = vpop.f32.mrf.mxu3  ;;  %v6158_v11 = vpack.c.bf16 %v1073_v5, %v1073_v5 }
 0x28b   :  { %v4858_v49 = vpop.f32.mrf.mxu1  ;;  %v12452_v50 = vadd.f32 %v4882_v46, %v4870_v45 }
 0x28c   :  { %6457 = vmatpush.bf16.msra.mxu3 %v9856_v22  ;;  %6419 = vmatpush.bf16.msra.mxu0 %v9831_v23 }
 0x28d   :  { %6432 = vmatpush.bf16.msra.mxu1 %v9839_v25 }
 0x28e   :  { %6445 = vmatpush.bf16.msra.mxu2 %v9847_v26 }
 0x290   :  { %6458 = vmatpush.bf16.msra.mxu3 %v9855_v27  ;;  %6420 = vmatpush.bf16.msra.mxu0 %v9830_v31  ;;  %v4871_v61 = vpop.f32.mrf.mxu2 }
 0x291   :  { %6433 = vmatpush.bf16.msra.mxu1 %v9838_v34 }
 0x292   :  { %6446 = vmatpush.bf16.msra.mxu2 %v9846_v35  ;;  %v4884_v63 = vpop.f32.mrf.mxu3 }
 0x294   :  { %6459 = vmatpush.bf16.msra.mxu3 %v9854_v38  ;;  %6421 = vmatpush.bf16.msra.mxu0 %v9829_v13 }
 0x295   :  { %6434 = vmatpush.bf16.msra.mxu1 %v9837_v16 }
 0x296   :  { %6447 = vmatpush.bf16.msra.mxu2 %v9845_v17 }
 0x298   :  { %6460 = vmatpush.bf16.msra.mxu3 %v9853_v44  ;;  %6422 = vmatpush.bf16.msra.mxu0 %v9828_v48 }
 0x299   :  { %6435 = vmatpush.bf16.msra.mxu1 %v9836_v51 }
 0x29a   :  { %6448 = vmatpush.bf16.msra.mxu2 %v9844_v52 }
 0x29c   :  { %6461 = vmatpush.bf16.msra.mxu3 %v9852_v53  ;;  %6423 = vmatpush.bf16.msra.mxu0 %v9827_v54 }
 0x29d   :  { %6436 = vmatpush.bf16.msra.mxu1 %v9835_v57 }
 0x29e   :  { %6449 = vmatpush.bf16.msra.mxu2 %v9843_v58 }
 0x2a0   :  { %6462 = vmatpush.bf16.msra.mxu3 %v9851_v60  ;;  %6424 = vmatpush.bf16.msra.mxu0 %v9826_v1  ;;  %v5957_v24 = vpop.f32.mrf.mxu0 }
 0x2a1   :  { %6437 = vmatpush.bf16.msra.mxu1 %v9834_v3 }
 0x2a2   :  { %6450 = vmatpush.bf16.msra.mxu2 %v9842_v4 }
 0x2a3   :  { %6425 = vmatmul.bf16.vlgmr.msra.gmra.mxu0 %v6157_v10  ;;  %v5970_v12 = vpop.f32.mrf.mxu1 }
 0x2a4   :  { %6463 = vmatpush.bf16.msra.mxu3 %v9850_v7  ;;  %6438 = vmatmul.bf16.vlgmr.msra.gmra.mxu1 %v6158_v11  ;;  %v5971_v18 = vadd.f32 %v5970_v12, %v5957_v24  ;;  %v9858_v7 = vld [vmem:[%s12508_s10] ss:$0 sm:$0xff] }
 0x2a5   :  { %6451 = vmatmul.bf16.vlgmr.msra.gmra.mxu2 %v6159_v14 }
 0x2a7   :  { %6464 = vmatmul.bf16.vlgmr.msra.gmra.mxu3 %v6160_v15 }
 0x2a8   :  { %v5983_v19 = vpop.f32.mrf.mxu2  ;;  %v5959_v56 = vpop.f32.mrf.mxu0 }
 0x2a9   :  { %v5984_v20 = vadd.f32 %v5983_v19, %v5971_v18  ;;  %v6484_v19 = vlaneseq }
 0x2aa   :  { %v5996_v21 = vpop.f32.mrf.mxu3 }
 0x2ab   :  { %v5997_v22 = vadd.f32 %v5996_v21, %v5984_v20  ;;  %v5972_v23 = vpop.f32.mrf.mxu1  ;;  %v6485_v20 = vand.u32 127, %v6484_v19 }
 0x2ad   :  { %vm6486_vm2 = vcmp.lt.s32.totalorder %v6485_v20, 32 }
 0x2b0   :  { %v5985_v25 = vpop.f32.mrf.mxu2 }
 0x2b2   :  { %v5998_v26 = vpop.f32.mrf.mxu3 }
 0x2c0   :  { %v6009_v27 = vpop.f32.mrf.mxu0 }
 0x2c1   :  { %v6010_v28 = vadd.f32 %v6009_v27, %v5997_v22 }
 0x2c3   :  { %v6022_v29 = vpop.f32.mrf.mxu1 }
 0x2c4   :  { %v6023_v30 = vadd.f32 %v6022_v29, %v6010_v28 }
 0x2c8   :  { %v6035_v31 = vpop.f32.mrf.mxu2  ;;  %v6011_v35 = vpop.f32.mrf.mxu0 }
 0x2c9   :  { %v6036_v32 = vadd.f32 %v6035_v31, %v6023_v30 }
 0x2ca   :  { %v6048_v33 = vpop.f32.mrf.mxu3 }
 0x2cb   :  { %v6049_v34 = vadd.f32 %v6048_v33, %v6036_v32  ;;  %v6024_v36 = vpop.f32.mrf.mxu1 }
 0x2d0   :  { %v6037_v37 = vpop.f32.mrf.mxu2 }
 0x2d2   :  { %v6050_v38 = vpop.f32.mrf.mxu3 }
 0x2e0   :  { %v6061_v39 = vpop.f32.mrf.mxu0 }
 0x2e1   :  { %v6062_v43 = vadd.f32 %v6061_v39, %v6049_v34 }
 0x2e3   :  { %v6074_v8 = vpop.f32.mrf.mxu1 }
 0x2e4   :  { %v6075_v44 = vadd.f32 %v6074_v8, %v6062_v43 }
 0x2e8   :  { %v6087_v9 = vpop.f32.mrf.mxu2  ;;  %v6063_v40 = vpop.f32.mrf.mxu0 }
 0x2e9   :  { %v6088_v45 = vadd.f32 %v6087_v9, %v6075_v44 }
 0x2ea   :  { %v6100_v13 = vpop.f32.mrf.mxu3 }
 0x2eb   :  { %v6076_v16 = vpop.f32.mrf.mxu1  ;;  %v6101_v46 = vadd.f32 %v6100_v13, %v6088_v45 }
 0x2f0   :  { %v6089_v17 = vpop.f32.mrf.mxu2 }
 0x2f2   :  { %v6102_v42 = vpop.f32.mrf.mxu3 }
 0x300   :  { %v6113_v47 = vpop.f32.mrf.mxu0 }
 0x301   :  { %v6114_v49 = vadd.f32 %v6113_v47, %v6101_v46 }
 0x303   :  { %v6126_v48 = vpop.f32.mrf.mxu1 }
 0x304   :  { %v6127_v51 = vadd.f32 %v6126_v48, %v6114_v49 }
 0x308   :  { %v6139_v52 = vpop.f32.mrf.mxu2  ;;  %v6115_v55 = vpop.f32.mrf.mxu0 }
 0x309   :  { %v6140_v53 = vadd.f32 %v6139_v52, %v6127_v51 }
 0x30a   :  { %v6152_v54 = vpop.f32.mrf.mxu3 }
 0x30b   :  { %v6128_v57 = vpop.f32.mrf.mxu1  ;;  %v6153_v58 = vadd.f32 %v6152_v54, %v6140_v53 }
 0x30d   :  { %v6156_v59 = vadd.f32 %v6153_v58, %v12452_v50 }
 0x310   :  { %v6141_v60 = vpop.f32.mrf.mxu2 }
 0x312   :  { %v6154_v61 = vpop.f32.mrf.mxu3 }
 0x320   :  { %v6426_v62 = vpop.f32.mrf.mxu0 }
 0x321   :  { %v6439_v63 = vpop.f32.mrf.mxu1 }
 0x322   :  { %v6440_v0 = vadd.f32 %v6439_v63, %v6426_v62 }
 0x328   :  { %v6452_v1 = vpop.f32.mrf.mxu2  ;;  %v6428_v4 = vpop.f32.mrf.mxu0 }
 0x329   :  { %v6453_v2 = vadd.f32 %v6452_v1, %v6440_v0  ;;  %v6441_v5 = vpop.f32.mrf.mxu1 }
 0x32a   :  { %v6465_v3 = vpop.f32.mrf.mxu3 }
 0x32b   :  { %v6466_v6 = vadd.f32 %v6465_v3, %v6453_v2 }
 0x32d   :  { %v6469_v41 = vadd.f32 %v6466_v6, %v6156_v59 }
 0x32f   :  { %v6474_v10 = vadd.f32 %v9858_v7, %v6469_v41 }
 0x330   :  { %v6454_v11 = vpop.f32.mrf.mxu2 }
 0x331   :  { %v6476_v14 = vand.u32 2147483647, %v6474_v10  ;;  %v6475_v22 = vmax.f32 %v6474_v10, 0.0 }
 0x332   :  { %v6467_v50 = vpop.f32.mrf.mxu3 }
 0x333   :  { %v6477_v15 = vsub.f32 0.0, %v6476_v14 }
 0x335   :  { %v6478_v24 = vmul.f32 1.442695, %v6477_v15 }
 0x337   :  { %9875 = vpow2.f32 %v6478_v24 }
 0x33d   :  { %v9876_v12 = vpop.eup %9875 }
 0x33e   :  { %v6480_v18 = vadd.f32 1.0, %v9876_v12 }
 0x340   :  { %9877 = vlog2.f32 %v6480_v18 }
 0x346   :  { %v9878_v21 = vpop.eup %9877 }
 0x347   :  { %v6482_v56 = vmul.f32 0.6931472, %v9878_v21 }
 0x349   :  { %v6483_v23 = vadd.f32 %v6482_v56, %v6475_v22 }
 0x34b   :  { %v6487_v25 = vsel %vm6486_vm2, %v6474_v10, %v6483_v23 }
 0x34c   :  { %6489 = vst.msk [vmem:[%s12509_s11] sm:$0x3] %vm6488_vm3, %v6487_v25 }

</bundles_post_ra>
